<compile_context>
chip_gen: v7x
topology: tpu7x:2x2x1
jax: 0.10.0
libtpu: 0.0.40
codegen_flags: <defaults>
</compile_context>

<pallas_src>
import numpy as np

import jax
import jax.numpy as jnp
from jax.experimental import pallas as pl
from jax.experimental.pallas import tpu as pltpu


# ----------------------------------------------------------------------------
# Kernel 1: fused conv1 -> conv2 -> conv3 for one stock image per grid step
# ----------------------------------------------------------------------------
def _stock_cnn_kernel(y_ref, w1_ref, b1_ref, w2_ref, b2_ref, w3_ref, b3_ref,
                      o_ref):
    f32 = jnp.float32
    bf16 = jnp.bfloat16

    # conv1 (k=8, s=4), phase-decomposed over the space-to-depth-by-8 input:
    # 4 offset matmuls -> phase-packed activation (12, 16, 4*32).
    acc = jnp.zeros((12 * 16, 128), f32)
    for a in range(2):
        for b in range(2):
            patch = y_ref[0, a:a + 12, b:b + 16, :].reshape(12 * 16, 64)
            acc = acc + jnp.dot(patch.astype(bf16), w1_ref[2 * a + b],
                                preferred_element_type=f32)
    a1 = jnp.maximum(acc + b1_ref[...], 0.0).reshape(12, 16, 128)
    # Columns >= 12 never reach a valid output; pad with zeros so conv2's
    # 24-wide, sublane-aligned patch windows stay in bounds.
    a1 = jnp.concatenate([a1, jnp.zeros((12, 16, 128), f32)], axis=1)

    # conv2 (k=4, s=2) == k'=2, s'=1 over the phase-packed activation.
    acc = jnp.zeros((11 * 24, 64), f32)
    for i in range(2):
        for j in range(2):
            patch = a1[i:i + 11, j:j + 24, :].reshape(11 * 24, 128)
            acc = acc + jnp.dot(patch.astype(bf16), w2_ref[2 * i + j],
                                preferred_element_type=f32)
    a2 = jnp.maximum(acc + b2_ref[...], 0.0).reshape(11, 24, 64)

    # conv3 (k=3, s=1). Rows (h*16 + w) with w >= 9 are harmless junk that is
    # zeroed out by the fc weight layout.
    acc = jnp.zeros((9 * 16, 64), f32)
    for kh in range(3):
        for kw in range(3):
            patch = a2[kh:kh + 9, kw:kw + 16, :].reshape(9 * 16, 64)
            acc = acc + jnp.dot(patch.astype(bf16), w3_ref[3 * kh + kw],
                                preferred_element_type=f32)
    a3 = jnp.maximum(acc + b3_ref[...], 0.0)
    o_ref[...] = a3.reshape(1, 9 * 16, 64).astype(o_ref.dtype)


def stock_encoder_convs(kp, y8):
    n_img = y8.shape[0]
    flops = n_img * 2 * (4 * 192 * 64 * 128 + 4 * 264 * 128 * 64
                         + 9 * 144 * 64 * 64)
    bytes_accessed = int(y8.size * 4 + n_img * 144 * 64 * 2 + 210_000)
    return pl.pallas_call(
        _stock_cnn_kernel,
        out_shape=jax.ShapeDtypeStruct((n_img, 144, 64), jnp.bfloat16),
        grid=(n_img,),
        in_specs=[
            pl.BlockSpec((1, 13, 17, 64), lambda n: (n, 0, 0, 0)),  # image
            pl.BlockSpec((4, 64, 128), lambda n: (0, 0, 0)),        # conv1 w
            pl.BlockSpec((1, 128), lambda n: (0, 0)),               # conv1 b
            pl.BlockSpec((4, 128, 64), lambda n: (0, 0, 0)),        # conv2 w
            pl.BlockSpec((1, 64), lambda n: (0, 0)),                # conv2 b
            pl.BlockSpec((9, 64, 64), lambda n: (0, 0, 0)),         # conv3 w
            pl.BlockSpec((1, 64), lambda n: (0, 0)),                # conv3 b
        ],
        out_specs=pl.BlockSpec((1, 144, 64), lambda n: (n, 0, 0)),
        compiler_params=pltpu.CompilerParams(
            dimension_semantics=("parallel",)),
        cost_estimate=pl.CostEstimate(flops=flops, transcendentals=0,
                                      bytes_accessed=bytes_accessed),
    )(y8, kp["w1"], kp["b1"], kp["w2"], kp["b2"], kp["w3"], kp["b3"])


# ----------------------------------------------------------------------------
# Kernel 2: fused fc + mean-over-stocks + product encoder + both heads
# ----------------------------------------------------------------------------
def _fc_heads_kernel(a3_ref, wfc_ref, bfc_ref, prod_ref, wp1_ref, bp1_ref,
                     wp2_ref, bp2_ref, ms_ref, mp_ref, wsh1_ref, wsh2_ref,
                     bsh_ref, wph1_ref, wph2_ref, bph_ref,
                     sl_ref, pl_out_ref):
    f32 = jnp.float32

    # Stock fc (bf16 MXU, f32 epilogue) then mean over stocks via a tiny
    # precomputed averaging matmul (no reshape needed).
    se = jnp.maximum(jnp.dot(a3_ref[...], wfc_ref[...],
                             preferred_element_type=f32) + bfc_ref[...], 0.0)
    ss = jnp.dot(ms_ref[...], se, preferred_element_type=f32)       # (B, 128)

    # Product encoder: fc1 (K=3) as 3 broadcast VPU FMAs, fc2 on the MXU.
    prod = prod_ref[...]
    wp1 = wp1_ref[...]
    h = (prod[:, 0:1] * wp1[0:1, :] + prod[:, 1:2] * wp1[1:2, :]
         + prod[:, 2:3] * wp1[2:3, :] + bp1_ref[...])
    h = jnp.maximum(h, 0.0)
    pe = jnp.maximum(jnp.dot(h, wp2_ref[...], preferred_element_type=f32)
                     + bp2_ref[...], 0.0)
    ps = jnp.dot(mp_ref[...], pe, preferred_element_type=f32)       # (B, 32)

    # Heads: [ss | ps] @ W  ==  ss @ W[:128] + ps @ W[128:]
    sl_ref[...] = (jnp.dot(ss, wsh1_ref[...], preferred_element_type=f32)
                   + jnp.dot(ps, wsh2_ref[...], preferred_element_type=f32)
                   + bsh_ref[...])
    pl_out_ref[...] = (jnp.dot(ss, wph1_ref[...], preferred_element_type=f32)
                       + jnp.dot(ps, wph2_ref[...], preferred_element_type=f32)
                       + bph_ref[...])


def fc_and_heads(kp, a3_flat, prod_flat, B, S, P):
    ns = kp["stock_head_w1"].shape[1]
    npd = kp["product_head_w1"].shape[1]
    ms = jnp.repeat(jnp.eye(B, dtype=jnp.float32), S, axis=1) / S   # (B, B*S)
    mp = jnp.repeat(jnp.eye(B, dtype=jnp.float32), P, axis=1) / P   # (B, B*P)

    def spec(x):
        return pl.BlockSpec(x.shape, lambda i: (0,) * x.ndim)

    args = (a3_flat, kp["fc_w"], kp["fc_b"], prod_flat, kp["pfc1_w"],
            kp["pfc1_b"], kp["pfc2_w"], kp["pfc2_b"], ms, mp,
            kp["stock_head_w1"], kp["stock_head_w2"], kp["stock_head_b"],
            kp["product_head_w1"], kp["product_head_w2"],
            kp["product_head_b"])
    flops = 2 * a3_flat.shape[0] * a3_flat.shape[1] * 128
    bytes_accessed = int(a3_flat.size * 2 + kp["fc_w"].size * 2 + 50_000)
    return pl.pallas_call(
        _fc_heads_kernel,
        out_shape=(jax.ShapeDtypeStruct((B, ns), jnp.float32),
                   jax.ShapeDtypeStruct((B, npd), jnp.float32)),
        grid=(1,),
        in_specs=[spec(a) for a in args],
        out_specs=(pl.BlockSpec((B, ns), lambda i: (0, 0)),
                   pl.BlockSpec((B, npd), lambda i: (0, 0))),
        compiler_params=pltpu.CompilerParams(
            dimension_semantics=("arbitrary",)),
        cost_estimate=pl.CostEstimate(flops=flops, transcendentals=0,
                                      bytes_accessed=bytes_accessed),
    )(*args)


# ----------------------------------------------------------------------------
# Parameter setup (torch layout) and kernel-layout derivation (one-time, host)
# ----------------------------------------------------------------------------
def init_params(key, num_stocks, num_products):
    keys = jax.random.split(key, 16)

    def u(k, shape, fan_in):
        bound = 1.0 / (fan_in ** 0.5)
        return jax.random.uniform(k, shape, jnp.float32, -bound, bound)

    p = {}
    p["conv1_w"] = u(keys[0], (32, 1, 8, 8), 1 * 8 * 8)
    p["conv1_b"] = u(keys[1], (32,), 1 * 8 * 8)
    p["conv2_w"] = u(keys[2], (64, 32, 4, 4), 32 * 4 * 4)
    p["conv2_b"] = u(keys[3], (64,), 32 * 4 * 4)
    p["conv3_w"] = u(keys[4], (64, 64, 3, 3), 64 * 3 * 3)
    p["conv3_b"] = u(keys[5], (64,), 64 * 3 * 3)
    p["fc_w"] = u(keys[6], (64 * 9 * 9, 128), 64 * 9 * 9)   # stored (in, out)
    p["fc_b"] = u(keys[7], (128,), 64 * 9 * 9)
    p["pfc1_w"] = u(keys[8], (3, 64), 3)
    p["pfc1_b"] = u(keys[9], (64,), 3)
    p["pfc2_w"] = u(keys[10], (64, 32), 64)
    p["pfc2_b"] = u(keys[11], (32,), 64)
    p["stock_head_w"] = u(keys[12], (160, num_stocks), 160)
    p["stock_head_b"] = u(keys[13], (num_stocks,), 160)
    p["product_head_w"] = u(keys[14], (160, num_products), 160)
    p["product_head_b"] = u(keys[15], (num_products,), 160)
    return p


def prepare_kernel_params(params):
    """Derive MXU-friendly weight layouts from torch-layout params (one time)."""
    kp = {}
    bf16 = jnp.bfloat16

    # conv1: phase-decomposed weights over the space-to-depth-by-8 input.
    W1 = np.asarray(params["conv1_w"], np.float32)          # (32, 1, 8, 8)
    w1 = np.zeros((2, 2, 64, 128), np.float32)
    for ph in range(2):
        for pw in range(2):
            for r in range(8):
                for s in range(8):
                    a_off, r8 = divmod(4 * ph + r, 8)
                    b_off, s8 = divmod(4 * pw + s, 8)
                    col = (2 * ph + pw) * 32
                    w1[a_off, b_off, r8 * 8 + s8, col:col + 32] = W1[:, 0, r, s]
    kp["w1"] = jnp.asarray(w1.reshape(4, 64, 128), bf16)
    kp["b1"] = jnp.asarray(np.tile(np.asarray(params["conv1_b"]), 4)[None, :],
                           jnp.float32)

    # conv2: k=4,s=2 becomes k'=2,s=1 over the phase-packed 128-channel input.
    W2 = np.asarray(params["conv2_w"], np.float32)           # (64, 32, 4, 4)
    w2 = np.zeros((2, 2, 128, 64), np.float32)
    for i in range(2):
        for j in range(2):
            for ph in range(2):
                for pw in range(2):
                    row = (2 * ph + pw) * 32
                    w2[i, j, row:row + 32, :] = W2[:, :, 2 * i + ph, 2 * j + pw].T
    kp["w2"] = jnp.asarray(w2.reshape(4, 128, 64), bf16)
    kp["b2"] = jnp.asarray(np.asarray(params["conv2_b"])[None, :], jnp.float32)

    # conv3
    W3 = np.asarray(params["conv3_w"], np.float32)           # (64, 64, 3, 3)
    w3 = np.zeros((9, 64, 64), np.float32)
    for kh in range(3):
        for kw in range(3):
            w3[kh * 3 + kw] = W3[:, :, kh, kw].T
    kp["w3"] = jnp.asarray(w3, bf16)
    kp["b3"] = jnp.asarray(np.asarray(params["conv3_b"])[None, :], jnp.float32)

    # fc: permute rows from torch's (c, h, w) flatten to the kernel's
    # (h, w_pad16, c) flatten; zero the rows of the padded columns.
    Wfc = np.asarray(params["fc_w"], np.float32)             # (5184, 128)
    Wfc = Wfc.reshape(64, 9, 9, 128).transpose(1, 2, 0, 3)   # (h, w, c, o)
    Wfcp = np.zeros((9, 16, 64, 128), np.float32)
    Wfcp[:, :9] = Wfc
    kp["fc_w"] = jnp.asarray(Wfcp.reshape(9 * 16 * 64, 128), bf16)
    kp["fc_b"] = jnp.asarray(np.asarray(params["fc_b"])[None, :], jnp.float32)

    # Product encoder (tiny, kept f32: VPU epilogues stay f32 for v5e).
    kp["pfc1_w"] = jnp.asarray(params["pfc1_w"], jnp.float32)
    kp["pfc1_b"] = jnp.asarray(np.asarray(params["pfc1_b"])[None, :], jnp.float32)
    kp["pfc2_w"] = jnp.asarray(params["pfc2_w"], jnp.float32)
    kp["pfc2_b"] = jnp.asarray(np.asarray(params["pfc2_b"])[None, :], jnp.float32)

    # Heads: split the 160-wide combined matmul into 128/32 halves.
    for name in ("stock", "product"):
        w = np.asarray(params[f"{name}_head_w"], np.float32)  # (160, n_out)
        kp[f"{name}_head_w1"] = jnp.asarray(w[:128], jnp.float32)
        kp[f"{name}_head_w2"] = jnp.asarray(w[128:], jnp.float32)
        kp[f"{name}_head_b"] = jnp.asarray(
            np.asarray(params[f"{name}_head_b"])[None, :], jnp.float32)
    return kp


# ----------------------------------------------------------------------------
# Forward pass (ActorNetwork.forward after obs preprocessing)
# ----------------------------------------------------------------------------
def actor_forward(kp, stocks, products):
    # stocks:   (B, num_stocks, 100, 100) float32
    # products: (B, num_products, 3)      float32
    B, S = stocks.shape[0], stocks.shape[1]
    P = products.shape[1]
    n_img = B * S

    # Host-side layout prep (pure layout, no im2col inflation): zero-pad the
    # 100x100 grid to 104x136 and space-to-depth by the cumulative stride 8.
    x = stocks.reshape(n_img, 100, 100)
    xp = jnp.pad(x, ((0, 0), (0, 4), (0, 36)))
    y8 = xp.reshape(n_img, 13, 8, 17, 8).transpose(0, 1, 3, 2, 4)
    y8 = y8.reshape(n_img, 13, 17, 64)

    a3 = stock_encoder_convs(kp, y8)               # (n_img, 144, 64) bf16
    a3_flat = a3.reshape(n_img, 144 * 64)          # free row-major reshape

    prod_flat = products.reshape(B * P, 3)
    return fc_and_heads(kp, a3_flat, prod_flat, B, S, P)


# Pure-JAX reference for validation (torch-layout params, NCHW convs)
def reference_forward(params, stocks, products):
    B, S = stocks.shape[0], stocks.shape[1]
    P = products.shape[1]
    x = stocks.reshape(B * S, 1, 100, 100)

    def conv(x, w, b, s):
        y = jax.lax.conv_general_dilated(
            x, w, (s, s), "VALID", dimension_numbers=("NCHW", "OIHW", "NCHW"))
        return jax.nn.relu(y + b.reshape(1, -1, 1, 1))

    x = conv(x, params["conv1_w"], params["conv1_b"], 4)
    x = conv(x, params["conv2_w"], params["conv2_b"], 2)
    x = conv(x, params["conv3_w"], params["conv3_b"], 1)
    x = x.reshape(B * S, -1)
    se = jax.nn.relu(x @ params["fc_w"] + params["fc_b"]).reshape(B, S, 128)
    p = products.reshape(B * P, 3)
    p = jax.nn.relu(p @ params["pfc1_w"] + params["pfc1_b"])
    p = jax.nn.relu(p @ params["pfc2_w"] + params["pfc2_b"])
    pe = p.reshape(B, P, 32)
    comb = jnp.concatenate([se.mean(1), pe.mean(1)], axis=-1)
    return (comb @ params["stock_head_w"] + params["stock_head_b"],
            comb @ params["product_head_w"] + params["product_head_b"])


if __name__ == "__main__":
    B, NUM_STOCKS, NUM_PRODUCTS = 2, 4, 5  # small demo sizes (100x100 fixed by arch)
    key = jax.random.PRNGKey(0)
    k_params, k_stocks, k_products = jax.random.split(key, 3)

    params = init_params(k_params, NUM_STOCKS, NUM_PRODUCTS)
    kparams = prepare_kernel_params(params)
    stocks = jax.random.normal(k_stocks, (B, NUM_STOCKS, 100, 100), jnp.float32)
    products = jax.random.uniform(k_products, (B, NUM_PRODUCTS, 3), jnp.float32)

    fwd = jax.jit(actor_forward)
    stock_logits, product_logits = fwd(kparams, stocks, products)
    jax.block_until_ready((stock_logits, product_logits))

    ref_sl, ref_pl = reference_forward(params, stocks, products)
    assert stock_logits.shape == (B, NUM_STOCKS)
    assert product_logits.shape == (B, NUM_PRODUCTS)
    # bf16 MXU path vs f32 reference -> few-percent tolerance is ample.
    assert jnp.allclose(stock_logits, ref_sl, atol=5e-2, rtol=5e-2), (
        float(jnp.max(jnp.abs(stock_logits - ref_sl))))
    assert jnp.allclose(product_logits, ref_pl, atol=5e-2, rtol=5e-2), (
        float(jnp.max(jnp.abs(product_logits - ref_pl))))

    print("KERNEL_OK")
</pallas_src>

<mosaic_0001>
module attributes {stable_mosaic.version = 11 : i64} {
  func.func @_stock_cnn_kernel(%arg0: i32, %arg1: memref<1x13x17x64xf32, #tpu.memory_space<vmem>>, %arg2: memref<4x64x128xbf16, #tpu.memory_space<vmem>>, %arg3: memref<1x128xf32, #tpu.memory_space<vmem>>, %arg4: memref<4x128x64xbf16, #tpu.memory_space<vmem>>, %arg5: memref<1x64xf32, #tpu.memory_space<vmem>>, %arg6: memref<9x64x64xbf16, #tpu.memory_space<vmem>>, %arg7: memref<1x64xf32, #tpu.memory_space<vmem>>, %arg8: memref<1x144x64xbf16, #tpu.memory_space<vmem>>) attributes {dimension_semantics = [#tpu.dimension_semantics<parallel>], iteration_bounds = array<i64: 8>, scalar_prefetch = 0 : i64, scratch_operands = 0 : i64, tpu.core_type = #tpu.core_type<tc>, window_params = [{transform_indices = @transform_0, window_bounds = array<i64: 1, 13, 17, 64>}, {pipeline_mode = #tpu.pipeline_mode<synchronous>, transform_indices = @transform_1, window_bounds = array<i64: 4, 64, 128>}, {pipeline_mode = #tpu.pipeline_mode<synchronous>, transform_indices = @transform_2, window_bounds = array<i64: 1, 128>}, {pipeline_mode = #tpu.pipeline_mode<synchronous>, transform_indices = @transform_3, window_bounds = array<i64: 4, 128, 64>}, {pipeline_mode = #tpu.pipeline_mode<synchronous>, transform_indices = @transform_4, window_bounds = array<i64: 1, 64>}, {pipeline_mode = #tpu.pipeline_mode<synchronous>, transform_indices = @transform_5, window_bounds = array<i64: 9, 64, 64>}, {pipeline_mode = #tpu.pipeline_mode<synchronous>, transform_indices = @transform_6, window_bounds = array<i64: 1, 64>}, {transform_indices = @transform_7, window_bounds = array<i64: 1, 144, 64>}]} {
    %cst = arith.constant 0.000000e+00 : f32
    %0 = vector.broadcast %cst : f32 to vector<192x128xf32>
    %c0 = arith.constant 0 : index
    %c0_0 = arith.constant 0 : index
    %c0_1 = arith.constant 0 : index
    %c0_2 = arith.constant 0 : index
    %1 = vector.load %arg1[%c0, %c0_0, %c0_1, %c0_2] : memref<1x13x17x64xf32, #tpu.memory_space<vmem>>, vector<1x12x16x64xf32>
    %2 = vector.shape_cast %1 : vector<1x12x16x64xf32> to vector<12x16x64xf32>
    %3 = vector.shape_cast %2 : vector<12x16x64xf32> to vector<192x64xf32>
    %4 = arith.truncf %3 : vector<192x64xf32> to vector<192x64xbf16>
    %c0_3 = arith.constant 0 : index
    %c0_4 = arith.constant 0 : index
    %c0_5 = arith.constant 0 : index
    %5 = vector.load %arg2[%c0_3, %c0_4, %c0_5] : memref<4x64x128xbf16, #tpu.memory_space<vmem>>, vector<1x64x128xbf16>
    %6 = vector.shape_cast %5 : vector<1x64x128xbf16> to vector<64x128xbf16>
    %cst_6 = arith.constant dense<0.000000e+00> : vector<192x128xf32>
    %7 = tpu.matmul %4, %6, %cst_6 {dimension_numbers = #tpu.dot_dimension_numbers<[1], [0], [0], [1], [0, 0, 1, 1], [], []>} : vector<192x64xbf16>, vector<64x128xbf16>, vector<192x128xf32> -> vector<192x128xf32>
    %8 = arith.addf %0, %7 : vector<192x128xf32>
    %c0_7 = arith.constant 0 : index
    %c0_8 = arith.constant 0 : index
    %c1 = arith.constant 1 : index
    %c0_9 = arith.constant 0 : index
    %9 = vector.load %arg1[%c0_7, %c0_8, %c1, %c0_9] : memref<1x13x17x64xf32, #tpu.memory_space<vmem>>, vector<1x12x16x64xf32>
    %10 = vector.shape_cast %9 : vector<1x12x16x64xf32> to vector<12x16x64xf32>
    %11 = vector.shape_cast %10 : vector<12x16x64xf32> to vector<192x64xf32>
    %12 = arith.truncf %11 : vector<192x64xf32> to vector<192x64xbf16>
    %c1_10 = arith.constant 1 : index
    %c0_11 = arith.constant 0 : index
    %c0_12 = arith.constant 0 : index
    %13 = vector.load %arg2[%c1_10, %c0_11, %c0_12] : memref<4x64x128xbf16, #tpu.memory_space<vmem>>, vector<1x64x128xbf16>
    %14 = vector.shape_cast %13 : vector<1x64x128xbf16> to vector<64x128xbf16>
    %cst_13 = arith.constant dense<0.000000e+00> : vector<192x128xf32>
    %15 = tpu.matmul %12, %14, %cst_13 {dimension_numbers = #tpu.dot_dimension_numbers<[1], [0], [0], [1], [0, 0, 1, 1], [], []>} : vector<192x64xbf16>, vector<64x128xbf16>, vector<192x128xf32> -> vector<192x128xf32>
    %16 = arith.addf %8, %15 : vector<192x128xf32>
    %c0_14 = arith.constant 0 : index
    %c1_15 = arith.constant 1 : index
    %c0_16 = arith.constant 0 : index
    %c0_17 = arith.constant 0 : index
    %17 = vector.load %arg1[%c0_14, %c1_15, %c0_16, %c0_17] : memref<1x13x17x64xf32, #tpu.memory_space<vmem>>, vector<1x12x16x64xf32>
    %18 = vector.shape_cast %17 : vector<1x12x16x64xf32> to vector<12x16x64xf32>
    %19 = vector.shape_cast %18 : vector<12x16x64xf32> to vector<192x64xf32>
    %20 = arith.truncf %19 : vector<192x64xf32> to vector<192x64xbf16>
    %c2 = arith.constant 2 : index
    %c0_18 = arith.constant 0 : index
    %c0_19 = arith.constant 0 : index
    %21 = vector.load %arg2[%c2, %c0_18, %c0_19] : memref<4x64x128xbf16, #tpu.memory_space<vmem>>, vector<1x64x128xbf16>
    %22 = vector.shape_cast %21 : vector<1x64x128xbf16> to vector<64x128xbf16>
    %cst_20 = arith.constant dense<0.000000e+00> : vector<192x128xf32>
    %23 = tpu.matmul %20, %22, %cst_20 {dimension_numbers = #tpu.dot_dimension_numbers<[1], [0], [0], [1], [0, 0, 1, 1], [], []>} : vector<192x64xbf16>, vector<64x128xbf16>, vector<192x128xf32> -> vector<192x128xf32>
    %24 = arith.addf %16, %23 : vector<192x128xf32>
    %c0_21 = arith.constant 0 : index
    %c1_22 = arith.constant 1 : index
    %c1_23 = arith.constant 1 : index
    %c0_24 = arith.constant 0 : index
    %25 = vector.load %arg1[%c0_21, %c1_22, %c1_23, %c0_24] : memref<1x13x17x64xf32, #tpu.memory_space<vmem>>, vector<1x12x16x64xf32>
    %26 = vector.shape_cast %25 : vector<1x12x16x64xf32> to vector<12x16x64xf32>
    %27 = vector.shape_cast %26 : vector<12x16x64xf32> to vector<192x64xf32>
    %28 = arith.truncf %27 : vector<192x64xf32> to vector<192x64xbf16>
    %c3 = arith.constant 3 : index
    %c0_25 = arith.constant 0 : index
    %c0_26 = arith.constant 0 : index
    %29 = vector.load %arg2[%c3, %c0_25, %c0_26] : memref<4x64x128xbf16, #tpu.memory_space<vmem>>, vector<1x64x128xbf16>
    %30 = vector.shape_cast %29 : vector<1x64x128xbf16> to vector<64x128xbf16>
    %cst_27 = arith.constant dense<0.000000e+00> : vector<192x128xf32>
    %31 = tpu.matmul %28, %30, %cst_27 {dimension_numbers = #tpu.dot_dimension_numbers<[1], [0], [0], [1], [0, 0, 1, 1], [], []>} : vector<192x64xbf16>, vector<64x128xbf16>, vector<192x128xf32> -> vector<192x128xf32>
    %32 = arith.addf %24, %31 : vector<192x128xf32>
    %c0_28 = arith.constant 0 : index
    %c0_29 = arith.constant 0 : index
    %33 = vector.load %arg3[%c0_28, %c0_29] : memref<1x128xf32, #tpu.memory_space<vmem>>, vector<1x128xf32>
    %34 = vector.broadcast %33 : vector<1x128xf32> to vector<192x128xf32>
    %35 = arith.addf %32, %34 : vector<192x128xf32>
    %cst_30 = arith.constant 0.000000e+00 : f32
    %36 = vector.broadcast %cst_30 : f32 to vector<192x128xf32>
    %37 = arith.maximumf %35, %36 : vector<192x128xf32>
    %38 = vector.shape_cast %37 : vector<192x128xf32> to vector<12x16x128xf32>
    %cst_31 = arith.constant 0.000000e+00 : f32
    %39 = vector.broadcast %cst_31 : f32 to vector<12x16x128xf32>
    %40 = tpu.concatenate %38, %39 in 1 : vector<12x16x128xf32>, vector<12x16x128xf32> -> vector<12x32x128xf32>
    %cst_32 = arith.constant 0.000000e+00 : f32
    %41 = vector.broadcast %cst_32 : f32 to vector<264x64xf32>
    %42 = vector.extract_strided_slice %40 {offsets = [0, 0, 0], sizes = [11, 24, 128], strides = [1, 1, 1]} : vector<12x32x128xf32> to vector<11x24x128xf32>
    %43 = vector.shape_cast %42 : vector<11x24x128xf32> to vector<264x128xf32>
    %44 = arith.truncf %43 : vector<264x128xf32> to vector<264x128xbf16>
    %c0_33 = arith.constant 0 : index
    %c0_34 = arith.constant 0 : index
    %c0_35 = arith.constant 0 : index
    %45 = vector.load %arg4[%c0_33, %c0_34, %c0_35] : memref<4x128x64xbf16, #tpu.memory_space<vmem>>, vector<1x128x64xbf16>
    %46 = vector.shape_cast %45 : vector<1x128x64xbf16> to vector<128x64xbf16>
    %cst_36 = arith.constant dense<0.000000e+00> : vector<264x64xf32>
    %47 = tpu.matmul %44, %46, %cst_36 {dimension_numbers = #tpu.dot_dimension_numbers<[1], [0], [0], [1], [0, 0, 1, 1], [], []>} : vector<264x128xbf16>, vector<128x64xbf16>, vector<264x64xf32> -> vector<264x64xf32>
    %48 = arith.addf %41, %47 : vector<264x64xf32>
    %49 = vector.extract_strided_slice %40 {offsets = [0, 1, 0], sizes = [11, 24, 128], strides = [1, 1, 1]} : vector<12x32x128xf32> to vector<11x24x128xf32>
    %50 = vector.shape_cast %49 : vector<11x24x128xf32> to vector<264x128xf32>
    %51 = arith.truncf %50 : vector<264x128xf32> to vector<264x128xbf16>
    %c1_37 = arith.constant 1 : index
    %c0_38 = arith.constant 0 : index
    %c0_39 = arith.constant 0 : index
    %52 = vector.load %arg4[%c1_37, %c0_38, %c0_39] : memref<4x128x64xbf16, #tpu.memory_space<vmem>>, vector<1x128x64xbf16>
    %53 = vector.shape_cast %52 : vector<1x128x64xbf16> to vector<128x64xbf16>
    %cst_40 = arith.constant dense<0.000000e+00> : vector<264x64xf32>
    %54 = tpu.matmul %51, %53, %cst_40 {dimension_numbers = #tpu.dot_dimension_numbers<[1], [0], [0], [1], [0, 0, 1, 1], [], []>} : vector<264x128xbf16>, vector<128x64xbf16>, vector<264x64xf32> -> vector<264x64xf32>
    %55 = arith.addf %48, %54 : vector<264x64xf32>
    %56 = vector.extract_strided_slice %40 {offsets = [1, 0, 0], sizes = [11, 24, 128], strides = [1, 1, 1]} : vector<12x32x128xf32> to vector<11x24x128xf32>
    %57 = vector.shape_cast %56 : vector<11x24x128xf32> to vector<264x128xf32>
    %58 = arith.truncf %57 : vector<264x128xf32> to vector<264x128xbf16>
    %c2_41 = arith.constant 2 : index
    %c0_42 = arith.constant 0 : index
    %c0_43 = arith.constant 0 : index
    %59 = vector.load %arg4[%c2_41, %c0_42, %c0_43] : memref<4x128x64xbf16, #tpu.memory_space<vmem>>, vector<1x128x64xbf16>
    %60 = vector.shape_cast %59 : vector<1x128x64xbf16> to vector<128x64xbf16>
    %cst_44 = arith.constant dense<0.000000e+00> : vector<264x64xf32>
    %61 = tpu.matmul %58, %60, %cst_44 {dimension_numbers = #tpu.dot_dimension_numbers<[1], [0], [0], [1], [0, 0, 1, 1], [], []>} : vector<264x128xbf16>, vector<128x64xbf16>, vector<264x64xf32> -> vector<264x64xf32>
    %62 = arith.addf %55, %61 : vector<264x64xf32>
    %63 = vector.extract_strided_slice %40 {offsets = [1, 1, 0], sizes = [11, 24, 128], strides = [1, 1, 1]} : vector<12x32x128xf32> to vector<11x24x128xf32>
    %64 = vector.shape_cast %63 : vector<11x24x128xf32> to vector<264x128xf32>
    %65 = arith.truncf %64 : vector<264x128xf32> to vector<264x128xbf16>
    %c3_45 = arith.constant 3 : index
    %c0_46 = arith.constant 0 : index
    %c0_47 = arith.constant 0 : index
    %66 = vector.load %arg4[%c3_45, %c0_46, %c0_47] : memref<4x128x64xbf16, #tpu.memory_space<vmem>>, vector<1x128x64xbf16>
    %67 = vector.shape_cast %66 : vector<1x128x64xbf16> to vector<128x64xbf16>
    %cst_48 = arith.constant dense<0.000000e+00> : vector<264x64xf32>
    %68 = tpu.matmul %65, %67, %cst_48 {dimension_numbers = #tpu.dot_dimension_numbers<[1], [0], [0], [1], [0, 0, 1, 1], [], []>} : vector<264x128xbf16>, vector<128x64xbf16>, vector<264x64xf32> -> vector<264x64xf32>
    %69 = arith.addf %62, %68 : vector<264x64xf32>
    %c0_49 = arith.constant 0 : index
    %c0_50 = arith.constant 0 : index
    %70 = vector.load %arg5[%c0_49, %c0_50] : memref<1x64xf32, #tpu.memory_space<vmem>>, vector<1x64xf32>
    %71 = vector.broadcast %70 : vector<1x64xf32> to vector<264x64xf32>
    %72 = arith.addf %69, %71 : vector<264x64xf32>
    %cst_51 = arith.constant 0.000000e+00 : f32
    %73 = vector.broadcast %cst_51 : f32 to vector<264x64xf32>
    %74 = arith.maximumf %72, %73 : vector<264x64xf32>
    %75 = vector.shape_cast %74 : vector<264x64xf32> to vector<11x24x64xf32>
    %cst_52 = arith.constant 0.000000e+00 : f32
    %76 = vector.broadcast %cst_52 : f32 to vector<144x64xf32>
    %77 = vector.extract_strided_slice %75 {offsets = [0, 0, 0], sizes = [9, 16, 64], strides = [1, 1, 1]} : vector<11x24x64xf32> to vector<9x16x64xf32>
    %78 = vector.shape_cast %77 : vector<9x16x64xf32> to vector<144x64xf32>
    %79 = arith.truncf %78 : vector<144x64xf32> to vector<144x64xbf16>
    %c0_53 = arith.constant 0 : index
    %c0_54 = arith.constant 0 : index
    %c0_55 = arith.constant 0 : index
    %80 = vector.load %arg6[%c0_53, %c0_54, %c0_55] : memref<9x64x64xbf16, #tpu.memory_space<vmem>>, vector<1x64x64xbf16>
    %81 = vector.shape_cast %80 : vector<1x64x64xbf16> to vector<64x64xbf16>
    %cst_56 = arith.constant dense<0.000000e+00> : vector<144x64xf32>
    %82 = tpu.matmul %79, %81, %cst_56 {dimension_numbers = #tpu.dot_dimension_numbers<[1], [0], [0], [1], [0, 0, 1, 1], [], []>} : vector<144x64xbf16>, vector<64x64xbf16>, vector<144x64xf32> -> vector<144x64xf32>
    %83 = arith.addf %76, %82 : vector<144x64xf32>
    %84 = vector.extract_strided_slice %75 {offsets = [0, 1, 0], sizes = [9, 16, 64], strides = [1, 1, 1]} : vector<11x24x64xf32> to vector<9x16x64xf32>
    %85 = vector.shape_cast %84 : vector<9x16x64xf32> to vector<144x64xf32>
    %86 = arith.truncf %85 : vector<144x64xf32> to vector<144x64xbf16>
    %c1_57 = arith.constant 1 : index
    %c0_58 = arith.constant 0 : index
    %c0_59 = arith.constant 0 : index
    %87 = vector.load %arg6[%c1_57, %c0_58, %c0_59] : memref<9x64x64xbf16, #tpu.memory_space<vmem>>, vector<1x64x64xbf16>
    %88 = vector.shape_cast %87 : vector<1x64x64xbf16> to vector<64x64xbf16>
    %cst_60 = arith.constant dense<0.000000e+00> : vector<144x64xf32>
    %89 = tpu.matmul %86, %88, %cst_60 {dimension_numbers = #tpu.dot_dimension_numbers<[1], [0], [0], [1], [0, 0, 1, 1], [], []>} : vector<144x64xbf16>, vector<64x64xbf16>, vector<144x64xf32> -> vector<144x64xf32>
    %90 = arith.addf %83, %89 : vector<144x64xf32>
    %91 = vector.extract_strided_slice %75 {offsets = [0, 2, 0], sizes = [9, 16, 64], strides = [1, 1, 1]} : vector<11x24x64xf32> to vector<9x16x64xf32>
    %92 = vector.shape_cast %91 : vector<9x16x64xf32> to vector<144x64xf32>
    %93 = arith.truncf %92 : vector<144x64xf32> to vector<144x64xbf16>
    %c2_61 = arith.constant 2 : index
    %c0_62 = arith.constant 0 : index
    %c0_63 = arith.constant 0 : index
    %94 = vector.load %arg6[%c2_61, %c0_62, %c0_63] : memref<9x64x64xbf16, #tpu.memory_space<vmem>>, vector<1x64x64xbf16>
    %95 = vector.shape_cast %94 : vector<1x64x64xbf16> to vector<64x64xbf16>
    %cst_64 = arith.constant dense<0.000000e+00> : vector<144x64xf32>
    %96 = tpu.matmul %93, %95, %cst_64 {dimension_numbers = #tpu.dot_dimension_numbers<[1], [0], [0], [1], [0, 0, 1, 1], [], []>} : vector<144x64xbf16>, vector<64x64xbf16>, vector<144x64xf32> -> vector<144x64xf32>
    %97 = arith.addf %90, %96 : vector<144x64xf32>
    %98 = vector.extract_strided_slice %75 {offsets = [1, 0, 0], sizes = [9, 16, 64], strides = [1, 1, 1]} : vector<11x24x64xf32> to vector<9x16x64xf32>
    %99 = vector.shape_cast %98 : vector<9x16x64xf32> to vector<144x64xf32>
    %100 = arith.truncf %99 : vector<144x64xf32> to vector<144x64xbf16>
    %c3_65 = arith.constant 3 : index
    %c0_66 = arith.constant 0 : index
    %c0_67 = arith.constant 0 : index
    %101 = vector.load %arg6[%c3_65, %c0_66, %c0_67] : memref<9x64x64xbf16, #tpu.memory_space<vmem>>, vector<1x64x64xbf16>
    %102 = vector.shape_cast %101 : vector<1x64x64xbf16> to vector<64x64xbf16>
    %cst_68 = arith.constant dense<0.000000e+00> : vector<144x64xf32>
    %103 = tpu.matmul %100, %102, %cst_68 {dimension_numbers = #tpu.dot_dimension_numbers<[1], [0], [0], [1], [0, 0, 1, 1], [], []>} : vector<144x64xbf16>, vector<64x64xbf16>, vector<144x64xf32> -> vector<144x64xf32>
    %104 = arith.addf %97, %103 : vector<144x64xf32>
    %105 = vector.extract_strided_slice %75 {offsets = [1, 1, 0], sizes = [9, 16, 64], strides = [1, 1, 1]} : vector<11x24x64xf32> to vector<9x16x64xf32>
    %106 = vector.shape_cast %105 : vector<9x16x64xf32> to vector<144x64xf32>
    %107 = arith.truncf %106 : vector<144x64xf32> to vector<144x64xbf16>
    %c4 = arith.constant 4 : index
    %c0_69 = arith.constant 0 : index
    %c0_70 = arith.constant 0 : index
    %108 = vector.load %arg6[%c4, %c0_69, %c0_70] : memref<9x64x64xbf16, #tpu.memory_space<vmem>>, vector<1x64x64xbf16>
    %109 = vector.shape_cast %108 : vector<1x64x64xbf16> to vector<64x64xbf16>
    %cst_71 = arith.constant dense<0.000000e+00> : vector<144x64xf32>
    %110 = tpu.matmul %107, %109, %cst_71 {dimension_numbers = #tpu.dot_dimension_numbers<[1], [0], [0], [1], [0, 0, 1, 1], [], []>} : vector<144x64xbf16>, vector<64x64xbf16>, vector<144x64xf32> -> vector<144x64xf32>
    %111 = arith.addf %104, %110 : vector<144x64xf32>
    %112 = vector.extract_strided_slice %75 {offsets = [1, 2, 0], sizes = [9, 16, 64], strides = [1, 1, 1]} : vector<11x24x64xf32> to vector<9x16x64xf32>
    %113 = vector.shape_cast %112 : vector<9x16x64xf32> to vector<144x64xf32>
    %114 = arith.truncf %113 : vector<144x64xf32> to vector<144x64xbf16>
    %c5 = arith.constant 5 : index
    %c0_72 = arith.constant 0 : index
    %c0_73 = arith.constant 0 : index
    %115 = vector.load %arg6[%c5, %c0_72, %c0_73] : memref<9x64x64xbf16, #tpu.memory_space<vmem>>, vector<1x64x64xbf16>
    %116 = vector.shape_cast %115 : vector<1x64x64xbf16> to vector<64x64xbf16>
    %cst_74 = arith.constant dense<0.000000e+00> : vector<144x64xf32>
    %117 = tpu.matmul %114, %116, %cst_74 {dimension_numbers = #tpu.dot_dimension_numbers<[1], [0], [0], [1], [0, 0, 1, 1], [], []>} : vector<144x64xbf16>, vector<64x64xbf16>, vector<144x64xf32> -> vector<144x64xf32>
    %118 = arith.addf %111, %117 : vector<144x64xf32>
    %119 = vector.extract_strided_slice %75 {offsets = [2, 0, 0], sizes = [9, 16, 64], strides = [1, 1, 1]} : vector<11x24x64xf32> to vector<9x16x64xf32>
    %120 = vector.shape_cast %119 : vector<9x16x64xf32> to vector<144x64xf32>
    %121 = arith.truncf %120 : vector<144x64xf32> to vector<144x64xbf16>
    %c6 = arith.constant 6 : index
    %c0_75 = arith.constant 0 : index
    %c0_76 = arith.constant 0 : index
    %122 = vector.load %arg6[%c6, %c0_75, %c0_76] : memref<9x64x64xbf16, #tpu.memory_space<vmem>>, vector<1x64x64xbf16>
    %123 = vector.shape_cast %122 : vector<1x64x64xbf16> to vector<64x64xbf16>
    %cst_77 = arith.constant dense<0.000000e+00> : vector<144x64xf32>
    %124 = tpu.matmul %121, %123, %cst_77 {dimension_numbers = #tpu.dot_dimension_numbers<[1], [0], [0], [1], [0, 0, 1, 1], [], []>} : vector<144x64xbf16>, vector<64x64xbf16>, vector<144x64xf32> -> vector<144x64xf32>
    %125 = arith.addf %118, %124 : vector<144x64xf32>
    %126 = vector.extract_strided_slice %75 {offsets = [2, 1, 0], sizes = [9, 16, 64], strides = [1, 1, 1]} : vector<11x24x64xf32> to vector<9x16x64xf32>
    %127 = vector.shape_cast %126 : vector<9x16x64xf32> to vector<144x64xf32>
    %128 = arith.truncf %127 : vector<144x64xf32> to vector<144x64xbf16>
    %c7 = arith.constant 7 : index
    %c0_78 = arith.constant 0 : index
    %c0_79 = arith.constant 0 : index
    %129 = vector.load %arg6[%c7, %c0_78, %c0_79] : memref<9x64x64xbf16, #tpu.memory_space<vmem>>, vector<1x64x64xbf16>
    %130 = vector.shape_cast %129 : vector<1x64x64xbf16> to vector<64x64xbf16>
    %cst_80 = arith.constant dense<0.000000e+00> : vector<144x64xf32>
    %131 = tpu.matmul %128, %130, %cst_80 {dimension_numbers = #tpu.dot_dimension_numbers<[1], [0], [0], [1], [0, 0, 1, 1], [], []>} : vector<144x64xbf16>, vector<64x64xbf16>, vector<144x64xf32> -> vector<144x64xf32>
    %132 = arith.addf %125, %131 : vector<144x64xf32>
    %133 = vector.extract_strided_slice %75 {offsets = [2, 2, 0], sizes = [9, 16, 64], strides = [1, 1, 1]} : vector<11x24x64xf32> to vector<9x16x64xf32>
    %134 = vector.shape_cast %133 : vector<9x16x64xf32> to vector<144x64xf32>
    %135 = arith.truncf %134 : vector<144x64xf32> to vector<144x64xbf16>
    %c8 = arith.constant 8 : index
    %c0_81 = arith.constant 0 : index
    %c0_82 = arith.constant 0 : index
    %136 = vector.load %arg6[%c8, %c0_81, %c0_82] : memref<9x64x64xbf16, #tpu.memory_space<vmem>>, vector<1x64x64xbf16>
    %137 = vector.shape_cast %136 : vector<1x64x64xbf16> to vector<64x64xbf16>
    %cst_83 = arith.constant dense<0.000000e+00> : vector<144x64xf32>
    %138 = tpu.matmul %135, %137, %cst_83 {dimension_numbers = #tpu.dot_dimension_numbers<[1], [0], [0], [1], [0, 0, 1, 1], [], []>} : vector<144x64xbf16>, vector<64x64xbf16>, vector<144x64xf32> -> vector<144x64xf32>
    %139 = arith.addf %132, %138 : vector<144x64xf32>
    %c0_84 = arith.constant 0 : index
    %c0_85 = arith.constant 0 : index
    %140 = vector.load %arg7[%c0_84, %c0_85] : memref<1x64xf32, #tpu.memory_space<vmem>>, vector<1x64xf32>
    %141 = vector.broadcast %140 : vector<1x64xf32> to vector<144x64xf32>
    %142 = arith.addf %139, %141 : vector<144x64xf32>
    %cst_86 = arith.constant 0.000000e+00 : f32
    %143 = vector.broadcast %cst_86 : f32 to vector<144x64xf32>
    %144 = arith.maximumf %142, %143 : vector<144x64xf32>
    %145 = vector.shape_cast %144 : vector<144x64xf32> to vector<1x144x64xf32>
    %146 = arith.truncf %145 : vector<1x144x64xf32> to vector<1x144x64xbf16>
    %c0_87 = arith.constant 0 : index
    %c0_88 = arith.constant 0 : index
    %c0_89 = arith.constant 0 : index
    %147 = vector.load %arg8[%c0_87, %c0_88, %c0_89] : memref<1x144x64xbf16, #tpu.memory_space<vmem>>, vector<1x144x64xbf16>
    tpu.vector_store %arg8[%c0_87, %c0_88, %c0_89], %146 {strides = array<i32>} : memref<1x144x64xbf16, #tpu.memory_space<vmem>>, vector<1x144x64xbf16>,
    return
  }
  func.func @transform_0(%arg0: i32) -> (i32, i32, i32, i32) {
    %c0_i32 = arith.constant 0 : i32
    %c0_i32_0 = arith.constant 0 : i32
    %c0_i32_1 = arith.constant 0 : i32
    %c0_i32_2 = arith.constant 0 : i32
    return %arg0, %c0_i32, %c0_i32_0, %c0_i32_1 : i32, i32, i32, i32
  }
  func.func @transform_1(%arg0: i32) -> (i32, i32, i32) {
    %c0_i32 = arith.constant 0 : i32
    %c0_i32_0 = arith.constant 0 : i32
    %c0_i32_1 = arith.constant 0 : i32
    %c0_i32_2 = arith.constant 0 : i32
    return %c0_i32, %c0_i32_0, %c0_i32_1 : i32, i32, i32
  }
  func.func @transform_2(%arg0: i32) -> (i32, i32) {
    %c0_i32 = arith.constant 0 : i32
    %c0_i32_0 = arith.constant 0 : i32
    %c0_i32_1 = arith.constant 0 : i32
    return %c0_i32, %c0_i32_0 : i32, i32
  }
  func.func @transform_3(%arg0: i32) -> (i32, i32, i32) {
    %c0_i32 = arith.constant 0 : i32
    %c0_i32_0 = arith.constant 0 : i32
    %c0_i32_1 = arith.constant 0 : i32
    %c0_i32_2 = arith.constant 0 : i32
    return %c0_i32, %c0_i32_0, %c0_i32_1 : i32, i32, i32
  }
  func.func @transform_4(%arg0: i32) -> (i32, i32) {
    %c0_i32 = arith.constant 0 : i32
    %c0_i32_0 = arith.constant 0 : i32
    %c0_i32_1 = arith.constant 0 : i32
    return %c0_i32, %c0_i32_0 : i32, i32
  }
  func.func @transform_5(%arg0: i32) -> (i32, i32, i32) {
    %c0_i32 = arith.constant 0 : i32
    %c0_i32_0 = arith.constant 0 : i32
    %c0_i32_1 = arith.constant 0 : i32
    %c0_i32_2 = arith.constant 0 : i32
    return %c0_i32, %c0_i32_0, %c0_i32_1 : i32, i32, i32
  }
  func.func @transform_6(%arg0: i32) -> (i32, i32) {
    %c0_i32 = arith.constant 0 : i32
    %c0_i32_0 = arith.constant 0 : i32
    %c0_i32_1 = arith.constant 0 : i32
    return %c0_i32, %c0_i32_0 : i32, i32
  }
  func.func @transform_7(%arg0: i32) -> (i32, i32, i32) {
    %c0_i32 = arith.constant 0 : i32
    %c0_i32_0 = arith.constant 0 : i32
    %c0_i32_1 = arith.constant 0 : i32
    return %arg0, %c0_i32, %c0_i32_0 : i32, i32, i32
  }
}

module attributes {stable_mosaic.version = 11 : i64} {
  func.func @_fc_heads_kernel(%arg0: i32, %arg1: memref<8x9216xbf16, #tpu.memory_space<vmem>>, %arg2: memref<9216x128xbf16, #tpu.memory_space<vmem>>, %arg3: memref<1x128xf32, #tpu.memory_space<vmem>>, %arg4: memref<10x3xf32, #tpu.memory_space<vmem>>, %arg5: memref<3x64xf32, #tpu.memory_space<vmem>>, %arg6: memref<1x64xf32, #tpu.memory_space<vmem>>, %arg7: memref<64x32xf32, #tpu.memory_space<vmem>>, %arg8: memref<1x32xf32, #tpu.memory_space<vmem>>, %arg9: memref<2x8xf32, #tpu.memory_space<vmem>>, %arg10: memref<2x10xf32, #tpu.memory_space<vmem>>, %arg11: memref<128x4xf32, #tpu.memory_space<vmem>>, %arg12: memref<32x4xf32, #tpu.memory_space<vmem>>, %arg13: memref<1x4xf32, #tpu.memory_space<vmem>>, %arg14: memref<128x5xf32, #tpu.memory_space<vmem>>, %arg15: memref<32x5xf32, #tpu.memory_space<vmem>>, %arg16: memref<1x5xf32, #tpu.memory_space<vmem>>, %arg17: memref<2x4xf32, #tpu.memory_space<vmem>>, %arg18: memref<2x5xf32, #tpu.memory_space<vmem>>) attributes {dimension_semantics = [#tpu.dimension_semantics<arbitrary>], iteration_bounds = array<i64: 1>, scalar_prefetch = 0 : i64, scratch_operands = 0 : i64, tpu.core_type = #tpu.core_type<tc>, window_params = [{pipeline_mode = #tpu.pipeline_mode<synchronous>, transform_indices = @transform_0, window_bounds = array<i64: 8, 9216>}, {pipeline_mode = #tpu.pipeline_mode<synchronous>, transform_indices = @transform_1, window_bounds = array<i64: 9216, 128>}, {pipeline_mode = #tpu.pipeline_mode<synchronous>, transform_indices = @transform_2, window_bounds = array<i64: 1, 128>}, {pipeline_mode = #tpu.pipeline_mode<synchronous>, transform_indices = @transform_3, window_bounds = array<i64: 10, 3>}, {pipeline_mode = #tpu.pipeline_mode<synchronous>, transform_indices = @transform_4, window_bounds = array<i64: 3, 64>}, {pipeline_mode = #tpu.pipeline_mode<synchronous>, transform_indices = @transform_5, window_bounds = array<i64: 1, 64>}, {pipeline_mode = #tpu.pipeline_mode<synchronous>, transform_indices = @transform_6, window_bounds = array<i64: 64, 32>}, {pipeline_mode = #tpu.pipeline_mode<synchronous>, transform_indices = @transform_7, window_bounds = array<i64: 1, 32>}, {pipeline_mode = #tpu.pipeline_mode<synchronous>, transform_indices = @transform_8, window_bounds = array<i64: 2, 8>}, {pipeline_mode = #tpu.pipeline_mode<synchronous>, transform_indices = @transform_9, window_bounds = array<i64: 2, 10>}, {pipeline_mode = #tpu.pipeline_mode<synchronous>, transform_indices = @transform_10, window_bounds = array<i64: 128, 4>}, {pipeline_mode = #tpu.pipeline_mode<synchronous>, transform_indices = @transform_11, window_bounds = array<i64: 32, 4>}, {pipeline_mode = #tpu.pipeline_mode<synchronous>, transform_indices = @transform_12, window_bounds = array<i64: 1, 4>}, {pipeline_mode = #tpu.pipeline_mode<synchronous>, transform_indices = @transform_13, window_bounds = array<i64: 128, 5>}, {pipeline_mode = #tpu.pipeline_mode<synchronous>, transform_indices = @transform_14, window_bounds = array<i64: 32, 5>}, {pipeline_mode = #tpu.pipeline_mode<synchronous>, transform_indices = @transform_15, window_bounds = array<i64: 1, 5>}, {pipeline_mode = #tpu.pipeline_mode<synchronous>, transform_indices = @transform_16, window_bounds = array<i64: 2, 4>}, {pipeline_mode = #tpu.pipeline_mode<synchronous>, transform_indices = @transform_17, window_bounds = array<i64: 2, 5>}]} {
    %c0 = arith.constant 0 : index
    %c0_0 = arith.constant 0 : index
    %0 = vector.load %arg1[%c0, %c0_0] : memref<8x9216xbf16, #tpu.memory_space<vmem>>, vector<8x9216xbf16>
    %c0_1 = arith.constant 0 : index
    %c0_2 = arith.constant 0 : index
    %1 = vector.load %arg2[%c0_1, %c0_2] : memref<9216x128xbf16, #tpu.memory_space<vmem>>, vector<9216x128xbf16>
    %cst = arith.constant dense<0.000000e+00> : vector<8x128xf32>
    %2 = tpu.matmul %0, %1, %cst {dimension_numbers = #tpu.dot_dimension_numbers<[1], [0], [0], [1], [0, 0, 1, 1], [], []>} : vector<8x9216xbf16>, vector<9216x128xbf16>, vector<8x128xf32> -> vector<8x128xf32>
    %c0_3 = arith.constant 0 : index
    %c0_4 = arith.constant 0 : index
    %3 = vector.load %arg3[%c0_3, %c0_4] : memref<1x128xf32, #tpu.memory_space<vmem>>, vector<1x128xf32>
    %4 = vector.broadcast %3 : vector<1x128xf32> to vector<8x128xf32>
    %5 = arith.addf %2, %4 : vector<8x128xf32>
    %cst_5 = arith.constant 0.000000e+00 : f32
    %6 = vector.broadcast %cst_5 : f32 to vector<8x128xf32>
    %7 = arith.maximumf %5, %6 : vector<8x128xf32>
    %c0_6 = arith.constant 0 : index
    %c0_7 = arith.constant 0 : index
    %8 = vector.load %arg9[%c0_6, %c0_7] : memref<2x8xf32, #tpu.memory_space<vmem>>, vector<2x8xf32>
    %cst_8 = arith.constant dense<0.000000e+00> : vector<2x128xf32>
    %9 = tpu.matmul %8, %7, %cst_8 {dimension_numbers = #tpu.dot_dimension_numbers<[1], [0], [0], [1], [0, 0, 1, 1], [], []>} : vector<2x8xf32>, vector<8x128xf32>, vector<2x128xf32> -> vector<2x128xf32>
    %c0_9 = arith.constant 0 : index
    %c0_10 = arith.constant 0 : index
    %10 = vector.load %arg4[%c0_9, %c0_10] : memref<10x3xf32, #tpu.memory_space<vmem>>, vector<10x3xf32>
    %c0_11 = arith.constant 0 : index
    %c0_12 = arith.constant 0 : index
    %11 = vector.load %arg5[%c0_11, %c0_12] : memref<3x64xf32, #tpu.memory_space<vmem>>, vector<3x64xf32>
    %12 = vector.extract_strided_slice %10 {offsets = [0, 0], sizes = [10, 1], strides = [1, 1]} : vector<10x3xf32> to vector<10x1xf32>
    %13 = vector.extract_strided_slice %11 {offsets = [0, 0], sizes = [1, 64], strides = [1, 1]} : vector<3x64xf32> to vector<1x64xf32>
    %14 = vector.broadcast %12 : vector<10x1xf32> to vector<10x64xf32>
    %15 = vector.broadcast %13 : vector<1x64xf32> to vector<10x64xf32>
    %16 = arith.mulf %14, %15 : vector<10x64xf32>
    %17 = vector.extract_strided_slice %10 {offsets = [0, 1], sizes = [10, 1], strides = [1, 1]} : vector<10x3xf32> to vector<10x1xf32>
    %18 = vector.extract_strided_slice %11 {offsets = [1, 0], sizes = [1, 64], strides = [1, 1]} : vector<3x64xf32> to vector<1x64xf32>
    %19 = vector.broadcast %17 : vector<10x1xf32> to vector<10x64xf32>
    %20 = vector.broadcast %18 : vector<1x64xf32> to vector<10x64xf32>
    %21 = arith.mulf %19, %20 : vector<10x64xf32>
    %22 = arith.addf %16, %21 : vector<10x64xf32>
    %23 = vector.extract_strided_slice %10 {offsets = [0, 2], sizes = [10, 1], strides = [1, 1]} : vector<10x3xf32> to vector<10x1xf32>
    %24 = vector.extract_strided_slice %11 {offsets = [2, 0], sizes = [1, 64], strides = [1, 1]} : vector<3x64xf32> to vector<1x64xf32>
    %25 = vector.broadcast %23 : vector<10x1xf32> to vector<10x64xf32>
    %26 = vector.broadcast %24 : vector<1x64xf32> to vector<10x64xf32>
    %27 = arith.mulf %25, %26 : vector<10x64xf32>
    %28 = arith.addf %22, %27 : vector<10x64xf32>
    %c0_13 = arith.constant 0 : index
    %c0_14 = arith.constant 0 : index
    %29 = vector.load %arg6[%c0_13, %c0_14] : memref<1x64xf32, #tpu.memory_space<vmem>>, vector<1x64xf32>
    %30 = vector.broadcast %29 : vector<1x64xf32> to vector<10x64xf32>
    %31 = arith.addf %28, %30 : vector<10x64xf32>
    %cst_15 = arith.constant 0.000000e+00 : f32
    %32 = vector.broadcast %cst_15 : f32 to vector<10x64xf32>
    %33 = arith.maximumf %31, %32 : vector<10x64xf32>
    %c0_16 = arith.constant 0 : index
    %c0_17 = arith.constant 0 : index
    %34 = vector.load %arg7[%c0_16, %c0_17] : memref<64x32xf32, #tpu.memory_space<vmem>>, vector<64x32xf32>
    %cst_18 = arith.constant dense<0.000000e+00> : vector<10x32xf32>
    %35 = tpu.matmul %33, %34, %cst_18 {dimension_numbers = #tpu.dot_dimension_numbers<[1], [0], [0], [1], [0, 0, 1, 1], [], []>} : vector<10x64xf32>, vector<64x32xf32>, vector<10x32xf32> -> vector<10x32xf32>
    %c0_19 = arith.constant 0 : index
    %c0_20 = arith.constant 0 : index
    %36 = vector.load %arg8[%c0_19, %c0_20] : memref<1x32xf32, #tpu.memory_space<vmem>>, vector<1x32xf32>
    %37 = vector.broadcast %36 : vector<1x32xf32> to vector<10x32xf32>
    %38 = arith.addf %35, %37 : vector<10x32xf32>
    %cst_21 = arith.constant 0.000000e+00 : f32
    %39 = vector.broadcast %cst_21 : f32 to vector<10x32xf32>
    %40 = arith.maximumf %38, %39 : vector<10x32xf32>
    %c0_22 = arith.constant 0 : index
    %c0_23 = arith.constant 0 : index
    %41 = vector.load %arg10[%c0_22, %c0_23] : memref<2x10xf32, #tpu.memory_space<vmem>>, vector<2x10xf32>
    %cst_24 = arith.constant dense<0.000000e+00> : vector<2x32xf32>
    %42 = tpu.matmul %41, %40, %cst_24 {dimension_numbers = #tpu.dot_dimension_numbers<[1], [0], [0], [1], [0, 0, 1, 1], [], []>} : vector<2x10xf32>, vector<10x32xf32>, vector<2x32xf32> -> vector<2x32xf32>
    %c0_25 = arith.constant 0 : index
    %c0_26 = arith.constant 0 : index
    %43 = vector.load %arg11[%c0_25, %c0_26] : memref<128x4xf32, #tpu.memory_space<vmem>>, vector<128x4xf32>
    %cst_27 = arith.constant dense<0.000000e+00> : vector<2x4xf32>
    %44 = tpu.matmul %9, %43, %cst_27 {dimension_numbers = #tpu.dot_dimension_numbers<[1], [0], [0], [1], [0, 0, 1, 1], [], []>} : vector<2x128xf32>, vector<128x4xf32>, vector<2x4xf32> -> vector<2x4xf32>
    %c0_28 = arith.constant 0 : index
    %c0_29 = arith.constant 0 : index
    %45 = vector.load %arg12[%c0_28, %c0_29] : memref<32x4xf32, #tpu.memory_space<vmem>>, vector<32x4xf32>
    %cst_30 = arith.constant dense<0.000000e+00> : vector<2x4xf32>
    %46 = tpu.matmul %42, %45, %cst_30 {dimension_numbers = #tpu.dot_dimension_numbers<[1], [0], [0], [1], [0, 0, 1, 1], [], []>} : vector<2x32xf32>, vector<32x4xf32>, vector<2x4xf32> -> vector<2x4xf32>
    %47 = arith.addf %44, %46 : vector<2x4xf32>
    %c0_31 = arith.constant 0 : index
    %c0_32 = arith.constant 0 : index
    %48 = vector.load %arg13[%c0_31, %c0_32] : memref<1x4xf32, #tpu.memory_space<vmem>>, vector<1x4xf32>
    %49 = vector.broadcast %48 : vector<1x4xf32> to vector<2x4xf32>
    %50 = arith.addf %47, %49 : vector<2x4xf32>
    %c0_33 = arith.constant 0 : index
    %c0_34 = arith.constant 0 : index
    %51 = vector.load %arg17[%c0_33, %c0_34] : memref<2x4xf32, #tpu.memory_space<vmem>>, vector<2x4xf32>
    tpu.vector_store %arg17[%c0_33, %c0_34], %50 {strides = array<i32>} : memref<2x4xf32, #tpu.memory_space<vmem>>, vector<2x4xf32>,
    %c0_35 = arith.constant 0 : index
    %c0_36 = arith.constant 0 : index
    %52 = vector.load %arg14[%c0_35, %c0_36] : memref<128x5xf32, #tpu.memory_space<vmem>>, vector<128x5xf32>
    %cst_37 = arith.constant dense<0.000000e+00> : vector<2x5xf32>
    %53 = tpu.matmul %9, %52, %cst_37 {dimension_numbers = #tpu.dot_dimension_numbers<[1], [0], [0], [1], [0, 0, 1, 1], [], []>} : vector<2x128xf32>, vector<128x5xf32>, vector<2x5xf32> -> vector<2x5xf32>
    %c0_38 = arith.constant 0 : index
    %c0_39 = arith.constant 0 : index
    %54 = vector.load %arg15[%c0_38, %c0_39] : memref<32x5xf32, #tpu.memory_space<vmem>>, vector<32x5xf32>
    %cst_40 = arith.constant dense<0.000000e+00> : vector<2x5xf32>
    %55 = tpu.matmul %42, %54, %cst_40 {dimension_numbers = #tpu.dot_dimension_numbers<[1], [0], [0], [1], [0, 0, 1, 1], [], []>} : vector<2x32xf32>, vector<32x5xf32>, vector<2x5xf32> -> vector<2x5xf32>
    %56 = arith.addf %53, %55 : vector<2x5xf32>
    %c0_41 = arith.constant 0 : index
    %c0_42 = arith.constant 0 : index
    %57 = vector.load %arg16[%c0_41, %c0_42] : memref<1x5xf32, #tpu.memory_space<vmem>>, vector<1x5xf32>
    %58 = vector.broadcast %57 : vector<1x5xf32> to vector<2x5xf32>
    %59 = arith.addf %56, %58 : vector<2x5xf32>
    %c0_43 = arith.constant 0 : index
    %c0_44 = arith.constant 0 : index
    %60 = vector.load %arg18[%c0_43, %c0_44] : memref<2x5xf32, #tpu.memory_space<vmem>>, vector<2x5xf32>
    tpu.vector_store %arg18[%c0_43, %c0_44], %59 {strides = array<i32>} : memref<2x5xf32, #tpu.memory_space<vmem>>, vector<2x5xf32>,
    return
  }
  func.func @transform_0(%arg0: i32) -> (i32, i32) {
    %c0_i32 = arith.constant 0 : i32
    %c0_i32_0 = arith.constant 0 : i32
    %c0_i32_1 = arith.constant 0 : i32
    return %c0_i32, %c0_i32_0 : i32, i32
  }
  func.func @transform_1(%arg0: i32) -> (i32, i32) {
    %c0_i32 = arith.constant 0 : i32
    %c0_i32_0 = arith.constant 0 : i32
    %c0_i32_1 = arith.constant 0 : i32
    return %c0_i32, %c0_i32_0 : i32, i32
  }
  func.func @transform_2(%arg0: i32) -> (i32, i32) {
    %c0_i32 = arith.constant 0 : i32
    %c0_i32_0 = arith.constant 0 : i32
    %c0_i32_1 = arith.constant 0 : i32
    return %c0_i32, %c0_i32_0 : i32, i32
  }
  func.func @transform_3(%arg0: i32) -> (i32, i32) {
    %c0_i32 = arith.constant 0 : i32
    %c0_i32_0 = arith.constant 0 : i32
    %c0_i32_1 = arith.constant 0 : i32
    return %c0_i32, %c0_i32_0 : i32, i32
  }
  func.func @transform_4(%arg0: i32) -> (i32, i32) {
    %c0_i32 = arith.constant 0 : i32
    %c0_i32_0 = arith.constant 0 : i32
    %c0_i32_1 = arith.constant 0 : i32
    return %c0_i32, %c0_i32_0 : i32, i32
  }
  func.func @transform_5(%arg0: i32) -> (i32, i32) {
    %c0_i32 = arith.constant 0 : i32
    %c0_i32_0 = arith.constant 0 : i32
    %c0_i32_1 = arith.constant 0 : i32
    return %c0_i32, %c0_i32_0 : i32, i32
  }
  func.func @transform_6(%arg0: i32) -> (i32, i32) {
    %c0_i32 = arith.constant 0 : i32
    %c0_i32_0 = arith.constant 0 : i32
    %c0_i32_1 = arith.constant 0 : i32
    return %c0_i32, %c0_i32_0 : i32, i32
  }
  func.func @transform_7(%arg0: i32) -> (i32, i32) {
    %c0_i32 = arith.constant 0 : i32
    %c0_i32_0 = arith.constant 0 : i32
    %c0_i32_1 = arith.constant 0 : i32
    return %c0_i32, %c0_i32_0 : i32, i32
  }
  func.func @transform_8(%arg0: i32) -> (i32, i32) {
    %c0_i32 = arith.constant 0 : i32
    %c0_i32_0 = arith.constant 0 : i32
    %c0_i32_1 = arith.constant 0 : i32
    return %c0_i32, %c0_i32_0 : i32, i32
  }
  func.func @transform_9(%arg0: i32) -> (i32, i32) {
    %c0_i32 = arith.constant 0 : i32
    %c0_i32_0 = arith.constant 0 : i32
    %c0_i32_1 = arith.constant 0 : i32
    return %c0_i32, %c0_i32_0 : i32, i32
  }
  func.func @transform_10(%arg0: i32) -> (i32, i32) {
    %c0_i32 = arith.constant 0 : i32
    %c0_i32_0 = arith.constant 0 : i32
    %c0_i32_1 = arith.constant 0 : i32
    return %c0_i32, %c0_i32_0 : i32, i32
  }
  func.func @transform_11(%arg0: i32) -> (i32, i32) {
    %c0_i32 = arith.constant 0 : i32
    %c0_i32_0 = arith.constant 0 : i32
    %c0_i32_1 = arith.constant 0 : i32
    return %c0_i32, %c0_i32_0 : i32, i32
  }
  func.func @transform_12(%arg0: i32) -> (i32, i32) {
    %c0_i32 = arith.constant 0 : i32
    %c0_i32_0 = arith.constant 0 : i32
    %c0_i32_1 = arith.constant 0 : i32
    return %c0_i32, %c0_i32_0 : i32, i32
  }
  func.func @transform_13(%arg0: i32) -> (i32, i32) {
    %c0_i32 = arith.constant 0 : i32
    %c0_i32_0 = arith.constant 0 : i32
    %c0_i32_1 = arith.constant 0 : i32
    return %c0_i32, %c0_i32_0 : i32, i32
  }
  func.func @transform_14(%arg0: i32) -> (i32, i32) {
    %c0_i32 = arith.constant 0 : i32
    %c0_i32_0 = arith.constant 0 : i32
    %c0_i32_1 = arith.constant 0 : i32
    return %c0_i32, %c0_i32_0 : i32, i32
  }
  func.func @transform_15(%arg0: i32) -> (i32, i32) {
    %c0_i32 = arith.constant 0 : i32
    %c0_i32_0 = arith.constant 0 : i32
    %c0_i32_1 = arith.constant 0 : i32
    return %c0_i32, %c0_i32_0 : i32, i32
  }
  func.func @transform_16(%arg0: i32) -> (i32, i32) {
    %c0_i32 = arith.constant 0 : i32
    %c0_i32_0 = arith.constant 0 : i32
    %c0_i32_1 = arith.constant 0 : i32
    return %c0_i32, %c0_i32_0 : i32, i32
  }
  func.func @transform_17(%arg0: i32) -> (i32, i32) {
    %c0_i32 = arith.constant 0 : i32
    %c0_i32_0 = arith.constant 0 : i32
    %c0_i32_1 = arith.constant 0 : i32
    return %c0_i32, %c0_i32_0 : i32, i32
  }
}

</mosaic_0001>

<bundles_post_ra>
// kernel: actor_forward.2
= control target key start
LH: loop header
LB: loop body
LE: loop exit
PB: predicated region body
PF: predicated region fallthrough
CT: control target
= control target key end

     0   :  { %s6247_s24 = smov 0   ;;  %s8597_s0 = inlined_call_operand.vmem [shape: f32[8,13,17,64], index: 0, kind: input, shape index: {}]   ;;  %s8598_s1 = inlined_call_operand.vmem [shape: bf16[4,64,128], index: 1, kind: input, shape index: {}]   ;;  %s8599_s2 = inlined_call_operand.vmem [shape: f32[1,128], index: 2, kind: input, shape index: {}]   ;;  %s8600_s3 = inlined_call_operand.vmem [shape: bf16[4,128,64], index: 3, kind: input, shape index: {}]   ;;  %s8601_s4 = inlined_call_operand.vmem [shape: f32[1,64], index: 4, kind: input, shape index: {}]   ;;  %s8602_s5 = inlined_call_operand.vmem [shape: bf16[9,64,64], index: 5, kind: input, shape index: {}]   ;;  %s8603_s6 = inlined_call_operand.vmem [shape: f32[1,64], index: 6, kind: input, shape index: {}]   ;;  %s8604_s7 = inlined_call_operand.vmem [shape: bf16[8,144,64], index: 7, kind: output, shape index: {}]  }
   0x1 LB: > { %s4433_s25 = sadd.s32 4294967295, %s6202_s24   ;;  %p4437_p0 = scmp.ge.s32.totalorder %s6202_s24, 1  ;;  %s6202_s24 = sphi %s6247_s24, %s17_s24  }
   0x2   : > { %p237_p1 = scmp.lt.s32.totalorder %s6202_s24, 9 }
   0x4   : > { %p238_p2 = pnand %p4437_p0, %p237_p1 }
   0x6   : > { %241 = sbr.rel (%p238_p2) target bundleno = 1516 (0x5ec), region = 48 }
   0xd   : > { %v6112_v0 = vld [vmem:[%s8598_s1 + $0x20] sm:$0xff]   ;;  %p269_p3 = scmp.lt.s32.totalorder %s4433_s25, 7  ;;  %v6113_v1 = vld [vmem:[%s8598_s1 + $0x28] sm:$0xff]   ;;  %v6114_v2 = vld [vmem:[%s8598_s1 + $0x30] sm:$0xff]   ;;  %vm393_vm0 = vcmask 523264   ;;  %vm6205_vm1 = vmmov 0  }
   0xe   : > { %5159 = vmatprep.subr.bf16.mxu0 %v6112_v0  ;;  %v6115_v5 = vld [vmem:[%s8598_s1 + $0x38] sm:$0xff]   ;;  %v6116_v9 = vld [vmem:[%s8598_s1] sm:$0xff]   ;;  %v6117_v14 = vld [vmem:[%s8598_s1 + $0x8] sm:$0xff]   ;;  %vm1376_vm2 = vcmask 1046528   ;;  %vm2994_vm3 = vcmask 1045504   ;;  %vm4359_vm4 = vcmask 519168  }
   0xf   : > { %s8677_s25 = smov (!%p269_p3, %s4433_s25), 7  ;;  %5160 = vmatpush3.bf16.msra.mxu0 %v6112_v0  ;;  %v6118_v15 = vld [vmem:[%s8598_s1 + $0x10] sm:$0xff]   ;;  %v6119_v22 = vld [vmem:[%s8598_s1 + $0x18] sm:$0xff]   ;;  %v6120_v27 = vld [vmem:[%s8598_s1 + $0x40] sm:$0xff]  }
  0x10   : > { %5161 = vmatprep.subr.bf16.mxu0 %v6113_v1  ;;  %s6099_s9 = smul.u32 312, %s8677_s25  ;;  %v6121_v53 = vld [vmem:[%s8598_s1 + $0x48] sm:$0xff]   ;;  %v6122_v59 = vld [vmem:[%s8598_s1 + $0x50] sm:$0xff]   ;;  %v6123_v61 = vld [vmem:[%s8598_s1 + $0x58] sm:$0xff]  }
  0x11   : > { %v6129_v63 = vld [vmem:[%s8600_s3 + $0x40] sm:$0xff]   ;;  %s6100_s15 = smul.u32 72, %s8677_s25 }
  0x12   : > { %s6270_s12 = scalar_lea.vmem %s8597_s0, %s6099_s9 }
  0x13   : > { %5162 = vmatpush3.bf16.msra.mxu0 %v6113_v1  ;;  %v324_v3 = vld [vmem:[%s6270_s12 + $0x1] sm:$0xff]  ;;  %v325_v4 = vld [vmem:[%s6270_s12 + $0x9] sm:$0xff]  ;;  %v326_v7 = vld [vmem:[%s6270_s12 + $0x19] sm:$0xff]  ;;  %s8510_s18 = scalar_lea.vmem %s8604_s7, %s6100_s15 }
  0x14   : > { %5163 = vmatprep.subr.bf16.mxu0 %v6114_v2  ;;  %v348_v6 = vpack.c.bf16 %v325_v4, %v324_v3  ;;  %v327_v8 = vld [vmem:[%s6270_s12 + $0x21] sm:$0xff]  ;;  %v328_v10 = vld [vmem:[%s6270_s12 + $0x31] sm:$0xff]  ;;  %v329_v11 = vld [vmem:[%s6270_s12 + $0x39] sm:$0xff] }
  0x15   : > { %v6285_v12 = vpack.c.bf16 %v327_v8, %v326_v7  ;;  %v6287_v13 = vpack.c.bf16 %v329_v11, %v328_v10  ;;  %v330_v16 = vld [vmem:[%s6270_s12 + $0x49] sm:$0xff]  ;;  %v331_v17 = vld [vmem:[%s6270_s12 + $0x51] sm:$0xff]  ;;  %v332_v18 = vld [vmem:[%s6270_s12 + $0x61] sm:$0xff] }
  0x16   : > { %5167 = vmatprep.mubr.msk.bf16.mxu0 %vm393_vm0, %v348_v6  ;;  %v333_v19 = vld [vmem:[%s6270_s12 + $0x69] sm:$0xff]  ;;  %v6303_v20 = vpack.c.bf16 %v331_v17, %v330_v16  ;;  %v334_v23 = vld [vmem:[%s6270_s12 + $0x79] sm:$0xff]  ;;  %v335_v24 = vld [vmem:[%s6270_s12 + $0x81] sm:$0xff] }
  0x17   : > { %5164 = vmatpush3.bf16.msra.mxu0 %v6114_v2  ;;  %v6305_v21 = vpack.c.bf16 %v333_v19, %v332_v18  ;;  %v336_v25 = vld [vmem:[%s6270_s12 + $0x91] sm:$0xff]  ;;  %v337_v26 = vld [vmem:[%s6270_s12 + $0x99] sm:$0xff]  ;;  %v6321_v28 = vpack.c.bf16 %v335_v24, %v334_v23  ;;  %v338_v30 = vld [vmem:[%s6270_s12 + $0xa9] sm:$0xff] }
  0x18   : > { %5165 = vmatprep.subr.bf16.mxu0 %v6115_v5  ;;  %v6323_v29 = vpack.c.bf16 %v337_v26, %v336_v25  ;;  %v339_v31 = vld [vmem:[%s6270_s12 + $0xb1] sm:$0xff]  ;;  %v340_v32 = vld [vmem:[%s6270_s12 + $0xc1] sm:$0xff]  ;;  %v341_v33 = vld [vmem:[%s6270_s12 + $0xc9] sm:$0xff] }
  0x19   : > { %v6333_v34 = vpack.c.bf16 %v339_v31, %v338_v30  ;;  %v6335_v35 = vpack.c.bf16 %v341_v33, %v340_v32  ;;  %v342_v36 = vld [vmem:[%s6270_s12 + $0xd9] sm:$0xff]  ;;  %v343_v37 = vld [vmem:[%s6270_s12 + $0xe1] sm:$0xff]  ;;  %v344_v38 = vld [vmem:[%s6270_s12 + $0xf1] sm:$0xff] }
  0x1a   : > { %v345_v39 = vld [vmem:[%s6270_s12 + $0xf9] sm:$0xff]  ;;  %v6345_v40 = vpack.c.bf16 %v343_v37, %v342_v36  ;;  %v346_v42 = vld [vmem:[%s6270_s12 + $0x109] sm:$0xff]  ;;  %v347_v43 = vld [vmem:[%s6270_s12 + $0x111] sm:$0xff] }
  0x1b   : > { %5166 = vmatpush3.bf16.msra.mxu0 %v6115_v5  ;;  %v6347_v41 = vpack.c.bf16 %v345_v39, %v344_v38  ;;  %v280_v44 = vld [vmem:[%s6270_s12] sm:$0xff]  ;;  %v281_v45 = vld [vmem:[%s6270_s12 + $0x8] sm:$0xff]  ;;  %v6357_v46 = vpack.c.bf16 %v347_v43, %v346_v42  ;;  %v282_v48 = vld [vmem:[%s6270_s12 + $0x18] sm:$0xff]  ;;  %v6204_v5 = vmov 0.0  }
  0x1c   : > { %5191 = vmatprep.subr.bf16.mxu0 %v6116_v9  ;;  %v304_v47 = vpack.c.bf16 %v281_v45, %v280_v44  ;;  %v283_v49 = vld [vmem:[%s6270_s12 + $0x20] sm:$0xff]  ;;  %v284_v50 = vld [vmem:[%s6270_s12 + $0x30] sm:$0xff]  ;;  %v285_v51 = vld [vmem:[%s6270_s12 + $0x38] sm:$0xff]  ;;  %5287 = vmatprep.subr.bf16.mxu1 %v6204_v5 }
  0x1d   : > { %v6366_v52 = vpack.c.bf16 %v283_v49, %v282_v48  ;;  %v6371_v54 = vpack.c.bf16 %v285_v51, %v284_v50  ;;  %v286_v55 = vld [vmem:[%s6270_s12 + $0x48] sm:$0xff]  ;;  %v287_v56 = vld [vmem:[%s6270_s12 + $0x50] sm:$0xff]  ;;  %v288_v57 = vld [vmem:[%s6270_s12 + $0x60] sm:$0xff]  ;;  %5288 = vmatpush3.bf16.msra.mxu1 %v6129_v63  ;;  %5303 = vmatprep.mubr.msk.bf16.mxu1 %vm6205_vm1, %v6204_v5 }
  0x1e   : > { %5168 = vmatmul.mubr.msk.bf16.vlgmr.msra.gmra.mrb[0].mxu0 %vm393_vm0, %v6285_v12  ;;  %v289_v58 = vld [vmem:[%s6270_s12 + $0x68] sm:$0xff]  ;;  %v307_v60 = vpack.c.bf16 %v287_v56, %v286_v55  ;;  %v290_v0 = vld [vmem:[%s6270_s12 + $0x78] sm:$0xff]  ;;  %v291_v1 = vld [vmem:[%s6270_s12 + $0x80] sm:$0xff]  ;;  %5289 = vmatprep.subr.bf16.mxu1 %v6204_v5 }
  0x1f   : > { %5192 = vmatpush3.bf16.msra.mxu0 %v6116_v9  ;;  %5171 = vmatprep.mubr.msk.bf16.mxu0 %vm393_vm0, %v6287_v13  ;;  %v6387_v62 = vpack.c.bf16 %v289_v58, %v288_v57  ;;  %v292_v2 = vld [vmem:[%s6270_s12 + $0x90] sm:$0xff]  ;;  %v293_v3 = vld [vmem:[%s6270_s12 + $0x98] sm:$0xff]  ;;  %v6124_v4 = vld [vmem:[%s8598_s1 + $0x60] sm:$0xff]   ;;  %v309_v7 = vpack.c.bf16 %v291_v1, %v290_v0 }
  0x20   : > { %5193 = vmatprep.subr.bf16.mxu0 %v6117_v14  ;;  %v6131_v6 = vld [vmem:[%s8600_s3 + $0x48] sm:$0xff]   ;;  %v310_v8 = vpack.c.bf16 %v293_v3, %v292_v2  ;;  %v6133_v9 = vld [vmem:[%s8600_s3 + $0x50] sm:$0xff]   ;;  %v6135_v16 = vld [vmem:[%s8600_s3 + $0x58] sm:$0xff]  }
  0x21   : > { %5290 = vmatpush3.bf16.msra.mxu1 %v6131_v6  ;;  %v294_v10 = vld [vmem:[%s6270_s12 + $0xa8] sm:$0xff]  ;;  %v295_v11 = vld [vmem:[%s6270_s12 + $0xb0] sm:$0xff]  ;;  %v6137_v19 = vld [vmem:[%s8600_s3 + $0x60] sm:$0xff]  }
  0x22   : > { %5291 = vmatprep.subr.bf16.mxu1 %v6204_v5  ;;  %v311_v17 = vpack.c.bf16 %v295_v11, %v294_v10  ;;  %v299_v23 = vld [vmem:[%s6270_s12 + $0xe0] sm:$0xff]  ;;  %v300_v24 = vld [vmem:[%s6270_s12 + $0xf0] sm:$0xff]  ;;  %v301_v25 = vld [vmem:[%s6270_s12 + $0xf8] sm:$0xff] }
  0x23   : > { %5194 = vmatpush3.bf16.msra.mxu0 %v6117_v14  ;;  %v296_v14 = vld [vmem:[%s6270_s12 + $0xc0] sm:$0xff]  ;;  %v302_v30 = vld [vmem:[%s6270_s12 + $0x108] sm:$0xff]  ;;  %v303_v31 = vld [vmem:[%s6270_s12 + $0x110] sm:$0xff] }
  0x24   : > { %5195 = vmatprep.subr.bf16.mxu0 %v6118_v15  ;;  %v315_v32 = vpack.c.bf16 %v303_v31, %v302_v30  ;;  %v6125_v33 = vld [vmem:[%s8598_s1 + $0x68] sm:$0xff]   ;;  %v6126_v36 = vld [vmem:[%s8598_s1 + $0x70] sm:$0xff]   ;;  %v6127_v37 = vld [vmem:[%s8598_s1 + $0x78] sm:$0xff]  }
  0x25   : > { %5292 = vmatpush3.bf16.msra.mxu1 %v6133_v9  ;;  %v4502_v38 = vld [vmem:[%s6270_s12 + $0x120] sm:$0xff]  ;;  %v4503_v39 = vld [vmem:[%s6270_s12 + $0x128] sm:$0xff] }
  0x26   : > { %5172 = vmatmul.mubr.msk.bf16.gmra.mrb[4].mxu0 %vm393_vm0, %v6303_v20  ;;  %5293 = vmatprep.subr.bf16.mxu1 %v6204_v5  ;;  %v784_v42 = vpack.c.bf16 %v4503_v39, %v4502_v38  ;;  %v6128_v43 = vld [vmem:[%s8600_s3 + $0x80] sm:$0xff]   ;;  %v6130_v44 = vld [vmem:[%s8600_s3 + $0x88] sm:$0xff]  }
  0x27   : > { %5175 = vmatprep.mubr.msk.bf16.mxu0 %vm393_vm0, %v6305_v21  ;;  %5196 = vmatpush3.bf16.msra.mxu0 %v6118_v15  ;;  %v297_v15 = vld [vmem:[%s6270_s12 + $0xc8] sm:$0xff] }
  0x28   : > { %5197 = vmatprep.subr.bf16.mxu0 %v6119_v22  ;;  %v312_v18 = vpack.c.bf16 %v297_v15, %v296_v14  ;;  %v6139_v45 = vld [vmem:[%s8600_s3 + $0x68] sm:$0xff]   ;;  %v6144_v15 = vld [vmem:[%s8600_s3] sm:$0xff]  }
  0x29   : > { %5294 = vmatpush3.bf16.msra.mxu1 %v6135_v16  ;;  %v6145_v30 = vld [vmem:[%s8600_s3 + $0x8] sm:$0xff]  }
  0x2a   : > { %5295 = vmatprep.subr.bf16.mxu1 %v6204_v5 }
  0x2b   : > { %5198 = vmatpush3.bf16.msra.mxu0 %v6119_v22  ;;  %v298_v22 = vld [vmem:[%s6270_s12 + $0xd8] sm:$0xff] }
  0x2c   : > { %5223 = vmatprep.subr.bf16.mxu0 %v6120_v27  ;;  %v313_v26 = vpack.c.bf16 %v299_v23, %v298_v22 }
  0x2d   : > { %5296 = vmatpush3.bf16.msra.mxu1 %v6137_v19 }
  0x2e   : > { %5176 = vmatmul.mubr.msk.bf16.gmra.mrb[8].mxu0 %vm393_vm0, %v6321_v28  ;;  %5297 = vmatprep.subr.bf16.mxu1 %v6204_v5 }
  0x2f   : > { %5179 = vmatprep.mubr.msk.bf16.mxu0 %vm393_vm0, %v6323_v29 }
  0x31   : > { %5298 = vmatpush3.bf16.msra.mxu1 %v6139_v45 }
  0x32   : > { %5299 = vmatprep.subr.bf16.mxu1 %v6204_v5 }
  0x36   : > { %5180 = vmatmul.mubr.msk.bf16.gmra.mrb[12].mxu0 %vm393_vm0, %v6333_v34 }
  0x37   : > { %5183 = vmatprep.mubr.msk.bf16.mxu0 %vm393_vm0, %v6335_v35 }
  0x3e   : > { %5184 = vmatmul.mubr.msk.bf16.gmra.mrb[16].mxu0 %vm393_vm0, %v6345_v40 }
  0x3f   : > { %5187 = vmatprep.mubr.msk.bf16.mxu0 %vm393_vm0, %v6347_v41 }
  0x46   : > { %5188 = vmatmul.mubr.msk.bf16.gmra.mrb[20].mxu0 %vm393_vm0, %v6357_v46 }
  0x47   : > { %5199 = vmatprep.mubr.msk.bf16.mxu0 %vm393_vm0, %v304_v47  ;;  %v6540_v47 = vld [vmem:[%s8599_s2] ss:$0 sm:$0xff] }
  0x4e   : > { %5200 = vmatmul.mubr.msk.bf16.vlgmr.msra.gmra.mrb[0].mxu0 %vm393_vm0, %v6366_v52 }
  0x4f   : > { %5224 = vmatpush3.bf16.msra.mxu0 %v6120_v27  ;;  %5203 = vmatprep.mubr.msk.bf16.mxu0 %vm393_vm0, %v6371_v54  ;;  %v314_v27 = vpack.c.bf16 %v301_v25, %v300_v24 }
  0x50   : > { %5225 = vmatprep.subr.bf16.mxu0 %v6121_v53 }
  0x53   : > { %5226 = vmatpush3.bf16.msra.mxu0 %v6121_v53 }
  0x54   : > { %5227 = vmatprep.subr.bf16.mxu0 %v6122_v59 }
  0x56   : > { %5204 = vmatmul.mubr.msk.bf16.gmra.mrb[4].mxu0 %vm393_vm0, %v307_v60 }
  0x57   : > { %5207 = vmatprep.mubr.msk.bf16.mxu0 %vm393_vm0, %v6387_v62  ;;  %5228 = vmatpush3.bf16.msra.mxu0 %v6122_v59  ;;  %v6551_v59 = vrot.slane %v6204_v5, 1 }
  0x58   : > { %5229 = vmatprep.subr.bf16.mxu0 %v6123_v61 }
  0x5b   : > { %5230 = vmatpush3.bf16.msra.mxu0 %v6123_v61 }
  0x5c   : > { %5255 = vmatprep.subr.bf16.mxu0 %v6124_v4 }
  0x5e   : > { %5208 = vmatmul.mubr.msk.bf16.gmra.mrb[8].mxu0 %vm393_vm0, %v309_v7 }
  0x5f   : > { %5211 = vmatprep.mubr.msk.bf16.mxu0 %vm393_vm0, %v310_v8 }
  0x66   : > { %5212 = vmatmul.mubr.msk.bf16.gmra.mrb[12].mxu0 %vm393_vm0, %v311_v17 }
  0x67   : > { %5215 = vmatprep.mubr.msk.bf16.mxu0 %vm393_vm0, %v312_v18 }
  0x6e   : > { %5216 = vmatmul.mubr.msk.bf16.gmra.mrb[16].mxu0 %vm393_vm0, %v313_v26 }
  0x6f   : > { %5219 = vmatprep.mubr.msk.bf16.mxu0 %vm393_vm0, %v314_v27 }
  0x76   : > { %5220 = vmatmul.mubr.msk.bf16.gmra.mrb[20].mxu0 %vm393_vm0, %v315_v32 }
  0x77   : > { %5231 = vmatprep.mubr.msk.bf16.mxu0 %vm393_vm0, %v6366_v52 }
  0x7e   : > { %5232 = vmatmul.mubr.msk.bf16.vlgmr.msra.gmra.mrb[0].mxu0 %vm393_vm0, %v6371_v54 }
  0x7f   : > { %5256 = vmatpush3.bf16.msra.mxu0 %v6124_v4  ;;  %5235 = vmatprep.mubr.msk.bf16.mxu0 %vm393_vm0, %v307_v60 }
  0x80   : > { %5257 = vmatprep.subr.bf16.mxu0 %v6125_v33 }
  0x83   : > { %5258 = vmatpush3.bf16.msra.mxu0 %v6125_v33 }
  0x84   : > { %5259 = vmatprep.subr.bf16.mxu0 %v6126_v36 }
  0x86   : > { %5236 = vmatmul.mubr.msk.bf16.gmra.mrb[4].mxu0 %vm393_vm0, %v6387_v62 }
  0x87   : > { %5239 = vmatprep.mubr.msk.bf16.mxu0 %vm393_vm0, %v309_v7  ;;  %5260 = vmatpush3.bf16.msra.mxu0 %v6126_v36 }
  0x88   : > { %5261 = vmatprep.subr.bf16.mxu0 %v6127_v37 }
  0x8b   : > { %5262 = vmatpush3.bf16.msra.mxu0 %v6127_v37 }
  0x8c   : > { %5455 = vmatprep.subr.bf16.mxu0 %v6204_v5 }
  0x8e   : > { %5240 = vmatmul.mubr.msk.bf16.gmra.mrb[8].mxu0 %vm393_vm0, %v310_v8 }
  0x8f   : > { %5243 = vmatprep.mubr.msk.bf16.mxu0 %vm393_vm0, %v311_v17 }
  0x96   : > { %5244 = vmatmul.mubr.msk.bf16.gmra.mrb[12].mxu0 %vm393_vm0, %v312_v18 }
  0x97   : > { %5247 = vmatprep.mubr.msk.bf16.mxu0 %vm393_vm0, %v313_v26 }
  0x9e   : > { %5248 = vmatmul.mubr.msk.bf16.gmra.mrb[16].mxu0 %vm393_vm0, %v314_v27 }
  0x9f   : > { %5251 = vmatprep.mubr.msk.bf16.mxu0 %vm393_vm0, %v315_v32 }
  0xa6   : > { %5252 = vmatmul.mubr.msk.bf16.gmra.mrb[20].mxu0 %vm393_vm0, %v784_v42 }
  0xa7   : > { %5263 = vmatprep.mubr.msk.bf16.mxu0 %vm393_vm0, %v6285_v12  ;;  %v6132_v12 = vld [vmem:[%s8600_s3 + $0x90] sm:$0xff]  }
  0xae   : > { %5264 = vmatmul.mubr.msk.bf16.vlgmr.msra.gmra.mrb[0].mxu0 %vm393_vm0, %v6287_v13  ;;  %v6134_v13 = vld [vmem:[%s8600_s3 + $0x98] sm:$0xff]  }
  0xaf   : > { %5267 = vmatprep.mubr.msk.bf16.mxu0 %vm393_vm0, %v6303_v20  ;;  %5456 = vmatpush3.bf16.msra.mxu0 %v6128_v43  ;;  %v6136_v20 = vld [vmem:[%s8600_s3 + $0xa0] sm:$0xff]  }
  0xb0   : > { %5457 = vmatprep.subr.bf16.mxu0 %v6204_v5 }
  0xb3   : > { %5458 = vmatpush3.bf16.msra.mxu0 %v6130_v44 }
  0xb4   : > { %5459 = vmatprep.subr.bf16.mxu0 %v6204_v5 }
  0xb6   : > { %5268 = vmatmul.mubr.msk.bf16.gmra.mrb[4].mxu0 %vm393_vm0, %v6305_v21  ;;  %v6138_v21 = vld [vmem:[%s8600_s3 + $0xa8] sm:$0xff]  }
  0xb7   : > { %5271 = vmatprep.mubr.msk.bf16.mxu0 %vm393_vm0, %v6321_v28  ;;  %5460 = vmatpush3.bf16.msra.mxu0 %v6132_v12  ;;  %v4550_v28 = vld [vmem:[%s6270_s12 + $0x121] sm:$0xff] }
  0xb8   : > { %5461 = vmatprep.subr.bf16.mxu0 %v6204_v5 }
  0xbb   : > { %5462 = vmatpush3.bf16.msra.mxu0 %v6134_v13 }
  0xbc   : > { %5463 = vmatprep.subr.bf16.mxu0 %v6204_v5 }
  0xbe   : > { %5272 = vmatmul.mubr.msk.bf16.gmra.mrb[8].mxu0 %vm393_vm0, %v6323_v29  ;;  %v4551_v29 = vld [vmem:[%s6270_s12 + $0x129] sm:$0xff] }
  0xbf   : > { %5275 = vmatprep.mubr.msk.bf16.mxu0 %vm393_vm0, %v6333_v34  ;;  %5464 = vmatpush3.bf16.msra.mxu0 %v6136_v20  ;;  %v1042_v34 = vpack.c.bf16 %v4551_v29, %v4550_v28  ;;  %v6146_v29 = vld [vmem:[%s8600_s3 + $0x10] sm:$0xff]  }
  0xc0   : > { %5465 = vmatprep.subr.bf16.mxu0 %v6204_v5 }
  0xc3   : > { %5466 = vmatpush3.bf16.msra.mxu0 %v6138_v21 }
  0xc4   : > { %5467 = vmatprep.subr.bf16.mxu0 %v6204_v5 }
  0xc6   : > { %5276 = vmatmul.mubr.msk.bf16.gmra.mrb[12].mxu0 %vm393_vm0, %v6335_v35  ;;  %v6140_v35 = vld [vmem:[%s8600_s3 + $0xb0] sm:$0xff]  }
  0xc7   : > { %5279 = vmatprep.mubr.msk.bf16.mxu0 %vm393_vm0, %v6345_v40  ;;  %5468 = vmatpush3.bf16.msra.mxu0 %v6140_v35  ;;  %v6141_v40 = vld [vmem:[%s8600_s3 + $0x70] sm:$0xff]  }
  0xc8   : > { %5469 = vmatprep.subr.bf16.mxu0 %v6204_v5  ;;  %5300 = vmatpush3.bf16.msra.mxu1 %v6141_v40 }
  0xc9   : > { %5301 = vmatprep.subr.bf16.mxu1 %v6204_v5 }
  0xce   : > { %5280 = vmatmul.mubr.msk.bf16.gmra.mrb[16].mxu0 %vm393_vm0, %v6347_v41  ;;  %v6142_v41 = vld [vmem:[%s8600_s3 + $0xb8] sm:$0xff]  }
  0xcf   : > { %5283 = vmatprep.mubr.msk.bf16.mxu0 %vm393_vm0, %v6357_v46  ;;  %5470 = vmatpush3.bf16.msra.mxu0 %v6142_v41  ;;  %v6143_v46 = vld [vmem:[%s8600_s3 + $0x78] sm:$0xff]  }
  0xd0   : > { %5623 = vmatprep.subr.bf16.mxu0 %v6204_v5  ;;  %5302 = vmatpush3.bf16.msra.mxu1 %v6143_v46 }
  0xd1   : > { %5371 = vmatprep.subr.bf16.mxu1 %v6204_v5 }
  0xd6   : > { %5284 = vmatmul.mubr.msk.bf16.gmra.mrb[20].mxu0 %vm393_vm0, %v1042_v34 }
  0xd7   : > { %5471 = vmatprep.mubr.msk.bf16.mxu0 %vm6205_vm1, %v6204_v5 }
 0x181   : > { %v5265_v48 = vpop.f32.mrb[0].mxu0 }
 0x182   : > { %v1274_v49 = vadd.f32 %v5265_v48, %v6540_v47  ;;  %v1146_v50 = vpop.f32.mrb[1].mxu0 }
 0x183   : > { %v1272_v51 = vadd.f32 %v6540_v47, %v1146_v50  ;;  %v5266_v52 = vpop.f32.mrb[2].mxu0 }
 0x184   : > { %v6544_v53 = vmax.f32 %v1274_v49, 0.0  ;;  %v1275_v54 = vadd.f32 %v5266_v52, %v6540_v47  ;;  %v1149_v55 = vpop.f32.mrb[3].mxu0 }
 0x185   : > { %v1296_v56 = vmax.f32 %v1272_v51, 0.0  ;;  %v1273_v57 = vadd.f32 %v6540_v47, %v1149_v55 }
 0x186   : > { %v6548_v58 = vmax.f32 %v1275_v54, 0.0  ;;  %v1383_v61 = vrot.slane %v6544_v53, 1  ;;  %v6147_v54 = vld [vmem:[%s8600_s3 + $0x18] sm:$0xff]  }
 0x187   : > { %v1297_v60 = vmax.f32 %v1273_v57, 0.0  ;;  %v1377_v0 = vrot.slane %v1296_v56, 1 }
 0x188   : > { %v1384_v62 = vrot.slane %v6548_v58, 1  ;;  %v1912_v63 = vpack.c.bf16 %v6548_v58, %v6544_v53 }
 0x189   : > { %v6557_v1 = vpack.c.bf16 %v1297_v60, %v1296_v56  ;;  %v1378_v2 = vrot.slane %v1297_v60, 1  ;;  %v5269_v3 = vpop.f32.mrb[4].mxu0 }
 0x18a   : > { %v1278_v4 = vadd.f32 %v5269_v3, %v6540_v47  ;;  %v1162_v6 = vpop.f32.mrb[5].mxu0  ;;  %5472 = vmatmul.mubr.bf16.vlgmr.msra.gmra.mrb[24].mxu0 %v1912_v63  ;;  %v6561_v7 = vsel %vm1376_vm2, %v1383_v61, %v1384_v62  ;;  %v6565_v8 = vsel %vm1376_vm2, %v1384_v62, %v6551_v59 }
 0x18b   : > { %v1276_v9 = vadd.f32 %v6540_v47, %v1162_v6  ;;  %v5270_v10 = vpop.f32.mrb[6].mxu0  ;;  %v1379_v11 = vsel %vm1376_vm2, %v1377_v0, %v1378_v2  ;;  %v1381_v14 = vsel %vm1376_vm2, %v1378_v2, %v6551_v59  ;;  %5475 = vmatprep.mubr.msk.bf16.mxu0 %vm6205_vm1, %v6204_v5  ;;  %v1447_v44 = vpack.c.bf16 %v6561_v7, %v6551_v59 }
 0x18c   : > { %v6576_v16 = vmax.f32 %v1278_v4, 0.0  ;;  %v1279_v17 = vadd.f32 %v5270_v10, %v6540_v47  ;;  %v1165_v18 = vpop.f32.mrb[7].mxu0  ;;  %v1446_v19 = vpack.c.bf16 %v1381_v14, %v1379_v11 }
 0x18d   : > { %v6579_v22 = vmax.f32 %v1276_v9, 0.0  ;;  %v1277_v23 = vadd.f32 %v6540_v47, %v1165_v18 }
 0x18e   : > { %v6584_v25 = vmax.f32 %v1279_v17, 0.0  ;;  %5304 = vmatmul.mubr.bf16.vlgmr.msra.gmra.mrb[0].mxu1 %v1446_v19  ;;  %v1391_v31 = vrot.slane %v6576_v16, 1  ;;  %v6148_v17 = vld [vmem:[%s8600_s3 + $0x20] sm:$0xff]  }
 0x18f   : > { %v6586_v26 = vmax.f32 %v1277_v23, 0.0  ;;  %5372 = vmatpush3.bf16.msra.mxu1 %v6144_v15  ;;  %v1913_v27 = vpack.c.bf16 %v6579_v22, %v6204_v5  ;;  %5307 = vmatprep.mubr.msk.bf16.mxu1 %vm6205_vm1, %v6204_v5  ;;  %v1387_v36 = vrot.slane %v6579_v22, 1 }
 0x190   : > { %v1392_v32 = vrot.slane %v6584_v25, 1  ;;  %5373 = vmatprep.subr.bf16.mxu1 %v6204_v5  ;;  %v1915_v33 = vpack.c.bf16 %v6584_v25, %v6576_v16 }
 0x191   : > { %v1388_v37 = vrot.slane %v6586_v26, 1  ;;  %v5273_v38 = vpop.f32.mrb[8].mxu0  ;;  %v1914_v60 = vpack.c.bf16 %v6204_v5, %v6586_v26 }
 0x192   : > { %v1282_v42 = vadd.f32 %v5273_v38, %v6540_v47  ;;  %v1178_v43 = vpop.f32.mrb[9].mxu0  ;;  %5476 = vmatmul.mubr.bf16.gmra.mrb[28].mxu0 %v1913_v27  ;;  %v6608_v12 = vsel %vm1376_vm2, %v1391_v31, %v1392_v32  ;;  %v6631_v41 = vsel %vm1376_vm2, %v1392_v32, %v6551_v59  ;;  %v1448_v27 = vpack.c.bf16 %v6551_v59, %v6565_v8 }
 0x193   : > { %v1280_v13 = vadd.f32 %v6540_v47, %v1178_v43  ;;  %v5274_v20 = vpop.f32.mrb[10].mxu0  ;;  %5479 = vmatprep.mubr.msk.bf16.mxu0 %vm6205_vm1, %v6204_v5  ;;  %5374 = vmatpush3.bf16.msra.mxu1 %v6145_v30  ;;  %v6614_v21 = vsel %vm1376_vm2, %v1387_v36, %v1388_v37  ;;  %v6618_v28 = vsel %vm1376_vm2, %v1388_v37, %v6551_v59 }
 0x194   : > { %v6623_v34 = vmax.f32 %v1282_v42, 0.0  ;;  %v1283_v45 = vadd.f32 %v5274_v20, %v6540_v47  ;;  %v1181_v35 = vpop.f32.mrb[11].mxu0  ;;  %v1449_v40 = vpack.c.bf16 %v6618_v28, %v6614_v21  ;;  %5375 = vmatprep.subr.bf16.mxu1 %v6204_v5 }
 0x195   : > { %v6633_v46 = vmax.f32 %v1280_v13, 0.0  ;;  %v1281_v48 = vadd.f32 %v6540_v47, %v1181_v35 }
 0x196   : > { %v6638_v50 = vmax.f32 %v1283_v45, 0.0  ;;  %5308 = vmatmul.mubr.bf16.gmra.mrb[4].mxu1 %v1447_v44  ;;  %v1399_v56 = vrot.slane %v6623_v34, 1  ;;  %v6149_v45 = vld [vmem:[%s8600_s3 + $0x28] sm:$0xff]  }
 0x197   : > { %v6642_v52 = vmax.f32 %v1281_v48, 0.0  ;;  %5311 = vmatprep.mubr.msk.bf16.mxu1 %vm6205_vm1, %v6204_v5  ;;  %5376 = vmatpush3.bf16.msra.mxu1 %v6146_v29  ;;  %v1395_v62 = vrot.slane %v6633_v46, 1 }
 0x198   : > { %v1400_v57 = vrot.slane %v6638_v50, 1  ;;  %v1918_v61 = vpack.c.bf16 %v6638_v50, %v6623_v34  ;;  %5377 = vmatprep.subr.bf16.mxu1 %v6204_v5 }
 0x199   : > { %v1396_v63 = vrot.slane %v6642_v52, 1  ;;  %v5277_v0 = vpop.f32.mrb[12].mxu0 }
 0x19a   : > { %v1286_v3 = vadd.f32 %v5277_v0, %v6540_v47  ;;  %v1194_v4 = vpop.f32.mrb[13].mxu0  ;;  %5480 = vmatmul.mubr.bf16.gmra.mrb[32].mxu0 %v1914_v60  ;;  %v6664_v6 = vsel %vm1376_vm2, %v1399_v56, %v1400_v57  ;;  %v6668_v9 = vsel %vm1376_vm2, %v1400_v57, %v6551_v59 }
 0x19b   : > { %v1284_v10 = vadd.f32 %v6540_v47, %v1194_v4  ;;  %v5278_v11 = vpop.f32.mrb[14].mxu0  ;;  %5483 = vmatprep.mubr.msk.bf16.mxu0 %vm6205_vm1, %v6204_v5  ;;  %v6674_v14 = vsel %vm1376_vm2, %v1395_v62, %v1396_v63  ;;  %v6678_v15 = vsel %vm1376_vm2, %v1396_v63, %v6551_v59  ;;  %5378 = vmatpush3.bf16.msra.mxu1 %v6147_v54 }
 0x19c   : > { %v6683_v18 = vmax.f32 %v1286_v3, 0.0  ;;  %v1287_v19 = vadd.f32 %v5278_v11, %v6540_v47  ;;  %v1197_v23 = vpop.f32.mrb[15].mxu0  ;;  %v1452_v30 = vpack.c.bf16 %v6678_v15, %v6674_v14  ;;  %5379 = vmatprep.subr.bf16.mxu1 %v6204_v5  ;;  %v1454_v36 = vpack.c.bf16 %v6551_v59, %v6668_v9 }
 0x19d   : > { %v6691_v31 = vmax.f32 %v1284_v10, 0.0  ;;  %v1285_v32 = vadd.f32 %v6540_v47, %v1197_v23 }
 0x19e   : > { %v6698_v38 = vmax.f32 %v1287_v19, 0.0  ;;  %5312 = vmatmul.mubr.bf16.gmra.mrb[8].mxu1 %v1448_v27  ;;  %v1407_v13 = vrot.slane %v6683_v18, 1 }
 0x19f   : > { %v6702_v43 = vmax.f32 %v1285_v32, 0.0  ;;  %5315 = vmatprep.mubr.msk.bf16.mxu1 %vm6205_vm1, %v6204_v5  ;;  %5380 = vmatpush3.bf16.msra.mxu1 %v6148_v17  ;;  %v1403_v35 = vrot.slane %v6691_v31, 1  ;;  %v6150_v32 = vld [vmem:[%s8600_s3 + $0x30] sm:$0xff]  }
 0x1a0   : > { %v1408_v20 = vrot.slane %v6698_v38, 1  ;;  %v1921_v29 = vpack.c.bf16 %v6698_v38, %v6683_v18  ;;  %5381 = vmatprep.subr.bf16.mxu1 %v6204_v5 }
 0x1a1   : > { %v1404_v48 = vrot.slane %v6702_v43, 1  ;;  %v5281_v54 = vpop.f32.mrb[16].mxu0 }
 0x1a2   : > { %v1290_v57 = vadd.f32 %v5281_v54, %v6540_v47  ;;  %v1210_v60 = vpop.f32.mrb[17].mxu0  ;;  %5484 = vmatmul.mubr.bf16.gmra.mrb[36].mxu0 %v1915_v33  ;;  %v6725_v62 = vsel %vm1376_vm2, %v1407_v13, %v1408_v20  ;;  %v6729_v63 = vsel %vm1376_vm2, %v1408_v20, %v6551_v59 }
 0x1a3   : > { %v1288_v0 = vadd.f32 %v6540_v47, %v1210_v60  ;;  %v5282_v3 = vpop.f32.mrb[18].mxu0  ;;  %5487 = vmatprep.mubr.msk.bf16.mxu0 %vm6205_vm1, %v6204_v5  ;;  %v6735_v4 = vsel %vm1376_vm2, %v1403_v35, %v1404_v48  ;;  %v6739_v10 = vsel %vm1376_vm2, %v1404_v48, %v6551_v59  ;;  %v1456_v33 = vpack.c.bf16 %v6725_v62, %v6551_v59 }
 0x1a4   : > { %v6743_v11 = vmax.f32 %v1290_v57, 0.0  ;;  %v1291_v17 = vadd.f32 %v5282_v3, %v6540_v47  ;;  %v1213_v19 = vpop.f32.mrb[19].mxu0  ;;  %v1455_v23 = vpack.c.bf16 %v6739_v10, %v6735_v4  ;;  %5382 = vmatpush3.bf16.msra.mxu1 %v6149_v45  ;;  %v1457_v27 = vpack.c.bf16 %v6551_v59, %v6729_v63 }
 0x1a5   : > { %v6753_v13 = vmax.f32 %v1288_v0, 0.0  ;;  %v1289_v20 = vadd.f32 %v6540_v47, %v1213_v19  ;;  %5383 = vmatprep.subr.bf16.mxu1 %v6204_v5  ;;  %v1916_v3 = vpack.c.bf16 %v6633_v46, %v6204_v5 }
 0x1a6   : > { %v6761_v45 = vmax.f32 %v1291_v17, 0.0  ;;  %5316 = vmatmul.mubr.bf16.gmra.mrb[12].mxu1 %v1449_v40  ;;  %v1415_v60 = vrot.slane %v6743_v11, 1  ;;  %v6151_v40 = vld [vmem:[%s8600_s3 + $0x38] sm:$0xff]  }
 0x1a7   : > { %v6768_v57 = vmax.f32 %v1289_v20, 0.0  ;;  %5319 = vmatprep.mubr.msk.bf16.mxu1 %vm6205_vm1, %v6204_v5  ;;  %v1411_v19 = vrot.slane %v6753_v13, 1 }
 0x1a8   : > { %v1416_v0 = vrot.slane %v6761_v45, 1  ;;  %v1924_v17 = vpack.c.bf16 %v6761_v45, %v6743_v11  ;;  %5384 = vmatpush3.bf16.msra.mxu1 %v6150_v32  ;;  %v1450_v32 = vpack.c.bf16 %v6608_v12, %v6551_v59 }
 0x1a9   : > { %v1412_v20 = vrot.slane %v6768_v57, 1  ;;  %v5285_v54 = vpop.f32.mrb[20].mxu0  ;;  %5385 = vmatprep.subr.bf16.mxu1 %v6204_v5 }
 0x1aa   : > { %v1294_v35 = vadd.f32 %v5285_v54, %v6540_v47  ;;  %v1226_v44 = vpop.f32.mrb[21].mxu0  ;;  %5488 = vmatmul.mubr.bf16.gmra.mrb[40].mxu0 %v1916_v3  ;;  %v6790_v42 = vsel %vm1376_vm2, %v1415_v60, %v1416_v0  ;;  %v6794_v37 = vsel %vm1376_vm2, %v1416_v0, %v6551_v59 }
 0x1ab   : > { %v1292_v55 = vadd.f32 %v6540_v47, %v1226_v44  ;;  %v5286_v51 = vpop.f32.mrb[22].mxu0  ;;  %5491 = vmatprep.mubr.msk.bf16.mxu0 %vm6205_vm1, %v6204_v5  ;;  %v6800_v54 = vsel %vm1376_vm2, %v1411_v19, %v1412_v20  ;;  %v6804_v3 = vsel %vm1376_vm2, %v1412_v20, %v6551_v59  ;;  %v1459_v60 = vpack.c.bf16 %v6790_v42, %v6551_v59 }
 0x1ac   : > { %v1318_v49 = vmax.f32 %v1294_v35, 0.0  ;;  %v1295_v0 = vadd.f32 %v5286_v51, %v6540_v47  ;;  %v1229_v24 = vpop.f32.mrb[23].mxu0  ;;  %v1458_v44 = vpack.c.bf16 %v6804_v3, %v6800_v54  ;;  %v1460_v48 = vpack.c.bf16 %v6551_v59, %v6794_v37  ;;  %5386 = vmatpush3.bf16.msra.mxu1 %v6151_v40 }
 0x1ad   : > { %v6813_v19 = vmax.f32 %v1292_v55, 0.0  ;;  %v1293_v56 = vadd.f32 %v6540_v47, %v1229_v24  ;;  %5539 = vmatprep.subr.bf16.mxu1 %v6204_v5  ;;  %v1917_v40 = vpack.c.bf16 %v6204_v5, %v6642_v52 }
 0x1ae   : > { %v1319_v35 = vmax.f32 %v1295_v0, 0.0  ;;  %5320 = vmatmul.mubr.bf16.gmra.mrb[16].mxu1 %v1450_v32  ;;  %v2196_v55 = vrot.slane %v1318_v49, 1 }
 0x1af   : > { %v6823_v39 = vmax.f32 %v1293_v56, 0.0  ;;  %5323 = vmatprep.mubr.msk.bf16.mxu1 %vm6205_vm1, %v6204_v5  ;;  %v1419_v20 = vrot.slane %v6813_v19, 1 }
 0x1b0   : > { %v1927_v47 = vpack.c.bf16 %v1319_v35, %v1318_v49  ;;  %v2197_v24 = vrot.slane %v1319_v35, 1 }
 0x1b1   : > { %v1420_v51 = vrot.slane %v6823_v39, 1  ;;  %v1335_v32 = vpack.c.bf16 %v6823_v39, %v6813_v19 }
 0x1b2   : > { %5492 = vmatmul.mubr.bf16.gmra.mrb[44].mxu0 %v1917_v40  ;;  %v6834_v56 = vsel %vm1376_vm2, %v2196_v55, %v2197_v24  ;;  %v6838_v0 = vsel %vm1376_vm2, %v2197_v24, %v6551_v59  ;;  %v1451_v55 = vpack.c.bf16 %v6551_v59, %v6631_v41 }
 0x1b3   : > { %5495 = vmatprep.mubr.msk.bf16.mxu0 %vm6205_vm1, %v6204_v5  ;;  %v6843_v49 = vsel %vm1376_vm2, %v1419_v20, %v1420_v51  ;;  %v6847_v35 = vsel %vm1376_vm2, %v1420_v51, %v6551_v59  ;;  %v1919_v51 = vpack.c.bf16 %v6691_v31, %v6204_v5 }
 0x1b4   : > { %v1461_v24 = vpack.c.bf16 %v6847_v35, %v6843_v49 }
 0x1b6   : > { %5324 = vmatmul.mubr.bf16.gmra.mrb[20].mxu1 %v1451_v55  ;;  %v6156_v55 = vld [vmem:[%s8600_s3 + $0xe0] sm:$0xff]  }
 0x1b7   : > { %5327 = vmatprep.mubr.msk.bf16.mxu1 %vm6205_vm1, %v6204_v5 }
 0x1ba   : > { %5496 = vmatmul.mubr.bf16.gmra.mrb[48].mxu0 %v1918_v61  ;;  %v1453_v61 = vpack.c.bf16 %v6664_v6, %v6551_v59 }
 0x1bb   : > { %5499 = vmatprep.mubr.msk.bf16.mxu0 %vm6205_vm1, %v6204_v5 }
 0x1be   : > { %5328 = vmatmul.mubr.bf16.gmra.mrb[24].mxu1 %v1452_v30  ;;  %v1920_v30 = vpack.c.bf16 %v6204_v5, %v6702_v43 }
 0x1bf   : > { %5331 = vmatprep.mubr.msk.bf16.mxu1 %vm6205_vm1, %v6204_v5 }
 0x1c2   : > { %5500 = vmatmul.mubr.bf16.gmra.mrb[52].mxu0 %v1919_v51  ;;  %v6158_v51 = vld [vmem:[%s8600_s3 + $0xf0] sm:$0xff]  }
 0x1c3   : > { %5503 = vmatprep.mubr.msk.bf16.mxu0 %vm6205_vm1, %v6204_v5 }
 0x1c6   : > { %5332 = vmatmul.mubr.bf16.gmra.mrb[28].mxu1 %v1453_v61  ;;  %v6159_v61 = vld [vmem:[%s8600_s3 + $0xf8] sm:$0xff]  }
 0x1c7   : > { %5335 = vmatprep.mubr.msk.bf16.mxu1 %vm6205_vm1, %v6204_v5 }
 0x1ca   : > { %5504 = vmatmul.mubr.bf16.gmra.mrb[56].mxu0 %v1920_v30  ;;  %v1324_v30 = vpack.c.bf16 %v6576_v16, %v6204_v5  ;;  %v1327_v16 = vpack.c.bf16 %v6623_v34, %v6204_v5 }
 0x1cb   : > { %5507 = vmatprep.mubr.msk.bf16.mxu0 %vm6205_vm1, %v6204_v5 }
 0x1ce   : > { %5336 = vmatmul.mubr.bf16.gmra.mrb[32].mxu1 %v1454_v36  ;;  %v1922_v36 = vpack.c.bf16 %v6753_v13, %v6204_v5 }
 0x1cf   : > { %5339 = vmatprep.mubr.msk.bf16.mxu1 %vm6205_vm1, %v6204_v5 }
 0x1d2   : > { %5508 = vmatmul.mubr.bf16.gmra.mrb[60].mxu0 %v1921_v29  ;;  %v1923_v29 = vpack.c.bf16 %v6204_v5, %v6768_v57 }
 0x1d3   : > { %5511 = vmatprep.mubr.msk.bf16.mxu0 %vm6205_vm1, %v6204_v5 }
 0x1d6   : > { %5340 = vmatmul.mubr.bf16.gmra.mrb[36].mxu1 %v1455_v23  ;;  %v1926_v23 = vpack.c.bf16 %v6204_v5, %v6823_v39 }
 0x1d7   : > { %5343 = vmatprep.mubr.msk.bf16.mxu1 %vm6205_vm1, %v6204_v5 }
 0x1da   : > { %5512 = vmatmul.mubr.bf16.gmra.mrb[64].mxu0 %v1922_v36 }
 0x1db   : > { %5515 = vmatprep.mubr.msk.bf16.mxu0 %vm6205_vm1, %v6204_v5 }
 0x1de   : > { %5344 = vmatmul.mubr.bf16.gmra.mrb[40].mxu1 %v1456_v33  ;;  %v1925_v33 = vpack.c.bf16 %v6813_v19, %v6204_v5 }
 0x1df   : > { %5347 = vmatprep.mubr.msk.bf16.mxu1 %vm6205_vm1, %v6204_v5 }
 0x1e2   : > { %5516 = vmatmul.mubr.bf16.gmra.mrb[68].mxu0 %v1923_v29 }
 0x1e3   : > { %5519 = vmatprep.mubr.msk.bf16.mxu0 %vm6205_vm1, %v6204_v5 }
 0x1e6   : > { %5348 = vmatmul.mubr.bf16.gmra.mrb[44].mxu1 %v1457_v27  ;;  %v6950_v27 = vpack.c.bf16 %v6551_v59, %v6551_v59 }
 0x1e7   : > { %5351 = vmatprep.mubr.msk.bf16.mxu1 %vm6205_vm1, %v6204_v5 }
 0x1ea   : > { %5520 = vmatmul.mubr.bf16.gmra.mrb[72].mxu0 %v1924_v17  ;;  %v6206_v17 = vmov 0.0|0.0  }
 0x1eb   : > { %5523 = vmatprep.mubr.msk.bf16.mxu0 %vm6205_vm1, %v6204_v5 }
 0x1ee   : > { %5352 = vmatmul.mubr.bf16.gmra.mrb[48].mxu1 %v1458_v44  ;;  %v1321_v44 = vpack.c.bf16 %v6544_v53, %v6204_v5  ;;  %v1322_v53 = vpack.c.bf16 %v6204_v5, %v6548_v58  ;;  %v8605_v58 = vpack.c.bf16 %v6586_v26, %v6579_v22  ;;  %v1325_v22 = vpack.c.bf16 %v6204_v5, %v6584_v25 }
 0x1ef   : > { %5355 = vmatprep.mubr.msk.bf16.mxu1 %vm6205_vm1, %v6204_v5  ;;  %v8606_v26 = vpack.c.bf16 %v6642_v52, %v6633_v46  ;;  %v1328_v25 = vpack.c.bf16 %v6204_v5, %v6638_v50  ;;  %v8607_v46 = vpack.c.bf16 %v6702_v43, %v6691_v31 }
 0x1f2   : > { %5524 = vmatmul.mubr.bf16.gmra.mrb[76].mxu0 %v1925_v33 }
 0x1f3   : > { %5527 = vmatprep.mubr.msk.bf16.mxu0 %vm6205_vm1, %v6204_v5 }
 0x1f6   : > { %5356 = vmatmul.mubr.bf16.gmra.mrb[52].mxu1 %v1459_v60  ;;  %v6153_v60 = vld [vmem:[%s8600_s3 + $0xc8] sm:$0xff]  }
 0x1f7   : > { %5359 = vmatprep.mubr.msk.bf16.mxu1 %vm6205_vm1, %v6204_v5 }
 0x1fa   : > { %5528 = vmatmul.mubr.bf16.gmra.mrb[80].mxu0 %v1926_v23 }
 0x1fb   : > { %5531 = vmatprep.mubr.msk.bf16.mxu0 %vm6205_vm1, %v6204_v5 }
 0x1fe   : > { %5360 = vmatmul.mubr.bf16.gmra.mrb[56].mxu1 %v1460_v48  ;;  %v6152_v48 = vld [vmem:[%s8600_s3 + $0xc0] sm:$0xff]  }
 0x1ff   : > { %5363 = vmatprep.mubr.msk.bf16.mxu1 %vm6205_vm1, %v6204_v5 }
 0x202   : > { %5532 = vmatmul.mubr.bf16.gmra.mrb[84].mxu0 %v1927_v47  ;;  %v6155_v47 = vld [vmem:[%s8600_s3 + $0xd8] sm:$0xff]  }
 0x203   : > { %5535 = vmatprep.mubr.msk.bf16.mxu0 %vm6205_vm1, %v6204_v5 }
 0x206   : > { %5364 = vmatmul.mubr.bf16.gmra.mrb[60].mxu1 %v1461_v24  ;;  %v6157_v24 = vld [vmem:[%s8600_s3 + $0xe8] sm:$0xff]  }
 0x207   : > { %5367 = vmatprep.mubr.msk.bf16.mxu1 %vm6205_vm1, %v6204_v5 }
 0x20a   : > { %5536 = vmatmul.mubr.bf16.gmra.mrb[88].mxu0 %v6206_v17 }
 0x20b   : > { %5631 = vmatprep.mubr.msk.bf16.mxu0 %vm6205_vm1, %v6204_v5 }
 0x20e   : > { %5368 = vmatmul.mubr.bf16.gmra.mrb[64].mxu1 %v6950_v27 }
 0x20f   : > { %5387 = vmatprep.mubr.msk.bf16.mxu1 %vm6205_vm1, %v6204_v5 }
 0x216   : > { %5388 = vmatmul.mubr.bf16.vlgmr.msra.gmra.mrb[68].mxu1 %v6557_v1  ;;  %v6154_v1 = vld [vmem:[%s8600_s3 + $0xd0] sm:$0xff]  }
 0x217   : > { %5540 = vmatpush3.bf16.msra.mxu1 %v6152_v48  ;;  %5391 = vmatprep.mubr.msk.bf16.mxu1 %vm6205_vm1, %v6204_v5 }
 0x218   : > { %5541 = vmatprep.subr.bf16.mxu1 %v6204_v5 }
 0x21b   : > { %5542 = vmatpush3.bf16.msra.mxu1 %v6153_v60  ;;  %v1330_v60 = vpack.c.bf16 %v6683_v18, %v6204_v5 }
 0x21c   : > { %5543 = vmatprep.subr.bf16.mxu1 %v6204_v5 }
 0x21e   : > { %5392 = vmatmul.mubr.bf16.gmra.mrb[72].mxu1 %v1321_v44 }
 0x21f   : > { %5395 = vmatprep.mubr.msk.bf16.mxu1 %vm6205_vm1, %v6204_v5  ;;  %5544 = vmatpush3.bf16.msra.mxu1 %v6154_v1 }
 0x220   : > { %5545 = vmatprep.subr.bf16.mxu1 %v6204_v5 }
 0x223   : > { %5546 = vmatpush3.bf16.msra.mxu1 %v6155_v47 }
 0x224   : > { %5547 = vmatprep.subr.bf16.mxu1 %v6204_v5 }
 0x226   : > { %5396 = vmatmul.mubr.bf16.gmra.mrb[76].mxu1 %v1322_v53 }
 0x227   : > { %5399 = vmatprep.mubr.msk.bf16.mxu1 %vm6205_vm1, %v6204_v5  ;;  %5548 = vmatpush3.bf16.msra.mxu1 %v6156_v55 }
 0x228   : > { %5549 = vmatprep.subr.bf16.mxu1 %v6204_v5 }
 0x22b   : > { %5550 = vmatpush3.bf16.msra.mxu1 %v6157_v24 }
 0x22c   : > { %5551 = vmatprep.subr.bf16.mxu1 %v6204_v5 }
 0x22e   : > { %5400 = vmatmul.mubr.bf16.gmra.mrb[80].mxu1 %v8605_v58 }
 0x22f   : > { %5403 = vmatprep.mubr.msk.bf16.mxu1 %vm6205_vm1, %v6204_v5  ;;  %5552 = vmatpush3.bf16.msra.mxu1 %v6158_v51  ;;  %v1331_v51 = vpack.c.bf16 %v6204_v5, %v6698_v38  ;;  %v8608_v38 = vpack.c.bf16 %v6768_v57, %v6753_v13 }
 0x230   : > { %5553 = vmatprep.subr.bf16.mxu1 %v6204_v5 }
 0x233   : > { %5554 = vmatpush3.bf16.msra.mxu1 %v6159_v61 }
 0x234   : > { %5711 = vmatprep.subr.bf16.mxu1 %v6204_v5 }
 0x236   : > { %5404 = vmatmul.mubr.bf16.gmra.mrb[84].mxu1 %v1324_v30 }
 0x237   : > { %5407 = vmatprep.mubr.msk.bf16.mxu1 %vm6205_vm1, %v6204_v5 }
 0x23e   : > { %5408 = vmatmul.mubr.bf16.gmra.mrb[88].mxu1 %v1325_v22 }
 0x23f   : > { %5411 = vmatprep.mubr.msk.bf16.mxu1 %vm6205_vm1, %v6204_v5 }
 0x246   : > { %5412 = vmatmul.mubr.bf16.gmra.mrb[92].mxu1 %v8606_v26 }
 0x247   : > { %5415 = vmatprep.mubr.msk.bf16.mxu1 %vm6205_vm1, %v6204_v5 }
 0x24e   : > { %5416 = vmatmul.mubr.bf16.gmra.mrb[96].mxu1 %v1327_v16 }
 0x24f   : > { %5419 = vmatprep.mubr.msk.bf16.mxu1 %vm6205_vm1, %v6204_v5 }
 0x256   : > { %5420 = vmatmul.mubr.bf16.gmra.mrb[100].mxu1 %v1328_v25 }
 0x257   : > { %5423 = vmatprep.mubr.msk.bf16.mxu1 %vm6205_vm1, %v6204_v5 }
 0x25d   : > { %v7027_v36 = vpop.f32.mrb[24].mxu0 }
 0x25e   : > { %5424 = vmatmul.mubr.bf16.gmra.mrb[104].mxu1 %v8607_v46  ;;  %v5473_v52 = vpop.f32.mrb[25].mxu0 }
 0x25f   : > { %v7032_v29 = vpop.f32.mrb[26].mxu0  ;;  %5427 = vmatprep.mubr.msk.bf16.mxu1 %vm6205_vm1, %v6204_v5 }
 0x260   : > { %v5474_v34 = vpop.f32.mrb[27].mxu0 }
 0x261   : > { %v7036_v33 = vpop.f32.mrb[0].mxu1 }
 0x262   : > { %v5305_v50 = vpop.f32.mrb[1].mxu1 }
 0x263   : > { %v7038_v23 = vpop.f32.mrb[2].mxu1 }
 0x264   : > { %v5306_v48 = vpop.f32.mrb[3].mxu1 }
 0x265   : > { %v7042_v1 = vpop.f32.mrb[28].mxu0 }
 0x266   : > { %5428 = vmatmul.mubr.bf16.gmra.mrb[108].mxu1 %v1330_v60  ;;  %v5477_v31 = vpop.f32.mrb[29].mxu0 }
 0x267   : > { %v7044_v43 = vpop.f32.mrb[30].mxu0  ;;  %5431 = vmatprep.mubr.msk.bf16.mxu1 %vm6205_vm1, %v6204_v5 }
 0x268   : > { %v5478_v44 = vpop.f32.mrb[31].mxu0 }
 0x269   : > { %v7048_v47 = vpop.f32.mrb[4].mxu1 }
 0x26a   : > { %v5309_v55 = vpop.f32.mrb[5].mxu1 }
 0x26b   : > { %v7050_v53 = vpop.f32.mrb[6].mxu1  ;;  %v1333_v55 = vpack.c.bf16 %v6743_v11, %v6204_v5 }
 0x26c   : > { %v5310_v24 = vpop.f32.mrb[7].mxu1 }
 0x26d   : > { %v7054_v18 = vpop.f32.mrb[32].mxu0 }
 0x26e   : > { %5432 = vmatmul.mubr.bf16.gmra.mrb[112].mxu1 %v1331_v51  ;;  %v5481_v58 = vpop.f32.mrb[33].mxu0 }
 0x26f   : > { %v7056_v61 = vpop.f32.mrb[34].mxu0  ;;  %5435 = vmatprep.mubr.msk.bf16.mxu1 %vm6205_vm1, %v6204_v5 }
 0x270   : > { %v5482_v30 = vpop.f32.mrb[35].mxu0 }
 0x271   : > { %v7060_v22 = vpop.f32.mrb[8].mxu1 }
 0x272   : > { %v5313_v26 = vpop.f32.mrb[9].mxu1 }
 0x273   : > { %v7062_v16 = vpop.f32.mrb[10].mxu1 }
 0x274   : > { %v5314_v25 = vpop.f32.mrb[11].mxu1 }
 0x275   : > { %v7064_v46 = vpop.f32.mrb[36].mxu0 }
 0x276   : > { %5436 = vmatmul.mubr.bf16.gmra.mrb[116].mxu1 %v8608_v38  ;;  %v5485_v52 = vpop.f32.mrb[37].mxu0  ;;  %v1334_v38 = vpack.c.bf16 %v6204_v5, %v6761_v45 }
 0x277   : > { %v7069_v34 = vpop.f32.mrb[38].mxu0  ;;  %5439 = vmatprep.mubr.msk.bf16.mxu1 %vm6205_vm1, %v6204_v5 }
 0x278   : > { %v5486_v50 = vpop.f32.mrb[39].mxu0 }
 0x279   : > { %v7073_v48 = vpop.f32.mrb[12].mxu1 }
 0x27a   : > { %v5317_v60 = vpop.f32.mrb[13].mxu1 }
 0x27b   : > { %v7075_v31 = vpop.f32.mrb[14].mxu1 }
 0x27c   : > { %v5318_v44 = vpop.f32.mrb[15].mxu1 }
 0x27d   : > { %v7079_v24 = vpop.f32.mrb[40].mxu0 }
 0x27e   : > { %5440 = vmatmul.mubr.bf16.gmra.mrb[120].mxu1 %v1333_v55  ;;  %v5489_v13 = vpop.f32.mrb[41].mxu0 }
 0x27f   : > { %v7081_v57 = vpop.f32.mrb[42].mxu0  ;;  %5443 = vmatprep.mubr.msk.bf16.mxu1 %vm6205_vm1, %v6204_v5 }
 0x280   : > { %v5490_v51 = vpop.f32.mrb[43].mxu0 }
 0x281   : > { %v7085_v58 = vpop.f32.mrb[16].mxu1 }
 0x282   : > { %v5321_v30 = vpop.f32.mrb[17].mxu1 }
 0x283   : > { %v7087_v26 = vpop.f32.mrb[18].mxu1 }
 0x284   : > { %v5322_v25 = vpop.f32.mrb[19].mxu1 }
 0x285   : > { %v7091_v11 = vpop.f32.mrb[44].mxu0 }
 0x286   : > { %5444 = vmatmul.mubr.bf16.gmra.mrb[124].mxu1 %v1334_v38  ;;  %v5493_v52 = vpop.f32.mrb[45].mxu0 }
 0x287   : > { %v7093_v50 = vpop.f32.mrb[46].mxu0  ;;  %5447 = vmatprep.mubr.msk.bf16.mxu1 %vm6205_vm1, %v6204_v5 }
 0x288   : > { %v5494_v60 = vpop.f32.mrb[47].mxu0 }
 0x289   : > { %v7097_v44 = vpop.f32.mrb[20].mxu1 }
 0x28a   : > { %v5325_v55 = vpop.f32.mrb[21].mxu1 }
 0x28b   : > { %v7099_v13 = vpop.f32.mrb[22].mxu1 }
 0x28c   : > { %v5326_v51 = vpop.f32.mrb[23].mxu1 }
 0x28d   : > { %v7101_v30 = vpop.f32.mrb[48].mxu0 }
 0x28e   : > { %5448 = vmatmul.mubr.bf16.gmra.mrb[128].mxu1 %v1335_v32  ;;  %v5497_v45 = vpop.f32.mrb[49].mxu0 }
 0x28f   : > { %v7106_v25 = vpop.f32.mrb[50].mxu0  ;;  %5451 = vmatprep.mubr.msk.bf16.mxu1 %vm6205_vm1, %v6204_v5 }
 0x290   : > { %v5498_v38 = vpop.f32.mrb[51].mxu0 }
 0x291   : > { %v7110_v52 = vpop.f32.mrb[24].mxu1 }
 0x292   : > { %v5329_v60 = vpop.f32.mrb[25].mxu1 }
 0x293   : > { %v7112_v55 = vpop.f32.mrb[26].mxu1 }
 0x294   : > { %v5330_v40 = vpop.f32.mrb[27].mxu1 }
 0x295   : > { %v7114_v51 = vpop.f32.mrb[52].mxu0 }
 0x296   : > { %8609 = vst [vmem:[#allocation2_spill] sm:$0xff] %v7114_v51  ;;  %5452 = vmatmul.mubr.bf16.gmra.mrb[132].mxu1 %v6206_v17  ;;  %v5501_v20 = vpop.f32.mrb[53].mxu0  ;;  %v8611_v51 = vpack.c.bf16 %v6565_v8, %v6561_v7 }
 0x297   : > { %v7117_v39 = vpop.f32.mrb[54].mxu0  ;;  %5555 = vmatprep.mubr.msk.bf16.mxu1 %vm6205_vm1, %v6204_v5  ;;  %v6160_v20 = vld [vmem:[%s8602_s5 + $0x20] sm:$0xff]  }
 0x298   : > { %v5502_v19 = vpop.f32.mrb[55].mxu0  ;;  %5624 = vmatpush3.bf16.msra.mxu0 %v6160_v20 }
 0x299   : > { %v7121_v32 = vpop.f32.mrb[28].mxu1  ;;  %5625 = vmatprep.subr.bf16.mxu0 %v6204_v5 }
 0x29a   : > { %v5333_v45 = vpop.f32.mrb[29].mxu1 }
 0x29b   : > { %v7123_v38 = vpop.f32.mrb[30].mxu1 }
 0x29c   : > { %v5334_v60 = vpop.f32.mrb[31].mxu1 }
 0x29d   : > { %v7125_v2 = vpop.f32.mrb[56].mxu0 }
 0x29e   : > { %8610 = vst [vmem:[#allocation3_spill] sm:$0xff] %v7125_v2  ;;  %v5505_v40 = vpop.f32.mrb[57].mxu0  ;;  %5556 = vmatmul.mubr.bf16.vlgmr.msra.gmra.mrb[136].mxu1 %v8611_v51  ;;  %v8616_v2 = vpack.c.bf16 %v6614_v21, %v6551_v59 }
 0x29f   : > { %v7133_v17 = vpop.f32.mrb[58].mxu0  ;;  %5559 = vmatprep.mubr.msk.bf16.mxu1 %vm6205_vm1, %v6204_v5 }
 0x2a0   : > { %8612 = vst [vmem:[#allocation4_spill] sm:$0xff] %v7133_v17  ;;  %v5506_v19 = vpop.f32.mrb[59].mxu0 }
 0x2a1   : > { %v7137_v45 = vpop.f32.mrb[32].mxu1 }
 0x2a2   : > { %8613 = vst [vmem:[#allocation5_spill] sm:$0xff] %v7137_v45  ;;  %v5337_v60 = vpop.f32.mrb[33].mxu1 }
 0x2a3   : > { %v7140_v40 = vpop.f32.mrb[34].mxu1 }
 0x2a4   : > { %8614 = vst [vmem:[#allocation6_spill] sm:$0xff] %v7140_v40  ;;  %v5338_v7 = vpop.f32.mrb[35].mxu1 }
 0x2a5   : > { %v7142_v8 = vpop.f32.mrb[60].mxu0 }
 0x2a6   : > { %8615 = vst [vmem:[#allocation7_spill] sm:$0xff] %v7142_v8  ;;  %v5509_v51 = vpop.f32.mrb[61].mxu0  ;;  %5560 = vmatmul.mubr.bf16.gmra.mrb[140].mxu1 %v8616_v2 }
 0x2a7   : > { %v7147_v17 = vpop.f32.mrb[62].mxu0  ;;  %5563 = vmatprep.mubr.msk.bf16.mxu1 %vm6205_vm1, %v6204_v5  ;;  %v8620_v51 = vpack.c.bf16 %v6551_v59, %v6618_v28 }
 0x2a8   : > { %8617 = vst [vmem:[#allocation8_spill] sm:$0xff] %v7147_v17  ;;  %v5510_v20 = vpop.f32.mrb[63].mxu0 }
 0x2a9   : > { %v7151_v19 = vpop.f32.mrb[36].mxu1 }
 0x2aa   : > { %v5341_v45 = vpop.f32.mrb[37].mxu1 }
 0x2ab   : > { %v7153_v60 = vpop.f32.mrb[38].mxu1 }
 0x2ac   : > { %8618 = vst [vmem:[#allocation9_spill] sm:$0xff] %v7153_v60  ;;  %v5342_v40 = vpop.f32.mrb[39].mxu1 }
 0x2ad   : > { %v7155_v7 = vpop.f32.mrb[64].mxu0 }
 0x2ae   : > { %8619 = vst [vmem:[#allocation10_spill] sm:$0xff] %v7155_v7  ;;  %v5513_v8 = vpop.f32.mrb[65].mxu0  ;;  %5564 = vmatmul.mubr.bf16.gmra.mrb[144].mxu1 %v8620_v51 }
 0x2af   : > { %v7160_v21 = vpop.f32.mrb[66].mxu0  ;;  %5567 = vmatprep.mubr.msk.bf16.mxu1 %vm6205_vm1, %v6204_v5  ;;  %v8624_v8 = vpack.c.bf16 %v6631_v41, %v6608_v12  ;;  %v8627_v41 = vpack.c.bf16 %v6674_v14, %v6551_v59  ;;  %v8631_v14 = vpack.c.bf16 %v6551_v59, %v6678_v15 }
 0x2b0   : > { %8621 = vst [vmem:[#allocation11_spill] sm:$0xff] %v7160_v21  ;;  %v5514_v2 = vpop.f32.mrb[67].mxu0 }
 0x2b1   : > { %v7164_v20 = vpop.f32.mrb[40].mxu1 }
 0x2b2   : > { %v5345_v17 = vpop.f32.mrb[41].mxu1 }
 0x2b3   : > { %v7166_v45 = vpop.f32.mrb[42].mxu1 }
 0x2b4   : > { %8622 = vst [vmem:[#allocation12_spill] sm:$0xff] %v7166_v45  ;;  %v5346_v60 = vpop.f32.mrb[43].mxu1 }
 0x2b5   : > { %v7168_v40 = vpop.f32.mrb[68].mxu0  ;;  %v6161_v60 = vld [vmem:[%s8602_s5 + $0x28] sm:$0xff]  }
 0x2b6   : > { %8623 = vst [vmem:[#allocation13_spill] sm:$0xff] %v7168_v40  ;;  %v5517_v7 = vpop.f32.mrb[69].mxu0  ;;  %5568 = vmatmul.mubr.bf16.gmra.mrb[148].mxu1 %v8624_v8  ;;  %5626 = vmatpush3.bf16.msra.mxu0 %v6161_v60 }
 0x2b7   : > { %v7173_v28 = vpop.f32.mrb[70].mxu0  ;;  %5571 = vmatprep.mubr.msk.bf16.mxu1 %vm6205_vm1, %v6204_v5  ;;  %5627 = vmatprep.subr.bf16.mxu0 %v6204_v5 }
 0x2b8   : > { %8625 = vst [vmem:[#allocation14_spill] sm:$0xff] %v7173_v28  ;;  %v5518_v51 = vpop.f32.mrb[71].mxu0 }
 0x2b9   : > { %v7177_v2 = vpop.f32.mrb[44].mxu1 }
 0x2ba   : > { %v5349_v21 = vpop.f32.mrb[45].mxu1 }
 0x2bb   : > { %v7179_v17 = vpop.f32.mrb[46].mxu1 }
 0x2bc   : > { %v5350_v45 = vpop.f32.mrb[47].mxu1 }
 0x2bd   : > { %v7184_v7 = vpop.f32.mrb[72].mxu0 }
 0x2be   : > { %8626 = vst [vmem:[#allocation15_spill] sm:$0xff] %v7184_v7  ;;  %v5521_v12 = vpop.f32.mrb[73].mxu0  ;;  %5572 = vmatmul.mubr.bf16.gmra.mrb[152].mxu1 %v8627_v41 }
 0x2bf   : > { %v7189_v8 = vpop.f32.mrb[74].mxu0  ;;  %5575 = vmatprep.mubr.msk.bf16.mxu1 %vm6205_vm1, %v6204_v5 }
 0x2c0   : > { %8628 = vst [vmem:[#allocation16_spill] sm:$0xff] %v7189_v8  ;;  %v5522_v21 = vpop.f32.mrb[75].mxu0 }
 0x2c1   : > { %v7194_v45 = vpop.f32.mrb[48].mxu1 }
 0x2c2   : > { %v5353_v51 = vpop.f32.mrb[49].mxu1 }
 0x2c3   : > { %v7196_v28 = vpop.f32.mrb[50].mxu1 }
 0x2c4   : > { %8629 = vst [vmem:[#allocation17_spill] sm:$0xff] %v7196_v28  ;;  %v5354_v7 = vpop.f32.mrb[51].mxu1 }
 0x2c5   : > { %v7198_v12 = vpop.f32.mrb[76].mxu0 }
 0x2c6   : > { %8630 = vst [vmem:[#allocation18_spill] sm:$0xff] %v7198_v12  ;;  %v5525_v40 = vpop.f32.mrb[77].mxu0  ;;  %5576 = vmatmul.mubr.bf16.gmra.mrb[156].mxu1 %v8631_v14 }
 0x2c7   : > { %v7203_v60 = vpop.f32.mrb[78].mxu0  ;;  %5579 = vmatprep.mubr.msk.bf16.mxu1 %vm6205_vm1, %v6204_v5  ;;  %v8635_v40 = vpack.c.bf16 %v6668_v9, %v6664_v6 }
 0x2c8   : > { %8632 = vst [vmem:[#allocation19_spill] sm:$0xff] %v7203_v60  ;;  %v5526_v41 = vpop.f32.mrb[79].mxu0 }
 0x2c9   : > { %v7207_v21 = vpop.f32.mrb[52].mxu1 }
 0x2ca   : > { %v5357_v8 = vpop.f32.mrb[53].mxu1 }
 0x2cb   : > { %v7209_v51 = vpop.f32.mrb[54].mxu1 }
 0x2cc   : > { %8633 = vst [vmem:[#allocation20_spill] sm:$0xff] %v7209_v51  ;;  %v5358_v28 = vpop.f32.mrb[55].mxu1 }
 0x2cd   : > { %v7211_v7 = vpop.f32.mrb[80].mxu0 }
 0x2ce   : > { %8634 = vst [vmem:[#allocation21_spill] sm:$0xff] %v7211_v7  ;;  %v5529_v12 = vpop.f32.mrb[81].mxu0  ;;  %5580 = vmatmul.mubr.bf16.gmra.mrb[160].mxu1 %v8635_v40 }
 0x2cf   : > { %v7216_v15 = vpop.f32.mrb[82].mxu0  ;;  %5583 = vmatprep.mubr.msk.bf16.mxu1 %vm6205_vm1, %v6204_v5  ;;  %v8638_v12 = vpack.c.bf16 %v6735_v4, %v6551_v59 }
 0x2d0   : > { %8636 = vst [vmem:[#allocation22_spill] sm:$0xff] %v7216_v15  ;;  %v5530_v14 = vpop.f32.mrb[83].mxu0 }
 0x2d1   : > { %v7220_v41 = vpop.f32.mrb[56].mxu1 }
 0x2d2   : > { %v5361_v60 = vpop.f32.mrb[57].mxu1 }
 0x2d3   : > { %v7222_v8 = vpop.f32.mrb[58].mxu1 }
 0x2d4   : > { %v5362_v51 = vpop.f32.mrb[59].mxu1 }
 0x2d5   : > { %v7224_v28 = vpop.f32.mrb[84].mxu0  ;;  %v8641_v51 = vpack.c.bf16 %v6551_v59, %v6739_v10 }
 0x2d6   : > { %8637 = vst [vmem:[#allocation23_spill] sm:$0xff] %v7224_v28  ;;  %v5533_v7 = vpop.f32.mrb[85].mxu0  ;;  %5584 = vmatmul.mubr.bf16.gmra.mrb[164].mxu1 %v8638_v12  ;;  %v6162_v12 = vld [vmem:[%s8602_s5 + $0x30] sm:$0xff]  }
 0x2d7   : > { %v7229_v6 = vpop.f32.mrb[86].mxu0  ;;  %5587 = vmatprep.mubr.msk.bf16.mxu1 %vm6205_vm1, %v6204_v5  ;;  %5628 = vmatpush3.bf16.msra.mxu0 %v6162_v12 }
 0x2d8   : > { %8639 = vst [vmem:[#allocation24_spill] sm:$0xff] %v7229_v6  ;;  %v5534_v9 = vpop.f32.mrb[87].mxu0  ;;  %5629 = vmatprep.subr.bf16.mxu0 %v6204_v5 }
 0x2d9   : > { %v7233_v40 = vpop.f32.mrb[60].mxu1 }
 0x2da   : > { %v5365_v14 = vpop.f32.mrb[61].mxu1 }
 0x2db   : > { %v7235_v60 = vpop.f32.mrb[62].mxu1 }
 0x2dc   : > { %8640 = vst [vmem:[#allocation25_spill] sm:$0xff] %v7235_v60  ;;  %v5366_v15 = vpop.f32.mrb[63].mxu1 }
 0x2dd   : > { %v8643_v15 = vpack.c.bf16 %v6729_v63, %v6725_v62  ;;  %v8644_v62 = vpack.c.bf16 %v6800_v54, %v6551_v59  ;;  %v8645_v54 = vpack.c.bf16 %v6551_v59, %v6804_v3 }
 0x2de   : > { %5588 = vmatmul.mubr.bf16.gmra.mrb[168].mxu1 %v8641_v51 }
 0x2df   : > { %5591 = vmatprep.mubr.msk.bf16.mxu1 %vm6205_vm1, %v6204_v5 }
 0x2e1   : > { %v7242_v4 = vpop.f32.mrb[64].mxu1 }
 0x2e2   : > { %8642 = vst [vmem:[#allocation26_spill] sm:$0xff] %v7242_v4  ;;  %v5369_v7 = vpop.f32.mrb[65].mxu1  ;;  %v7254_v4 = vpop.f32.mrb[88].mxu0 }
 0x2e3   : > { %v1693_v9 = vpop.f32.mrb[66].mxu1  ;;  %v5537_v28 = vpop.f32.mrb[89].mxu0 }
 0x2e4   : > { %v5370_v6 = vpop.f32.mrb[67].mxu1  ;;  %v2158_v60 = vpop.f32.mrb[90].mxu0 }
 0x2e6   : > { %5592 = vmatmul.mubr.bf16.gmra.mrb[172].mxu1 %v8643_v15 }
 0x2e7   : > { %5595 = vmatprep.mubr.msk.bf16.mxu1 %vm6205_vm1, %v6204_v5 }
 0x2e9   : > { %v1778_v10 = vpop.f32.mrb[68].mxu1 }
 0x2ea   : > { %v1779_v14 = vadd.f32 %v1778_v10, %v7036_v33  ;;  %v5389_v51 = vpop.f32.mrb[69].mxu1  ;;  %v5538_v33 = vpop.f32.mrb[91].mxu0 }
 0x2eb   : > { %v1781_v7 = vpop.f32.mrb[70].mxu1 }
 0x2ec   : > { %v1782_v9 = vadd.f32 %v1781_v7, %v7038_v23  ;;  %v5390_v6 = vpop.f32.mrb[71].mxu1  ;;  %v7258_v12 = vadd.f32 %v7027_v36, %v1779_v14 }
 0x2ee   : > { %5596 = vmatmul.mubr.bf16.gmra.mrb[176].mxu1 %v8644_v62  ;;  %v7264_v63 = vadd.f32 %v7032_v29, %v1782_v9  ;;  %v8646_v62 = vpack.c.bf16 %v6794_v37, %v6790_v42 }
 0x2ef   : > { %5599 = vmatprep.mubr.msk.bf16.mxu1 %vm6205_vm1, %v6204_v5 }
 0x2f1   : > { %v1786_v15 = vpop.f32.mrb[72].mxu1 }
 0x2f2   : > { %v1787_v23 = vadd.f32 %v1786_v15, %v7048_v47  ;;  %v5393_v10 = vpop.f32.mrb[73].mxu1  ;;  %v6163_v47 = vld [vmem:[%s8602_s5 + $0x40] sm:$0xff]  }
 0x2f3   : > { %v1789_v51 = vpop.f32.mrb[74].mxu1  ;;  %5712 = vmatpush3.bf16.msra.mxu1 %v6163_v47  ;;  %v6167_v10 = vld [vmem:[%s8602_s5 + $0x58] sm:$0xff]  }
 0x2f4   : > { %v1790_v36 = vadd.f32 %v1789_v51, %v7050_v53  ;;  %v5394_v28 = vpop.f32.mrb[75].mxu1  ;;  %v7271_v60 = vadd.f32 %v7042_v1, %v1787_v23  ;;  %5713 = vmatprep.subr.bf16.mxu1 %v6204_v5 }
 0x2f6   : > { %5600 = vmatmul.mubr.bf16.gmra.mrb[180].mxu1 %v8645_v54  ;;  %v7277_v29 = vadd.f32 %v7044_v43, %v1790_v36  ;;  %v6164_v43 = vld [vmem:[%s8602_s5 + $0x48] sm:$0xff]  }
 0x2f7   : > { %5603 = vmatprep.mubr.msk.bf16.mxu1 %vm6205_vm1, %v6204_v5  ;;  %5714 = vmatpush3.bf16.msra.mxu1 %v6164_v43 }
 0x2f8   : > { %5715 = vmatprep.subr.bf16.mxu1 %v6204_v5 }
 0x2f9   : > { %v1794_v14 = vpop.f32.mrb[76].mxu1 }
 0x2fa   : > { %v1795_v53 = vadd.f32 %v1794_v14, %v7060_v22  ;;  %v5397_v7 = vpop.f32.mrb[77].mxu1 }
 0x2fb   : > { %v1797_v1 = vpop.f32.mrb[78].mxu1 }
 0x2fc   : > { %v1798_v3 = vadd.f32 %v1797_v1, %v7062_v16  ;;  %v5398_v9 = vpop.f32.mrb[79].mxu1  ;;  %v7291_v6 = vadd.f32 %v7054_v18, %v1795_v53  ;;  %v6165_v16 = vld [vmem:[%s8602_s5 + $0x50] sm:$0xff]  }
 0x2fd   : > { %5716 = vmatpush3.bf16.msra.mxu1 %v6165_v16 }
 0x2fe   : > { %5604 = vmatmul.mubr.bf16.gmra.mrb[184].mxu1 %v8646_v62  ;;  %v7297_v22 = vadd.f32 %v7056_v61, %v1798_v3  ;;  %5717 = vmatprep.subr.bf16.mxu1 %v6204_v5  ;;  %v6166_v61 = vld [vmem:[%s8602_s5 + $0x38] sm:$0xff]  }
 0x2ff   : > { %5607 = vmatprep.mubr.msk.bf16.mxu1 %vm6205_vm1, %v6204_v5  ;;  %5630 = vmatpush3.bf16.msra.mxu0 %v6166_v61 }
 0x300   : > { %5667 = vmatprep.subr.bf16.mxu0 %v6204_v5 }
 0x301   : > { %v1802_v33 = vpop.f32.mrb[80].mxu1  ;;  %5718 = vmatpush3.bf16.msra.mxu1 %v6167_v10  ;;  %v8652_v10 = vld [vmem:[#allocation6_spill] sm:$0xff] }
 0x302   : > { %v1803_v18 = vadd.f32 %v1802_v33, %v7073_v48  ;;  %v5401_v15 = vpop.f32.mrb[81].mxu1  ;;  %v8647_v48 = vpack.c.bf16 %v6843_v49, %v6551_v59  ;;  %5799 = vmatprep.subr.bf16.mxu1 %v6204_v5 }
 0x303   : > { %v1805_v23 = vpop.f32.mrb[82].mxu1  ;;  %v8650_v15 = vld [vmem:[#allocation2_spill] sm:$0xff] }
 0x304   : > { %v1806_v37 = vadd.f32 %v1805_v23, %v7075_v31  ;;  %v5402_v42 = vpop.f32.mrb[83].mxu1  ;;  %v7315_v51 = vadd.f32 %v7064_v46, %v1803_v18 }
 0x306   : > { %5608 = vmatmul.mubr.bf16.gmra.mrb[188].mxu1 %v8647_v48  ;;  %v7321_v31 = vadd.f32 %v7069_v34, %v1806_v37  ;;  %v8648_v34 = vpack.c.bf16 %v6551_v59, %v6847_v35  ;;  %v8649_v59 = vpack.c.bf16 %v6838_v0, %v6834_v56 }
 0x307   : > { %5611 = vmatprep.mubr.msk.bf16.mxu1 %vm6205_vm1, %v6204_v5 }
 0x309   : > { %v1810_v36 = vpop.f32.mrb[84].mxu1 }
 0x30a   : > { %v1811_v46 = vadd.f32 %v1810_v36, %v7085_v58  ;;  %v5405_v28 = vpop.f32.mrb[85].mxu1 }
 0x30b   : > { %v1813_v54 = vpop.f32.mrb[86].mxu1  ;;  %v8654_v28 = vld [vmem:[#allocation4_spill] sm:$0xff] }
 0x30c   : > { %v1814_v49 = vadd.f32 %v1813_v54, %v7087_v26  ;;  %v5406_v47 = vpop.f32.mrb[87].mxu1  ;;  %v7330_v14 = vadd.f32 %v7079_v24, %v1811_v46 }
 0x30e   : > { %5612 = vmatmul.mubr.bf16.gmra.mrb[192].mxu1 %v8648_v34  ;;  %v7336_v53 = vadd.f32 %v7081_v57, %v1814_v49  ;;  %v8655_v34 = vld [vmem:[#allocation9_spill] sm:$0xff] }
 0x30f   : > { %5615 = vmatprep.mubr.msk.bf16.mxu1 %vm6205_vm1, %v6204_v5 }
 0x311   : > { %v1818_v7 = vpop.f32.mrb[88].mxu1 }
 0x312   : > { %v1819_v58 = vadd.f32 %v1818_v7, %v7097_v44  ;;  %v5409_v1 = vpop.f32.mrb[89].mxu1 }
 0x313   : > { %v1821_v3 = vpop.f32.mrb[90].mxu1  ;;  %v8656_v1 = vld [vmem:[#allocation7_spill] sm:$0xff] }
 0x314   : > { %v1822_v26 = vadd.f32 %v1821_v3, %v7099_v13  ;;  %v5410_v9 = vpop.f32.mrb[91].mxu1  ;;  %v7343_v24 = vadd.f32 %v7091_v11, %v1819_v58 }
 0x316   : > { %5616 = vmatmul.mubr.bf16.gmra.mrb[196].mxu1 %v8649_v59  ;;  %v7349_v35 = vadd.f32 %v7093_v50, %v1822_v26  ;;  %v8657_v26 = vld [vmem:[#allocation8_spill] sm:$0xff] }
 0x317   : > { %5619 = vmatprep.mubr.msk.bf16.mxu1 %vm6205_vm1, %v6204_v5 }
 0x319   : > { %v1826_v57 = vpop.f32.mrb[92].mxu1 }
 0x31a   : > { %v1827_v44 = vadd.f32 %v1826_v57, %v7110_v52  ;;  %v5413_v43 = vpop.f32.mrb[93].mxu1 }
 0x31b   : > { %v1829_v62 = vpop.f32.mrb[94].mxu1 }
 0x31c   : > { %v1830_v13 = vadd.f32 %v1829_v62, %v7112_v55  ;;  %v5414_v16 = vpop.f32.mrb[95].mxu1  ;;  %v7356_v11 = vadd.f32 %v7101_v30, %v1827_v44  ;;  %v8658_v62 = vld [vmem:[#allocation12_spill] sm:$0xff] }
 0x31e   : > { %5620 = vmatmul.mubr.bf16.gmra.mrb[200].mxu1 %v6950_v27  ;;  %v7360_v56 = vadd.f32 %v7106_v25, %v1830_v13  ;;  %v8651_v25 = vld [vmem:[#allocation5_spill] sm:$0xff] }
 0x31f   : > { %5719 = vmatprep.mubr.msk.bf16.mxu1 %vm6205_vm1, %v6204_v5 }
 0x321   : > { %v1834_v0 = vpop.f32.mrb[96].mxu1 }
 0x322   : > { %v1835_v50 = vadd.f32 %v1834_v0, %v7121_v32  ;;  %v5417_v52 = vpop.f32.mrb[97].mxu1  ;;  %v8653_v32 = vld [vmem:[#allocation3_spill] sm:$0xff] }
 0x323   : > { %v1837_v33 = vpop.f32.mrb[98].mxu1 }
 0x324   : > { %v1838_v18 = vadd.f32 %v1837_v33, %v7123_v38  ;;  %v5418_v55 = vpop.f32.mrb[99].mxu1  ;;  %v7367_v23 = vadd.f32 %v8650_v15, %v1835_v50  ;;  %v8660_v50 = vld [vmem:[#allocation11_spill] sm:$0xff] }
 0x326   : > { %v7370_v30 = vadd.f32 %v7117_v39, %v1838_v18 }
 0x329   : > { %v1842_v27 = vpop.f32.mrb[100].mxu1 }
 0x32a   : > { %v1843_v37 = vadd.f32 %v1842_v27, %v8651_v25  ;;  %v5421_v42 = vpop.f32.mrb[101].mxu1 }
 0x32b   : > { %v1845_v61 = vpop.f32.mrb[102].mxu1  ;;  %v8662_v42 = vld [vmem:[#allocation14_spill] sm:$0xff] }
 0x32c   : > { %v1846_v48 = vadd.f32 %v1845_v61, %v8652_v10  ;;  %v5422_v36 = vpop.f32.mrb[103].mxu1  ;;  %v7375_v46 = vadd.f32 %v8653_v32, %v1843_v37 }
 0x32e   : > { %v7378_v38 = vadd.f32 %v8654_v28, %v1846_v48  ;;  %v8663_v28 = vld [vmem:[#allocation17_spill] sm:$0xff] }
 0x331   : > { %v1850_v54 = vpop.f32.mrb[104].mxu1 }
 0x332   : > { %v1851_v49 = vadd.f32 %v1850_v54, %v7151_v19  ;;  %v5425_v47 = vpop.f32.mrb[105].mxu1  ;;  %v8659_v19 = vld [vmem:[#allocation10_spill] sm:$0xff] }
 0x333   : > { %v1853_v39 = vpop.f32.mrb[106].mxu1 }
 0x334   : > { %v1854_v7 = vadd.f32 %v1853_v39, %v8655_v34  ;;  %v5426_v58 = vpop.f32.mrb[107].mxu1  ;;  %v7383_v3 = vadd.f32 %v8656_v1, %v1851_v49  ;;  %v8665_v39 = vld [vmem:[#allocation16_spill] sm:$0xff] }
 0x336   : > { %v7386_v9 = vadd.f32 %v8657_v26, %v1854_v7  ;;  %v8666_v26 = vld [vmem:[#allocation20_spill] sm:$0xff] }
 0x339   : > { %v1858_v59 = vpop.f32.mrb[108].mxu1 }
 0x33a   : > { %v1859_v57 = vadd.f32 %v1858_v59, %v7164_v20  ;;  %v5429_v44 = vpop.f32.mrb[109].mxu1  ;;  %v8661_v20 = vld [vmem:[#allocation13_spill] sm:$0xff] }
 0x33b   : > { %v1861_v43 = vpop.f32.mrb[110].mxu1 }
 0x33c   : > { %v1862_v13 = vadd.f32 %v1861_v43, %v8658_v62  ;;  %v5430_v16 = vpop.f32.mrb[111].mxu1  ;;  %v7391_v0 = vadd.f32 %v8659_v19, %v1859_v57  ;;  %v8668_v43 = vld [vmem:[#allocation19_spill] sm:$0xff] }
 0x33e   : > { %v7394_v52 = vadd.f32 %v8660_v50, %v1862_v13 }
 0x341   : > { %v1866_v33 = vpop.f32.mrb[112].mxu1 }
 0x342   : > { %v1867_v18 = vadd.f32 %v1866_v33, %v7177_v2  ;;  %v5433_v55 = vpop.f32.mrb[113].mxu1  ;;  %v8664_v2 = vld [vmem:[#allocation15_spill] sm:$0xff] }
 0x343   : > { %v1869_v15 = vpop.f32.mrb[114].mxu1 }
 0x344   : > { %v1870_v27 = vadd.f32 %v1869_v15, %v7179_v17  ;;  %v5434_v25 = vpop.f32.mrb[115].mxu1  ;;  %v7399_v37 = vadd.f32 %v8661_v20, %v1867_v18  ;;  %v8670_v15 = vld [vmem:[#allocation22_spill] sm:$0xff] }
 0x346   : > { %v7402_v61 = vadd.f32 %v8662_v42, %v1870_v27 }
 0x349   : > { %v1874_v10 = vpop.f32.mrb[116].mxu1 }
 0x34a   : > { %v1875_v48 = vadd.f32 %v1874_v10, %v7194_v45  ;;  %v5437_v36 = vpop.f32.mrb[117].mxu1  ;;  %v8667_v45 = vld [vmem:[#allocation18_spill] sm:$0xff] }
 0x34b   : > { %v1877_v32 = vpop.f32.mrb[118].mxu1 }
 0x34c   : > { %v1878_v54 = vadd.f32 %v1877_v32, %v8663_v28  ;;  %v5438_v49 = vpop.f32.mrb[119].mxu1  ;;  %v7407_v47 = vadd.f32 %v8664_v2, %v1875_v48  ;;  %v8671_v48 = vld [vmem:[#allocation25_spill] sm:$0xff]  ;;  %v8674_v2 = vld [vmem:[#allocation26_spill] sm:$0xff] }
 0x34e   : > { %v7410_v17 = vadd.f32 %v8665_v39, %v1878_v54  ;;  %v8673_v54 = vld [vmem:[#allocation24_spill] sm:$0xff] }
 0x351   : > { %v1882_v34 = vpop.f32.mrb[120].mxu1 }
 0x352   : > { %v1883_v7 = vadd.f32 %v1882_v34, %v7207_v21  ;;  %v5441_v58 = vpop.f32.mrb[121].mxu1  ;;  %v8669_v21 = vld [vmem:[#allocation21_spill] sm:$0xff] }
 0x353   : > { %v1885_v1 = vpop.f32.mrb[122].mxu1 }
 0x354   : > { %v1886_v59 = vadd.f32 %v1885_v1, %v8666_v26  ;;  %v5442_v57 = vpop.f32.mrb[123].mxu1  ;;  %v7415_v44 = vadd.f32 %v8667_v45, %v1883_v7  ;;  %v7443_v26 = vld [vmem:[%s8601_s4] ss:$0 sm:$0xff] }
 0x356   : > { %v7418_v62 = vadd.f32 %v8668_v43, %v1886_v59 }
 0x359   : > { %v1890_v13 = vpop.f32.mrb[124].mxu1 }
 0x35a   : > { %v1891_v16 = vadd.f32 %v1890_v13, %v7220_v41  ;;  %v5445_v19 = vpop.f32.mrb[125].mxu1  ;;  %v8672_v41 = vld [vmem:[#allocation23_spill] sm:$0xff] }
 0x35b   : > { %v1893_v50 = vpop.f32.mrb[126].mxu1 }
 0x35c   : > { %v1894_v33 = vadd.f32 %v1893_v50, %v7222_v8  ;;  %v5446_v18 = vpop.f32.mrb[127].mxu1  ;;  %v7423_v55 = vadd.f32 %v8669_v21, %v1891_v16 }
 0x35e   : > { %v7426_v27 = vadd.f32 %v8670_v15, %v1894_v33 }
 0x361   : > { %v1898_v25 = vpop.f32.mrb[128].mxu1 }
 0x362   : > { %v1899_v20 = vadd.f32 %v1898_v25, %v7233_v40  ;;  %v5449_v42 = vpop.f32.mrb[129].mxu1 }
 0x363   : > { %v1901_v10 = vpop.f32.mrb[130].mxu1 }
 0x364   : > { %v1902_v36 = vadd.f32 %v1901_v10, %v8671_v48  ;;  %v5450_v32 = vpop.f32.mrb[131].mxu1  ;;  %v7431_v28 = vadd.f32 %v8672_v41, %v1899_v20 }
 0x366   : > { %v7434_v8 = vadd.f32 %v8673_v54, %v1902_v36 }
 0x369   : > { %v1906_v49 = vpop.f32.mrb[132].mxu1 }
 0x36a   : > { %v1907_v39 = vadd.f32 %v1906_v49, %v8674_v2  ;;  %v5453_v34 = vpop.f32.mrb[133].mxu1 }
 0x36b   : > { %v1909_v7 = vpop.f32.mrb[134].mxu1 }
 0x36c   : > { %v7438_v58 = vadd.f32 %v7254_v4, %v1907_v39  ;;  %v5454_v40 = vpop.f32.mrb[135].mxu1 }
 0x371   : > { %v2317_v1 = vpop.f32.mrb[136].mxu1 }
 0x372   : > { %v2451_v59 = vadd.f32 %v2317_v1, %v7258_v12  ;;  %v5557_v57 = vpop.f32.mrb[137].mxu1 }
 0x373   : > { %v2320_v45 = vpop.f32.mrb[138].mxu1 }
 0x374   : > { %v2491_v43 = vadd.f32 %v7443_v26, %v2451_v59  ;;  %v2452_v13 = vadd.f32 %v2320_v45, %v7264_v63  ;;  %v5558_v16 = vpop.f32.mrb[139].mxu1 }
 0x376   : > { %v7448_v19 = vmax.f32 %v2491_v43, 0.0  ;;  %v2492_v4 = vadd.f32 %v7443_v26, %v2452_v13  ;;  %v6172_v43 = vld [vmem:[%s8602_s5 + $0x80] sm:$0xff]  }
 0x378   : > { %v7451_v50 = vmax.f32 %v2492_v4, 0.0  ;;  %v2601_v33 = vrot.slane %v7448_v19, 1  ;;  %v2995_v18 = vrot.slane %v7448_v19, 2 }
 0x379   : > { %v2325_v21 = vpop.f32.mrb[140].mxu1 }
 0x37a   : > { %v2557_v12 = vpack.c.bf16 %v7451_v50, %v7448_v19  ;;  %v2602_v15 = vrot.slane %v7451_v50, 1  ;;  %v2996_v63 = vrot.slane %v7451_v50, 2  ;;  %v2453_v25 = vadd.f32 %v2325_v21, %v7271_v60  ;;  %v5561_v20 = vpop.f32.mrb[141].mxu1  ;;  %v6173_v21 = vld [vmem:[%s8602_s5 + $0x88] sm:$0xff]  }
 0x37b   : > { %v2328_v42 = vpop.f32.mrb[142].mxu1  ;;  %v6181_v50 = vld [vmem:[%s8602_s5 + $0xc8] sm:$0xff]  }
 0x37c   : > { %v2493_v10 = vadd.f32 %v7443_v26, %v2453_v25  ;;  %v2603_v48 = vsel %vm1376_vm2, %v2601_v33, %v2602_v15  ;;  %v2997_v36 = vsel %vm2994_vm3, %v2995_v18, %v2996_v63  ;;  %v2454_v32 = vadd.f32 %v2328_v42, %v7277_v29  ;;  %v5562_v41 = vpop.f32.mrb[143].mxu1  ;;  %v6168_v29 = vld [vmem:[%s8602_s5] sm:$0xff]  }
 0x37e   : > { %v2526_v54 = vmax.f32 %v2493_v10, 0.0  ;;  %v2494_v39 = vadd.f32 %v7443_v26, %v2454_v32 }
 0x380   : > { %v2604_v49 = vrot.slane %v2526_v54, 1  ;;  %v2998_v2 = vrot.slane %v2526_v54, 2  ;;  %v2527_v13 = vmax.f32 %v2494_v39, 0.0 }
 0x381   : > { %v2333_v34 = vpop.f32.mrb[144].mxu1 }
 0x382   : > { %v2605_v7 = vsel %vm1376_vm2, %v2602_v15, %v2604_v49  ;;  %v2999_v60 = vsel %vm2994_vm3, %v2996_v63, %v2998_v2  ;;  %v5565_v40 = vpop.f32.mrb[145].mxu1  ;;  %v2455_v57 = vadd.f32 %v2333_v34, %v7291_v6  ;;  %v2606_v15 = vrot.slane %v2527_v13, 1 }
 0x383   : > { %v2664_v1 = vpack.c.bf16 %v2605_v7, %v2603_v48  ;;  %v3058_v59 = vpack.c.bf16 %v2999_v60, %v2997_v36  ;;  %v2336_v45 = vpop.f32.mrb[146].mxu1  ;;  %v3000_v25 = vrot.slane %v2527_v13, 2 }
 0x384   : > { %v2456_v16 = vadd.f32 %v2336_v45, %v7297_v22  ;;  %v5566_v4 = vpop.f32.mrb[147].mxu1  ;;  %v2495_v33 = vadd.f32 %v7443_v26, %v2455_v57  ;;  %v6169_v22 = vld [vmem:[%s8602_s5 + $0x8] sm:$0xff]   ;;  %v6170_v57 = vld [vmem:[%s8602_s5 + $0x10] sm:$0xff]  }
 0x385   : > { %5632 = vmatmul.mubr.msk.bf16.vlgmr.msra.gmra.mrb[92].mxu0 %vm393_vm0, %v2664_v1  ;;  %5720 = vmatmul.mubr.msk.bf16.vlgmr.msra.gmra.mrb[204].mxu1 %vm393_vm0, %v3058_v59 }
 0x386   : > { %v2496_v6 = vadd.f32 %v7443_v26, %v2456_v16  ;;  %5635 = vmatprep.mubr.msk.bf16.mxu0 %vm6205_vm1, %v6204_v5  ;;  %5723 = vmatprep.mubr.msk.bf16.mxu1 %vm6205_vm1, %v6204_v5  ;;  %v2528_v18 = vmax.f32 %v2495_v33, 0.0  ;;  %v6171_v33 = vld [vmem:[%s8602_s5 + $0x18] sm:$0xff]  }
 0x387   : > { %5668 = vmatpush3.bf16.msra.mxu0 %v6168_v29  ;;  %5800 = vmatpush3.bf16.msra.mxu1 %v6172_v43 }
 0x388   : > { %v2529_v63 = vmax.f32 %v2496_v6, 0.0  ;;  %5669 = vmatprep.subr.bf16.mxu0 %v6204_v5  ;;  %5801 = vmatprep.subr.bf16.mxu1 %v6204_v5  ;;  %v2607_v20 = vrot.slane %v2528_v18, 1  ;;  %v3001_v42 = vrot.slane %v2528_v18, 2  ;;  %v7491_v48 = vpack.c.bf16 %v2528_v18, %v2527_v13  ;;  %v6175_v6 = vld [vmem:[%s8602_s5 + $0x98] sm:$0xff]  }
 0x389   : > { %v2341_v10 = vpop.f32.mrb[148].mxu1 }
 0x38a   : > { %v2609_v36 = vrot.slane %v2529_v63, 1  ;;  %v3003_v32 = vrot.slane %v2529_v63, 2  ;;  %v2457_v41 = vadd.f32 %v2341_v10, %v7315_v51  ;;  %v5569_v54 = vpop.f32.mrb[149].mxu1  ;;  %v2608_v2 = vsel %vm1376_vm2, %v2606_v15, %v2607_v20 }
 0x38b   : > { %v2344_v49 = vpop.f32.mrb[150].mxu1  ;;  %v3002_v39 = vsel %vm2994_vm3, %v3000_v25, %v3001_v42  ;;  %5670 = vmatpush3.bf16.msra.mxu0 %v6169_v22  ;;  %5802 = vmatpush3.bf16.msra.mxu1 %v6173_v21 }
 0x38c   : > { %v2497_v34 = vadd.f32 %v7443_v26, %v2457_v41  ;;  %v2458_v7 = vadd.f32 %v2344_v49, %v7321_v31  ;;  %v5570_v60 = vpop.f32.mrb[151].mxu1  ;;  %v2610_v40 = vsel %vm1376_vm2, %v2607_v20, %v2609_v36  ;;  %v3004_v1 = vsel %vm2994_vm3, %v3001_v42, %v3003_v32  ;;  %5671 = vmatprep.subr.bf16.mxu0 %v6204_v5  ;;  %v6174_v31 = vld [vmem:[%s8602_s5 + $0x90] sm:$0xff]  }
 0x38d   : > { %v7501_v51 = vpack.c.bf16 %v2610_v40, %v2608_v2  ;;  %v7503_v59 = vpack.c.bf16 %v3004_v1, %v3002_v39  ;;  %5803 = vmatprep.subr.bf16.mxu1 %v6204_v5 }
 0x38e   : > { %v2530_v45 = vmax.f32 %v2497_v34, 0.0  ;;  %v2498_v29 = vadd.f32 %v7443_v26, %v2458_v7 }
 0x38f   : > { %5636 = vmatmul.mubr.msk.bf16.gmra.mrb[96].mxu0 %vm393_vm0, %v7501_v51  ;;  %5724 = vmatmul.mubr.msk.bf16.gmra.mrb[208].mxu1 %vm393_vm0, %v7503_v59 }
 0x390   : > { %v2531_v43 = vmax.f32 %v2498_v29, 0.0  ;;  %5639 = vmatprep.mubr.msk.bf16.mxu0 %vm6205_vm1, %v6204_v5  ;;  %5727 = vmatprep.mubr.msk.bf16.mxu1 %vm6205_vm1, %v6204_v5  ;;  %v2611_v13 = vrot.slane %v2530_v45, 1  ;;  %v3005_v16 = vrot.slane %v2530_v45, 2 }
 0x391   : > { %v2349_v4 = vpop.f32.mrb[152].mxu1  ;;  %5672 = vmatpush3.bf16.msra.mxu0 %v6170_v57  ;;  %5804 = vmatpush3.bf16.msra.mxu1 %v6174_v31 }
 0x392   : > { %v2612_v18 = vrot.slane %v2531_v43, 1  ;;  %v3006_v22 = vrot.slane %v2531_v43, 2  ;;  %v2459_v21 = vadd.f32 %v2349_v4, %v7330_v14  ;;  %v5573_v15 = vpop.f32.mrb[153].mxu1  ;;  %5673 = vmatprep.subr.bf16.mxu0 %v6204_v5  ;;  %5805 = vmatprep.subr.bf16.mxu1 %v6204_v5  ;;  %v7530_v63 = vpack.c.bf16 %v2531_v43, %v2530_v45 }
 0x393   : > { %v2352_v25 = vpop.f32.mrb[154].mxu1 }
 0x394   : > { %v2499_v20 = vadd.f32 %v7443_v26, %v2459_v21  ;;  %v2460_v42 = vadd.f32 %v2352_v25, %v7336_v53  ;;  %v5574_v10 = vpop.f32.mrb[155].mxu1  ;;  %v2613_v36 = vsel %vm1376_vm2, %v2611_v13, %v2612_v18  ;;  %v3007_v32 = vsel %vm2994_vm3, %v3005_v16, %v3006_v22 }
 0x395   : > { %5674 = vmatpush3.bf16.msra.mxu0 %v6171_v33  ;;  %5806 = vmatpush3.bf16.msra.mxu1 %v6175_v6 }
 0x396   : > { %v2532_v14 = vmax.f32 %v2499_v20, 0.0  ;;  %5755 = vmatprep.subr.bf16.mxu0 %v6204_v5  ;;  %5887 = vmatprep.subr.bf16.mxu1 %v6204_v5  ;;  %v2500_v41 = vadd.f32 %v7443_v26, %v2460_v42 }
 0x398   : > { %v2614_v54 = vrot.slane %v2532_v14, 1  ;;  %v3008_v49 = vrot.slane %v2532_v14, 2  ;;  %v2533_v7 = vmax.f32 %v2500_v41, 0.0 }
 0x399   : > { %v2357_v2 = vpop.f32.mrb[156].mxu1 }
 0x39a   : > { %v2461_v39 = vadd.f32 %v2357_v2, %v7343_v24  ;;  %v5577_v53 = vpop.f32.mrb[157].mxu1  ;;  %v2615_v34 = vsel %vm1376_vm2, %v2612_v18, %v2614_v54  ;;  %v3009_v1 = vsel %vm2994_vm3, %v3006_v22, %v3008_v49  ;;  %v2616_v13 = vrot.slane %v2533_v7, 1 }
 0x39b   : > { %v2360_v60 = vpop.f32.mrb[158].mxu1  ;;  %v7541_v40 = vpack.c.bf16 %v2615_v34, %v2613_v36  ;;  %v7546_v29 = vpack.c.bf16 %v3009_v1, %v3007_v32  ;;  %v3010_v6 = vrot.slane %v2533_v7, 2 }
 0x39c   : > { %v2501_v57 = vadd.f32 %v7443_v26, %v2461_v39  ;;  %v2462_v31 = vadd.f32 %v2360_v60, %v7349_v35  ;;  %v5578_v45 = vpop.f32.mrb[159].mxu1 }
 0x39d   : > { %5640 = vmatmul.mubr.msk.bf16.gmra.mrb[100].mxu0 %vm393_vm0, %v7541_v40  ;;  %5728 = vmatmul.mubr.msk.bf16.gmra.mrb[212].mxu1 %vm393_vm0, %v7546_v29 }
 0x39e   : > { %v2534_v24 = vmax.f32 %v2501_v57, 0.0  ;;  %v2502_v43 = vadd.f32 %v7443_v26, %v2462_v31  ;;  %5643 = vmatprep.mubr.msk.bf16.mxu0 %vm6205_vm1, %v6204_v5  ;;  %5731 = vmatprep.mubr.msk.bf16.mxu1 %vm6205_vm1, %v6204_v5 }
 0x3a0   : > { %v2617_v35 = vrot.slane %v2534_v24, 1  ;;  %v3011_v16 = vrot.slane %v2534_v24, 2  ;;  %v2535_v4 = vmax.f32 %v2502_v43, 0.0  ;;  %v7557_v33 = vpack.c.bf16 %v2534_v24, %v2533_v7 }
 0x3a1   : > { %v2365_v18 = vpop.f32.mrb[160].mxu1 }
 0x3a2   : > { %v2619_v22 = vrot.slane %v2535_v4, 1  ;;  %v3013_v21 = vrot.slane %v2535_v4, 2  ;;  %v2463_v15 = vadd.f32 %v2365_v18, %v7356_v11  ;;  %v5581_v25 = vpop.f32.mrb[161].mxu1  ;;  %v2618_v20 = vsel %vm1376_vm2, %v2616_v13, %v2617_v35 }
 0x3a3   : > { %v2368_v42 = vpop.f32.mrb[162].mxu1  ;;  %v3012_v10 = vsel %vm2994_vm3, %v3010_v6, %v3011_v16 }
 0x3a4   : > { %v2503_v36 = vadd.f32 %v7443_v26, %v2463_v15  ;;  %v2464_v32 = vadd.f32 %v2368_v42, %v7360_v56  ;;  %v5582_v14 = vpop.f32.mrb[163].mxu1  ;;  %v2620_v41 = vsel %vm1376_vm2, %v2617_v35, %v2619_v22  ;;  %v3014_v54 = vsel %vm2994_vm3, %v3011_v16, %v3013_v21 }
 0x3a5   : > { %v7566_v49 = vpack.c.bf16 %v2620_v41, %v2618_v20  ;;  %v7568_v2 = vpack.c.bf16 %v3014_v54, %v3012_v10 }
 0x3a6   : > { %v2536_v11 = vmax.f32 %v2503_v36, 0.0  ;;  %v2504_v39 = vadd.f32 %v7443_v26, %v2464_v32 }
 0x3a7   : > { %5644 = vmatmul.mubr.msk.bf16.gmra.mrb[104].mxu0 %vm393_vm0, %v7566_v49  ;;  %5732 = vmatmul.mubr.msk.bf16.gmra.mrb[216].mxu1 %vm393_vm0, %v7568_v2 }
 0x3a8   : > { %v2537_v53 = vmax.f32 %v2504_v39, 0.0  ;;  %5647 = vmatprep.mubr.msk.bf16.mxu0 %vm6205_vm1, %v6204_v5  ;;  %5735 = vmatprep.mubr.msk.bf16.mxu1 %vm6205_vm1, %v6204_v5  ;;  %v2621_v56 = vrot.slane %v2536_v11, 1  ;;  %v3015_v34 = vrot.slane %v2536_v11, 2 }
 0x3a9   : > { %v2373_v7 = vpop.f32.mrb[164].mxu1 }
 0x3aa   : > { %v2622_v60 = vrot.slane %v2537_v53, 1  ;;  %v3016_v1 = vrot.slane %v2537_v53, 2  ;;  %v2465_v57 = vadd.f32 %v2373_v7, %v7367_v23  ;;  %v5585_v31 = vpop.f32.mrb[165].mxu1  ;;  %v7580_v45 = vpack.c.bf16 %v2537_v53, %v2536_v11 }
 0x3ab   : > { %v2376_v24 = vpop.f32.mrb[166].mxu1 }
 0x3ac   : > { %v2505_v43 = vadd.f32 %v7443_v26, %v2465_v57  ;;  %v2466_v13 = vadd.f32 %v2376_v24, %v7370_v30  ;;  %v5586_v35 = vpop.f32.mrb[167].mxu1  ;;  %v2623_v16 = vsel %vm1376_vm2, %v2621_v56, %v2622_v60  ;;  %v3017_v4 = vsel %vm2994_vm3, %v3015_v34, %v3016_v1 }
 0x3ae   : > { %v2538_v6 = vmax.f32 %v2505_v43, 0.0  ;;  %v2506_v18 = vadd.f32 %v7443_v26, %v2466_v13 }
 0x3b0   : > { %v2624_v22 = vrot.slane %v2538_v6, 1  ;;  %v3018_v21 = vrot.slane %v2538_v6, 2  ;;  %v2539_v42 = vmax.f32 %v2506_v18, 0.0 }
 0x3b1   : > { %v2381_v15 = vpop.f32.mrb[168].mxu1 }
 0x3b2   : > { %v2467_v23 = vadd.f32 %v2381_v15, %v7375_v46  ;;  %v5589_v25 = vpop.f32.mrb[169].mxu1  ;;  %v2625_v20 = vsel %vm1376_vm2, %v2622_v60, %v2624_v22  ;;  %v3019_v30 = vsel %vm2994_vm3, %v3016_v1, %v3018_v21  ;;  %v2626_v39 = vrot.slane %v2539_v42, 1 }
 0x3b3   : > { %v2384_v10 = vpop.f32.mrb[170].mxu1  ;;  %v7589_v36 = vpack.c.bf16 %v2625_v20, %v2623_v16  ;;  %v7594_v54 = vpack.c.bf16 %v3019_v30, %v3017_v4  ;;  %v3020_v7 = vrot.slane %v2539_v42, 2 }
 0x3b4   : > { %v2507_v32 = vadd.f32 %v7443_v26, %v2467_v23  ;;  %v2468_v14 = vadd.f32 %v2384_v10, %v7378_v38  ;;  %v5590_v41 = vpop.f32.mrb[171].mxu1 }
 0x3b5   : > { %5648 = vmatmul.mubr.msk.bf16.gmra.mrb[108].mxu0 %vm393_vm0, %v7589_v36  ;;  %5736 = vmatmul.mubr.msk.bf16.gmra.mrb[220].mxu1 %vm393_vm0, %v7594_v54 }
 0x3b6   : > { %v2540_v46 = vmax.f32 %v2507_v32, 0.0  ;;  %v2508_v11 = vadd.f32 %v7443_v26, %v2468_v14  ;;  %5651 = vmatprep.mubr.msk.bf16.mxu0 %vm6205_vm1, %v6204_v5  ;;  %5739 = vmatprep.mubr.msk.bf16.mxu1 %vm6205_vm1, %v6204_v5 }
 0x3b8   : > { %v2627_v38 = vrot.slane %v2540_v46, 1  ;;  %v3021_v53 = vrot.slane %v2540_v46, 2  ;;  %v2541_v56 = vmax.f32 %v2508_v11, 0.0  ;;  %v7605_v34 = vpack.c.bf16 %v2540_v46, %v2539_v42 }
 0x3b9   : > { %v2389_v60 = vpop.f32.mrb[172].mxu1 }
 0x3ba   : > { %v2629_v1 = vrot.slane %v2541_v56, 1  ;;  %v3023_v57 = vrot.slane %v2541_v56, 2  ;;  %v2469_v31 = vadd.f32 %v2389_v60, %v7383_v3  ;;  %v5593_v24 = vpop.f32.mrb[173].mxu1  ;;  %v2628_v43 = vsel %vm1376_vm2, %v2626_v39, %v2627_v38 }
 0x3bb   : > { %v2392_v13 = vpop.f32.mrb[174].mxu1  ;;  %v3022_v35 = vsel %vm2994_vm3, %v3020_v7, %v3021_v53 }
 0x3bc   : > { %v2509_v16 = vadd.f32 %v7443_v26, %v2469_v31  ;;  %v2470_v4 = vadd.f32 %v2392_v13, %v7386_v9  ;;  %v5594_v6 = vpop.f32.mrb[175].mxu1  ;;  %v2630_v18 = vsel %vm1376_vm2, %v2627_v38, %v2629_v1  ;;  %v3024_v22 = vsel %vm2994_vm3, %v3021_v53, %v3023_v57 }
 0x3bd   : > { %v7614_v21 = vpack.c.bf16 %v2630_v18, %v2628_v43  ;;  %v7616_v15 = vpack.c.bf16 %v3024_v22, %v3022_v35 }
 0x3be   : > { %v2542_v3 = vmax.f32 %v2509_v16, 0.0  ;;  %v2510_v23 = vadd.f32 %v7443_v26, %v2470_v4 }
 0x3bf   : > { %5652 = vmatmul.mubr.msk.bf16.gmra.mrb[112].mxu0 %vm393_vm0, %v7614_v21  ;;  %5740 = vmatmul.mubr.msk.bf16.gmra.mrb[224].mxu1 %vm393_vm0, %v7616_v15 }
 0x3c0   : > { %v2543_v25 = vmax.f32 %v2510_v23, 0.0  ;;  %5655 = vmatprep.mubr.msk.bf16.mxu0 %vm6205_vm1, %v6204_v5  ;;  %5743 = vmatprep.mubr.msk.bf16.mxu1 %vm6205_vm1, %v6204_v5  ;;  %v2631_v9 = vrot.slane %v2542_v3, 1  ;;  %v3025_v20 = vrot.slane %v2542_v3, 2 }
 0x3c1   : > { %v2397_v42 = vpop.f32.mrb[176].mxu1 }
 0x3c2   : > { %v2632_v10 = vrot.slane %v2543_v25, 1  ;;  %v3026_v30 = vrot.slane %v2543_v25, 2  ;;  %v2471_v32 = vadd.f32 %v2397_v42, %v7391_v0  ;;  %v5597_v14 = vpop.f32.mrb[177].mxu1  ;;  %v7628_v41 = vpack.c.bf16 %v2543_v25, %v2542_v3 }
 0x3c3   : > { %v2400_v46 = vpop.f32.mrb[178].mxu1 }
 0x3c4   : > { %v2511_v11 = vadd.f32 %v7443_v26, %v2471_v32  ;;  %v2472_v39 = vadd.f32 %v2400_v46, %v7394_v52  ;;  %v5598_v38 = vpop.f32.mrb[179].mxu1  ;;  %v2633_v53 = vsel %vm1376_vm2, %v2631_v9, %v2632_v10  ;;  %v3027_v56 = vsel %vm2994_vm3, %v3025_v20, %v3026_v30 }
 0x3c6   : > { %v2544_v7 = vmax.f32 %v2511_v11, 0.0  ;;  %v2512_v60 = vadd.f32 %v7443_v26, %v2472_v39 }
 0x3c8   : > { %v2634_v1 = vrot.slane %v2544_v7, 1  ;;  %v3028_v57 = vrot.slane %v2544_v7, 2  ;;  %v2545_v13 = vmax.f32 %v2512_v60, 0.0 }
 0x3c9   : > { %v2405_v31 = vpop.f32.mrb[180].mxu1 }
 0x3ca   : > { %v2473_v0 = vadd.f32 %v2405_v31, %v7399_v37  ;;  %v5601_v24 = vpop.f32.mrb[181].mxu1  ;;  %v2635_v43 = vsel %vm1376_vm2, %v2632_v10, %v2634_v1  ;;  %v3029_v52 = vsel %vm2994_vm3, %v3026_v30, %v3028_v57  ;;  %v2636_v23 = vrot.slane %v2545_v13, 1 }
 0x3cb   : > { %v2408_v35 = vpop.f32.mrb[182].mxu1  ;;  %v7637_v16 = vpack.c.bf16 %v2635_v43, %v2633_v53  ;;  %v7642_v22 = vpack.c.bf16 %v3029_v52, %v3027_v56  ;;  %v3030_v42 = vrot.slane %v2545_v13, 2 }
 0x3cc   : > { %v2513_v4 = vadd.f32 %v7443_v26, %v2473_v0  ;;  %v2474_v6 = vadd.f32 %v2408_v35, %v7402_v61  ;;  %v5602_v18 = vpop.f32.mrb[183].mxu1 }
 0x3cd   : > { %5656 = vmatmul.mubr.msk.bf16.gmra.mrb[116].mxu0 %vm393_vm0, %v7637_v16  ;;  %5744 = vmatmul.mubr.msk.bf16.gmra.mrb[228].mxu1 %vm393_vm0, %v7642_v22 }
 0x3ce   : > { %v2546_v37 = vmax.f32 %v2513_v4, 0.0  ;;  %v2514_v3 = vadd.f32 %v7443_v26, %v2474_v6  ;;  %5659 = vmatprep.mubr.msk.bf16.mxu0 %vm6205_vm1, %v6204_v5  ;;  %5747 = vmatprep.mubr.msk.bf16.mxu1 %vm6205_vm1, %v6204_v5 }
 0x3d0   : > { %v2637_v61 = vrot.slane %v2546_v37, 1  ;;  %v3031_v25 = vrot.slane %v2546_v37, 2  ;;  %v2547_v9 = vmax.f32 %v2514_v3, 0.0  ;;  %v7653_v20 = vpack.c.bf16 %v2546_v37, %v2545_v13 }
 0x3d1   : > { %v2413_v10 = vpop.f32.mrb[184].mxu1 }
 0x3d2   : > { %v2639_v30 = vrot.slane %v2547_v9, 1  ;;  %v3033_v32 = vrot.slane %v2547_v9, 2  ;;  %v2475_v14 = vadd.f32 %v2413_v10, %v7407_v47  ;;  %v5605_v46 = vpop.f32.mrb[185].mxu1  ;;  %v2638_v11 = vsel %vm1376_vm2, %v2636_v23, %v2637_v61 }
 0x3d3   : > { %v2416_v39 = vpop.f32.mrb[186].mxu1  ;;  %v3032_v38 = vsel %vm2994_vm3, %v3030_v42, %v3031_v25 }
 0x3d4   : > { %v2515_v53 = vadd.f32 %v7443_v26, %v2475_v14  ;;  %v2476_v56 = vadd.f32 %v2416_v39, %v7410_v17  ;;  %v5606_v7 = vpop.f32.mrb[187].mxu1  ;;  %v2640_v60 = vsel %vm1376_vm2, %v2637_v61, %v2639_v30  ;;  %v3034_v1 = vsel %vm2994_vm3, %v3031_v25, %v3033_v32 }
 0x3d5   : > { %v7662_v57 = vpack.c.bf16 %v2640_v60, %v2638_v11  ;;  %v7664_v31 = vpack.c.bf16 %v3034_v1, %v3032_v38 }
 0x3d6   : > { %v2548_v47 = vmax.f32 %v2515_v53, 0.0  ;;  %v2516_v0 = vadd.f32 %v7443_v26, %v2476_v56 }
 0x3d7   : > { %5660 = vmatmul.mubr.msk.bf16.gmra.mrb[120].mxu0 %vm393_vm0, %v7662_v57  ;;  %5748 = vmatmul.mubr.msk.bf16.gmra.mrb[232].mxu1 %vm393_vm0, %v7664_v31 }
 0x3d8   : > { %v2549_v24 = vmax.f32 %v2516_v0, 0.0  ;;  %5663 = vmatprep.mubr.msk.bf16.mxu0 %vm6205_vm1, %v6204_v5  ;;  %5751 = vmatprep.mubr.msk.bf16.mxu1 %vm6205_vm1, %v6204_v5  ;;  %v2641_v17 = vrot.slane %v2548_v47, 1  ;;  %v3035_v43 = vrot.slane %v2548_v47, 2 }
 0x3d9   : > { %v2421_v13 = vpop.f32.mrb[188].mxu1 }
 0x3da   : > { %v2642_v35 = vrot.slane %v2549_v24, 1  ;;  %v3036_v52 = vrot.slane %v2549_v24, 2  ;;  %v2477_v4 = vadd.f32 %v2421_v13, %v7415_v44  ;;  %v5609_v6 = vpop.f32.mrb[189].mxu1  ;;  %v7676_v18 = vpack.c.bf16 %v2549_v24, %v2548_v47 }
 0x3db   : > { %v2424_v37 = vpop.f32.mrb[190].mxu1 }
 0x3dc   : > { %v2517_v3 = vadd.f32 %v7443_v26, %v2477_v4  ;;  %v2478_v23 = vadd.f32 %v2424_v37, %v7418_v62  ;;  %v5610_v61 = vpop.f32.mrb[191].mxu1  ;;  %v2643_v25 = vsel %vm1376_vm2, %v2641_v17, %v2642_v35  ;;  %v3037_v9 = vsel %vm2994_vm3, %v3035_v43, %v3036_v52 }
 0x3de   : > { %v2550_v42 = vmax.f32 %v2517_v3, 0.0  ;;  %v2518_v10 = vadd.f32 %v7443_v26, %v2478_v23  ;;  %v6176_v23 = vld [vmem:[%s8602_s5 + $0x60] sm:$0xff]  }
 0x3e0   : > { %v2644_v30 = vrot.slane %v2550_v42, 1  ;;  %v3038_v32 = vrot.slane %v2550_v42, 2  ;;  %v2551_v39 = vmax.f32 %v2518_v10, 0.0 }
 0x3e1   : > { %v2429_v14 = vpop.f32.mrb[192].mxu1 }
 0x3e2   : > { %v2479_v44 = vadd.f32 %v2429_v14, %v7423_v55  ;;  %v5613_v46 = vpop.f32.mrb[193].mxu1  ;;  %v2645_v11 = vsel %vm1376_vm2, %v2642_v35, %v2644_v30  ;;  %v3039_v62 = vsel %vm2994_vm3, %v3036_v52, %v3038_v32  ;;  %v3413_v0 = vrot.slane %v2551_v39, 1  ;;  %v6180_v32 = vld [vmem:[%s8602_s5 + $0xc0] sm:$0xff]  }
 0x3e3   : > { %v2432_v38 = vpop.f32.mrb[194].mxu1  ;;  %v7685_v53 = vpack.c.bf16 %v2645_v11, %v2643_v25  ;;  %v7690_v1 = vpack.c.bf16 %v3039_v62, %v3037_v9  ;;  %v3580_v24 = vrot.slane %v2551_v39, 2 }
 0x3e4   : > { %v2519_v56 = vadd.f32 %v7443_v26, %v2479_v44  ;;  %v2480_v7 = vadd.f32 %v2432_v38, %v7426_v27  ;;  %v5614_v60 = vpop.f32.mrb[195].mxu1 }
 0x3e5   : > { %5664 = vmatmul.mubr.msk.bf16.gmra.mrb[124].mxu0 %vm393_vm0, %v7685_v53  ;;  %5752 = vmatmul.mubr.msk.bf16.gmra.mrb[236].mxu1 %vm393_vm0, %v7690_v1 }
 0x3e6   : > { %v2552_v55 = vmax.f32 %v2519_v56, 0.0  ;;  %v2520_v47 = vadd.f32 %v7443_v26, %v2480_v7  ;;  %5675 = vmatprep.mubr.msk.bf16.mxu0 %vm6205_vm1, %v6204_v5  ;;  %5807 = vmatprep.mubr.msk.bf16.mxu1 %vm6205_vm1, %v6204_v5 }
 0x3e8   : > { %v7701_v27 = vpack.c.bf16 %v2552_v55, %v2551_v39  ;;  %v3414_v17 = vrot.slane %v2552_v55, 1  ;;  %v3581_v43 = vrot.slane %v2552_v55, 2  ;;  %v2553_v13 = vmax.f32 %v2520_v47, 0.0  ;;  %v6178_v55 = vld [vmem:[%s8602_s5 + $0x70] sm:$0xff]  }
 0x3e9   : > { %v2437_v35 = vpop.f32.mrb[196].mxu1 }
 0x3ea   : > { %v3415_v52 = vsel %vm1376_vm2, %v3413_v0, %v3414_v17  ;;  %v3416_v4 = vrot.slane %v2553_v13, 1  ;;  %v3582_v6 = vsel %vm2994_vm3, %v3580_v24, %v3581_v43  ;;  %v3583_v37 = vrot.slane %v2553_v13, 2  ;;  %v5617_v3 = vpop.f32.mrb[197].mxu1 }
 0x3eb   : > { %v2481_v61 = vadd.f32 %v2437_v35, %v7431_v28  ;;  %v2440_v25 = vpop.f32.mrb[198].mxu1 }
 0x3ec   : > { %v3417_v9 = vsel %vm1376_vm2, %v3414_v17, %v3416_v4  ;;  %v3584_v42 = vsel %vm2994_vm3, %v3581_v43, %v3583_v37  ;;  %v2482_v10 = vadd.f32 %v2440_v25, %v7434_v8  ;;  %v5618_v30 = vpop.f32.mrb[199].mxu1  ;;  %v6177_v8 = vld [vmem:[%s8602_s5 + $0x68] sm:$0xff]   ;;  %v6183_v4 = vld [vmem:[%s8602_s5 + $0xd8] sm:$0xff]   ;;  %v7855_v25 = vld [vmem:[%s8602_s5 + $0x100] sm:$0xff]  }
 0x3ed   : > { %v7715_v14 = vpack.c.bf16 %v3417_v9, %v3415_v52  ;;  %v7717_v44 = vpack.c.bf16 %v3584_v42, %v3582_v6  ;;  %v2521_v46 = vadd.f32 %v7443_v26, %v2481_v61  ;;  %5676 = vmatmul.mubr.msk.bf16.vlgmr.msra.gmra.mrb[128].mxu0 %vm393_vm0, %v2557_v12  ;;  %5808 = vmatmul.mubr.msk.bf16.vlgmr.msra.gmra.mrb[240].mxu1 %vm393_vm0, %v7501_v51  ;;  %v6184_v61 = vld [vmem:[%s8602_s5 + $0xa0] sm:$0xff]   ;;  %v6185_v9 = vld [vmem:[%s8602_s5 + $0xa8] sm:$0xff]   ;;  %v6186_v42 = vld [vmem:[%s8602_s5 + $0xb0] sm:$0xff]  }
 0x3ee   : > { %v2522_v28 = vadd.f32 %v7443_v26, %v2482_v10  ;;  %5756 = vmatpush3.bf16.msra.mxu0 %v6176_v23  ;;  %5679 = vmatprep.mubr.msk.bf16.mxu0 %vm6205_vm1, %v6204_v5  ;;  %v7884_v10 = vld [vmem:[%s8602_s5 + $0x110] sm:$0xff]   ;;  %v6187_v30 = vld [vmem:[%s8602_s5 + $0xb8] sm:$0xff]  }
 0x3ef   : > { %v7730_v11 = vmax.f32 %v2521_v46, 0.0  ;;  %5811 = vmatprep.mubr.msk.bf16.mxu1 %vm6205_vm1, %v6204_v5  ;;  %5757 = vmatprep.subr.bf16.mxu0 %v6204_v5 }
 0x3f0   : > { %v7736_v19 = vmax.f32 %v2522_v28, 0.0  ;;  %5888 = vmatpush3.bf16.msra.mxu1 %v6180_v32 }
 0x3f1   : > { %v3910_v12 = vrot.slane %v7730_v11, 1  ;;  %v4077_v51 = vrot.slane %v7730_v11, 2  ;;  %v2445_v39 = vpop.f32.mrb[200].mxu1  ;;  %5889 = vmatprep.subr.bf16.mxu1 %v6204_v5 }
 0x3f2   : > { %v3747_v38 = vpack.c.bf16 %v7736_v19, %v7730_v11  ;;  %v3911_v62 = vrot.slane %v7736_v19, 1  ;;  %v4078_v56 = vrot.slane %v7736_v19, 2  ;;  %v2483_v7 = vadd.f32 %v2445_v39, %v7438_v58  ;;  %5758 = vmatpush3.bf16.msra.mxu0 %v6177_v8  ;;  %v5621_v60 = vpop.f32.mrb[201].mxu1  ;;  %v6182_v58 = vld [vmem:[%s8602_s5 + $0xd0] sm:$0xff]  }
 0x3f3   : > { %5759 = vmatprep.subr.bf16.mxu0 %v6204_v5  ;;  %v2448_v47 = vpop.f32.mrb[202].mxu1 }
 0x3f4   : > { %v2523_v0 = vadd.f32 %v7443_v26, %v2483_v7  ;;  %v7756_v24 = vsel %vm1376_vm2, %v3910_v12, %v3911_v62  ;;  %v7759_v17 = vsel %vm2994_vm3, %v4077_v51, %v4078_v56  ;;  %5890 = vmatpush3.bf16.msra.mxu1 %v6181_v50  ;;  %v5622_v43 = vpop.f32.mrb[203].mxu1  ;;  %v6179_v26 = vld [vmem:[%s8602_s5 + $0x78] sm:$0xff]  }
 0x3f5   : > { %5680 = vmatmul.mubr.msk.bf16.gmra.mrb[132].mxu0 %vm393_vm0, %v7491_v48  ;;  %5891 = vmatprep.subr.bf16.mxu1 %v6204_v5 }
 0x3f6   : > { %v2556_v13 = vmax.f32 %v2523_v0, 0.0  ;;  %5812 = vmatmul.mubr.msk.bf16.gmra.mrb[244].mxu1 %vm393_vm0, %v7541_v40  ;;  %5683 = vmatprep.mubr.msk.bf16.mxu0 %vm6205_vm1, %v6204_v5 }
 0x3f7   : > { %5815 = vmatprep.mubr.msk.bf16.mxu1 %vm6205_vm1, %v6204_v5  ;;  %5760 = vmatpush3.bf16.msra.mxu0 %v6178_v55 }
 0x3f8   : > { %v3913_v35 = vrot.slane %v2556_v13, 1  ;;  %v4080_v52 = vrot.slane %v2556_v13, 2  ;;  %5761 = vmatprep.subr.bf16.mxu0 %v6204_v5  ;;  %5892 = vmatpush3.bf16.msra.mxu1 %v6182_v58 }
 0x3f9   : > { %5893 = vmatprep.subr.bf16.mxu1 %v6204_v5 }
 0x3fa   : > { %v7782_v6 = vsel %vm1376_vm2, %v3911_v62, %v3913_v35  ;;  %v7785_v37 = vsel %vm2994_vm3, %v4078_v56, %v4080_v52  ;;  %v6192_v52 = vld [vmem:[%s8602_s5 + $0xe0] sm:$0xff]  }
 0x3fb   : > { %v4084_v23 = vpack.c.bf16 %v7785_v37, %v7759_v17  ;;  %5762 = vmatpush3.bf16.msra.mxu0 %v6179_v26 }
 0x3fc   : > { %5894 = vmatpush3.bf16.msra.mxu1 %v6183_v4  ;;  %5843 = vmatprep.subr.bf16.mxu0 %v6204_v5 }
 0x3fd   : > { %5684 = vmatmul.mubr.msk.bf16.gmra.mrb[136].mxu0 %vm393_vm0, %v7530_v63  ;;  %6019 = vmatprep.subr.bf16.mxu1 %v6204_v5 }
 0x3fe   : > { %5816 = vmatmul.mubr.msk.bf16.gmra.mrb[248].mxu1 %vm393_vm0, %v7566_v49  ;;  %5687 = vmatprep.mubr.msk.bf16.mxu0 %vm6205_vm1, %v6204_v5 }
 0x3ff   : > { %5819 = vmatprep.mubr.msk.bf16.mxu1 %vm6205_vm1, %v6204_v5 }
 0x405   : > { %5688 = vmatmul.mubr.msk.bf16.gmra.mrb[140].mxu0 %vm393_vm0, %v7557_v33 }
 0x406   : > { %5820 = vmatmul.mubr.msk.bf16.gmra.mrb[252].mxu1 %vm393_vm0, %v7589_v36  ;;  %5691 = vmatprep.mubr.msk.bf16.mxu0 %vm6205_vm1, %v6204_v5 }
 0x407   : > { %5823 = vmatprep.mubr.msk.bf16.mxu1 %vm6205_vm1, %v6204_v5 }
 0x40d   : > { %5692 = vmatmul.mubr.msk.bf16.gmra.mrb[144].mxu0 %vm393_vm0, %v7580_v45 }
 0x40e   : > { %5824 = vmatmul.mubr.msk.bf16.gmra.mrb[0].mxu1 %vm393_vm0, %v7614_v21  ;;  %5695 = vmatprep.mubr.msk.bf16.mxu0 %vm6205_vm1, %v6204_v5 }
 0x40f   : > { %5827 = vmatprep.mubr.msk.bf16.mxu1 %vm6205_vm1, %v6204_v5 }
 0x415   : > { %5696 = vmatmul.mubr.msk.bf16.gmra.mrb[148].mxu0 %vm393_vm0, %v7605_v34 }
 0x416   : > { %5828 = vmatmul.mubr.msk.bf16.gmra.mrb[4].mxu1 %vm393_vm0, %v7637_v16  ;;  %5699 = vmatprep.mubr.msk.bf16.mxu0 %vm6205_vm1, %v6204_v5 }
 0x417   : > { %5831 = vmatprep.mubr.msk.bf16.mxu1 %vm6205_vm1, %v6204_v5 }
 0x41d   : > { %5700 = vmatmul.mubr.msk.bf16.gmra.mrb[152].mxu0 %vm393_vm0, %v7628_v41 }
 0x41e   : > { %5832 = vmatmul.mubr.msk.bf16.gmra.mrb[8].mxu1 %vm393_vm0, %v7662_v57  ;;  %5703 = vmatprep.mubr.msk.bf16.mxu0 %vm6205_vm1, %v6204_v5 }
 0x41f   : > { %5835 = vmatprep.mubr.msk.bf16.mxu1 %vm6205_vm1, %v6204_v5 }
 0x425   : > { %5704 = vmatmul.mubr.msk.bf16.gmra.mrb[156].mxu0 %vm393_vm0, %v7653_v20 }
 0x426   : > { %5836 = vmatmul.mubr.msk.bf16.gmra.mrb[12].mxu1 %vm393_vm0, %v7685_v53  ;;  %5707 = vmatprep.mubr.msk.bf16.mxu0 %vm6205_vm1, %v6204_v5 }
 0x427   : > { %5839 = vmatprep.mubr.msk.bf16.mxu1 %vm6205_vm1, %v6204_v5 }
 0x42d   : > { %5708 = vmatmul.mubr.msk.bf16.gmra.mrb[160].mxu0 %vm393_vm0, %v7676_v18 }
 0x42e   : > { %5840 = vmatmul.mubr.msk.bf16.gmra.mrb[16].mxu1 %vm393_vm0, %v7715_v14  ;;  %5763 = vmatprep.mubr.msk.bf16.mxu0 %vm6205_vm1, %v6204_v5 }
 0x42f   : > { %5895 = vmatprep.mubr.msk.bf16.mxu1 %vm6205_vm1, %v6204_v5 }
 0x435   : > { %5764 = vmatmul.mubr.msk.bf16.vlgmr.msra.gmra.mrb[164].mxu0 %vm393_vm0, %v7491_v48  ;;  %v7873_v48 = vld [vmem:[%s8602_s5 + $0x108] sm:$0xff]  }
 0x436   : > { %5896 = vmatmul.mubr.msk.bf16.vlgmr.msra.gmra.mrb[20].mxu1 %vm393_vm0, %v7530_v63  ;;  %5844 = vmatpush3.bf16.msra.mxu0 %v6184_v61 }
 0x437   : > { %5767 = vmatprep.mubr.msk.bf16.mxu0 %vm6205_vm1, %v6204_v5  ;;  %5899 = vmatprep.mubr.msk.bf16.mxu1 %vm6205_vm1, %v6204_v5 }
 0x438   : > { %5845 = vmatprep.subr.bf16.mxu0 %v6204_v5  ;;  %6023 = vmatpush3.bf16.msra.mxu1 %v7855_v25 }
 0x439   : > { %6020 = vmatprep.subr.bf16.mxu1 %v6204_v5 }
 0x43a   : > { %5846 = vmatpush3.bf16.msra.mxu0 %v6185_v9  ;;  %v6193_v9 = vld [vmem:[%s8602_s5 + $0xe8] sm:$0xff]  }
 0x43b   : > { %5847 = vmatprep.subr.bf16.mxu0 %v6204_v5 }
 0x43c   : > { %6024 = vmatpush3.bf16.msra.mxu1 %v7873_v48 }
 0x43d   : > { %5768 = vmatmul.mubr.msk.bf16.gmra.mrb[168].mxu0 %vm393_vm0, %v7530_v63  ;;  %6021 = vmatprep.subr.bf16.mxu1 %v6204_v5  ;;  %v7903_v63 = vld [vmem:[%s8602_s5 + $0x118] sm:$0xff]  }
 0x43e   : > { %5900 = vmatmul.mubr.msk.bf16.gmra.mrb[24].mxu1 %vm393_vm0, %v7557_v33  ;;  %5771 = vmatprep.mubr.msk.bf16.mxu0 %vm6205_vm1, %v6204_v5 }
 0x43f   : > { %5903 = vmatprep.mubr.msk.bf16.mxu1 %vm6205_vm1, %v6204_v5  ;;  %5848 = vmatpush3.bf16.msra.mxu0 %v6186_v42  ;;  %v6195_v42 = vld [vmem:[%s8602_s5 + $0xf8] sm:$0xff]  }
 0x440   : > { %5849 = vmatprep.subr.bf16.mxu0 %v6204_v5  ;;  %6025 = vmatpush3.bf16.msra.mxu1 %v7884_v10 }
 0x441   : > { %6022 = vmatprep.subr.bf16.mxu1 %v6204_v5 }
 0x443   : > { %5850 = vmatpush3.bf16.msra.mxu0 %v6187_v30 }
 0x444   : > { %6026 = vmatpush3.bf16.msra.mxu1 %v7903_v63  ;;  %5931 = vmatprep.subr.bf16.mxu0 %v6204_v5 }
 0x445   : > { %5772 = vmatmul.mubr.msk.bf16.gmra.mrb[172].mxu0 %vm393_vm0, %v7557_v33 }
 0x446   : > { %5904 = vmatmul.mubr.msk.bf16.gmra.mrb[28].mxu1 %vm393_vm0, %v7580_v45  ;;  %5775 = vmatprep.mubr.msk.bf16.mxu0 %vm6205_vm1, %v6204_v5 }
 0x447   : > { %5907 = vmatprep.mubr.msk.bf16.mxu1 %vm6205_vm1, %v6204_v5 }
 0x44d   : > { %5776 = vmatmul.mubr.msk.bf16.gmra.mrb[176].mxu0 %vm393_vm0, %v7580_v45 }
 0x44e   : > { %5908 = vmatmul.mubr.msk.bf16.gmra.mrb[32].mxu1 %vm393_vm0, %v7605_v34  ;;  %5779 = vmatprep.mubr.msk.bf16.mxu0 %vm6205_vm1, %v6204_v5 }
 0x44f   : > { %5911 = vmatprep.mubr.msk.bf16.mxu1 %vm6205_vm1, %v6204_v5 }
 0x455   : > { %5780 = vmatmul.mubr.msk.bf16.gmra.mrb[180].mxu0 %vm393_vm0, %v7605_v34 }
 0x456   : > { %5912 = vmatmul.mubr.msk.bf16.gmra.mrb[36].mxu1 %vm393_vm0, %v7628_v41  ;;  %5783 = vmatprep.mubr.msk.bf16.mxu0 %vm6205_vm1, %v6204_v5 }
 0x457   : > { %5915 = vmatprep.mubr.msk.bf16.mxu1 %vm6205_vm1, %v6204_v5 }
 0x458   : > { %v7932_v33 = vpop.f32.mrb[92].mxu0  ;;  %v7934_v45 = vpop.f32.mrb[204].mxu1 }
 0x459   : > { %v5633_v32 = vpop.f32.mrb[93].mxu0  ;;  %v5721_v46 = vpop.f32.mrb[205].mxu1 }
 0x45a   : > { %v7936_v28 = vpop.f32.mrb[94].mxu0  ;;  %v7938_v8 = vpop.f32.mrb[206].mxu1 }
 0x45b   : > { %v5634_v34 = vpop.f32.mrb[95].mxu0  ;;  %v5722_v50 = vpop.f32.mrb[207].mxu1 }
 0x45d   : > { %5784 = vmatmul.mubr.msk.bf16.gmra.mrb[184].mxu0 %vm393_vm0, %v7628_v41 }
 0x45e   : > { %5916 = vmatmul.mubr.msk.bf16.gmra.mrb[40].mxu1 %vm393_vm0, %v7653_v20  ;;  %5787 = vmatprep.mubr.msk.bf16.mxu0 %vm6205_vm1, %v6204_v5 }
 0x45f   : > { %5919 = vmatprep.mubr.msk.bf16.mxu1 %vm6205_vm1, %v6204_v5 }
 0x462   : > { %v7948_v12 = vpop.f32.mrb[96].mxu0  ;;  %v7950_v51 = vpop.f32.mrb[208].mxu1 }
 0x463   : > { %v5637_v39 = vpop.f32.mrb[97].mxu0  ;;  %v5725_v62 = vpop.f32.mrb[209].mxu1 }
 0x464   : > { %v7952_v56 = vpop.f32.mrb[98].mxu0  ;;  %v7954_v7 = vpop.f32.mrb[210].mxu1 }
 0x465   : > { %v5638_v41 = vpop.f32.mrb[99].mxu0  ;;  %v5726_v60 = vpop.f32.mrb[211].mxu1  ;;  %5788 = vmatmul.mubr.msk.bf16.gmra.mrb[188].mxu0 %vm393_vm0, %v7653_v20 }
 0x466   : > { %5920 = vmatmul.mubr.msk.bf16.gmra.mrb[44].mxu1 %vm393_vm0, %v7676_v18  ;;  %5791 = vmatprep.mubr.msk.bf16.mxu0 %vm6205_vm1, %v6204_v5 }
 0x467   : > { %5923 = vmatprep.mubr.msk.bf16.mxu1 %vm6205_vm1, %v6204_v5 }
 0x46d   : > { %5792 = vmatmul.mubr.msk.bf16.gmra.mrb[192].mxu0 %vm393_vm0, %v7676_v18 }
 0x46e   : > { %5924 = vmatmul.mubr.msk.bf16.gmra.mrb[48].mxu1 %vm393_vm0, %v7701_v27  ;;  %5795 = vmatprep.mubr.msk.bf16.mxu0 %vm6205_vm1, %v6204_v5 }
 0x46f   : > { %5927 = vmatprep.mubr.msk.bf16.mxu1 %vm6205_vm1, %v6204_v5 }
 0x470   : > { %v7972_v20 = vpop.f32.mrb[100].mxu0  ;;  %v7974_v55 = vpop.f32.mrb[212].mxu1 }
 0x471   : > { %v5641_v47 = vpop.f32.mrb[101].mxu0  ;;  %v5729_v0 = vpop.f32.mrb[213].mxu1 }
 0x472   : > { %v7976_v58 = vpop.f32.mrb[102].mxu0  ;;  %v7978_v43 = vpop.f32.mrb[214].mxu1 }
 0x473   : > { %v5642_v18 = vpop.f32.mrb[103].mxu0  ;;  %v5730_v13 = vpop.f32.mrb[215].mxu1 }
 0x475   : > { %5796 = vmatmul.mubr.msk.bf16.gmra.mrb[196].mxu0 %vm393_vm0, %v7701_v27 }
 0x476   : > { %5928 = vmatmul.mubr.msk.bf16.gmra.mrb[52].mxu1 %vm393_vm0, %v3747_v38  ;;  %5851 = vmatprep.mubr.msk.bf16.mxu0 %vm6205_vm1, %v6204_v5 }
 0x477   : > { %5987 = vmatprep.mubr.msk.bf16.mxu1 %vm6205_vm1, %v6204_v5 }
 0x47a   : > { %v7990_v26 = vpop.f32.mrb[104].mxu0  ;;  %v7992_v35 = vpop.f32.mrb[216].mxu1 }
 0x47b   : > { %v5645_v27 = vpop.f32.mrb[105].mxu0  ;;  %v5733_v4 = vpop.f32.mrb[217].mxu1 }
 0x47c   : > { %v7997_v61 = vpop.f32.mrb[106].mxu0  ;;  %v7999_v11 = vpop.f32.mrb[218].mxu1 }
 0x47d   : > { %v5646_v19 = vpop.f32.mrb[107].mxu0  ;;  %v5734_v38 = vpop.f32.mrb[219].mxu1  ;;  %5852 = vmatmul.mubr.msk.bf16.vlgmr.msra.gmra.mrb[200].mxu0 %vm393_vm0, %v7503_v59  ;;  %v6194_v59 = vld [vmem:[%s8602_s5 + $0xf0] sm:$0xff]  }
 0x47e   : > { %5988 = vmatmul.mubr.msk.bf16.vlgmr.msra.gmra.mrb[56].mxu1 %vm393_vm0, %v7568_v2  ;;  %5932 = vmatpush3.bf16.msra.mxu0 %v6192_v52 }
 0x47f   : > { %5855 = vmatprep.mubr.msk.bf16.mxu0 %vm6205_vm1, %v6204_v5  ;;  %5991 = vmatprep.mubr.msk.bf16.mxu1 %vm6205_vm1, %v6204_v5 }
 0x480   : > { %5933 = vmatprep.subr.bf16.mxu0 %v6204_v5 }
 0x482   : > { %5934 = vmatpush3.bf16.msra.mxu0 %v6193_v9 }
 0x483   : > { %5935 = vmatprep.subr.bf16.mxu0 %v6204_v5 }
 0x485   : > { %5856 = vmatmul.mubr.msk.bf16.gmra.mrb[204].mxu0 %vm393_vm0, %v7546_v29 }
 0x486   : > { %5992 = vmatmul.mubr.msk.bf16.gmra.mrb[60].mxu1 %vm393_vm0, %v7594_v54  ;;  %5859 = vmatprep.mubr.msk.bf16.mxu0 %vm6205_vm1, %v6204_v5 }
 0x487   : > { %5995 = vmatprep.mubr.msk.bf16.mxu1 %vm6205_vm1, %v6204_v5  ;;  %5936 = vmatpush3.bf16.msra.mxu0 %v6194_v59 }
 0x488   : > { %v8028_v30 = vpop.f32.mrb[108].mxu0  ;;  %5937 = vmatprep.subr.bf16.mxu0 %v6204_v5  ;;  %v8031_v32 = vpop.f32.mrb[220].mxu1 }
 0x489   : > { %v5649_v46 = vpop.f32.mrb[109].mxu0  ;;  %v5737_v34 = vpop.f32.mrb[221].mxu1 }
 0x48a   : > { %v8033_v50 = vpop.f32.mrb[110].mxu0  ;;  %v8035_v39 = vpop.f32.mrb[222].mxu1 }
 0x48b   : > { %v5650_v62 = vpop.f32.mrb[111].mxu0  ;;  %5938 = vmatpush3.bf16.msra.mxu0 %v6195_v42  ;;  %v5738_v41 = vpop.f32.mrb[223].mxu1 }
 0x48c   : > { %5975 = vmatprep.subr.bf16.mxu0 %v6204_v5 }
 0x48d   : > { %5860 = vmatmul.mubr.msk.bf16.gmra.mrb[208].mxu0 %vm393_vm0, %v7568_v2 }
 0x48e   : > { %5996 = vmatmul.mubr.msk.bf16.gmra.mrb[64].mxu1 %vm393_vm0, %v7616_v15  ;;  %5863 = vmatprep.mubr.msk.bf16.mxu0 %vm6205_vm1, %v6204_v5 }
 0x48f   : > { %5999 = vmatprep.mubr.msk.bf16.mxu1 %vm6205_vm1, %v6204_v5 }
 0x492   : > { %v8046_v60 = vpop.f32.mrb[112].mxu0  ;;  %v8048_v47 = vpop.f32.mrb[224].mxu1 }
 0x493   : > { %v5653_v0 = vpop.f32.mrb[113].mxu0  ;;  %v5741_v18 = vpop.f32.mrb[225].mxu1 }
 0x494   : > { %v8050_v13 = vpop.f32.mrb[114].mxu0  ;;  %v8052_v52 = vpop.f32.mrb[226].mxu1 }
 0x495   : > { %v5654_v2 = vpop.f32.mrb[115].mxu0  ;;  %v5742_v27 = vpop.f32.mrb[227].mxu1  ;;  %5864 = vmatmul.mubr.msk.bf16.gmra.mrb[212].mxu0 %vm393_vm0, %v7594_v54 }
 0x496   : > { %6000 = vmatmul.mubr.msk.bf16.gmra.mrb[68].mxu1 %vm393_vm0, %v7642_v22  ;;  %5867 = vmatprep.mubr.msk.bf16.mxu0 %vm6205_vm1, %v6204_v5 }
 0x497   : > { %6003 = vmatprep.mubr.msk.bf16.mxu1 %vm6205_vm1, %v6204_v5 }
 0x49d   : > { %5868 = vmatmul.mubr.msk.bf16.gmra.mrb[216].mxu0 %vm393_vm0, %v7616_v15 }
 0x49e   : > { %6004 = vmatmul.mubr.msk.bf16.gmra.mrb[72].mxu1 %vm393_vm0, %v7664_v31  ;;  %5871 = vmatprep.mubr.msk.bf16.mxu0 %vm6205_vm1, %v6204_v5 }
 0x49f   : > { %6007 = vmatprep.mubr.msk.bf16.mxu1 %vm6205_vm1, %v6204_v5 }
 0x4a0   : > { %v8070_v54 = vpop.f32.mrb[116].mxu0  ;;  %v8072_v4 = vpop.f32.mrb[228].mxu1 }
 0x4a1   : > { %v5657_v19 = vpop.f32.mrb[117].mxu0  ;;  %v5745_v38 = vpop.f32.mrb[229].mxu1 }
 0x4a2   : > { %v8074_v9 = vpop.f32.mrb[118].mxu0  ;;  %v8076_v59 = vpop.f32.mrb[230].mxu1 }
 0x4a3   : > { %v5658_v15 = vpop.f32.mrb[119].mxu0  ;;  %v5746_v42 = vpop.f32.mrb[231].mxu1 }
 0x4a5   : > { %5872 = vmatmul.mubr.msk.bf16.gmra.mrb[220].mxu0 %vm393_vm0, %v7642_v22 }
 0x4a6   : > { %6008 = vmatmul.mubr.msk.bf16.gmra.mrb[76].mxu1 %vm393_vm0, %v7690_v1  ;;  %5875 = vmatprep.mubr.msk.bf16.mxu0 %vm6205_vm1, %v6204_v5 }
 0x4a7   : > { %6011 = vmatprep.mubr.msk.bf16.mxu1 %vm6205_vm1, %v6204_v5 }
 0x4aa   : > { %v8086_v46 = vpop.f32.mrb[120].mxu0  ;;  %v8088_v34 = vpop.f32.mrb[232].mxu1 }
 0x4ab   : > { %v5661_v62 = vpop.f32.mrb[121].mxu0  ;;  %v5749_v41 = vpop.f32.mrb[233].mxu1 }
 0x4ac   : > { %v8090_v0 = vpop.f32.mrb[122].mxu0  ;;  %v8092_v18 = vpop.f32.mrb[234].mxu1 }
 0x4ad   : > { %v5662_v22 = vpop.f32.mrb[123].mxu0  ;;  %v5750_v2 = vpop.f32.mrb[235].mxu1  ;;  %5876 = vmatmul.mubr.msk.bf16.gmra.mrb[224].mxu0 %vm393_vm0, %v7664_v31 }
 0x4ae   : > { %6012 = vmatmul.mubr.msk.bf16.gmra.mrb[80].mxu1 %vm393_vm0, %v7717_v44  ;;  %5879 = vmatprep.mubr.msk.bf16.mxu0 %vm6205_vm1, %v6204_v5 }
 0x4af   : > { %6015 = vmatprep.mubr.msk.bf16.mxu1 %vm6205_vm1, %v6204_v5 }
 0x4b5   : > { %5880 = vmatmul.mubr.msk.bf16.gmra.mrb[228].mxu0 %vm393_vm0, %v7690_v1 }
 0x4b6   : > { %6016 = vmatmul.mubr.msk.bf16.gmra.mrb[84].mxu1 %vm393_vm0, %v4084_v23  ;;  %5883 = vmatprep.mubr.msk.bf16.mxu0 %vm6205_vm1, %v6204_v5 }
 0x4b8   : > { %v8110_v31 = vpop.f32.mrb[124].mxu0  ;;  %v8112_v27 = vpop.f32.mrb[236].mxu1 }
 0x4b9   : > { %v5665_v19 = vpop.f32.mrb[125].mxu0  ;;  %v5753_v38 = vpop.f32.mrb[237].mxu1 }
 0x4ba   : > { %v8114_v15 = vpop.f32.mrb[126].mxu0  ;;  %v8116_v42 = vpop.f32.mrb[238].mxu1 }
 0x4bb   : > { %v5666_v62 = vpop.f32.mrb[127].mxu0  ;;  %v5754_v1 = vpop.f32.mrb[239].mxu1 }
 0x4bd   : > { %5884 = vmatmul.mubr.msk.bf16.gmra.mrb[232].mxu0 %vm393_vm0, %v7717_v44 }
 0x4be   : > { %5939 = vmatprep.mubr.msk.bf16.mxu0 %vm6205_vm1, %v6204_v5 }
 0x4c0   : > { %v2923_v17 = vpop.f32.mrb[128].mxu0  ;;  %v8123_v23 = vpop.f32.mrb[240].mxu1 }
 0x4c1   : > { %v2924_v37 = vadd.f32 %v2923_v17, %v7932_v33  ;;  %v5677_v41 = vpop.f32.mrb[129].mxu0  ;;  %v5809_v22 = vpop.f32.mrb[241].mxu1 }
 0x4c2   : > { %v2926_v2 = vpop.f32.mrb[130].mxu0  ;;  %v8126_v38 = vpop.f32.mrb[242].mxu1 }
 0x4c3   : > { %v2927_v19 = vadd.f32 %v2926_v2, %v7936_v28  ;;  %v5678_v62 = vpop.f32.mrb[131].mxu0  ;;  %v8129_v1 = vadd.f32 %v7934_v45, %v2924_v37  ;;  %v5810_v44 = vpop.f32.mrb[243].mxu1 }
 0x4c5   : > { %5940 = vmatmul.mubr.msk.bf16.vlgmr.msra.gmra.mrb[236].mxu0 %vm393_vm0, %v7541_v40  ;;  %v8134_v3 = vadd.f32 %v7938_v8, %v2927_v19 }
 0x4c6   : > { %5976 = vmatpush3.bf16.msra.mxu0 %v7855_v25  ;;  %5943 = vmatprep.mubr.msk.bf16.mxu0 %vm6205_vm1, %v6204_v5 }
 0x4c7   : > { %5977 = vmatprep.subr.bf16.mxu0 %v6204_v5 }
 0x4c8   : > { %v2931_v33 = vpop.f32.mrb[132].mxu0 }
 0x4c9   : > { %v2932_v28 = vadd.f32 %v2931_v33, %v7948_v12  ;;  %v8141_v17 = vpop.f32.mrb[244].mxu1  ;;  %v5681_v45 = vpop.f32.mrb[133].mxu0 }
 0x4ca   : > { %v5813_v37 = vpop.f32.mrb[245].mxu1  ;;  %v2934_v41 = vpop.f32.mrb[134].mxu0  ;;  %5978 = vmatpush3.bf16.msra.mxu0 %v7873_v48 }
 0x4cb   : > { %v2935_v40 = vadd.f32 %v2934_v41, %v7952_v56  ;;  %v8145_v8 = vpop.f32.mrb[246].mxu1  ;;  %v5682_v25 = vpop.f32.mrb[135].mxu0  ;;  %5979 = vmatprep.subr.bf16.mxu0 %v6204_v5  ;;  %v8149_v22 = vadd.f32 %v7950_v51, %v2932_v28 }
 0x4cc   : > { %v5814_v2 = vpop.f32.mrb[247].mxu1 }
 0x4cd   : > { %5944 = vmatmul.mubr.msk.bf16.gmra.mrb[240].mxu0 %vm393_vm0, %v7566_v49  ;;  %v8154_v12 = vadd.f32 %v7954_v7, %v2935_v40 }
 0x4ce   : > { %5947 = vmatprep.mubr.msk.bf16.mxu0 %vm6205_vm1, %v6204_v5  ;;  %5980 = vmatpush3.bf16.msra.mxu0 %v7884_v10 }
 0x4cf   : > { %5981 = vmatprep.subr.bf16.mxu0 %v6204_v5 }
 0x4d0   : > { %v2939_v48 = vpop.f32.mrb[136].mxu0 }
 0x4d1   : > { %v2940_v56 = vadd.f32 %v2939_v48, %v7972_v20  ;;  %v8161_v19 = vpop.f32.mrb[248].mxu1  ;;  %v5685_v51 = vpop.f32.mrb[137].mxu0 }
 0x4d2   : > { %v5817_v62 = vpop.f32.mrb[249].mxu1  ;;  %v2942_v44 = vpop.f32.mrb[138].mxu0  ;;  %5982 = vmatpush3.bf16.msra.mxu0 %v7903_v63 }
 0x4d3   : > { %v2943_v49 = vadd.f32 %v2942_v44, %v7976_v58  ;;  %v8165_v7 = vpop.f32.mrb[250].mxu1  ;;  %v5686_v33 = vpop.f32.mrb[139].mxu0  ;;  %v8168_v28 = vadd.f32 %v7974_v55, %v2940_v56 }
 0x4d4   : > { %v5818_v10 = vpop.f32.mrb[251].mxu1 }
 0x4d5   : > { %5948 = vmatmul.mubr.msk.bf16.gmra.mrb[244].mxu0 %vm393_vm0, %v7589_v36  ;;  %v8173_v20 = vadd.f32 %v7978_v43, %v2943_v49 }
 0x4d6   : > { %5951 = vmatprep.mubr.msk.bf16.mxu0 %vm6205_vm1, %v6204_v5 }
 0x4d8   : > { %v2947_v45 = vpop.f32.mrb[140].mxu0 }
 0x4d9   : > { %v2948_v63 = vadd.f32 %v2947_v45, %v7990_v26  ;;  %v8178_v58 = vpop.f32.mrb[252].mxu1  ;;  %v5689_v37 = vpop.f32.mrb[141].mxu0 }
 0x4da   : > { %v5821_v41 = vpop.f32.mrb[253].mxu1  ;;  %v2950_v40 = vpop.f32.mrb[142].mxu0 }
 0x4db   : > { %v2951_v55 = vadd.f32 %v2950_v40, %v7997_v61  ;;  %v8181_v25 = vpop.f32.mrb[254].mxu1  ;;  %v5690_v2 = vpop.f32.mrb[143].mxu0  ;;  %v8184_v36 = vadd.f32 %v7992_v35, %v2948_v63 }
 0x4dc   : > { %v5822_v43 = vpop.f32.mrb[255].mxu1 }
 0x4dd   : > { %5952 = vmatmul.mubr.msk.bf16.gmra.mrb[248].mxu0 %vm393_vm0, %v7614_v21  ;;  %v8189_v48 = vadd.f32 %v7999_v11, %v2951_v55 }
 0x4de   : > { %5955 = vmatprep.mubr.msk.bf16.mxu0 %vm6205_vm1, %v6204_v5 }
 0x4e0   : > { %v2955_v26 = vpop.f32.mrb[144].mxu0 }
 0x4e1   : > { %v2956_v56 = vadd.f32 %v2955_v26, %v8028_v30  ;;  %v8194_v61 = vpop.f32.mrb[0].mxu1  ;;  %v5693_v51 = vpop.f32.mrb[145].mxu0 }
 0x4e2   : > { %v5825_v62 = vpop.f32.mrb[1].mxu1  ;;  %v2958_v44 = vpop.f32.mrb[146].mxu0 }
 0x4e3   : > { %v2959_v35 = vadd.f32 %v2958_v44, %v8033_v50  ;;  %v8197_v49 = vpop.f32.mrb[2].mxu1  ;;  %v5694_v33 = vpop.f32.mrb[147].mxu0  ;;  %v8200_v21 = vadd.f32 %v8031_v32, %v2956_v56 }
 0x4e4   : > { %v5826_v11 = vpop.f32.mrb[3].mxu1 }
 0x4e5   : > { %5956 = vmatmul.mubr.msk.bf16.gmra.mrb[252].mxu0 %vm393_vm0, %v7637_v16  ;;  %v8205_v10 = vadd.f32 %v8035_v39, %v2959_v35 }
 0x4e6   : > { %5959 = vmatprep.mubr.msk.bf16.mxu0 %vm6205_vm1, %v6204_v5 }
 0x4e8   : > { %v2963_v30 = vpop.f32.mrb[148].mxu0 }
 0x4e9   : > { %v2964_v45 = vadd.f32 %v2963_v30, %v8046_v60  ;;  %v8210_v50 = vpop.f32.mrb[4].mxu1  ;;  %v5697_v63 = vpop.f32.mrb[149].mxu0 }
 0x4ea   : > { %v5829_v37 = vpop.f32.mrb[5].mxu1  ;;  %v2966_v41 = vpop.f32.mrb[150].mxu0 }
 0x4eb   : > { %v2967_v32 = vadd.f32 %v2966_v41, %v8050_v13  ;;  %v8213_v40 = vpop.f32.mrb[6].mxu1  ;;  %v5698_v55 = vpop.f32.mrb[151].mxu0  ;;  %v8216_v16 = vadd.f32 %v8048_v47, %v2964_v45 }
 0x4ec   : > { %v5830_v39 = vpop.f32.mrb[7].mxu1 }
 0x4ed   : > { %5960 = vmatmul.mubr.msk.bf16.gmra.mrb[0].mxu0 %vm393_vm0, %v7662_v57  ;;  %v8221_v2 = vadd.f32 %v8052_v52, %v2967_v32 }
 0x4ee   : > { %5963 = vmatprep.mubr.msk.bf16.mxu0 %vm6205_vm1, %v6204_v5 }
 0x4f0   : > { %v2971_v60 = vpop.f32.mrb[152].mxu0 }
 0x4f1   : > { %v2972_v43 = vadd.f32 %v2971_v60, %v8070_v54  ;;  %v8226_v13 = vpop.f32.mrb[8].mxu1  ;;  %v5701_v26 = vpop.f32.mrb[153].mxu0 }
 0x4f2   : > { %v5833_v56 = vpop.f32.mrb[9].mxu1  ;;  %v2974_v51 = vpop.f32.mrb[154].mxu0 }
 0x4f3   : > { %v2975_v47 = vadd.f32 %v2974_v51, %v8074_v9  ;;  %v8229_v62 = vpop.f32.mrb[10].mxu1  ;;  %v5702_v44 = vpop.f32.mrb[155].mxu0  ;;  %v8232_v57 = vadd.f32 %v8072_v4, %v2972_v43  ;;  %v8675_v56 = vpack.c.bf16 %v7782_v6, %v7756_v24 }
 0x4f4   : > { %v5834_v52 = vpop.f32.mrb[11].mxu1 }
 0x4f5   : > { %5964 = vmatmul.mubr.msk.bf16.gmra.mrb[4].mxu0 %vm393_vm0, %v7685_v53  ;;  %v8237_v35 = vadd.f32 %v8076_v59, %v2975_v47 }
 0x4f6   : > { %5967 = vmatprep.mubr.msk.bf16.mxu0 %vm6205_vm1, %v6204_v5 }
 0x4f8   : > { %v2979_v54 = vpop.f32.mrb[156].mxu0 }
 0x4f9   : > { %v2980_v33 = vadd.f32 %v2979_v54, %v8086_v46  ;;  %v8242_v9 = vpop.f32.mrb[12].mxu1  ;;  %v5705_v11 = vpop.f32.mrb[157].mxu0 }
 0x4fa   : > { %v5837_v30 = vpop.f32.mrb[13].mxu1  ;;  %v2982_v45 = vpop.f32.mrb[158].mxu0 }
 0x4fb   : > { %v2983_v4 = vadd.f32 %v2982_v45, %v8090_v0  ;;  %v8245_v63 = vpop.f32.mrb[14].mxu1  ;;  %v5706_v37 = vpop.f32.mrb[159].mxu0  ;;  %v8248_v53 = vadd.f32 %v8088_v34, %v2980_v33 }
 0x4fc   : > { %v5838_v59 = vpop.f32.mrb[15].mxu1 }
 0x4fd   : > { %5968 = vmatmul.mubr.msk.bf16.gmra.mrb[8].mxu0 %vm393_vm0, %v7715_v14  ;;  %v8253_v41 = vadd.f32 %v8092_v18, %v2983_v4 }
 0x4fe   : > { %5971 = vmatprep.mubr.msk.bf16.mxu0 %vm6205_vm1, %v6204_v5 }
 0x500   : > { %v2987_v46 = vpop.f32.mrb[160].mxu0 }
 0x501   : > { %v2988_v32 = vadd.f32 %v2987_v46, %v8110_v31  ;;  %v8258_v0 = vpop.f32.mrb[16].mxu1  ;;  %v5709_v55 = vpop.f32.mrb[161].mxu0 }
 0x502   : > { %v5841_v39 = vpop.f32.mrb[17].mxu1  ;;  %v2990_v60 = vpop.f32.mrb[162].mxu0 }
 0x503   : > { %v2991_v34 = vadd.f32 %v2990_v60, %v8114_v15  ;;  %v8261_v43 = vpop.f32.mrb[18].mxu1  ;;  %v5710_v26 = vpop.f32.mrb[163].mxu0  ;;  %v8264_v14 = vadd.f32 %v8112_v27, %v2988_v32 }
 0x504   : > { %v5842_v18 = vpop.f32.mrb[19].mxu1 }
 0x505   : > { %5972 = vmatmul.mubr.msk.bf16.gmra.mrb[12].mxu0 %vm393_vm0, %v8675_v56  ;;  %v8271_v31 = vadd.f32 %v8116_v42, %v2991_v34 }
 0x506   : > { %5983 = vmatprep.mubr.msk.bf16.mxu0 %vm6205_vm1, %v6204_v5 }
 0x508   : > { %v3321_v51 = vpop.f32.mrb[164].mxu0 }
 0x509   : > { %v3392_v15 = vadd.f32 %v3321_v51, %v8129_v1  ;;  %v8276_v47 = vpop.f32.mrb[20].mxu1  ;;  %v5765_v44 = vpop.f32.mrb[165].mxu0 }
 0x50a   : > { %v5897_v27 = vpop.f32.mrb[21].mxu1  ;;  %v3324_v52 = vpop.f32.mrb[166].mxu0 }
 0x50b   : > { %v3393_v54 = vadd.f32 %v3324_v52, %v8134_v3  ;;  %v8279_v33 = vpop.f32.mrb[22].mxu1  ;;  %v5766_v24 = vpop.f32.mrb[167].mxu0  ;;  %v8282_v6 = vadd.f32 %v8123_v23, %v3392_v15 }
 0x50c   : > { %v5898_v42 = vpop.f32.mrb[23].mxu1 }
 0x50d   : > { %5984 = vmatmul.mubr.msk.bf16.vlgmr.msra.gmra.mrb[16].mxu0 %vm393_vm0, %v7546_v29  ;;  %v8287_v5 = vadd.f32 %v8126_v38, %v3393_v54 }
 0x510   : > { %v3329_v1 = vpop.f32.mrb[168].mxu0 }
 0x511   : > { %v3394_v11 = vadd.f32 %v3329_v1, %v8149_v22  ;;  %v8290_v30 = vpop.f32.mrb[24].mxu1  ;;  %v5769_v45 = vpop.f32.mrb[169].mxu0 }
 0x512   : > { %v5901_v3 = vpop.f32.mrb[25].mxu1  ;;  %v3332_v4 = vpop.f32.mrb[170].mxu0 }
 0x513   : > { %v3395_v37 = vadd.f32 %v3332_v4, %v8154_v12  ;;  %v8293_v59 = vpop.f32.mrb[26].mxu1  ;;  %v5770_v23 = vpop.f32.mrb[171].mxu0  ;;  %v8296_v46 = vadd.f32 %v8141_v17, %v3394_v11 }
 0x514   : > { %v5902_v29 = vpop.f32.mrb[27].mxu1 }
 0x515   : > { %v8299_v38 = vadd.f32 %v8145_v8, %v3395_v37 }
 0x518   : > { %v3337_v32 = vpop.f32.mrb[172].mxu0 }
 0x519   : > { %v3396_v22 = vadd.f32 %v3337_v32, %v8168_v28  ;;  %v8302_v55 = vpop.f32.mrb[28].mxu1  ;;  %v5773_v39 = vpop.f32.mrb[173].mxu0 }
 0x51a   : > { %v5905_v60 = vpop.f32.mrb[29].mxu1  ;;  %v3340_v34 = vpop.f32.mrb[174].mxu0 }
 0x51b   : > { %v3397_v12 = vadd.f32 %v3340_v34, %v8173_v20  ;;  %v8305_v26 = vpop.f32.mrb[30].mxu1  ;;  %v5774_v18 = vpop.f32.mrb[175].mxu0  ;;  %v8308_v17 = vadd.f32 %v8161_v19, %v3396_v22 }
 0x51c   : > { %v5906_v56 = vpop.f32.mrb[31].mxu1 }
 0x51d   : > { %v8311_v8 = vadd.f32 %v8165_v7, %v3397_v12 }
 0x520   : > { %v3345_v51 = vpop.f32.mrb[176].mxu0 }
 0x521   : > { %v3398_v28 = vadd.f32 %v3345_v51, %v8184_v36  ;;  %v8314_v15 = vpop.f32.mrb[32].mxu1  ;;  %v5777_v44 = vpop.f32.mrb[177].mxu0 }
 0x522   : > { %v5909_v27 = vpop.f32.mrb[33].mxu1  ;;  %v3348_v52 = vpop.f32.mrb[178].mxu0 }
 0x523   : > { %v3399_v20 = vadd.f32 %v3348_v52, %v8189_v48  ;;  %v8317_v54 = vpop.f32.mrb[34].mxu1  ;;  %v5778_v24 = vpop.f32.mrb[179].mxu0  ;;  %v8320_v19 = vadd.f32 %v8178_v58, %v3398_v28 }
 0x524   : > { %v5910_v42 = vpop.f32.mrb[35].mxu1 }
 0x525   : > { %v8323_v7 = vadd.f32 %v8181_v25, %v3399_v20 }
 0x528   : > { %v3353_v1 = vpop.f32.mrb[180].mxu0 }
 0x529   : > { %v3400_v36 = vadd.f32 %v3353_v1, %v8200_v21  ;;  %v8326_v11 = vpop.f32.mrb[36].mxu1  ;;  %v5781_v45 = vpop.f32.mrb[181].mxu0 }
 0x52a   : > { %v5913_v3 = vpop.f32.mrb[37].mxu1  ;;  %v3356_v4 = vpop.f32.mrb[182].mxu0 }
 0x52b   : > { %v3401_v48 = vadd.f32 %v3356_v4, %v8205_v10  ;;  %v8329_v37 = vpop.f32.mrb[38].mxu1  ;;  %v5782_v23 = vpop.f32.mrb[183].mxu0  ;;  %v8332_v58 = vadd.f32 %v8194_v61, %v3400_v36 }
 0x52c   : > { %v5914_v29 = vpop.f32.mrb[39].mxu1 }
 0x52d   : > { %v8335_v25 = vadd.f32 %v8197_v49, %v3401_v48 }
 0x530   : > { %v3361_v32 = vpop.f32.mrb[184].mxu0 }
 0x531   : > { %v3402_v21 = vadd.f32 %v3361_v32, %v8216_v16  ;;  %v8338_v22 = vpop.f32.mrb[40].mxu1  ;;  %v5785_v39 = vpop.f32.mrb[185].mxu0 }
 0x532   : > { %v5917_v60 = vpop.f32.mrb[41].mxu1  ;;  %v3364_v34 = vpop.f32.mrb[186].mxu0 }
 0x533   : > { %v3403_v10 = vadd.f32 %v3364_v34, %v8221_v2  ;;  %v8341_v12 = vpop.f32.mrb[42].mxu1  ;;  %v5786_v18 = vpop.f32.mrb[187].mxu0  ;;  %v8344_v61 = vadd.f32 %v8210_v50, %v3402_v21 }
 0x534   : > { %v5918_v56 = vpop.f32.mrb[43].mxu1 }
 0x535   : > { %v8347_v49 = vadd.f32 %v8213_v40, %v3403_v10 }
 0x538   : > { %v3369_v51 = vpop.f32.mrb[188].mxu0 }
 0x539   : > { %v3404_v16 = vadd.f32 %v3369_v51, %v8232_v57  ;;  %v8350_v28 = vpop.f32.mrb[44].mxu1  ;;  %v5789_v44 = vpop.f32.mrb[189].mxu0 }
 0x53a   : > { %v5921_v27 = vpop.f32.mrb[45].mxu1  ;;  %v3372_v52 = vpop.f32.mrb[190].mxu0 }
 0x53b   : > { %v3405_v2 = vadd.f32 %v3372_v52, %v8237_v35  ;;  %v8353_v20 = vpop.f32.mrb[46].mxu1  ;;  %v5790_v24 = vpop.f32.mrb[191].mxu0  ;;  %v8356_v50 = vadd.f32 %v8226_v13, %v3404_v16 }
 0x53c   : > { %v5922_v42 = vpop.f32.mrb[47].mxu1 }
 0x53d   : > { %v8359_v40 = vadd.f32 %v8229_v62, %v3405_v2 }
 0x540   : > { %v3377_v1 = vpop.f32.mrb[192].mxu0 }
 0x541   : > { %v3406_v57 = vadd.f32 %v3377_v1, %v8248_v53  ;;  %v8362_v36 = vpop.f32.mrb[48].mxu1  ;;  %v5793_v45 = vpop.f32.mrb[193].mxu0 }
 0x542   : > { %v5925_v3 = vpop.f32.mrb[49].mxu1  ;;  %v3380_v4 = vpop.f32.mrb[194].mxu0 }
 0x543   : > { %v3407_v35 = vadd.f32 %v3380_v4, %v8253_v41  ;;  %v8365_v48 = vpop.f32.mrb[50].mxu1  ;;  %v5794_v23 = vpop.f32.mrb[195].mxu0  ;;  %v8368_v13 = vadd.f32 %v8242_v9, %v3406_v57 }
 0x544   : > { %v5926_v29 = vpop.f32.mrb[51].mxu1 }
 0x545   : > { %v8371_v62 = vadd.f32 %v8245_v63, %v3407_v35 }
 0x548   : > { %v3385_v32 = vpop.f32.mrb[196].mxu0 }
 0x549   : > { %v3408_v53 = vadd.f32 %v3385_v32, %v8264_v14  ;;  %v8374_v21 = vpop.f32.mrb[52].mxu1  ;;  %v5797_v39 = vpop.f32.mrb[197].mxu0 }
 0x54a   : > { %v5929_v60 = vpop.f32.mrb[53].mxu1  ;;  %v3388_v34 = vpop.f32.mrb[198].mxu0 }
 0x54b   : > { %v3409_v41 = vadd.f32 %v3388_v34, %v8271_v31  ;;  %v8377_v10 = vpop.f32.mrb[54].mxu1  ;;  %v5798_v18 = vpop.f32.mrb[199].mxu0  ;;  %v8380_v9 = vadd.f32 %v8258_v0, %v3408_v53 }
 0x54c   : > { %v5930_v56 = vpop.f32.mrb[55].mxu1 }
 0x54d   : > { %v8383_v63 = vadd.f32 %v8261_v43, %v3409_v41 }
 0x550   : > { %v3658_v51 = vpop.f32.mrb[200].mxu0 }
 0x551   : > { %v3729_v14 = vadd.f32 %v3658_v51, %v8282_v6  ;;  %v8386_v16 = vpop.f32.mrb[56].mxu1  ;;  %v5853_v44 = vpop.f32.mrb[201].mxu0 }
 0x552   : > { %v5989_v27 = vpop.f32.mrb[57].mxu1  ;;  %v3661_v52 = vpop.f32.mrb[202].mxu0 }
 0x553   : > { %v3730_v31 = vadd.f32 %v3661_v52, %v8287_v5  ;;  %v8389_v2 = vpop.f32.mrb[58].mxu1  ;;  %v5854_v24 = vpop.f32.mrb[203].mxu0  ;;  %v8392_v0 = vadd.f32 %v8276_v47, %v3729_v14 }
 0x554   : > { %v5990_v42 = vpop.f32.mrb[59].mxu1 }
 0x555   : > { %v8395_v43 = vadd.f32 %v8279_v33, %v3730_v31 }
 0x558   : > { %v3666_v1 = vpop.f32.mrb[204].mxu0 }
 0x559   : > { %v3731_v6 = vadd.f32 %v3666_v1, %v8296_v46  ;;  %v8398_v57 = vpop.f32.mrb[60].mxu1  ;;  %v5857_v45 = vpop.f32.mrb[205].mxu0 }
 0x55a   : > { %v5993_v3 = vpop.f32.mrb[61].mxu1  ;;  %v3669_v4 = vpop.f32.mrb[206].mxu0 }
 0x55b   : > { %v3732_v5 = vadd.f32 %v3669_v4, %v8299_v38  ;;  %v8401_v35 = vpop.f32.mrb[62].mxu1  ;;  %v5858_v23 = vpop.f32.mrb[207].mxu0  ;;  %v8404_v47 = vadd.f32 %v8290_v30, %v3731_v6 }
 0x55c   : > { %v5994_v29 = vpop.f32.mrb[63].mxu1 }
 0x55d   : > { %v8407_v33 = vadd.f32 %v8293_v59, %v3732_v5 }
 0x560   : > { %v3674_v32 = vpop.f32.mrb[208].mxu0 }
 0x561   : > { %v3733_v46 = vadd.f32 %v3674_v32, %v8308_v17  ;;  %v8410_v53 = vpop.f32.mrb[64].mxu1  ;;  %v5861_v39 = vpop.f32.mrb[209].mxu0 }
 0x562   : > { %v5997_v60 = vpop.f32.mrb[65].mxu1  ;;  %v3677_v34 = vpop.f32.mrb[210].mxu0 }
 0x563   : > { %v3734_v38 = vadd.f32 %v3677_v34, %v8311_v8  ;;  %v8413_v41 = vpop.f32.mrb[66].mxu1  ;;  %v5862_v18 = vpop.f32.mrb[211].mxu0  ;;  %v8416_v30 = vadd.f32 %v8302_v55, %v3733_v46 }
 0x564   : > { %v5998_v56 = vpop.f32.mrb[67].mxu1 }
 0x565   : > { %v8419_v59 = vadd.f32 %v8305_v26, %v3734_v38 }
 0x568   : > { %v3682_v51 = vpop.f32.mrb[212].mxu0 }
 0x569   : > { %v3735_v17 = vadd.f32 %v3682_v51, %v8320_v19  ;;  %v8422_v14 = vpop.f32.mrb[68].mxu1  ;;  %v5865_v44 = vpop.f32.mrb[213].mxu0 }
 0x56a   : > { %v6001_v27 = vpop.f32.mrb[69].mxu1  ;;  %v3685_v52 = vpop.f32.mrb[214].mxu0 }
 0x56b   : > { %v3736_v8 = vadd.f32 %v3685_v52, %v8323_v7  ;;  %v8425_v31 = vpop.f32.mrb[70].mxu1  ;;  %v5866_v24 = vpop.f32.mrb[215].mxu0  ;;  %v8428_v55 = vadd.f32 %v8314_v15, %v3735_v17 }
 0x56c   : > { %v6002_v42 = vpop.f32.mrb[71].mxu1 }
 0x56d   : > { %v8431_v26 = vadd.f32 %v8317_v54, %v3736_v8 }
 0x570   : > { %v3690_v1 = vpop.f32.mrb[216].mxu0 }
 0x571   : > { %v3737_v19 = vadd.f32 %v3690_v1, %v8332_v58  ;;  %v8434_v6 = vpop.f32.mrb[72].mxu1  ;;  %v5869_v45 = vpop.f32.mrb[217].mxu0 }
 0x572   : > { %v6005_v3 = vpop.f32.mrb[73].mxu1  ;;  %v3693_v4 = vpop.f32.mrb[218].mxu0 }
 0x573   : > { %v3738_v7 = vadd.f32 %v3693_v4, %v8335_v25  ;;  %v8437_v5 = vpop.f32.mrb[74].mxu1  ;;  %v5870_v23 = vpop.f32.mrb[219].mxu0  ;;  %v8440_v15 = vadd.f32 %v8326_v11, %v3737_v19 }
 0x574   : > { %v6006_v29 = vpop.f32.mrb[75].mxu1 }
 0x575   : > { %v8443_v54 = vadd.f32 %v8329_v37, %v3738_v7 }
 0x578   : > { %v3698_v32 = vpop.f32.mrb[220].mxu0 }
 0x579   : > { %v3739_v58 = vadd.f32 %v3698_v32, %v8344_v61  ;;  %v8446_v46 = vpop.f32.mrb[76].mxu1  ;;  %v5873_v39 = vpop.f32.mrb[221].mxu0 }
 0x57a   : > { %v6009_v60 = vpop.f32.mrb[77].mxu1  ;;  %v3701_v34 = vpop.f32.mrb[222].mxu0 }
 0x57b   : > { %v3740_v25 = vadd.f32 %v3701_v34, %v8347_v49  ;;  %v8449_v38 = vpop.f32.mrb[78].mxu1  ;;  %v5874_v18 = vpop.f32.mrb[223].mxu0  ;;  %v8452_v11 = vadd.f32 %v8338_v22, %v3739_v58 }
 0x57c   : > { %v6010_v56 = vpop.f32.mrb[79].mxu1 }
 0x57d   : > { %v8455_v37 = vadd.f32 %v8341_v12, %v3740_v25 }
 0x580   : > { %v3706_v51 = vpop.f32.mrb[224].mxu0 }
 0x581   : > { %v3741_v61 = vadd.f32 %v3706_v51, %v8356_v50  ;;  %v8458_v17 = vpop.f32.mrb[80].mxu1  ;;  %v5877_v44 = vpop.f32.mrb[225].mxu0 }
 0x582   : > { %v6013_v27 = vpop.f32.mrb[81].mxu1  ;;  %v3709_v52 = vpop.f32.mrb[226].mxu0 }
 0x583   : > { %v3742_v49 = vadd.f32 %v3709_v52, %v8359_v40  ;;  %v8461_v8 = vpop.f32.mrb[82].mxu1  ;;  %v5878_v24 = vpop.f32.mrb[227].mxu0  ;;  %v8464_v22 = vadd.f32 %v8350_v28, %v3741_v61 }
 0x584   : > { %v6014_v42 = vpop.f32.mrb[83].mxu1 }
 0x585   : > { %v8467_v12 = vadd.f32 %v8353_v20, %v3742_v49 }
 0x588   : > { %v3714_v1 = vpop.f32.mrb[228].mxu0 }
 0x589   : > { %v3743_v50 = vadd.f32 %v3714_v1, %v8368_v13  ;;  %v8470_v19 = vpop.f32.mrb[84].mxu1  ;;  %v5881_v45 = vpop.f32.mrb[229].mxu0 }
 0x58a   : > { %v6017_v3 = vpop.f32.mrb[85].mxu1  ;;  %v3717_v4 = vpop.f32.mrb[230].mxu0 }
 0x58b   : > { %v3744_v40 = vadd.f32 %v3717_v4, %v8371_v62  ;;  %v8473_v7 = vpop.f32.mrb[86].mxu1  ;;  %v5882_v23 = vpop.f32.mrb[231].mxu0  ;;  %v8476_v28 = vadd.f32 %v8362_v36, %v3743_v50 }
 0x58c   : > { %v6018_v29 = vpop.f32.mrb[87].mxu1 }
 0x58d   : > { %v8479_v20 = vadd.f32 %v8365_v48, %v3744_v40 }
 0x590   : > { %v3722_v32 = vpop.f32.mrb[232].mxu0 }
 0x591   : > { %v3745_v13 = vadd.f32 %v3722_v32, %v8380_v9  ;;  %v5885_v58 = vpop.f32.mrb[233].mxu0 }
 0x592   : > { %v3725_v39 = vpop.f32.mrb[234].mxu0 }
 0x593   : > { %v3746_v60 = vadd.f32 %v3725_v39, %v8383_v63  ;;  %v5886_v34 = vpop.f32.mrb[235].mxu0  ;;  %v8484_v62 = vadd.f32 %v8374_v21, %v3745_v13  ;;  %v8499_v21 = vld [vmem:[%s8603_s6] ss:$0 sm:$0xff] }
 0x595   : > { %v8487_v25 = vadd.f32 %v8377_v10, %v3746_v60 }
 0x598   : > { %v3988_v36 = vpop.f32.mrb[236].mxu0 }
 0x599   : > { %v8490_v18 = vadd.f32 %v3988_v36, %v8392_v0  ;;  %v5941_v48 = vpop.f32.mrb[237].mxu0 }
 0x59a   : > { %v3991_v56 = vpop.f32.mrb[238].mxu0 }
 0x59b   : > { %v8493_v9 = vadd.f32 %v3991_v56, %v8395_v43  ;;  %v5942_v51 = vpop.f32.mrb[239].mxu0 }
 0x5a0   : > { %v3996_v61 = vpop.f32.mrb[240].mxu0 }
 0x5a1   : > { %v4061_v63 = vadd.f32 %v3996_v61, %v8404_v47  ;;  %v5945_v44 = vpop.f32.mrb[241].mxu0 }
 0x5a2   : > { %v3999_v10 = vpop.f32.mrb[242].mxu0 }
 0x5a3   : > { %v4228_v27 = vadd.f32 %v8386_v16, %v4061_v63  ;;  %v4062_v0 = vadd.f32 %v3999_v10, %v8407_v33  ;;  %v5946_v52 = vpop.f32.mrb[243].mxu0 }
 0x5a5   : > { %v4253_v43 = vadd.f32 %v8499_v21, %v4228_v27  ;;  %v4229_v49 = vadd.f32 %v8389_v2, %v4062_v0 }
 0x5a7   : > { %v4271_v24 = vmax.f32 %v4253_v43, 0.0  ;;  %v4254_v47 = vadd.f32 %v8499_v21, %v4229_v49 }
 0x5a8   : > { %v4004_v16 = vpop.f32.mrb[244].mxu0 }
 0x5a9   : > { %v4862_v42 = vpack.c.bf16 %v4271_v24, %v4271_v24  ;;  %v4272_v33 = vmax.f32 %v4254_v47, 0.0  ;;  %v4063_v1 = vadd.f32 %v4004_v16, %v8416_v30  ;;  %v5949_v50 = vpop.f32.mrb[245].mxu0 }
 0x5aa   : > { %v4007_v45 = vpop.f32.mrb[246].mxu0 }
 0x5ab   : > { %4362 = vst.msk [vmem:[%s8510_s18 + $0x8] sm:$0xf] %vm4359_vm4, %v4862_v42  ;;  %v4863_v2 = vpack.c.bf16 %v4272_v33, %v4272_v33  ;;  %v4230_v3 = vadd.f32 %v8398_v57, %v4063_v1  ;;  %v4064_v4 = vadd.f32 %v4007_v45, %v8419_v59  ;;  %v5950_v40 = vpop.f32.mrb[247].mxu0 }
 0x5ad   : > { %4363 = vst.msk [vmem:[%s8510_s18 + $0xc] sm:$0xf] %vm4359_vm4, %v4863_v2  ;;  %v4255_v23 = vadd.f32 %v8499_v21, %v4230_v3  ;;  %v4231_v29 = vadd.f32 %v8401_v35, %v4064_v4 }
 0x5af   : > { %v4273_v32 = vmax.f32 %v4255_v23, 0.0  ;;  %v4256_v30 = vadd.f32 %v8499_v21, %v4231_v29 }
 0x5b0   : > { %v4012_v13 = vpop.f32.mrb[248].mxu0 }
 0x5b1   : > { %v4864_v58 = vpack.c.bf16 %v4273_v32, %v4273_v32  ;;  %v4274_v39 = vmax.f32 %v4256_v30, 0.0  ;;  %v4065_v60 = vadd.f32 %v4012_v13, %v8428_v55  ;;  %v5953_v34 = vpop.f32.mrb[249].mxu0 }
 0x5b2   : > { %v4015_v57 = vpop.f32.mrb[250].mxu0 }
 0x5b3   : > { %4364 = vst.msk [vmem:[%s8510_s18 + $0x10] sm:$0xf] %vm4359_vm4, %v4864_v58  ;;  %v4865_v59 = vpack.c.bf16 %v4274_v39, %v4274_v39  ;;  %v4232_v36 = vadd.f32 %v8410_v53, %v4065_v60  ;;  %v4066_v48 = vadd.f32 %v4015_v57, %v8431_v26  ;;  %v5954_v56 = vpop.f32.mrb[251].mxu0 }
 0x5b5   : > { %4365 = vst.msk [vmem:[%s8510_s18 + $0x14] sm:$0xf] %vm4359_vm4, %v4865_v59  ;;  %v4257_v35 = vadd.f32 %v8499_v21, %v4232_v36  ;;  %v4233_v51 = vadd.f32 %v8413_v41, %v4066_v48 }
 0x5b7   : > { %v4275_v61 = vmax.f32 %v4257_v35, 0.0  ;;  %v4258_v55 = vadd.f32 %v8499_v21, %v4233_v51 }
 0x5b8   : > { %v4020_v63 = vpop.f32.mrb[252].mxu0 }
 0x5b9   : > { %v4866_v44 = vpack.c.bf16 %v4275_v61, %v4275_v61  ;;  %v4276_v10 = vmax.f32 %v4258_v55, 0.0  ;;  %v4067_v27 = vadd.f32 %v4020_v63, %v8440_v15  ;;  %v5957_v0 = vpop.f32.mrb[253].mxu0 }
 0x5ba   : > { %v4023_v53 = vpop.f32.mrb[254].mxu0 }
 0x5bb   : > { %4366 = vst.msk [vmem:[%s8510_s18 + $0x18] sm:$0xf] %vm4359_vm4, %v4866_v44  ;;  %v4867_v26 = vpack.c.bf16 %v4276_v10, %v4276_v10  ;;  %v4234_v52 = vadd.f32 %v8422_v14, %v4067_v27  ;;  %v4068_v43 = vadd.f32 %v4023_v53, %v8443_v54  ;;  %v5958_v49 = vpop.f32.mrb[255].mxu0 }
 0x5bd   : > { %4367 = vst.msk [vmem:[%s8510_s18 + $0x1c] sm:$0xf] %vm4359_vm4, %v4867_v26  ;;  %v4259_v41 = vadd.f32 %v8499_v21, %v4234_v52  ;;  %v4235_v24 = vadd.f32 %v8425_v31, %v4068_v43 }
 0x5bf   : > { %v4277_v47 = vmax.f32 %v4259_v41, 0.0  ;;  %v4260_v15 = vadd.f32 %v8499_v21, %v4235_v24 }
 0x5c0   : > { %v4028_v16 = vpop.f32.mrb[0].mxu0 }
 0x5c1   : > { %v4868_v42 = vpack.c.bf16 %v4277_v47, %v4277_v47  ;;  %v4278_v33 = vmax.f32 %v4260_v15, 0.0  ;;  %v4069_v1 = vadd.f32 %v4028_v16, %v8452_v11  ;;  %v5961_v50 = vpop.f32.mrb[1].mxu0 }
 0x5c2   : > { %v4031_v14 = vpop.f32.mrb[2].mxu0 }
 0x5c3   : > { %4368 = vst.msk [vmem:[%s8510_s18 + $0x20] sm:$0xf] %vm4359_vm4, %v4868_v42  ;;  %v4869_v54 = vpack.c.bf16 %v4278_v33, %v4278_v33  ;;  %v4236_v45 = vadd.f32 %v8434_v6, %v4069_v1  ;;  %v4070_v2 = vadd.f32 %v4031_v14, %v8455_v37  ;;  %v5962_v3 = vpop.f32.mrb[3].mxu0 }
 0x5c5   : > { %4369 = vst.msk [vmem:[%s8510_s18 + $0x24] sm:$0xf] %vm4359_vm4, %v4869_v54  ;;  %v4261_v31 = vadd.f32 %v8499_v21, %v4236_v45  ;;  %v4237_v4 = vadd.f32 %v8437_v5, %v4070_v2 }
 0x5c7   : > { %v4279_v40 = vmax.f32 %v4261_v31, 0.0  ;;  %v4262_v11 = vadd.f32 %v8499_v21, %v4237_v4 }
 0x5c8   : > { %v4036_v23 = vpop.f32.mrb[4].mxu0 }
 0x5c9   : > { %v4870_v29 = vpack.c.bf16 %v4279_v40, %v4279_v40  ;;  %v4280_v32 = vmax.f32 %v4262_v11, 0.0  ;;  %v4071_v30 = vadd.f32 %v4036_v23, %v8464_v22  ;;  %v5965_v13 = vpop.f32.mrb[5].mxu0 }
 0x5ca   : > { %v4039_v6 = vpop.f32.mrb[6].mxu0 }
 0x5cb   : > { %4370 = vst.msk [vmem:[%s8510_s18 + $0x28] sm:$0xf] %vm4359_vm4, %v4870_v29  ;;  %v4871_v37 = vpack.c.bf16 %v4280_v32, %v4280_v32  ;;  %v4238_v58 = vadd.f32 %v8446_v46, %v4071_v30  ;;  %v4072_v39 = vadd.f32 %v4039_v6, %v8467_v12  ;;  %v5966_v60 = vpop.f32.mrb[7].mxu0 }
 0x5cd   : > { %4371 = vst.msk [vmem:[%s8510_s18 + $0x2c] sm:$0xf] %vm4359_vm4, %v4871_v37  ;;  %v4263_v5 = vadd.f32 %v8499_v21, %v4238_v58  ;;  %v4239_v34 = vadd.f32 %v8449_v38, %v4072_v39 }
 0x5cf   : > { %v4281_v57 = vmax.f32 %v4263_v5, 0.0  ;;  %v4264_v22 = vadd.f32 %v8499_v21, %v4239_v34 }
 0x5d0   : > { %v4044_v59 = vpop.f32.mrb[8].mxu0 }
 0x5d1   : > { %v4872_v36 = vpack.c.bf16 %v4281_v57, %v4281_v57  ;;  %v4282_v48 = vmax.f32 %v4264_v22, 0.0  ;;  %v4073_v56 = vadd.f32 %v4044_v59, %v8476_v28  ;;  %v5969_v35 = vpop.f32.mrb[9].mxu0 }
 0x5d2   : > { %v4047_v46 = vpop.f32.mrb[10].mxu0 }
 0x5d3   : > { %4372 = vst.msk [vmem:[%s8510_s18 + $0x30] sm:$0xf] %vm4359_vm4, %v4872_v36  ;;  %v4873_v12 = vpack.c.bf16 %v4282_v48, %v4282_v48  ;;  %v4240_v51 = vadd.f32 %v8458_v17, %v4073_v56  ;;  %v4074_v61 = vadd.f32 %v4047_v46, %v8479_v20  ;;  %v5970_v55 = vpop.f32.mrb[11].mxu0 }
 0x5d5   : > { %4373 = vst.msk [vmem:[%s8510_s18 + $0x34] sm:$0xf] %vm4359_vm4, %v4873_v12  ;;  %v4265_v38 = vadd.f32 %v8499_v21, %v4240_v51  ;;  %v4241_v63 = vadd.f32 %v8461_v8, %v4074_v61 }
 0x5d7   : > { %v4283_v44 = vmax.f32 %v4265_v38, 0.0  ;;  %v4266_v28 = vadd.f32 %v8499_v21, %v4241_v63 }
 0x5d8   : > { %v4052_v10 = vpop.f32.mrb[12].mxu0 }
 0x5d9   : > { %v4874_v27 = vpack.c.bf16 %v4283_v44, %v4283_v44  ;;  %v4284_v0 = vmax.f32 %v4266_v28, 0.0  ;;  %v4075_v53 = vadd.f32 %v4052_v10, %v8484_v62  ;;  %v5973_v26 = vpop.f32.mrb[13].mxu0 }
 0x5da   : > { %v4055_v17 = vpop.f32.mrb[14].mxu0 }
 0x5db   : > { %4374 = vst.msk [vmem:[%s8510_s18 + $0x38] sm:$0xf] %vm4359_vm4, %v4874_v27  ;;  %v4875_v20 = vpack.c.bf16 %v4284_v0, %v4284_v0  ;;  %v4242_v52 = vadd.f32 %v8470_v19, %v4075_v53  ;;  %v4076_v43 = vadd.f32 %v4055_v17, %v8487_v25  ;;  %v5974_v49 = vpop.f32.mrb[15].mxu0 }
 0x5dd   : > { %4375 = vst.msk [vmem:[%s8510_s18 + $0x3c] sm:$0xf] %vm4359_vm4, %v4875_v20  ;;  %v4267_v8 = vadd.f32 %v8499_v21, %v4242_v52  ;;  %v4243_v41 = vadd.f32 %v8473_v7, %v4076_v43 }
 0x5df   : > { %v4285_v24 = vmax.f32 %v4267_v8, 0.0  ;;  %v4268_v62 = vadd.f32 %v8499_v21, %v4243_v41 }
 0x5e0   : > { %v4155_v47 = vpop.f32.mrb[16].mxu0 }
 0x5e1   : > { %v4876_v15 = vpack.c.bf16 %v4285_v24, %v4285_v24  ;;  %v4286_v16 = vmax.f32 %v4268_v62, 0.0  ;;  %v4226_v19 = vadd.f32 %v4155_v47, %v8490_v18  ;;  %v5985_v42 = vpop.f32.mrb[17].mxu0 }
 0x5e2   : > { %v4158_v25 = vpop.f32.mrb[18].mxu0 }
 0x5e3   : > { %4376 = vst.msk [vmem:[%s8510_s18 + $0x40] sm:$0xf] %vm4359_vm4, %v4876_v15  ;;  %v4877_v33 = vpack.c.bf16 %v4286_v16, %v4286_v16  ;;  %v4251_v1 = vadd.f32 %v8499_v21, %v4226_v19  ;;  %v4227_v50 = vadd.f32 %v4158_v25, %v8493_v9  ;;  %v5986_v7 = vpop.f32.mrb[19].mxu0 }
 0x5e5   : > { %4377 = vst.msk [vmem:[%s8510_s18 + $0x44] sm:$0xf] %vm4359_vm4, %v4877_v33  ;;  %v4269_v14 = vmax.f32 %v4251_v1, 0.0  ;;  %v4252_v54 = vadd.f32 %v8499_v21, %v4227_v50 }
 0x5e7   : > { %v4860_v45 = vpack.c.bf16 %v4269_v14, %v4269_v14  ;;  %v4270_v2 = vmax.f32 %v4252_v54, 0.0 }
 0x5e9   : > { %4360 = vst.msk [vmem:[%s8510_s18] sm:$0xf] %vm4359_vm4, %v4860_v45  ;;  %v4861_v18 = vpack.c.bf16 %v4270_v2, %v4270_v2 }
 0x5eb   : > { %4361 = vst.msk [vmem:[%s8510_s18 + $0x4] sm:$0xf] %vm4359_vm4, %v4861_v18 }
 0x5ec PF: > { %s17_s24 = sadd.s32 1, %s6202_s24  }
 0x5ed   : > { %p14_p4 = scmp.ge.s32.totalorder %s17_s24, 10  }
 0x5ef   :  { %16 = sbr.rel (!%p14_p4) target bundleno = 1 (0x1), region = 93 }

// kernel: actor_forward.3
= control target key start
LH: loop header
LB: loop body
LE: loop exit
PB: predicated region body
PF: predicated region fallthrough
CT: control target
= control target key end

     0   :  { %s11722_s0 = inlined_call_operand.vmem [shape: bf16[8,9216], index: 0, kind: input, shape index: {}]   ;;  %s11723_s1 = inlined_call_operand.vmem [shape: bf16[9216,128], index: 1, kind: input, shape index: {}]   ;;  %s11724_s2 = inlined_call_operand.vmem [shape: f32[1,128], index: 2, kind: input, shape index: {}]   ;;  %s11725_s3 = inlined_call_operand.vmem [shape: f32[10,3], index: 3, kind: input, shape index: {}]   ;;  %s11726_s4 = inlined_call_operand.vmem [shape: f32[3,64], index: 4, kind: input, shape index: {}]   ;;  %s11727_s5 = inlined_call_operand.vmem [shape: f32[1,64], index: 5, kind: input, shape index: {}]   ;;  %s11728_s6 = inlined_call_operand.vmem [shape: f32[64,32], index: 6, kind: input, shape index: {}]   ;;  %s11729_s7 = inlined_call_operand.vmem [shape: f32[1,32], index: 7, kind: input, shape index: {}]   ;;  %s11730_s8 = inlined_call_operand.vmem [shape: f32[2,8], index: 8, kind: input, shape index: {}]   ;;  %s11731_s9 = inlined_call_operand.vmem [shape: f32[2,10], index: 9, kind: input, shape index: {}]   ;;  %s11732_s10 = inlined_call_operand.vmem [shape: f32[128,4], index: 10, kind: input, shape index: {}]   ;;  %s11733_s11 = inlined_call_operand.vmem [shape: f32[32,4], index: 11, kind: input, shape index: {}]   ;;  %s11734_s12 = inlined_call_operand.vmem [shape: f32[1,4], index: 12, kind: input, shape index: {}]   ;;  %s11735_s13 = inlined_call_operand.vmem [shape: f32[128,5], index: 13, kind: input, shape index: {}]   ;;  %s11736_s14 = inlined_call_operand.vmem [shape: f32[32,5], index: 14, kind: input, shape index: {}]   ;;  %s11737_s15 = inlined_call_operand.vmem [shape: f32[1,5], index: 15, kind: input, shape index: {}]   ;;  %s11738_s16 = inlined_call_operand.hbm [shape: f32[2,4], index: 16, kind: output, shape index: {0}]   ;;  %s11739_s17 = inlined_call_operand.hbm [shape: f32[2,5], index: 17, kind: output, shape index: {1}]  }
   0x1   :  { %11742 = sst [smem:[#allocation8_spill]] %s11722_s0 }
   0x2   :  { %11743 = sst [smem:[#allocation9_spill]] %s11723_s1 }
   0x3   :  { %23 = vsyncpa [#allocation3], 0  ;;  %s11744_s26 = sld [smem:[#allocation9_spill]]  ;;  %s11745_s20 = sld [smem:[#allocation8_spill]] }
   0x9   :  { %v8818_v0 = vld [vmem:[%s11744_s26 + $0x40] sm:$0xff]   ;;  %v8822_v4 = vld [vmem:[%s11744_s26 + $0x48] sm:$0xff]   ;;  %v8826_v8 = vld [vmem:[%s11744_s26 + $0x50] sm:$0xff]  }
   0xa   :  { %v8819_v1 = vld [vmem:[%s11744_s26 + $0xc0] sm:$0xff]   ;;  %7749 = vmatprep.subr.bf16.mxu0 %v8818_v0  ;;  %v8823_v5 = vld [vmem:[%s11744_s26 + $0xc8] sm:$0xff]   ;;  %v8827_v9 = vld [vmem:[%s11744_s26 + $0xd0] sm:$0xff]  }
   0xb   :  { %v8820_v2 = vld [vmem:[%s11744_s26] sm:$0xff]   ;;  %7771 = vmatprep.subr.bf16.mxu1 %v8819_v1  ;;  %v8824_v6 = vld [vmem:[%s11744_s26 + $0x8] sm:$0xff]   ;;  %v8828_v10 = vld [vmem:[%s11744_s26 + $0x10] sm:$0xff]  }
   0xc   :  { %v8821_v3 = vld [vmem:[%s11744_s26 + $0x80] sm:$0xff]   ;;  %7750 = vmatpush3.bf16.msra.mxu0 %v8820_v2  ;;  %v8825_v7 = vld [vmem:[%s11744_s26 + $0x88] sm:$0xff]   ;;  %v8829_v11 = vld [vmem:[%s11744_s26 + $0x90] sm:$0xff]  }
   0xd   :  { %7772 = vmatpush3.bf16.msra.mxu1 %v8821_v3  ;;  %7751 = vmatprep.subr.bf16.mxu0 %v8822_v4  ;;  %v8830_v12 = vld [vmem:[%s11744_s26 + $0x58] sm:$0xff]   ;;  %v8834_v16 = vld [vmem:[%s11744_s26 + $0x60] sm:$0xff]   ;;  %v8838_v20 = vld [vmem:[%s11744_s26 + $0x68] sm:$0xff]  }
   0xe   :  { %7773 = vmatprep.subr.bf16.mxu1 %v8823_v5  ;;  %v8831_v13 = vld [vmem:[%s11744_s26 + $0xd8] sm:$0xff]   ;;  %v8835_v17 = vld [vmem:[%s11744_s26 + $0xe0] sm:$0xff]   ;;  %v8839_v21 = vld [vmem:[%s11744_s26 + $0xe8] sm:$0xff]  }
   0xf   :  { %v8832_v14 = vld [vmem:[%s11744_s26 + $0x18] sm:$0xff]   ;;  %v8836_v18 = vld [vmem:[%s11744_s26 + $0x20] sm:$0xff]   ;;  %v8840_v22 = vld [vmem:[%s11744_s26 + $0x28] sm:$0xff]  }
  0x10   :  { %7752 = vmatpush3.bf16.msra.mxu0 %v8824_v6  ;;  %v8833_v15 = vld [vmem:[%s11744_s26 + $0x98] sm:$0xff]   ;;  %v8837_v19 = vld [vmem:[%s11744_s26 + $0xa0] sm:$0xff]   ;;  %v8841_v23 = vld [vmem:[%s11744_s26 + $0xa8] sm:$0xff]  }
  0x11   :  { %7774 = vmatpush3.bf16.msra.mxu1 %v8825_v7  ;;  %7753 = vmatprep.subr.bf16.mxu0 %v8826_v8  ;;  %v8842_v24 = vld [vmem:[%s11744_s26 + $0x70] sm:$0xff]   ;;  %v8846_v28 = vld [vmem:[%s11744_s26 + $0x78] sm:$0xff]   ;;  %v58_v32 = vld [vmem:[%s11745_s20] sm:$0xff] }
  0x12   :  { %7775 = vmatprep.subr.bf16.mxu1 %v8827_v9  ;;  %v8843_v25 = vld [vmem:[%s11744_s26 + $0xf0] sm:$0xff]   ;;  %v8847_v29 = vld [vmem:[%s11744_s26 + $0xf8] sm:$0xff]   ;;  %v59_v33 = vld [vmem:[%s11745_s20 + $0x8] sm:$0xff]  ;;  %v7090_v34 = vcombine.low %v58_v32, %v58_v32  ;;  %v7091_v35 = vcombine.high %v58_v32, %v58_v32 }
  0x13   :  { %v8844_v26 = vld [vmem:[%s11744_s26 + $0x30] sm:$0xff]   ;;  %v8848_v30 = vld [vmem:[%s11744_s26 + $0x38] sm:$0xff]   ;;  %v7092_v36 = vcombine.low %v59_v33, %v59_v33  ;;  %v7093_v37 = vcombine.high %v59_v33, %v59_v33  ;;  %v8854_v38 = vld [vmem:[%s11744_s26 + $0x140] sm:$0xff]  }
  0x14   :  { %7754 = vmatpush3.bf16.msra.mxu0 %v8828_v10  ;;  %v8845_v27 = vld [vmem:[%s11744_s26 + $0xb0] sm:$0xff]   ;;  %v8849_v31 = vld [vmem:[%s11744_s26 + $0xb8] sm:$0xff]   ;;  %v8855_v39 = vld [vmem:[%s11744_s26 + $0x1c0] sm:$0xff]   ;;  %4993 = vmatprep.mubr.bf16.mxu0 %v7091_v35 }
  0x15   :  { %7776 = vmatpush3.bf16.msra.mxu1 %v8829_v11  ;;  %7755 = vmatprep.subr.bf16.mxu0 %v8830_v12  ;;  %v8856_v40 = vld [vmem:[%s11744_s26 + $0x100] sm:$0xff]   ;;  %v8858_v42 = vld [vmem:[%s11744_s26 + $0x148] sm:$0xff]   ;;  %v8862_v46 = vld [vmem:[%s11744_s26 + $0x150] sm:$0xff]  }
  0x16   :  { %7777 = vmatprep.subr.bf16.mxu1 %v8831_v13  ;;  %5033 = vmatprep.mubr.bf16.mxu1 %v7093_v37  ;;  %v8857_v41 = vld [vmem:[%s11744_s26 + $0x180] sm:$0xff]   ;;  %v8859_v43 = vld [vmem:[%s11744_s26 + $0x1c8] sm:$0xff]   ;;  %v8863_v47 = vld [vmem:[%s11744_s26 + $0x1d0] sm:$0xff]  }
  0x17   :  { %v8860_v44 = vld [vmem:[%s11744_s26 + $0x108] sm:$0xff]   ;;  %v8864_v48 = vld [vmem:[%s11744_s26 + $0x110] sm:$0xff]   ;;  %v8866_v50 = vld [vmem:[%s11744_s26 + $0x158] sm:$0xff]  }
  0x18   :  { %7756 = vmatpush3.bf16.msra.mxu0 %v8832_v14  ;;  %v8861_v45 = vld [vmem:[%s11744_s26 + $0x188] sm:$0xff]   ;;  %v8865_v49 = vld [vmem:[%s11744_s26 + $0x190] sm:$0xff]   ;;  %v8867_v51 = vld [vmem:[%s11744_s26 + $0x1d8] sm:$0xff]  }
  0x19   :  { %7778 = vmatpush3.bf16.msra.mxu1 %v8833_v15  ;;  %7757 = vmatprep.subr.bf16.mxu0 %v8834_v16  ;;  %v8868_v52 = vld [vmem:[%s11744_s26 + $0x118] sm:$0xff]   ;;  %v8870_v54 = vld [vmem:[%s11744_s26 + $0x160] sm:$0xff]   ;;  %v8874_v58 = vld [vmem:[%s11744_s26 + $0x168] sm:$0xff]  }
  0x1a   :  { %7779 = vmatprep.subr.bf16.mxu1 %v8835_v17  ;;  %v8869_v53 = vld [vmem:[%s11744_s26 + $0x198] sm:$0xff]   ;;  %v8871_v55 = vld [vmem:[%s11744_s26 + $0x1e0] sm:$0xff]   ;;  %v8875_v59 = vld [vmem:[%s11744_s26 + $0x1e8] sm:$0xff]  }
  0x1b   :  { %v8872_v56 = vld [vmem:[%s11744_s26 + $0x120] sm:$0xff]   ;;  %v8876_v60 = vld [vmem:[%s11744_s26 + $0x128] sm:$0xff]   ;;  %v8878_v62 = vld [vmem:[%s11744_s26 + $0x170] sm:$0xff]  }
  0x1c   :  { %7758 = vmatpush3.bf16.msra.mxu0 %v8836_v18  ;;  %v8873_v57 = vld [vmem:[%s11744_s26 + $0x1a0] sm:$0xff]   ;;  %v8877_v61 = vld [vmem:[%s11744_s26 + $0x1a8] sm:$0xff]   ;;  %v8879_v63 = vld [vmem:[%s11744_s26 + $0x1f0] sm:$0xff]  }
  0x1d   :  { %7780 = vmatpush3.bf16.msra.mxu1 %v8837_v19  ;;  %7759 = vmatprep.subr.bf16.mxu0 %v8838_v20  ;;  %v8880_v0 = vld [vmem:[%s11744_s26 + $0x130] sm:$0xff]   ;;  %v8882_v2 = vld [vmem:[%s11744_s26 + $0x178] sm:$0xff]   ;;  %v8890_v12 = vld [vmem:[%s11744_s26 + $0x240] sm:$0xff]  }
  0x1e   :  { %7781 = vmatprep.subr.bf16.mxu1 %v8839_v21  ;;  %v8881_v1 = vld [vmem:[%s11744_s26 + $0x1b0] sm:$0xff]   ;;  %v8883_v3 = vld [vmem:[%s11744_s26 + $0x1f8] sm:$0xff]   ;;  %v8891_v13 = vld [vmem:[%s11744_s26 + $0x2c0] sm:$0xff]  }
  0x1f   :  { %v8884_v4 = vld [vmem:[%s11744_s26 + $0x138] sm:$0xff]   ;;  %v60_v6 = vld [vmem:[%s11745_s20 + $0x10] sm:$0xff]  ;;  %v8892_v14 = vld [vmem:[%s11744_s26 + $0x200] sm:$0xff]  }
  0x20   :  { %7760 = vmatpush3.bf16.msra.mxu0 %v8840_v22  ;;  %v8885_v5 = vld [vmem:[%s11744_s26 + $0x1b8] sm:$0xff]   ;;  %v7094_v7 = vcombine.low %v60_v6, %v60_v6  ;;  %v7095_v8 = vcombine.high %v60_v6, %v60_v6  ;;  %v8893_v15 = vld [vmem:[%s11744_s26 + $0x280] sm:$0xff]   ;;  %v8894_v16 = vld [vmem:[%s11744_s26 + $0x248] sm:$0xff]  }
  0x21   :  { %7782 = vmatpush3.bf16.msra.mxu1 %v8841_v23  ;;  %7761 = vmatprep.subr.bf16.mxu0 %v8842_v24  ;;  %v61_v9 = vld [vmem:[%s11745_s20 + $0x18] sm:$0xff]  ;;  %v8895_v17 = vld [vmem:[%s11744_s26 + $0x2c8] sm:$0xff]   ;;  %v8898_v20 = vld [vmem:[%s11744_s26 + $0x250] sm:$0xff]  }
  0x22   :  { %7783 = vmatprep.subr.bf16.mxu1 %v8843_v25  ;;  %v7096_v10 = vcombine.low %v61_v9, %v61_v9  ;;  %v7097_v11 = vcombine.high %v61_v9, %v61_v9  ;;  %v8896_v18 = vld [vmem:[%s11744_s26 + $0x208] sm:$0xff]   ;;  %v8899_v21 = vld [vmem:[%s11744_s26 + $0x2d0] sm:$0xff]   ;;  %v8902_v24 = vld [vmem:[%s11744_s26 + $0x258] sm:$0xff]  }
  0x23   :  { %v8897_v19 = vld [vmem:[%s11744_s26 + $0x288] sm:$0xff]   ;;  %v8900_v22 = vld [vmem:[%s11744_s26 + $0x210] sm:$0xff]   ;;  %v8903_v25 = vld [vmem:[%s11744_s26 + $0x2d8] sm:$0xff]  }
  0x24   :  { %7762 = vmatpush3.bf16.msra.mxu0 %v8844_v26  ;;  %v8901_v23 = vld [vmem:[%s11744_s26 + $0x290] sm:$0xff]   ;;  %v8904_v26 = vld [vmem:[%s11744_s26 + $0x218] sm:$0xff]   ;;  %v8910_v32 = vld [vmem:[%s11744_s26 + $0x268] sm:$0xff]  }
  0x25   :  { %7784 = vmatpush3.bf16.msra.mxu1 %v8845_v27  ;;  %7763 = vmatprep.subr.bf16.mxu0 %v8846_v28  ;;  %v8905_v27 = vld [vmem:[%s11744_s26 + $0x298] sm:$0xff]   ;;  %v8906_v28 = vld [vmem:[%s11744_s26 + $0x260] sm:$0xff]   ;;  %v8911_v33 = vld [vmem:[%s11744_s26 + $0x2e8] sm:$0xff]  }
  0x26   :  { %7785 = vmatprep.subr.bf16.mxu1 %v8847_v29  ;;  %v8907_v29 = vld [vmem:[%s11744_s26 + $0x2e0] sm:$0xff]   ;;  %v8913_v35 = vld [vmem:[%s11744_s26 + $0x2a8] sm:$0xff]   ;;  %v8915_v37 = vld [vmem:[%s11744_s26 + $0x2f0] sm:$0xff]  }
  0x27   :  { %v8946_v6 = vld [vmem:[%s11744_s26 + $0x368] sm:$0xff]  }
  0x28   :  { %7764 = vmatpush3.bf16.msra.mxu0 %v8848_v30  ;;  %v8908_v30 = vld [vmem:[%s11744_s26 + $0x220] sm:$0xff]   ;;  %v8949_v9 = vld [vmem:[%s11744_s26 + $0x3a8] sm:$0xff]  }
  0x29   :  { %7786 = vmatpush3.bf16.msra.mxu1 %v8849_v31  ;;  %7793 = vmatprep.subr.bf16.mxu0 %v8854_v38  ;;  %v8909_v31 = vld [vmem:[%s11744_s26 + $0x2a0] sm:$0xff]   ;;  %v8916_v38 = vld [vmem:[%s11744_s26 + $0x230] sm:$0xff]  }
  0x2a   :  { %7815 = vmatprep.subr.bf16.mxu1 %v8855_v39  ;;  %v8917_v39 = vld [vmem:[%s11744_s26 + $0x2b0] sm:$0xff]  }
  0x2b   :  { %4994 = vmatmul.mubr.bf16.vlgmr.msra.gmra.mrb[0].mxu0 %v7090_v34  ;;  %v8912_v34 = vld [vmem:[%s11744_s26 + $0x228] sm:$0xff]  }
  0x2c   :  { %5034 = vmatmul.mubr.bf16.vlgmr.msra.gmra.mrb[0].mxu1 %v7092_v36  ;;  %7794 = vmatpush3.bf16.msra.mxu0 %v8856_v40  ;;  %v8914_v36 = vld [vmem:[%s11744_s26 + $0x270] sm:$0xff]   ;;  %v8918_v40 = vld [vmem:[%s11744_s26 + $0x278] sm:$0xff]  }
  0x2d   :  { %7816 = vmatpush3.bf16.msra.mxu1 %v8857_v41  ;;  %7795 = vmatprep.subr.bf16.mxu0 %v8858_v42  ;;  %v8919_v41 = vld [vmem:[%s11744_s26 + $0x2f8] sm:$0xff]  }
  0x2e   :  { %7817 = vmatprep.subr.bf16.mxu1 %v8859_v43  ;;  %5073 = vmatprep.mubr.bf16.mxu0 %v7095_v8  ;;  %v8920_v42 = vld [vmem:[%s11744_s26 + $0x238] sm:$0xff]   ;;  %v8948_v8 = vld [vmem:[%s11744_s26 + $0x328] sm:$0xff]  }
  0x2f   :  { %5113 = vmatprep.mubr.bf16.mxu1 %v7097_v11  ;;  %v8921_v43 = vld [vmem:[%s11744_s26 + $0x2b8] sm:$0xff]   ;;  %v8951_v11 = vld [vmem:[%s11744_s26 + $0x3f0] sm:$0xff]  }
  0x30   :  { %7796 = vmatpush3.bf16.msra.mxu0 %v8860_v44  ;;  %v62_v44 = vld [vmem:[%s11745_s20 + $0x20] sm:$0xff] }
  0x31   :  { %7818 = vmatpush3.bf16.msra.mxu1 %v8861_v45  ;;  %7797 = vmatprep.subr.bf16.mxu0 %v8862_v46  ;;  %v63_v45 = vld [vmem:[%s11745_s20 + $0x28] sm:$0xff]  ;;  %v7098_v46 = vcombine.low %v62_v44, %v62_v44 }
  0x32   :  { %7819 = vmatprep.subr.bf16.mxu1 %v8863_v47  ;;  %v7099_v47 = vcombine.high %v62_v44, %v62_v44  ;;  %v8982_v44 = vld [vmem:[%s11744_s26 + $0x468] sm:$0xff]  }
  0x34   :  { %7798 = vmatpush3.bf16.msra.mxu0 %v8864_v48  ;;  %v7100_v48 = vcombine.low %v63_v45, %v63_v45 }
  0x35   :  { %7820 = vmatpush3.bf16.msra.mxu1 %v8865_v49  ;;  %7799 = vmatprep.subr.bf16.mxu0 %v8866_v50  ;;  %v7101_v49 = vcombine.high %v63_v45, %v63_v45  ;;  %v8926_v50 = vld [vmem:[%s11744_s26 + $0x340] sm:$0xff]   ;;  %v8983_v45 = vld [vmem:[%s11744_s26 + $0x4e8] sm:$0xff]  }
  0x36   :  { %7821 = vmatprep.subr.bf16.mxu1 %v8867_v51  ;;  %v8927_v51 = vld [vmem:[%s11744_s26 + $0x3c0] sm:$0xff]  }
  0x38   :  { %7800 = vmatpush3.bf16.msra.mxu0 %v8868_v52  ;;  %v8928_v52 = vld [vmem:[%s11744_s26 + $0x300] sm:$0xff]  }
  0x39   :  { %7822 = vmatpush3.bf16.msra.mxu1 %v8869_v53  ;;  %7801 = vmatprep.subr.bf16.mxu0 %v8870_v54  ;;  %v8929_v53 = vld [vmem:[%s11744_s26 + $0x380] sm:$0xff]   ;;  %v8930_v54 = vld [vmem:[%s11744_s26 + $0x348] sm:$0xff]  }
  0x3a   :  { %7823 = vmatprep.subr.bf16.mxu1 %v8871_v55  ;;  %v8931_v55 = vld [vmem:[%s11744_s26 + $0x3c8] sm:$0xff]  }
  0x3c   :  { %7802 = vmatpush3.bf16.msra.mxu0 %v8872_v56  ;;  %v8932_v56 = vld [vmem:[%s11744_s26 + $0x308] sm:$0xff]  }
  0x3d   :  { %7824 = vmatpush3.bf16.msra.mxu1 %v8873_v57  ;;  %7803 = vmatprep.subr.bf16.mxu0 %v8874_v58  ;;  %v8933_v57 = vld [vmem:[%s11744_s26 + $0x388] sm:$0xff]   ;;  %v8934_v58 = vld [vmem:[%s11744_s26 + $0x350] sm:$0xff]  }
  0x3e   :  { %7825 = vmatprep.subr.bf16.mxu1 %v8875_v59  ;;  %v8935_v59 = vld [vmem:[%s11744_s26 + $0x3d0] sm:$0xff]  }
  0x40   :  { %7804 = vmatpush3.bf16.msra.mxu0 %v8876_v60  ;;  %v8936_v60 = vld [vmem:[%s11744_s26 + $0x310] sm:$0xff]  }
  0x41   :  { %7826 = vmatpush3.bf16.msra.mxu1 %v8877_v61  ;;  %7805 = vmatprep.subr.bf16.mxu0 %v8878_v62  ;;  %v8937_v61 = vld [vmem:[%s11744_s26 + $0x390] sm:$0xff]   ;;  %v8938_v62 = vld [vmem:[%s11744_s26 + $0x358] sm:$0xff]  }
  0x42   :  { %7827 = vmatprep.subr.bf16.mxu1 %v8879_v63  ;;  %v8939_v63 = vld [vmem:[%s11744_s26 + $0x3d8] sm:$0xff]  }
  0x44   :  { %7806 = vmatpush3.bf16.msra.mxu0 %v8880_v0  ;;  %v8940_v0 = vld [vmem:[%s11744_s26 + $0x318] sm:$0xff]  }
  0x45   :  { %7828 = vmatpush3.bf16.msra.mxu1 %v8881_v1  ;;  %7807 = vmatprep.subr.bf16.mxu0 %v8882_v2  ;;  %v8941_v1 = vld [vmem:[%s11744_s26 + $0x398] sm:$0xff]   ;;  %v8942_v2 = vld [vmem:[%s11744_s26 + $0x360] sm:$0xff]  }
  0x46   :  { %7829 = vmatprep.subr.bf16.mxu1 %v8883_v3  ;;  %v8943_v3 = vld [vmem:[%s11744_s26 + $0x3e0] sm:$0xff]  }
  0x48   :  { %7808 = vmatpush3.bf16.msra.mxu0 %v8884_v4  ;;  %v8944_v4 = vld [vmem:[%s11744_s26 + $0x320] sm:$0xff]  }
  0x49   :  { %7830 = vmatpush3.bf16.msra.mxu1 %v8885_v5  ;;  %7837 = vmatprep.subr.bf16.mxu0 %v8890_v12  ;;  %v8945_v5 = vld [vmem:[%s11744_s26 + $0x3a0] sm:$0xff]   ;;  %v8952_v12 = vld [vmem:[%s11744_s26 + $0x330] sm:$0xff]  }
  0x4a   :  { %7859 = vmatprep.subr.bf16.mxu1 %v8891_v13  ;;  %v8953_v13 = vld [vmem:[%s11744_s26 + $0x3b0] sm:$0xff]  }
  0x4b   :  { %5074 = vmatmul.mubr.bf16.vlgmr.msra.gmra.mrb[4].mxu0 %v7094_v7  ;;  %v8947_v7 = vld [vmem:[%s11744_s26 + $0x3e8] sm:$0xff]  }
  0x4c   :  { %5114 = vmatmul.mubr.bf16.vlgmr.msra.gmra.mrb[4].mxu1 %v7096_v10  ;;  %7838 = vmatpush3.bf16.msra.mxu0 %v8892_v14  ;;  %v8950_v10 = vld [vmem:[%s11744_s26 + $0x370] sm:$0xff]   ;;  %v8954_v14 = vld [vmem:[%s11744_s26 + $0x378] sm:$0xff]  }
  0x4d   :  { %7860 = vmatpush3.bf16.msra.mxu1 %v8893_v15  ;;  %7839 = vmatprep.subr.bf16.mxu0 %v8894_v16  ;;  %v8955_v15 = vld [vmem:[%s11744_s26 + $0x3f8] sm:$0xff]  }
  0x4e   :  { %7861 = vmatprep.subr.bf16.mxu1 %v8895_v17  ;;  %5153 = vmatprep.mubr.bf16.mxu0 %v7099_v47  ;;  %v8956_v16 = vld [vmem:[%s11744_s26 + $0x338] sm:$0xff]   ;;  %v8985_v47 = vld [vmem:[%s11744_s26 + $0x4a8] sm:$0xff]  }
  0x4f   :  { %5193 = vmatprep.mubr.bf16.mxu1 %v7101_v49  ;;  %v8957_v17 = vld [vmem:[%s11744_s26 + $0x3b8] sm:$0xff]   ;;  %v8987_v49 = vld [vmem:[%s11744_s26 + $0x4f0] sm:$0xff]  }
  0x50   :  { %7840 = vmatpush3.bf16.msra.mxu0 %v8896_v18  ;;  %v64_v18 = vld [vmem:[%s11745_s20 + $0x30] sm:$0xff] }
  0x51   :  { %7862 = vmatpush3.bf16.msra.mxu1 %v8897_v19  ;;  %7841 = vmatprep.subr.bf16.mxu0 %v8898_v20  ;;  %v65_v19 = vld [vmem:[%s11745_s20 + $0x38] sm:$0xff]  ;;  %v7102_v20 = vcombine.low %v64_v18, %v64_v18 }
  0x52   :  { %7863 = vmatprep.subr.bf16.mxu1 %v8899_v21  ;;  %v7103_v21 = vcombine.high %v64_v18, %v64_v18  ;;  %v9018_v18 = vld [vmem:[%s11744_s26 + $0x568] sm:$0xff]  }
  0x54   :  { %7842 = vmatpush3.bf16.msra.mxu0 %v8900_v22  ;;  %v7104_v22 = vcombine.low %v65_v19, %v65_v19 }
  0x55   :  { %7864 = vmatpush3.bf16.msra.mxu1 %v8901_v23  ;;  %7843 = vmatprep.subr.bf16.mxu0 %v8902_v24  ;;  %v8962_v23 = vld [vmem:[%s11744_s26 + $0x440] sm:$0xff]   ;;  %v7105_v24 = vcombine.high %v65_v19, %v65_v19  ;;  %v9019_v19 = vld [vmem:[%s11744_s26 + $0x5e8] sm:$0xff]  }
  0x56   :  { %7865 = vmatprep.subr.bf16.mxu1 %v8903_v25  ;;  %v8963_v25 = vld [vmem:[%s11744_s26 + $0x4c0] sm:$0xff]  }
  0x58   :  { %7844 = vmatpush3.bf16.msra.mxu0 %v8904_v26  ;;  %v8964_v26 = vld [vmem:[%s11744_s26 + $0x400] sm:$0xff]  }
  0x59   :  { %7866 = vmatpush3.bf16.msra.mxu1 %v8905_v27  ;;  %7845 = vmatprep.subr.bf16.mxu0 %v8906_v28  ;;  %v8965_v27 = vld [vmem:[%s11744_s26 + $0x480] sm:$0xff]   ;;  %v8966_v28 = vld [vmem:[%s11744_s26 + $0x448] sm:$0xff]  }
  0x5a   :  { %7867 = vmatprep.subr.bf16.mxu1 %v8907_v29  ;;  %v8967_v29 = vld [vmem:[%s11744_s26 + $0x4c8] sm:$0xff]  }
  0x5c   :  { %7846 = vmatpush3.bf16.msra.mxu0 %v8908_v30  ;;  %v8968_v30 = vld [vmem:[%s11744_s26 + $0x408] sm:$0xff]  }
  0x5d   :  { %7868 = vmatpush3.bf16.msra.mxu1 %v8909_v31  ;;  %7847 = vmatprep.subr.bf16.mxu0 %v8910_v32  ;;  %v8969_v31 = vld [vmem:[%s11744_s26 + $0x488] sm:$0xff]   ;;  %v8970_v32 = vld [vmem:[%s11744_s26 + $0x450] sm:$0xff]  }
  0x5e   :  { %7869 = vmatprep.subr.bf16.mxu1 %v8911_v33  ;;  %v8971_v33 = vld [vmem:[%s11744_s26 + $0x4d0] sm:$0xff]  }
  0x60   :  { %7848 = vmatpush3.bf16.msra.mxu0 %v8912_v34  ;;  %v8972_v34 = vld [vmem:[%s11744_s26 + $0x410] sm:$0xff]  }
  0x61   :  { %7870 = vmatpush3.bf16.msra.mxu1 %v8913_v35  ;;  %7849 = vmatprep.subr.bf16.mxu0 %v8914_v36  ;;  %v8973_v35 = vld [vmem:[%s11744_s26 + $0x490] sm:$0xff]   ;;  %v8974_v36 = vld [vmem:[%s11744_s26 + $0x458] sm:$0xff]  }
  0x62   :  { %7871 = vmatprep.subr.bf16.mxu1 %v8915_v37  ;;  %v8975_v37 = vld [vmem:[%s11744_s26 + $0x4d8] sm:$0xff]  }
  0x64   :  { %7850 = vmatpush3.bf16.msra.mxu0 %v8916_v38  ;;  %v8976_v38 = vld [vmem:[%s11744_s26 + $0x418] sm:$0xff]  }
  0x65   :  { %7872 = vmatpush3.bf16.msra.mxu1 %v8917_v39  ;;  %7851 = vmatprep.subr.bf16.mxu0 %v8918_v40  ;;  %v8977_v39 = vld [vmem:[%s11744_s26 + $0x498] sm:$0xff]   ;;  %v8978_v40 = vld [vmem:[%s11744_s26 + $0x460] sm:$0xff]  }
  0x66   :  { %7873 = vmatprep.subr.bf16.mxu1 %v8919_v41  ;;  %v8979_v41 = vld [vmem:[%s11744_s26 + $0x4e0] sm:$0xff]  }
  0x68   :  { %7852 = vmatpush3.bf16.msra.mxu0 %v8920_v42  ;;  %v8980_v42 = vld [vmem:[%s11744_s26 + $0x420] sm:$0xff]  }
  0x69   :  { %7874 = vmatpush3.bf16.msra.mxu1 %v8921_v43  ;;  %7881 = vmatprep.subr.bf16.mxu0 %v8926_v50  ;;  %v8981_v43 = vld [vmem:[%s11744_s26 + $0x4a0] sm:$0xff]   ;;  %v8988_v50 = vld [vmem:[%s11744_s26 + $0x430] sm:$0xff]  }
  0x6a   :  { %7903 = vmatprep.subr.bf16.mxu1 %v8927_v51  ;;  %v8989_v51 = vld [vmem:[%s11744_s26 + $0x4b0] sm:$0xff]  }
  0x6b   :  { %5154 = vmatmul.mubr.bf16.vlgmr.msra.gmra.mrb[8].mxu0 %v7098_v46  ;;  %v8984_v46 = vld [vmem:[%s11744_s26 + $0x428] sm:$0xff]  }
  0x6c   :  { %5194 = vmatmul.mubr.bf16.vlgmr.msra.gmra.mrb[8].mxu1 %v7100_v48  ;;  %7882 = vmatpush3.bf16.msra.mxu0 %v8928_v52  ;;  %v8986_v48 = vld [vmem:[%s11744_s26 + $0x470] sm:$0xff]   ;;  %v8990_v52 = vld [vmem:[%s11744_s26 + $0x478] sm:$0xff]  }
  0x6d   :  { %7904 = vmatpush3.bf16.msra.mxu1 %v8929_v53  ;;  %7883 = vmatprep.subr.bf16.mxu0 %v8930_v54  ;;  %v8991_v53 = vld [vmem:[%s11744_s26 + $0x4f8] sm:$0xff]  }
  0x6e   :  { %7905 = vmatprep.subr.bf16.mxu1 %v8931_v55  ;;  %5233 = vmatprep.mubr.bf16.mxu0 %v7103_v21  ;;  %v8992_v54 = vld [vmem:[%s11744_s26 + $0x438] sm:$0xff]   ;;  %v9021_v21 = vld [vmem:[%s11744_s26 + $0x5a8] sm:$0xff]  }
  0x6f   :  { %5273 = vmatprep.mubr.bf16.mxu1 %v7105_v24  ;;  %v8993_v55 = vld [vmem:[%s11744_s26 + $0x4b8] sm:$0xff]   ;;  %v9024_v24 = vld [vmem:[%s11744_s26 + $0x530] sm:$0xff]  }
  0x70   :  { %7884 = vmatpush3.bf16.msra.mxu0 %v8932_v56  ;;  %v66_v56 = vld [vmem:[%s11745_s20 + $0x40] sm:$0xff] }
  0x71   :  { %7906 = vmatpush3.bf16.msra.mxu1 %v8933_v57  ;;  %7885 = vmatprep.subr.bf16.mxu0 %v8934_v58  ;;  %v7106_v57 = vcombine.low %v66_v56, %v66_v56  ;;  %v7107_v58 = vcombine.high %v66_v56, %v66_v56  ;;  %v9054_v56 = vld [vmem:[%s11744_s26 + $0x668] sm:$0xff]  }
  0x72   :  { %7907 = vmatprep.subr.bf16.mxu1 %v8935_v59  ;;  %v67_v59 = vld [vmem:[%s11745_s20 + $0x48] sm:$0xff] }
  0x74   :  { %7886 = vmatpush3.bf16.msra.mxu0 %v8936_v60  ;;  %v7108_v60 = vcombine.low %v67_v59, %v67_v59 }
  0x75   :  { %7908 = vmatpush3.bf16.msra.mxu1 %v8937_v61  ;;  %7887 = vmatprep.subr.bf16.mxu0 %v8938_v62  ;;  %v7109_v61 = vcombine.high %v67_v59, %v67_v59  ;;  %v8998_v62 = vld [vmem:[%s11744_s26 + $0x540] sm:$0xff]   ;;  %v9057_v59 = vld [vmem:[%s11744_s26 + $0x6a8] sm:$0xff]  }
  0x76   :  { %7909 = vmatprep.subr.bf16.mxu1 %v8939_v63  ;;  %v8999_v63 = vld [vmem:[%s11744_s26 + $0x5c0] sm:$0xff]  }
  0x78   :  { %7888 = vmatpush3.bf16.msra.mxu0 %v8940_v0  ;;  %v9000_v0 = vld [vmem:[%s11744_s26 + $0x500] sm:$0xff]  }
  0x79   :  { %7910 = vmatpush3.bf16.msra.mxu1 %v8941_v1  ;;  %7889 = vmatprep.subr.bf16.mxu0 %v8942_v2  ;;  %v9001_v1 = vld [vmem:[%s11744_s26 + $0x580] sm:$0xff]   ;;  %v9002_v2 = vld [vmem:[%s11744_s26 + $0x548] sm:$0xff]  }
  0x7a   :  { %7911 = vmatprep.subr.bf16.mxu1 %v8943_v3  ;;  %v9003_v3 = vld [vmem:[%s11744_s26 + $0x5c8] sm:$0xff]  }
  0x7c   :  { %7890 = vmatpush3.bf16.msra.mxu0 %v8944_v4  ;;  %v9004_v4 = vld [vmem:[%s11744_s26 + $0x508] sm:$0xff]  }
  0x7d   :  { %7912 = vmatpush3.bf16.msra.mxu1 %v8945_v5  ;;  %7891 = vmatprep.subr.bf16.mxu0 %v8946_v6  ;;  %v9005_v5 = vld [vmem:[%s11744_s26 + $0x588] sm:$0xff]   ;;  %v9006_v6 = vld [vmem:[%s11744_s26 + $0x550] sm:$0xff]  }
  0x7e   :  { %7913 = vmatprep.subr.bf16.mxu1 %v8947_v7  ;;  %v9007_v7 = vld [vmem:[%s11744_s26 + $0x5d0] sm:$0xff]  }
  0x80   :  { %7892 = vmatpush3.bf16.msra.mxu0 %v8948_v8  ;;  %v9008_v8 = vld [vmem:[%s11744_s26 + $0x510] sm:$0xff]  }
  0x81   :  { %7914 = vmatpush3.bf16.msra.mxu1 %v8949_v9  ;;  %7893 = vmatprep.subr.bf16.mxu0 %v8950_v10  ;;  %v9009_v9 = vld [vmem:[%s11744_s26 + $0x590] sm:$0xff]   ;;  %v9010_v10 = vld [vmem:[%s11744_s26 + $0x558] sm:$0xff]  }
  0x82   :  { %7915 = vmatprep.subr.bf16.mxu1 %v8951_v11  ;;  %v9011_v11 = vld [vmem:[%s11744_s26 + $0x5d8] sm:$0xff]  }
  0x84   :  { %7894 = vmatpush3.bf16.msra.mxu0 %v8952_v12  ;;  %v9012_v12 = vld [vmem:[%s11744_s26 + $0x518] sm:$0xff]  }
  0x85   :  { %7916 = vmatpush3.bf16.msra.mxu1 %v8953_v13  ;;  %7895 = vmatprep.subr.bf16.mxu0 %v8954_v14  ;;  %v9013_v13 = vld [vmem:[%s11744_s26 + $0x598] sm:$0xff]   ;;  %v9014_v14 = vld [vmem:[%s11744_s26 + $0x560] sm:$0xff]  }
  0x86   :  { %7917 = vmatprep.subr.bf16.mxu1 %v8955_v15  ;;  %v9015_v15 = vld [vmem:[%s11744_s26 + $0x5e0] sm:$0xff]  }
  0x88   :  { %7896 = vmatpush3.bf16.msra.mxu0 %v8956_v16  ;;  %v9016_v16 = vld [vmem:[%s11744_s26 + $0x520] sm:$0xff]  }
  0x89   :  { %7918 = vmatpush3.bf16.msra.mxu1 %v8957_v17  ;;  %7925 = vmatprep.subr.bf16.mxu0 %v8962_v23  ;;  %v9017_v17 = vld [vmem:[%s11744_s26 + $0x5a0] sm:$0xff]   ;;  %v9023_v23 = vld [vmem:[%s11744_s26 + $0x5f0] sm:$0xff]  }
  0x8a   :  { %7947 = vmatprep.subr.bf16.mxu1 %v8963_v25  ;;  %v9025_v25 = vld [vmem:[%s11744_s26 + $0x5b0] sm:$0xff]  }
  0x8b   :  { %5234 = vmatmul.mubr.bf16.vlgmr.msra.gmra.mrb[12].mxu0 %v7102_v20  ;;  %v9020_v20 = vld [vmem:[%s11744_s26 + $0x528] sm:$0xff]  }
  0x8c   :  { %5274 = vmatmul.mubr.bf16.vlgmr.msra.gmra.mrb[12].mxu1 %v7104_v22  ;;  %7926 = vmatpush3.bf16.msra.mxu0 %v8964_v26  ;;  %v9022_v22 = vld [vmem:[%s11744_s26 + $0x570] sm:$0xff]   ;;  %v9026_v26 = vld [vmem:[%s11744_s26 + $0x578] sm:$0xff]  }
  0x8d   :  { %7948 = vmatpush3.bf16.msra.mxu1 %v8965_v27  ;;  %7927 = vmatprep.subr.bf16.mxu0 %v8966_v28  ;;  %v9027_v27 = vld [vmem:[%s11744_s26 + $0x5f8] sm:$0xff]  }
  0x8e   :  { %7949 = vmatprep.subr.bf16.mxu1 %v8967_v29  ;;  %5313 = vmatprep.mubr.bf16.mxu0 %v7107_v58  ;;  %v9028_v28 = vld [vmem:[%s11744_s26 + $0x538] sm:$0xff]   ;;  %v9056_v58 = vld [vmem:[%s11744_s26 + $0x628] sm:$0xff]  }
  0x8f   :  { %5353 = vmatprep.mubr.bf16.mxu1 %v7109_v61  ;;  %v9029_v29 = vld [vmem:[%s11744_s26 + $0x5b8] sm:$0xff]   ;;  %v9059_v61 = vld [vmem:[%s11744_s26 + $0x6f0] sm:$0xff]  }
  0x90   :  { %7928 = vmatpush3.bf16.msra.mxu0 %v8968_v30  ;;  %v68_v30 = vld [vmem:[%s11745_s20 + $0x50] sm:$0xff] }
  0x91   :  { %7950 = vmatpush3.bf16.msra.mxu1 %v8969_v31  ;;  %7929 = vmatprep.subr.bf16.mxu0 %v8970_v32  ;;  %v69_v31 = vld [vmem:[%s11745_s20 + $0x58] sm:$0xff]  ;;  %v7110_v32 = vcombine.low %v68_v30, %v68_v30 }
  0x92   :  { %7951 = vmatprep.subr.bf16.mxu1 %v8971_v33  ;;  %v7111_v33 = vcombine.high %v68_v30, %v68_v30  ;;  %v9089_v30 = vld [vmem:[%s11744_s26 + $0x7a0] sm:$0xff]  }
  0x94   :  { %7930 = vmatpush3.bf16.msra.mxu0 %v8972_v34  ;;  %v7112_v34 = vcombine.low %v69_v31, %v69_v31 }
  0x95   :  { %7952 = vmatpush3.bf16.msra.mxu1 %v8973_v35  ;;  %7931 = vmatprep.subr.bf16.mxu0 %v8974_v36  ;;  %v7113_v35 = vcombine.high %v69_v31, %v69_v31  ;;  %v9034_v36 = vld [vmem:[%s11744_s26 + $0x640] sm:$0xff]  }
  0x96   :  { %7953 = vmatprep.subr.bf16.mxu1 %v8975_v37  ;;  %v9035_v37 = vld [vmem:[%s11744_s26 + $0x6c0] sm:$0xff]  }
  0x98   :  { %7932 = vmatpush3.bf16.msra.mxu0 %v8976_v38  ;;  %v9036_v38 = vld [vmem:[%s11744_s26 + $0x600] sm:$0xff]  }
  0x99   :  { %7954 = vmatpush3.bf16.msra.mxu1 %v8977_v39  ;;  %7933 = vmatprep.subr.bf16.mxu0 %v8978_v40  ;;  %v9037_v39 = vld [vmem:[%s11744_s26 + $0x680] sm:$0xff]   ;;  %v9038_v40 = vld [vmem:[%s11744_s26 + $0x648] sm:$0xff]  }
  0x9a   :  { %7955 = vmatprep.subr.bf16.mxu1 %v8979_v41  ;;  %v9039_v41 = vld [vmem:[%s11744_s26 + $0x6c8] sm:$0xff]  }
  0x9c   :  { %7934 = vmatpush3.bf16.msra.mxu0 %v8980_v42  ;;  %v9040_v42 = vld [vmem:[%s11744_s26 + $0x608] sm:$0xff]  }
  0x9d   :  { %7956 = vmatpush3.bf16.msra.mxu1 %v8981_v43  ;;  %7935 = vmatprep.subr.bf16.mxu0 %v8982_v44  ;;  %v9041_v43 = vld [vmem:[%s11744_s26 + $0x688] sm:$0xff]   ;;  %v9042_v44 = vld [vmem:[%s11744_s26 + $0x650] sm:$0xff]  }
  0x9e   :  { %7957 = vmatprep.subr.bf16.mxu1 %v8983_v45  ;;  %v9043_v45 = vld [vmem:[%s11744_s26 + $0x6d0] sm:$0xff]  }
  0xa0   :  { %7936 = vmatpush3.bf16.msra.mxu0 %v8984_v46  ;;  %v9044_v46 = vld [vmem:[%s11744_s26 + $0x610] sm:$0xff]  }
  0xa1   :  { %7958 = vmatpush3.bf16.msra.mxu1 %v8985_v47  ;;  %7937 = vmatprep.subr.bf16.mxu0 %v8986_v48  ;;  %v9045_v47 = vld [vmem:[%s11744_s26 + $0x690] sm:$0xff]   ;;  %v9046_v48 = vld [vmem:[%s11744_s26 + $0x658] sm:$0xff]  }
  0xa2   :  { %7959 = vmatprep.subr.bf16.mxu1 %v8987_v49  ;;  %v9047_v49 = vld [vmem:[%s11744_s26 + $0x6d8] sm:$0xff]  }
  0xa4   :  { %7938 = vmatpush3.bf16.msra.mxu0 %v8988_v50  ;;  %v9048_v50 = vld [vmem:[%s11744_s26 + $0x618] sm:$0xff]  }
  0xa5   :  { %7960 = vmatpush3.bf16.msra.mxu1 %v8989_v51  ;;  %7939 = vmatprep.subr.bf16.mxu0 %v8990_v52  ;;  %v9049_v51 = vld [vmem:[%s11744_s26 + $0x698] sm:$0xff]   ;;  %v9050_v52 = vld [vmem:[%s11744_s26 + $0x660] sm:$0xff]  }
  0xa6   :  { %7961 = vmatprep.subr.bf16.mxu1 %v8991_v53  ;;  %v9051_v53 = vld [vmem:[%s11744_s26 + $0x6e0] sm:$0xff]  }
  0xa8   :  { %7940 = vmatpush3.bf16.msra.mxu0 %v8992_v54  ;;  %v9052_v54 = vld [vmem:[%s11744_s26 + $0x620] sm:$0xff]  }
  0xa9   :  { %7962 = vmatpush3.bf16.msra.mxu1 %v8993_v55  ;;  %7969 = vmatprep.subr.bf16.mxu0 %v8998_v62  ;;  %v9053_v55 = vld [vmem:[%s11744_s26 + $0x6a0] sm:$0xff]   ;;  %v9060_v62 = vld [vmem:[%s11744_s26 + $0x630] sm:$0xff]  }
  0xaa   :  { %7991 = vmatprep.subr.bf16.mxu1 %v8999_v63  ;;  %v9061_v63 = vld [vmem:[%s11744_s26 + $0x6b0] sm:$0xff]  }
  0xab   :  { %5314 = vmatmul.mubr.bf16.vlgmr.msra.gmra.mrb[16].mxu0 %v7106_v57  ;;  %v9055_v57 = vld [vmem:[%s11744_s26 + $0x6e8] sm:$0xff]  }
  0xac   :  { %5354 = vmatmul.mubr.bf16.vlgmr.msra.gmra.mrb[16].mxu1 %v7108_v60  ;;  %7970 = vmatpush3.bf16.msra.mxu0 %v9000_v0  ;;  %v9058_v60 = vld [vmem:[%s11744_s26 + $0x670] sm:$0xff]   ;;  %v9062_v0 = vld [vmem:[%s11744_s26 + $0x678] sm:$0xff]  }
  0xad   :  { %7992 = vmatpush3.bf16.msra.mxu1 %v9001_v1  ;;  %7971 = vmatprep.subr.bf16.mxu0 %v9002_v2  ;;  %v9063_v1 = vld [vmem:[%s11744_s26 + $0x6f8] sm:$0xff]  }
  0xae   :  { %7993 = vmatprep.subr.bf16.mxu1 %v9003_v3  ;;  %5393 = vmatprep.mubr.bf16.mxu0 %v7111_v33  ;;  %v9064_v2 = vld [vmem:[%s11744_s26 + $0x638] sm:$0xff]  }
  0xaf   :  { %5433 = vmatprep.mubr.bf16.mxu1 %v7113_v35  ;;  %v9065_v3 = vld [vmem:[%s11744_s26 + $0x6b8] sm:$0xff]  }
  0xb0   :  { %7972 = vmatpush3.bf16.msra.mxu0 %v9004_v4  ;;  %v70_v4 = vld [vmem:[%s11745_s20 + $0x60] sm:$0xff] }
  0xb1   :  { %7994 = vmatpush3.bf16.msra.mxu1 %v9005_v5  ;;  %7973 = vmatprep.subr.bf16.mxu0 %v9006_v6  ;;  %v71_v5 = vld [vmem:[%s11745_s20 + $0x68] sm:$0xff]  ;;  %v7114_v6 = vcombine.low %v70_v4, %v70_v4 }
  0xb2   :  { %7995 = vmatprep.subr.bf16.mxu1 %v9007_v7  ;;  %v7115_v7 = vcombine.high %v70_v4, %v70_v4  ;;  %v9113_v4 = vld [vmem:[%s11744_s26 + $0x888] sm:$0xff]  }
  0xb4   :  { %7974 = vmatpush3.bf16.msra.mxu0 %v9008_v8  ;;  %v7116_v8 = vcombine.low %v71_v5, %v71_v5 }
  0xb5   :  { %7996 = vmatpush3.bf16.msra.mxu1 %v9009_v9  ;;  %7975 = vmatprep.subr.bf16.mxu0 %v9010_v10  ;;  %v9070_v9 = vld [vmem:[%s11744_s26 + $0x740] sm:$0xff]   ;;  %v7117_v10 = vcombine.high %v71_v5, %v71_v5  ;;  %v9114_v5 = vld [vmem:[%s11744_s26 + $0x850] sm:$0xff]  }
  0xb6   :  { %7997 = vmatprep.subr.bf16.mxu1 %v9011_v11  ;;  %v9071_v11 = vld [vmem:[%s11744_s26 + $0x7c0] sm:$0xff]  }
  0xb8   :  { %7976 = vmatpush3.bf16.msra.mxu0 %v9012_v12  ;;  %v9072_v12 = vld [vmem:[%s11744_s26 + $0x700] sm:$0xff]  }
  0xb9   :  { %7998 = vmatpush3.bf16.msra.mxu1 %v9013_v13  ;;  %7977 = vmatprep.subr.bf16.mxu0 %v9014_v14  ;;  %v9073_v13 = vld [vmem:[%s11744_s26 + $0x780] sm:$0xff]   ;;  %v9074_v14 = vld [vmem:[%s11744_s26 + $0x748] sm:$0xff]  }
  0xba   :  { %7999 = vmatprep.subr.bf16.mxu1 %v9015_v15  ;;  %v9075_v15 = vld [vmem:[%s11744_s26 + $0x7c8] sm:$0xff]  }
  0xbc   :  { %7978 = vmatpush3.bf16.msra.mxu0 %v9016_v16  ;;  %v9076_v16 = vld [vmem:[%s11744_s26 + $0x708] sm:$0xff]  }
  0xbd   :  { %8000 = vmatpush3.bf16.msra.mxu1 %v9017_v17  ;;  %7979 = vmatprep.subr.bf16.mxu0 %v9018_v18  ;;  %v9077_v17 = vld [vmem:[%s11744_s26 + $0x788] sm:$0xff]   ;;  %v9078_v18 = vld [vmem:[%s11744_s26 + $0x750] sm:$0xff]  }
  0xbe   :  { %8001 = vmatprep.subr.bf16.mxu1 %v9019_v19  ;;  %v9079_v19 = vld [vmem:[%s11744_s26 + $0x7d0] sm:$0xff]  }
  0xc0   :  { %7980 = vmatpush3.bf16.msra.mxu0 %v9020_v20  ;;  %v9080_v20 = vld [vmem:[%s11744_s26 + $0x710] sm:$0xff]  }
  0xc1   :  { %8002 = vmatpush3.bf16.msra.mxu1 %v9021_v21  ;;  %7981 = vmatprep.subr.bf16.mxu0 %v9022_v22  ;;  %v9081_v21 = vld [vmem:[%s11744_s26 + $0x790] sm:$0xff]   ;;  %v9082_v22 = vld [vmem:[%s11744_s26 + $0x758] sm:$0xff]  }
  0xc2   :  { %8003 = vmatprep.subr.bf16.mxu1 %v9023_v23  ;;  %v9083_v23 = vld [vmem:[%s11744_s26 + $0x7d8] sm:$0xff]  }
  0xc4   :  { %7982 = vmatpush3.bf16.msra.mxu0 %v9024_v24  ;;  %v9084_v24 = vld [vmem:[%s11744_s26 + $0x718] sm:$0xff]  }
  0xc5   :  { %8004 = vmatpush3.bf16.msra.mxu1 %v9025_v25  ;;  %7983 = vmatprep.subr.bf16.mxu0 %v9026_v26  ;;  %v9085_v25 = vld [vmem:[%s11744_s26 + $0x798] sm:$0xff]   ;;  %v9086_v26 = vld [vmem:[%s11744_s26 + $0x760] sm:$0xff]  }
  0xc6   :  { %8005 = vmatprep.subr.bf16.mxu1 %v9027_v27  ;;  %v9087_v27 = vld [vmem:[%s11744_s26 + $0x7e0] sm:$0xff]  }
  0xc8   :  { %7984 = vmatpush3.bf16.msra.mxu0 %v9028_v28  ;;  %v9088_v28 = vld [vmem:[%s11744_s26 + $0x720] sm:$0xff]  }
  0xc9   :  { %8006 = vmatpush3.bf16.msra.mxu1 %v9029_v29  ;;  %8013 = vmatprep.subr.bf16.mxu0 %v9034_v36 }
  0xca   :  { %8035 = vmatprep.subr.bf16.mxu1 %v9035_v37  ;;  %v9090_v37 = vld [vmem:[%s11744_s26 + $0x768] sm:$0xff]  }
  0xcb   :  { %5394 = vmatmul.mubr.bf16.vlgmr.msra.gmra.mrb[20].mxu0 %v7110_v32  ;;  %v7089_v32 = vld [vmem:[%s11724_s2] ss:$0 sm:$0xff] }
  0xcc   :  { %5434 = vmatmul.mubr.bf16.vlgmr.msra.gmra.mrb[20].mxu1 %v7112_v34  ;;  %8014 = vmatpush3.bf16.msra.mxu0 %v9036_v38 }
  0xcd   :  { %8036 = vmatpush3.bf16.msra.mxu1 %v9037_v39  ;;  %8015 = vmatprep.subr.bf16.mxu0 %v9038_v40  ;;  %v9091_v39 = vld [vmem:[%s11744_s26 + $0x7e8] sm:$0xff]  }
  0xce   :  { %8037 = vmatprep.subr.bf16.mxu1 %v9039_v41  ;;  %5473 = vmatprep.mubr.bf16.mxu0 %v7115_v7  ;;  %v9116_v7 = vld [vmem:[%s11744_s26 + $0x810] sm:$0xff]  }
  0xcf   :  { %5513 = vmatprep.mubr.bf16.mxu1 %v7117_v10  ;;  %v9119_v10 = vld [vmem:[%s11744_s26 + $0x8d8] sm:$0xff]  }
  0xd0   :  { %8016 = vmatpush3.bf16.msra.mxu0 %v9040_v42  ;;  %v9092_v42 = vld [vmem:[%s11744_s26 + $0x728] sm:$0xff]  }
  0xd1   :  { %8038 = vmatpush3.bf16.msra.mxu1 %v9041_v43  ;;  %8017 = vmatprep.subr.bf16.mxu0 %v9042_v44  ;;  %v9093_v44 = vld [vmem:[%s11744_s26 + $0x7a8] sm:$0xff]  }
  0xd2   :  { %8039 = vmatprep.subr.bf16.mxu1 %v9043_v45 }
  0xd4   :  { %8018 = vmatpush3.bf16.msra.mxu0 %v9044_v46 }
  0xd5   :  { %8040 = vmatpush3.bf16.msra.mxu1 %v9045_v47  ;;  %8019 = vmatprep.subr.bf16.mxu0 %v9046_v48  ;;  %v9094_v47 = vld [vmem:[%s11744_s26 + $0x770] sm:$0xff]  }
  0xd6   :  { %8041 = vmatprep.subr.bf16.mxu1 %v9047_v49  ;;  %v9095_v48 = vld [vmem:[%s11744_s26 + $0x7f0] sm:$0xff]  }
  0xd7   :  { %v9096_v49 = vld [vmem:[%s11744_s26 + $0x730] sm:$0xff]  }
  0xd8   :  { %8020 = vmatpush3.bf16.msra.mxu0 %v9048_v50  ;;  %v9097_v50 = vld [vmem:[%s11744_s26 + $0x7b0] sm:$0xff]  }
  0xd9   :  { %8042 = vmatpush3.bf16.msra.mxu1 %v9049_v51  ;;  %8021 = vmatprep.subr.bf16.mxu0 %v9050_v52  ;;  %v9098_v51 = vld [vmem:[%s11744_s26 + $0x778] sm:$0xff]  }
  0xda   :  { %8043 = vmatprep.subr.bf16.mxu1 %v9051_v53  ;;  %v9099_v52 = vld [vmem:[%s11744_s26 + $0x7f8] sm:$0xff]  }
  0xdb   :  { %v9100_v53 = vld [vmem:[%s11744_s26 + $0x738] sm:$0xff]  }
  0xdc   :  { %8022 = vmatpush3.bf16.msra.mxu0 %v9052_v54  ;;  %v9101_v54 = vld [vmem:[%s11744_s26 + $0x7b8] sm:$0xff]  }
  0xdd   :  { %8044 = vmatpush3.bf16.msra.mxu1 %v9053_v55  ;;  %8023 = vmatprep.subr.bf16.mxu0 %v9054_v56  ;;  %v72_v55 = vld [vmem:[%s11745_s20 + $0x70] sm:$0xff]  ;;  %v73_v56 = vld [vmem:[%s11745_s20 + $0x78] sm:$0xff] }
  0xde   :  { %8045 = vmatprep.subr.bf16.mxu1 %v9055_v57  ;;  %v7118_v57 = vcombine.low %v72_v55, %v72_v55 }
  0xe0   :  { %8024 = vmatpush3.bf16.msra.mxu0 %v9056_v58  ;;  %v7119_v58 = vcombine.high %v72_v55, %v72_v55  ;;  %v9150_v55 = vld [vmem:[%s11744_s26 + $0x950] sm:$0xff]  }
  0xe1   :  { %8046 = vmatpush3.bf16.msra.mxu1 %v9057_v59  ;;  %8025 = vmatprep.subr.bf16.mxu0 %v9058_v60  ;;  %v7120_v59 = vcombine.low %v73_v56, %v73_v56  ;;  %v7121_v60 = vcombine.high %v73_v56, %v73_v56  ;;  %v9151_v56 = vld [vmem:[%s11744_s26 + $0x9d0] sm:$0xff]  }
  0xe2   :  { %8047 = vmatprep.subr.bf16.mxu1 %v9059_v61  ;;  %v9106_v61 = vld [vmem:[%s11744_s26 + $0x840] sm:$0xff]  }
  0xe4   :  { %8026 = vmatpush3.bf16.msra.mxu0 %v9060_v62  ;;  %v9107_v62 = vld [vmem:[%s11744_s26 + $0x8c0] sm:$0xff]  }
  0xe5   :  { %8048 = vmatpush3.bf16.msra.mxu1 %v9061_v63  ;;  %8027 = vmatprep.subr.bf16.mxu0 %v9062_v0  ;;  %v9108_v63 = vld [vmem:[%s11744_s26 + $0x800] sm:$0xff]  }
  0xe6   :  { %8049 = vmatprep.subr.bf16.mxu1 %v9063_v1  ;;  %v9109_v0 = vld [vmem:[%s11744_s26 + $0x880] sm:$0xff]   ;;  %v9110_v1 = vld [vmem:[%s11744_s26 + $0x848] sm:$0xff]  }
  0xe8   :  { %8028 = vmatpush3.bf16.msra.mxu0 %v9064_v2  ;;  %v9111_v2 = vld [vmem:[%s11744_s26 + $0x8c8] sm:$0xff]  }
  0xe9   :  { %8050 = vmatpush3.bf16.msra.mxu1 %v9065_v3  ;;  %8057 = vmatprep.subr.bf16.mxu0 %v9070_v9  ;;  %v9112_v3 = vld [vmem:[%s11744_s26 + $0x808] sm:$0xff]   ;;  %v9118_v9 = vld [vmem:[%s11744_s26 + $0x858] sm:$0xff]  }
  0xea   :  { %8079 = vmatprep.subr.bf16.mxu1 %v9071_v11  ;;  %v9120_v11 = vld [vmem:[%s11744_s26 + $0x818] sm:$0xff]  }
  0xeb   :  { %5474 = vmatmul.mubr.bf16.vlgmr.msra.gmra.mrb[24].mxu0 %v7114_v6  ;;  %v9115_v6 = vld [vmem:[%s11744_s26 + $0x8d0] sm:$0xff]  }
  0xec   :  { %5514 = vmatmul.mubr.bf16.vlgmr.msra.gmra.mrb[24].mxu1 %v7116_v8  ;;  %8058 = vmatpush3.bf16.msra.mxu0 %v9072_v12  ;;  %v9117_v8 = vld [vmem:[%s11744_s26 + $0x890] sm:$0xff]   ;;  %v9121_v12 = vld [vmem:[%s11744_s26 + $0x898] sm:$0xff]  }
  0xed   :  { %8080 = vmatpush3.bf16.msra.mxu1 %v9073_v13  ;;  %8059 = vmatprep.subr.bf16.mxu0 %v9074_v14  ;;  %v9122_v13 = vld [vmem:[%s11744_s26 + $0x860] sm:$0xff]  }
  0xee   :  { %8081 = vmatprep.subr.bf16.mxu1 %v9075_v15  ;;  %5553 = vmatprep.mubr.bf16.mxu0 %v7119_v58  ;;  %v9123_v14 = vld [vmem:[%s11744_s26 + $0x8e0] sm:$0xff]   ;;  %v9153_v58 = vld [vmem:[%s11744_s26 + $0x990] sm:$0xff]  }
  0xef   :  { %5593 = vmatprep.mubr.bf16.mxu1 %v7121_v60  ;;  %v9124_v15 = vld [vmem:[%s11744_s26 + $0x820] sm:$0xff]   ;;  %v9155_v60 = vld [vmem:[%s11744_s26 + $0x9d8] sm:$0xff]  }
  0xf0   :  { %8060 = vmatpush3.bf16.msra.mxu0 %v9076_v16 }
  0xf1   :  { %8082 = vmatpush3.bf16.msra.mxu1 %v9077_v17  ;;  %8061 = vmatprep.subr.bf16.mxu0 %v9078_v18  ;;  %v9125_v17 = vld [vmem:[%s11744_s26 + $0x8a0] sm:$0xff]  }
  0xf2   :  { %8083 = vmatprep.subr.bf16.mxu1 %v9079_v19 }
  0xf4   :  { %8062 = vmatpush3.bf16.msra.mxu0 %v9080_v20 }
  0xf5   :  { %8084 = vmatpush3.bf16.msra.mxu1 %v9081_v21  ;;  %8063 = vmatprep.subr.bf16.mxu0 %v9082_v22 }
  0xf6   :  { %8085 = vmatprep.subr.bf16.mxu1 %v9083_v23  ;;  %v9126_v23 = vld [vmem:[%s11744_s26 + $0x868] sm:$0xff]  }
  0xf8   :  { %8064 = vmatpush3.bf16.msra.mxu0 %v9084_v24 }
  0xf9   :  { %8086 = vmatpush3.bf16.msra.mxu1 %v9085_v25  ;;  %8065 = vmatprep.subr.bf16.mxu0 %v9086_v26  ;;  %v9127_v25 = vld [vmem:[%s11744_s26 + $0x8e8] sm:$0xff]  }
  0xfa   :  { %8087 = vmatprep.subr.bf16.mxu1 %v9087_v27 }
  0xfc   :  { %8066 = vmatpush3.bf16.msra.mxu0 %v9088_v28  ;;  %v9128_v28 = vld [vmem:[%s11744_s26 + $0x828] sm:$0xff]  }
  0xfd   :  { %8088 = vmatpush3.bf16.msra.mxu1 %v9089_v30  ;;  %8067 = vmatprep.subr.bf16.mxu0 %v9090_v37  ;;  %v9129_v30 = vld [vmem:[%s11744_s26 + $0x8a8] sm:$0xff]   ;;  %v9134_v37 = vld [vmem:[%s11744_s26 + $0x878] sm:$0xff]  }
  0xfe   :  { %v7765_v29 = vpop.f32.mrb[0].mxu0  ;;  %8089 = vmatprep.subr.bf16.mxu1 %v9091_v39  ;;  %v9136_v39 = vld [vmem:[%s11744_s26 + $0x838] sm:$0xff]  }
  0xff   :  { %v7787_v31 = vpop.f32.mrb[0].mxu1  ;;  %v7766_v33 = vpop.f32.mrb[1].mxu0 }
 0x100   :  { %v7788_v34 = vpop.f32.mrb[1].mxu1  ;;  %v7767_v35 = vadd.f32 %v7766_v33, %v7765_v29  ;;  %v7768_v38 = vpop.f32.mrb[2].mxu0  ;;  %8068 = vmatpush3.bf16.msra.mxu0 %v9092_v42  ;;  %v9130_v33 = vld [vmem:[%s11744_s26 + $0x870] sm:$0xff]   ;;  %v75_v42 = vld [vmem:[%s11745_s20 + $0x88] sm:$0xff] }
 0x101   :  { %v7789_v36 = vadd.f32 %v7788_v34, %v7787_v31  ;;  %v7790_v40 = vpop.f32.mrb[2].mxu1  ;;  %v7769_v43 = vpop.f32.mrb[3].mxu0  ;;  %8090 = vmatpush3.bf16.msra.mxu1 %v9093_v44  ;;  %8069 = vmatprep.subr.bf16.mxu0 %v9094_v47  ;;  %v9131_v34 = vld [vmem:[%s11744_s26 + $0x8f0] sm:$0xff]   ;;  %v9135_v38 = vld [vmem:[%s11744_s26 + $0x8f8] sm:$0xff]   ;;  %v9142_v47 = vld [vmem:[%s11744_s26 + $0x940] sm:$0xff]  }
 0x102   :  { %v4996_v41 = vadd.f32 %v7767_v35, %v7089_v32  ;;  %v7791_v45 = vpop.f32.mrb[3].mxu1  ;;  %8091 = vmatprep.subr.bf16.mxu1 %v9095_v48  ;;  %v9132_v35 = vld [vmem:[%s11744_s26 + $0x830] sm:$0xff]   ;;  %v9137_v40 = vld [vmem:[%s11744_s26 + $0x8b8] sm:$0xff]   ;;  %v9143_v48 = vld [vmem:[%s11744_s26 + $0x9c0] sm:$0xff]  }
 0x103   :  { %v7124_v45 = vcombine.low %v75_v42, %v75_v42 }
 0x104   :  { %v10402_v46 = vadd.f32 %v7789_v36, %v4996_v41  ;;  %8070 = vmatpush3.bf16.msra.mxu0 %v9096_v49  ;;  %v9133_v36 = vld [vmem:[%s11744_s26 + $0x8b0] sm:$0xff]   ;;  %v74_v41 = vld [vmem:[%s11745_s20 + $0x80] sm:$0xff] }
 0x105   :  { %8092 = vmatpush3.bf16.msra.mxu1 %v9097_v50  ;;  %8071 = vmatprep.subr.bf16.mxu0 %v9098_v51  ;;  %v7122_v43 = vcombine.low %v74_v41, %v74_v41  ;;  %v7123_v44 = vcombine.high %v74_v41, %v74_v41  ;;  %v9144_v49 = vld [vmem:[%s11744_s26 + $0x900] sm:$0xff]   ;;  %v9146_v51 = vld [vmem:[%s11744_s26 + $0x948] sm:$0xff]   ;;  %v9186_v41 = vld [vmem:[%s11744_s26 + $0xa50] sm:$0xff]  }
 0x106   :  { %8093 = vmatprep.subr.bf16.mxu1 %v9099_v52  ;;  %v9145_v50 = vld [vmem:[%s11744_s26 + $0x980] sm:$0xff]   ;;  %v9147_v52 = vld [vmem:[%s11744_s26 + $0x9c8] sm:$0xff]  }
 0x108   :  { %8072 = vmatpush3.bf16.msra.mxu0 %v9100_v53  ;;  %v9148_v53 = vld [vmem:[%s11744_s26 + $0x908] sm:$0xff]  }
 0x109   :  { %8094 = vmatpush3.bf16.msra.mxu1 %v9101_v54  ;;  %8101 = vmatprep.subr.bf16.mxu0 %v9106_v61  ;;  %v9149_v54 = vld [vmem:[%s11744_s26 + $0x988] sm:$0xff]   ;;  %v9156_v61 = vld [vmem:[%s11744_s26 + $0x918] sm:$0xff]  }
 0x10a   :  { %8123 = vmatprep.subr.bf16.mxu1 %v9107_v62  ;;  %v9157_v62 = vld [vmem:[%s11744_s26 + $0x998] sm:$0xff]  }
 0x10b   :  { %5554 = vmatmul.mubr.bf16.vlgmr.msra.gmra.mrb[28].mxu0 %v7118_v57  ;;  %v9152_v57 = vld [vmem:[%s11744_s26 + $0x910] sm:$0xff]  }
 0x10c   :  { %5594 = vmatmul.mubr.bf16.vlgmr.msra.gmra.mrb[28].mxu1 %v7120_v59  ;;  %8102 = vmatpush3.bf16.msra.mxu0 %v9108_v63  ;;  %v9154_v59 = vld [vmem:[%s11744_s26 + $0x958] sm:$0xff]   ;;  %v9158_v63 = vld [vmem:[%s11744_s26 + $0x960] sm:$0xff]  }
 0x10d   :  { %8124 = vmatpush3.bf16.msra.mxu1 %v9109_v0  ;;  %8103 = vmatprep.subr.bf16.mxu0 %v9110_v1  ;;  %v9159_v0 = vld [vmem:[%s11744_s26 + $0x9e0] sm:$0xff]  }
 0x10e   :  { %8125 = vmatprep.subr.bf16.mxu1 %v9111_v2  ;;  %5633 = vmatprep.mubr.bf16.mxu0 %v7123_v44  ;;  %v9160_v2 = vld [vmem:[%s11744_s26 + $0x920] sm:$0xff]   ;;  %v9189_v44 = vld [vmem:[%s11744_s26 + $0xa90] sm:$0xff]  }
 0x110   :  { %8104 = vmatpush3.bf16.msra.mxu0 %v9112_v3 }
 0x111   :  { %8126 = vmatpush3.bf16.msra.mxu1 %v9113_v4  ;;  %8105 = vmatprep.subr.bf16.mxu0 %v9114_v5  ;;  %v9161_v4 = vld [vmem:[%s11744_s26 + $0x9a0] sm:$0xff]  }
 0x112   :  { %8127 = vmatprep.subr.bf16.mxu1 %v9115_v6 }
 0x114   :  { %8106 = vmatpush3.bf16.msra.mxu0 %v9116_v7 }
 0x115   :  { %8128 = vmatpush3.bf16.msra.mxu1 %v9117_v8  ;;  %8107 = vmatprep.subr.bf16.mxu0 %v9118_v9  ;;  %v9162_v8 = vld [vmem:[%s11744_s26 + $0x968] sm:$0xff]  }
 0x116   :  { %8129 = vmatprep.subr.bf16.mxu1 %v9119_v10  ;;  %v9163_v10 = vld [vmem:[%s11744_s26 + $0x9e8] sm:$0xff]  }
 0x118   :  { %8108 = vmatpush3.bf16.msra.mxu0 %v9120_v11 }
 0x119   :  { %8130 = vmatpush3.bf16.msra.mxu1 %v9121_v12  ;;  %8109 = vmatprep.subr.bf16.mxu0 %v9122_v13 }
 0x11a   :  { %8131 = vmatprep.subr.bf16.mxu1 %v9123_v14  ;;  %v9164_v14 = vld [vmem:[%s11744_s26 + $0x928] sm:$0xff]  }
 0x11c   :  { %8110 = vmatpush3.bf16.msra.mxu0 %v9124_v15  ;;  %v9165_v15 = vld [vmem:[%s11744_s26 + $0x9a8] sm:$0xff]  }
 0x11d   :  { %8132 = vmatpush3.bf16.msra.mxu1 %v9125_v17  ;;  %8111 = vmatprep.subr.bf16.mxu0 %v9126_v23  ;;  %v9170_v23 = vld [vmem:[%s11744_s26 + $0x978] sm:$0xff]  }
 0x11e   :  { %v7809_v16 = vpop.f32.mrb[4].mxu0  ;;  %8133 = vmatprep.subr.bf16.mxu1 %v9127_v25  ;;  %v9172_v25 = vld [vmem:[%s11744_s26 + $0x938] sm:$0xff]  }
 0x11f   :  { %v7831_v18 = vpop.f32.mrb[4].mxu1  ;;  %v7810_v19 = vpop.f32.mrb[5].mxu0 }
 0x120   :  { %v7832_v20 = vpop.f32.mrb[5].mxu1  ;;  %v7811_v21 = vadd.f32 %v7810_v19, %v7809_v16  ;;  %v7812_v24 = vpop.f32.mrb[6].mxu0  ;;  %8112 = vmatpush3.bf16.msra.mxu0 %v9128_v28  ;;  %v9166_v19 = vld [vmem:[%s11744_s26 + $0x970] sm:$0xff]   ;;  %v77_v28 = vld [vmem:[%s11745_s20 + $0x98] sm:$0xff] }
 0x121   :  { %v7833_v22 = vadd.f32 %v7832_v20, %v7831_v18  ;;  %v7834_v26 = vpop.f32.mrb[6].mxu1  ;;  %v7813_v29 = vpop.f32.mrb[7].mxu0  ;;  %8134 = vmatpush3.bf16.msra.mxu1 %v9129_v30  ;;  %8113 = vmatprep.subr.bf16.mxu0 %v9130_v33  ;;  %v9167_v20 = vld [vmem:[%s11744_s26 + $0x9f0] sm:$0xff]   ;;  %v9171_v24 = vld [vmem:[%s11744_s26 + $0x9f8] sm:$0xff]   ;;  %v7129_v33 = vcombine.high %v77_v28, %v77_v28 }
 0x122   :  { %v5076_v27 = vadd.f32 %v7811_v21, %v10402_v46  ;;  %v7835_v31 = vpop.f32.mrb[7].mxu1  ;;  %8135 = vmatprep.subr.bf16.mxu1 %v9131_v34  ;;  %v7125_v46 = vcombine.high %v75_v42, %v75_v42  ;;  %v9168_v21 = vld [vmem:[%s11744_s26 + $0x930] sm:$0xff]   ;;  %v9173_v26 = vld [vmem:[%s11744_s26 + $0x9b8] sm:$0xff]   ;;  %v9179_v34 = vld [vmem:[%s11744_s26 + $0xac0] sm:$0xff]  }
 0x123   :  { %v7128_v31 = vcombine.low %v77_v28, %v77_v28  ;;  %v9187_v42 = vld [vmem:[%s11744_s26 + $0xad0] sm:$0xff]  }
 0x124   :  { %v10507_v32 = vadd.f32 %v7833_v22, %v5076_v27  ;;  %8114 = vmatpush3.bf16.msra.mxu0 %v9132_v35  ;;  %5673 = vmatprep.mubr.bf16.mxu1 %v7125_v46  ;;  %v9169_v22 = vld [vmem:[%s11744_s26 + $0x9b0] sm:$0xff]   ;;  %v9180_v35 = vld [vmem:[%s11744_s26 + $0xa00] sm:$0xff]   ;;  %v9191_v46 = vld [vmem:[%s11744_s26 + $0xad8] sm:$0xff]  }
 0x125   :  { %8136 = vmatpush3.bf16.msra.mxu1 %v9133_v36  ;;  %8115 = vmatprep.subr.bf16.mxu0 %v9134_v37  ;;  %v76_v27 = vld [vmem:[%s11745_s20 + $0x90] sm:$0xff]  ;;  %v9181_v36 = vld [vmem:[%s11744_s26 + $0xa80] sm:$0xff]   ;;  %v9182_v37 = vld [vmem:[%s11744_s26 + $0xa48] sm:$0xff]  }
 0x126   :  { %8137 = vmatprep.subr.bf16.mxu1 %v9135_v38  ;;  %v7126_v29 = vcombine.low %v76_v27, %v76_v27  ;;  %v7127_v30 = vcombine.high %v76_v27, %v76_v27  ;;  %v9183_v38 = vld [vmem:[%s11744_s26 + $0xac8] sm:$0xff]   ;;  %v9222_v27 = vld [vmem:[%s11744_s26 + $0xb50] sm:$0xff]  }
 0x127   :  { %v9223_v28 = vld [vmem:[%s11744_s26 + $0xbd0] sm:$0xff]  }
 0x128   :  { %8116 = vmatpush3.bf16.msra.mxu0 %v9136_v39  ;;  %v9184_v39 = vld [vmem:[%s11744_s26 + $0xa08] sm:$0xff]  }
 0x129   :  { %8138 = vmatpush3.bf16.msra.mxu1 %v9137_v40  ;;  %8145 = vmatprep.subr.bf16.mxu0 %v9142_v47  ;;  %v9185_v40 = vld [vmem:[%s11744_s26 + $0xa88] sm:$0xff]   ;;  %v9192_v47 = vld [vmem:[%s11744_s26 + $0xa18] sm:$0xff]  }
 0x12a   :  { %8167 = vmatprep.subr.bf16.mxu1 %v9143_v48  ;;  %v9193_v48 = vld [vmem:[%s11744_s26 + $0xa98] sm:$0xff]  }
 0x12b   :  { %5634 = vmatmul.mubr.bf16.vlgmr.msra.gmra.mrb[32].mxu0 %v7122_v43  ;;  %v9188_v43 = vld [vmem:[%s11744_s26 + $0xa10] sm:$0xff]  }
 0x12c   :  { %5674 = vmatmul.mubr.bf16.vlgmr.msra.gmra.mrb[32].mxu1 %v7124_v45  ;;  %8146 = vmatpush3.bf16.msra.mxu0 %v9144_v49  ;;  %v9190_v45 = vld [vmem:[%s11744_s26 + $0xa58] sm:$0xff]   ;;  %v9194_v49 = vld [vmem:[%s11744_s26 + $0xa60] sm:$0xff]  }
 0x12d   :  { %8168 = vmatpush3.bf16.msra.mxu1 %v9145_v50  ;;  %8147 = vmatprep.subr.bf16.mxu0 %v9146_v51  ;;  %v9195_v50 = vld [vmem:[%s11744_s26 + $0xae0] sm:$0xff]  }
 0x12e   :  { %8169 = vmatprep.subr.bf16.mxu1 %v9147_v52  ;;  %5713 = vmatprep.mubr.bf16.mxu0 %v7127_v30  ;;  %v9196_v52 = vld [vmem:[%s11744_s26 + $0xa20] sm:$0xff]   ;;  %v9225_v30 = vld [vmem:[%s11744_s26 + $0xb90] sm:$0xff]  }
 0x12f   :  { %5753 = vmatprep.mubr.bf16.mxu1 %v7129_v33  ;;  %v9228_v33 = vld [vmem:[%s11744_s26 + $0xb18] sm:$0xff]  }
 0x130   :  { %8148 = vmatpush3.bf16.msra.mxu0 %v9148_v53 }
 0x131   :  { %8170 = vmatpush3.bf16.msra.mxu1 %v9149_v54  ;;  %8149 = vmatprep.subr.bf16.mxu0 %v9150_v55  ;;  %v9197_v54 = vld [vmem:[%s11744_s26 + $0xaa0] sm:$0xff]  }
 0x132   :  { %8171 = vmatprep.subr.bf16.mxu1 %v9151_v56 }
 0x134   :  { %8150 = vmatpush3.bf16.msra.mxu0 %v9152_v57  ;;  %v9198_v57 = vld [vmem:[%s11744_s26 + $0xa68] sm:$0xff]  }
 0x135   :  { %8172 = vmatpush3.bf16.msra.mxu1 %v9153_v58  ;;  %8151 = vmatprep.subr.bf16.mxu0 %v9154_v59 }
 0x136   :  { %8173 = vmatprep.subr.bf16.mxu1 %v9155_v60  ;;  %v9199_v60 = vld [vmem:[%s11744_s26 + $0xae8] sm:$0xff]  }
 0x138   :  { %8152 = vmatpush3.bf16.msra.mxu0 %v9156_v61 }
 0x139   :  { %8174 = vmatpush3.bf16.msra.mxu1 %v9157_v62  ;;  %8153 = vmatprep.subr.bf16.mxu0 %v9158_v63  ;;  %v9200_v63 = vld [vmem:[%s11744_s26 + $0xa28] sm:$0xff]  }
 0x13a   :  { %8175 = vmatprep.subr.bf16.mxu1 %v9159_v0 }
 0x13c   :  { %8154 = vmatpush3.bf16.msra.mxu0 %v9160_v2 }
 0x13d   :  { %8176 = vmatpush3.bf16.msra.mxu1 %v9161_v4  ;;  %8155 = vmatprep.subr.bf16.mxu0 %v9162_v8  ;;  %v9202_v4 = vld [vmem:[%s11744_s26 + $0xa70] sm:$0xff]  }
 0x13e   :  { %v7853_v1 = vpop.f32.mrb[8].mxu0  ;;  %8177 = vmatprep.subr.bf16.mxu1 %v9163_v10  ;;  %v9205_v8 = vld [vmem:[%s11744_s26 + $0xab0] sm:$0xff]   ;;  %v9207_v10 = vld [vmem:[%s11744_s26 + $0xaf8] sm:$0xff]  }
 0x13f   :  { %v7875_v3 = vpop.f32.mrb[8].mxu1  ;;  %v7854_v5 = vpop.f32.mrb[9].mxu0 }
 0x140   :  { %v7855_v6 = vadd.f32 %v7854_v5, %v7853_v1  ;;  %v7876_v7 = vpop.f32.mrb[9].mxu1  ;;  %v7856_v11 = vpop.f32.mrb[10].mxu0  ;;  %8156 = vmatpush3.bf16.msra.mxu0 %v9164_v14  ;;  %v9201_v1 = vld [vmem:[%s11744_s26 + $0xaa8] sm:$0xff]  }
 0x141   :  { %v7877_v9 = vadd.f32 %v7876_v7, %v7875_v3  ;;  %v7878_v13 = vpop.f32.mrb[10].mxu1  ;;  %v7857_v16 = vpop.f32.mrb[11].mxu0  ;;  %8178 = vmatpush3.bf16.msra.mxu1 %v9165_v15  ;;  %8157 = vmatprep.subr.bf16.mxu0 %v9166_v19  ;;  %v9204_v7 = vld [vmem:[%s11744_s26 + $0xa30] sm:$0xff]   ;;  %v9208_v11 = vld [vmem:[%s11744_s26 + $0xa38] sm:$0xff]   ;;  %v9214_v19 = vld [vmem:[%s11744_s26 + $0xb40] sm:$0xff]  }
 0x142   :  { %v5156_v12 = vadd.f32 %v7855_v6, %v10507_v32  ;;  %v7879_v18 = vpop.f32.mrb[11].mxu1  ;;  %8179 = vmatprep.subr.bf16.mxu1 %v9167_v20  ;;  %v9178_v32 = vld [vmem:[%s11744_s26 + $0xa40] sm:$0xff]   ;;  %v9203_v6 = vld [vmem:[%s11744_s26 + $0xaf0] sm:$0xff]   ;;  %v79_v16 = vld [vmem:[%s11745_s20 + $0xa8] sm:$0xff] }
 0x143   :  { %v78_v13 = vld [vmem:[%s11745_s20 + $0xa0] sm:$0xff]  ;;  %v7133_v18 = vcombine.high %v79_v16, %v79_v16 }
 0x144   :  { %v10612_v17 = vadd.f32 %v7877_v9, %v5156_v12  ;;  %8158 = vmatpush3.bf16.msra.mxu0 %v9168_v21  ;;  %v9206_v9 = vld [vmem:[%s11744_s26 + $0xa78] sm:$0xff]   ;;  %v7130_v14 = vcombine.low %v78_v13, %v78_v13  ;;  %v7131_v15 = vcombine.high %v78_v13, %v78_v13  ;;  %v9215_v20 = vld [vmem:[%s11744_s26 + $0xbc0] sm:$0xff]   ;;  %v9258_v13 = vld [vmem:[%s11744_s26 + $0xc50] sm:$0xff]  }
 0x145   :  { %8180 = vmatpush3.bf16.msra.mxu1 %v9169_v22  ;;  %8159 = vmatprep.subr.bf16.mxu0 %v9170_v23  ;;  %v9209_v12 = vld [vmem:[%s11744_s26 + $0xab8] sm:$0xff]   ;;  %v9216_v21 = vld [vmem:[%s11744_s26 + $0xb00] sm:$0xff]   ;;  %v9218_v23 = vld [vmem:[%s11744_s26 + $0xb48] sm:$0xff]  }
 0x146   :  { %8181 = vmatprep.subr.bf16.mxu1 %v9171_v24  ;;  %v9217_v22 = vld [vmem:[%s11744_s26 + $0xb80] sm:$0xff]   ;;  %v9219_v24 = vld [vmem:[%s11744_s26 + $0xbc8] sm:$0xff]  }
 0x148   :  { %8160 = vmatpush3.bf16.msra.mxu0 %v9172_v25  ;;  %v9220_v25 = vld [vmem:[%s11744_s26 + $0xb08] sm:$0xff]  }
 0x149   :  { %8182 = vmatpush3.bf16.msra.mxu1 %v9173_v26  ;;  %8189 = vmatprep.subr.bf16.mxu0 %v9178_v32  ;;  %v9221_v26 = vld [vmem:[%s11744_s26 + $0xb88] sm:$0xff]   ;;  %v9227_v32 = vld [vmem:[%s11744_s26 + $0xbd8] sm:$0xff]  }
 0x14a   :  { %8211 = vmatprep.subr.bf16.mxu1 %v9179_v34  ;;  %v9229_v34 = vld [vmem:[%s11744_s26 + $0xb98] sm:$0xff]  }
 0x14b   :  { %5714 = vmatmul.mubr.bf16.vlgmr.msra.gmra.mrb[36].mxu0 %v7126_v29  ;;  %v9224_v29 = vld [vmem:[%s11744_s26 + $0xb10] sm:$0xff]  }
 0x14c   :  { %5754 = vmatmul.mubr.bf16.vlgmr.msra.gmra.mrb[36].mxu1 %v7128_v31  ;;  %8190 = vmatpush3.bf16.msra.mxu0 %v9180_v35  ;;  %v9226_v31 = vld [vmem:[%s11744_s26 + $0xb58] sm:$0xff]   ;;  %v9230_v35 = vld [vmem:[%s11744_s26 + $0xb60] sm:$0xff]  }
 0x14d   :  { %8212 = vmatpush3.bf16.msra.mxu1 %v9181_v36  ;;  %8191 = vmatprep.subr.bf16.mxu0 %v9182_v37  ;;  %v9231_v36 = vld [vmem:[%s11744_s26 + $0xbe0] sm:$0xff]  }
 0x14e   :  { %8213 = vmatprep.subr.bf16.mxu1 %v9183_v38  ;;  %5793 = vmatprep.mubr.bf16.mxu0 %v7131_v15  ;;  %v9232_v38 = vld [vmem:[%s11744_s26 + $0xb20] sm:$0xff]   ;;  %v9260_v15 = vld [vmem:[%s11744_s26 + $0xc10] sm:$0xff]  }
 0x14f   :  { %5833 = vmatprep.mubr.bf16.mxu1 %v7133_v18  ;;  %v9263_v18 = vld [vmem:[%s11744_s26 + $0xcd8] sm:$0xff]  }
 0x150   :  { %8192 = vmatpush3.bf16.msra.mxu0 %v9184_v39 }
 0x151   :  { %8214 = vmatpush3.bf16.msra.mxu1 %v9185_v40  ;;  %8193 = vmatprep.subr.bf16.mxu0 %v9186_v41  ;;  %v9233_v40 = vld [vmem:[%s11744_s26 + $0xba0] sm:$0xff]  }
 0x152   :  { %8215 = vmatprep.subr.bf16.mxu1 %v9187_v42 }
 0x154   :  { %8194 = vmatpush3.bf16.msra.mxu0 %v9188_v43  ;;  %v9234_v43 = vld [vmem:[%s11744_s26 + $0xb68] sm:$0xff]  }
 0x155   :  { %8216 = vmatpush3.bf16.msra.mxu1 %v9189_v44  ;;  %8195 = vmatprep.subr.bf16.mxu0 %v9190_v45 }
 0x156   :  { %8217 = vmatprep.subr.bf16.mxu1 %v9191_v46  ;;  %v9235_v46 = vld [vmem:[%s11744_s26 + $0xbe8] sm:$0xff]  }
 0x158   :  { %8196 = vmatpush3.bf16.msra.mxu0 %v9192_v47 }
 0x159   :  { %8218 = vmatpush3.bf16.msra.mxu1 %v9193_v48  ;;  %8197 = vmatprep.subr.bf16.mxu0 %v9194_v49  ;;  %v9236_v49 = vld [vmem:[%s11744_s26 + $0xb28] sm:$0xff]  }
 0x15a   :  { %8219 = vmatprep.subr.bf16.mxu1 %v9195_v50 }
 0x15c   :  { %8198 = vmatpush3.bf16.msra.mxu0 %v9196_v52 }
 0x15d   :  { %8220 = vmatpush3.bf16.msra.mxu1 %v9197_v54  ;;  %8199 = vmatprep.subr.bf16.mxu0 %v9198_v57  ;;  %v9238_v54 = vld [vmem:[%s11744_s26 + $0xb70] sm:$0xff]  }
 0x15e   :  { %v7897_v51 = vpop.f32.mrb[12].mxu0  ;;  %8221 = vmatprep.subr.bf16.mxu1 %v9199_v60  ;;  %v9240_v57 = vld [vmem:[%s11744_s26 + $0xb30] sm:$0xff]   ;;  %v9243_v60 = vld [vmem:[%s11744_s26 + $0xbf8] sm:$0xff]  }
 0x15f   :  { %v7919_v53 = vpop.f32.mrb[12].mxu1  ;;  %v7898_v55 = vpop.f32.mrb[13].mxu0 }
 0x160   :  { %v7920_v56 = vpop.f32.mrb[13].mxu1  ;;  %v7899_v58 = vadd.f32 %v7898_v55, %v7897_v51  ;;  %v7900_v61 = vpop.f32.mrb[14].mxu0  ;;  %8200 = vmatpush3.bf16.msra.mxu0 %v9200_v63  ;;  %v9237_v51 = vld [vmem:[%s11744_s26 + $0xba8] sm:$0xff]   ;;  %v80_v63 = vld [vmem:[%s11745_s20 + $0xb0] sm:$0xff] }
 0x161   :  { %v7921_v59 = vadd.f32 %v7920_v56, %v7919_v53  ;;  %v7922_v62 = vpop.f32.mrb[14].mxu1  ;;  %v7901_v2 = vpop.f32.mrb[15].mxu0  ;;  %8222 = vmatpush3.bf16.msra.mxu1 %v9201_v1  ;;  %8201 = vmatprep.subr.bf16.mxu0 %v9202_v4  ;;  %v9239_v56 = vld [vmem:[%s11744_s26 + $0xbf0] sm:$0xff]   ;;  %v9244_v61 = vld [vmem:[%s11744_s26 + $0xb38] sm:$0xff]   ;;  %v7134_v1 = vcombine.low %v80_v63, %v80_v63 }
 0x162   :  { %v5236_v0 = vadd.f32 %v7899_v58, %v10612_v17  ;;  %v7923_v3 = vpop.f32.mrb[15].mxu1  ;;  %8223 = vmatprep.subr.bf16.mxu1 %v9203_v6  ;;  %v7132_v17 = vcombine.low %v79_v16, %v79_v16  ;;  %v9241_v58 = vld [vmem:[%s11744_s26 + $0xbb0] sm:$0xff]   ;;  %v9245_v62 = vld [vmem:[%s11744_s26 + $0xbb8] sm:$0xff]   ;;  %v7135_v2 = vcombine.high %v80_v63, %v80_v63  ;;  %v9251_v6 = vld [vmem:[%s11744_s26 + $0xcc0] sm:$0xff]  }
 0x163   :  { %v9261_v16 = vld [vmem:[%s11744_s26 + $0xc90] sm:$0xff]  }
 0x164   :  { %v10720_v5 = vadd.f32 %v7921_v59, %v5236_v0  ;;  %8202 = vmatpush3.bf16.msra.mxu0 %v9204_v7  ;;  %v9242_v59 = vld [vmem:[%s11744_s26 + $0xb78] sm:$0xff]   ;;  %v9252_v7 = vld [vmem:[%s11744_s26 + $0xc00] sm:$0xff]   ;;  %v9294_v63 = vld [vmem:[%s11744_s26 + $0xd50] sm:$0xff]  }
 0x165   :  { %8224 = vmatpush3.bf16.msra.mxu1 %v9205_v8  ;;  %8203 = vmatprep.subr.bf16.mxu0 %v9206_v9  ;;  %v81_v0 = vld [vmem:[%s11745_s20 + $0xb8] sm:$0xff]  ;;  %v9253_v8 = vld [vmem:[%s11744_s26 + $0xc80] sm:$0xff]   ;;  %v9254_v9 = vld [vmem:[%s11744_s26 + $0xc48] sm:$0xff]  }
 0x166   :  { %8225 = vmatprep.subr.bf16.mxu1 %v9207_v10  ;;  %v7136_v3 = vcombine.low %v81_v0, %v81_v0  ;;  %v7137_v4 = vcombine.high %v81_v0, %v81_v0  ;;  %v9255_v10 = vld [vmem:[%s11744_s26 + $0xcc8] sm:$0xff]   ;;  %v9295_v0 = vld [vmem:[%s11744_s26 + $0xdd0] sm:$0xff]  }
 0x168   :  { %8204 = vmatpush3.bf16.msra.mxu0 %v9208_v11  ;;  %v9256_v11 = vld [vmem:[%s11744_s26 + $0xc08] sm:$0xff]  }
 0x169   :  { %8226 = vmatpush3.bf16.msra.mxu1 %v9209_v12  ;;  %8233 = vmatprep.subr.bf16.mxu0 %v9214_v19  ;;  %v9257_v12 = vld [vmem:[%s11744_s26 + $0xc88] sm:$0xff]   ;;  %v9264_v19 = vld [vmem:[%s11744_s26 + $0xc18] sm:$0xff]  }
 0x16a   :  { %8255 = vmatprep.subr.bf16.mxu1 %v9215_v20  ;;  %v9265_v20 = vld [vmem:[%s11744_s26 + $0xc98] sm:$0xff]  }
 0x16b   :  { %5794 = vmatmul.mubr.bf16.vlgmr.msra.gmra.mrb[40].mxu0 %v7130_v14  ;;  %v9259_v14 = vld [vmem:[%s11744_s26 + $0xcd0] sm:$0xff]  }
 0x16c   :  { %5834 = vmatmul.mubr.bf16.vlgmr.msra.gmra.mrb[40].mxu1 %v7132_v17  ;;  %8234 = vmatpush3.bf16.msra.mxu0 %v9216_v21  ;;  %v9262_v17 = vld [vmem:[%s11744_s26 + $0xc58] sm:$0xff]   ;;  %v9266_v21 = vld [vmem:[%s11744_s26 + $0xc60] sm:$0xff]  }
 0x16d   :  { %8256 = vmatpush3.bf16.msra.mxu1 %v9217_v22  ;;  %8235 = vmatprep.subr.bf16.mxu0 %v9218_v23  ;;  %v9267_v22 = vld [vmem:[%s11744_s26 + $0xce0] sm:$0xff]  }
 0x16e   :  { %8257 = vmatprep.subr.bf16.mxu1 %v9219_v24  ;;  %5873 = vmatprep.mubr.bf16.mxu0 %v7135_v2  ;;  %v9268_v24 = vld [vmem:[%s11744_s26 + $0xc20] sm:$0xff]   ;;  %v9297_v2 = vld [vmem:[%s11744_s26 + $0xd90] sm:$0xff]  }
 0x16f   :  { %5913 = vmatprep.mubr.bf16.mxu1 %v7137_v4  ;;  %v9299_v4 = vld [vmem:[%s11744_s26 + $0xdd8] sm:$0xff]  }
 0x170   :  { %8236 = vmatpush3.bf16.msra.mxu0 %v9220_v25 }
 0x171   :  { %8258 = vmatpush3.bf16.msra.mxu1 %v9221_v26  ;;  %8237 = vmatprep.subr.bf16.mxu0 %v9222_v27  ;;  %v9269_v26 = vld [vmem:[%s11744_s26 + $0xca0] sm:$0xff]  }
 0x172   :  { %8259 = vmatprep.subr.bf16.mxu1 %v9223_v28 }
 0x174   :  { %8238 = vmatpush3.bf16.msra.mxu0 %v9224_v29 }
 0x175   :  { %8260 = vmatpush3.bf16.msra.mxu1 %v9225_v30  ;;  %8239 = vmatprep.subr.bf16.mxu0 %v9226_v31  ;;  %v9270_v30 = vld [vmem:[%s11744_s26 + $0xc68] sm:$0xff]  }
 0x176   :  { %8261 = vmatprep.subr.bf16.mxu1 %v9227_v32  ;;  %v9271_v32 = vld [vmem:[%s11744_s26 + $0xce8] sm:$0xff]  }
 0x178   :  { %8240 = vmatpush3.bf16.msra.mxu0 %v9228_v33 }
 0x179   :  { %8262 = vmatpush3.bf16.msra.mxu1 %v9229_v34  ;;  %8241 = vmatprep.subr.bf16.mxu0 %v9230_v35 }
 0x17a   :  { %8263 = vmatprep.subr.bf16.mxu1 %v9231_v36  ;;  %v9272_v36 = vld [vmem:[%s11744_s26 + $0xc28] sm:$0xff]  }
 0x17c   :  { %8242 = vmatpush3.bf16.msra.mxu0 %v9232_v38 }
 0x17d   :  { %8264 = vmatpush3.bf16.msra.mxu1 %v9233_v40  ;;  %8243 = vmatprep.subr.bf16.mxu0 %v9234_v43  ;;  %v9276_v43 = vld [vmem:[%s11744_s26 + $0xc30] sm:$0xff]  }
 0x17e   :  { %v7941_v37 = vpop.f32.mrb[16].mxu0  ;;  %8265 = vmatprep.subr.bf16.mxu1 %v9235_v46  ;;  %v9279_v46 = vld [vmem:[%s11744_s26 + $0xcf8] sm:$0xff]  }
 0x17f   :  { %v7963_v39 = vpop.f32.mrb[16].mxu1  ;;  %v7942_v41 = vpop.f32.mrb[17].mxu0 }
 0x180   :  { %v7964_v42 = vpop.f32.mrb[17].mxu1  ;;  %v7943_v44 = vadd.f32 %v7942_v41, %v7941_v37  ;;  %v7944_v47 = vpop.f32.mrb[18].mxu0  ;;  %8244 = vmatpush3.bf16.msra.mxu0 %v9236_v49  ;;  %v9273_v37 = vld [vmem:[%s11744_s26 + $0xca8] sm:$0xff]   ;;  %v9274_v41 = vld [vmem:[%s11744_s26 + $0xc70] sm:$0xff]   ;;  %v82_v49 = vld [vmem:[%s11745_s20 + $0xc0] sm:$0xff] }
 0x181   :  { %v7965_v45 = vadd.f32 %v7964_v42, %v7963_v39  ;;  %v7966_v48 = vpop.f32.mrb[18].mxu1  ;;  %v7945_v52 = vpop.f32.mrb[19].mxu0  ;;  %8266 = vmatpush3.bf16.msra.mxu1 %v9237_v51  ;;  %8245 = vmatprep.subr.bf16.mxu0 %v9238_v54  ;;  %v9275_v42 = vld [vmem:[%s11744_s26 + $0xcf0] sm:$0xff]   ;;  %v9280_v47 = vld [vmem:[%s11744_s26 + $0xc38] sm:$0xff]   ;;  %v7138_v51 = vcombine.low %v82_v49, %v82_v49  ;;  %v9286_v54 = vld [vmem:[%s11744_s26 + $0xd40] sm:$0xff]  }
 0x182   :  { %v5316_v50 = vadd.f32 %v7943_v44, %v10720_v5  ;;  %v7967_v53 = vpop.f32.mrb[19].mxu1  ;;  %8267 = vmatprep.subr.bf16.mxu1 %v9239_v56  ;;  %v9250_v5 = vld [vmem:[%s11744_s26 + $0xc40] sm:$0xff]   ;;  %v9277_v44 = vld [vmem:[%s11744_s26 + $0xcb0] sm:$0xff]   ;;  %v9281_v48 = vld [vmem:[%s11744_s26 + $0xcb8] sm:$0xff]   ;;  %v7139_v52 = vcombine.high %v82_v49, %v82_v49 }
 0x183   :  { %v9287_v56 = vld [vmem:[%s11744_s26 + $0xdc0] sm:$0xff]   ;;  %v9330_v49 = vld [vmem:[%s11744_s26 + $0xe50] sm:$0xff]  }
 0x184   :  { %v10825_v55 = vadd.f32 %v7965_v45, %v5316_v50  ;;  %8246 = vmatpush3.bf16.msra.mxu0 %v9240_v57  ;;  %v9278_v45 = vld [vmem:[%s11744_s26 + $0xc78] sm:$0xff]   ;;  %v83_v50 = vld [vmem:[%s11745_s20 + $0xc8] sm:$0xff]  ;;  %v9288_v57 = vld [vmem:[%s11744_s26 + $0xd00] sm:$0xff]  }
 0x185   :  { %8268 = vmatpush3.bf16.msra.mxu1 %v9241_v58  ;;  %8247 = vmatprep.subr.bf16.mxu0 %v9242_v59  ;;  %v7140_v53 = vcombine.low %v83_v50, %v83_v50  ;;  %v9289_v58 = vld [vmem:[%s11744_s26 + $0xd80] sm:$0xff]   ;;  %v9290_v59 = vld [vmem:[%s11744_s26 + $0xd48] sm:$0xff]  }
 0x186   :  { %8269 = vmatprep.subr.bf16.mxu1 %v9243_v60  ;;  %v9291_v60 = vld [vmem:[%s11744_s26 + $0xdc8] sm:$0xff]  }
 0x188   :  { %8248 = vmatpush3.bf16.msra.mxu0 %v9244_v61  ;;  %v9292_v61 = vld [vmem:[%s11744_s26 + $0xd08] sm:$0xff]  }
 0x189   :  { %8270 = vmatpush3.bf16.msra.mxu1 %v9245_v62  ;;  %8277 = vmatprep.subr.bf16.mxu0 %v9250_v5  ;;  %v9293_v62 = vld [vmem:[%s11744_s26 + $0xd88] sm:$0xff]   ;;  %v9300_v5 = vld [vmem:[%s11744_s26 + $0xd18] sm:$0xff]  }
 0x18a   :  { %8299 = vmatprep.subr.bf16.mxu1 %v9251_v6  ;;  %v9301_v6 = vld [vmem:[%s11744_s26 + $0xd98] sm:$0xff]  }
 0x18b   :  { %5874 = vmatmul.mubr.bf16.vlgmr.msra.gmra.mrb[44].mxu0 %v7134_v1  ;;  %v9296_v1 = vld [vmem:[%s11744_s26 + $0xd10] sm:$0xff]  }
 0x18c   :  { %5914 = vmatmul.mubr.bf16.vlgmr.msra.gmra.mrb[44].mxu1 %v7136_v3  ;;  %8278 = vmatpush3.bf16.msra.mxu0 %v9252_v7  ;;  %v9298_v3 = vld [vmem:[%s11744_s26 + $0xd58] sm:$0xff]   ;;  %v9302_v7 = vld [vmem:[%s11744_s26 + $0xd60] sm:$0xff]  }
 0x18d   :  { %8300 = vmatpush3.bf16.msra.mxu1 %v9253_v8  ;;  %8279 = vmatprep.subr.bf16.mxu0 %v9254_v9  ;;  %v9303_v8 = vld [vmem:[%s11744_s26 + $0xde0] sm:$0xff]  }
 0x18e   :  { %8301 = vmatprep.subr.bf16.mxu1 %v9255_v10  ;;  %5953 = vmatprep.mubr.bf16.mxu0 %v7139_v52  ;;  %v9304_v10 = vld [vmem:[%s11744_s26 + $0xd20] sm:$0xff]   ;;  %v9333_v52 = vld [vmem:[%s11744_s26 + $0xe90] sm:$0xff]  }
 0x190   :  { %8280 = vmatpush3.bf16.msra.mxu0 %v9256_v11 }
 0x191   :  { %8302 = vmatpush3.bf16.msra.mxu1 %v9257_v12  ;;  %8281 = vmatprep.subr.bf16.mxu0 %v9258_v13  ;;  %v9305_v12 = vld [vmem:[%s11744_s26 + $0xda0] sm:$0xff]  }
 0x192   :  { %8303 = vmatprep.subr.bf16.mxu1 %v9259_v14 }
 0x194   :  { %8282 = vmatpush3.bf16.msra.mxu0 %v9260_v15  ;;  %v9306_v15 = vld [vmem:[%s11744_s26 + $0xd68] sm:$0xff]  }
 0x195   :  { %8304 = vmatpush3.bf16.msra.mxu1 %v9261_v16  ;;  %8283 = vmatprep.subr.bf16.mxu0 %v9262_v17 }
 0x196   :  { %8305 = vmatprep.subr.bf16.mxu1 %v9263_v18  ;;  %v9307_v18 = vld [vmem:[%s11744_s26 + $0xde8] sm:$0xff]  }
 0x198   :  { %8284 = vmatpush3.bf16.msra.mxu0 %v9264_v19 }
 0x199   :  { %8306 = vmatpush3.bf16.msra.mxu1 %v9265_v20  ;;  %8285 = vmatprep.subr.bf16.mxu0 %v9266_v21  ;;  %v9308_v21 = vld [vmem:[%s11744_s26 + $0xd28] sm:$0xff]  }
 0x19a   :  { %8307 = vmatprep.subr.bf16.mxu1 %v9267_v22 }
 0x19c   :  { %8286 = vmatpush3.bf16.msra.mxu0 %v9268_v24 }
 0x19d   :  { %8308 = vmatpush3.bf16.msra.mxu1 %v9269_v26  ;;  %8287 = vmatprep.subr.bf16.mxu0 %v9270_v30  ;;  %v9310_v26 = vld [vmem:[%s11744_s26 + $0xd70] sm:$0xff]  }
 0x19e   :  { %v7985_v23 = vpop.f32.mrb[20].mxu0  ;;  %8309 = vmatprep.subr.bf16.mxu1 %v9271_v32  ;;  %v9313_v30 = vld [vmem:[%s11744_s26 + $0xdb0] sm:$0xff]   ;;  %v9315_v32 = vld [vmem:[%s11744_s26 + $0xdf8] sm:$0xff]  }
 0x19f   :  { %v8007_v25 = vpop.f32.mrb[20].mxu1  ;;  %v7986_v27 = vpop.f32.mrb[21].mxu0 }
 0x1a0   :  { %v7987_v28 = vadd.f32 %v7986_v27, %v7985_v23  ;;  %v8008_v29 = vpop.f32.mrb[21].mxu1  ;;  %v7988_v33 = vpop.f32.mrb[22].mxu0  ;;  %8288 = vmatpush3.bf16.msra.mxu0 %v9272_v36  ;;  %v9309_v23 = vld [vmem:[%s11744_s26 + $0xda8] sm:$0xff]  }
 0x1a1   :  { %v8009_v31 = vadd.f32 %v8008_v29, %v8007_v25  ;;  %v8010_v35 = vpop.f32.mrb[22].mxu1  ;;  %v7989_v38 = vpop.f32.mrb[23].mxu0  ;;  %8310 = vmatpush3.bf16.msra.mxu1 %v9273_v37  ;;  %8289 = vmatprep.subr.bf16.mxu0 %v9274_v41  ;;  %v9312_v29 = vld [vmem:[%s11744_s26 + $0xd30] sm:$0xff]   ;;  %v9316_v33 = vld [vmem:[%s11744_s26 + $0xd38] sm:$0xff]   ;;  %v9322_v41 = vld [vmem:[%s11744_s26 + $0xe40] sm:$0xff]  }
 0x1a2   :  { %v5396_v34 = vadd.f32 %v7987_v28, %v10825_v55  ;;  %v8011_v40 = vpop.f32.mrb[23].mxu1  ;;  %8311 = vmatprep.subr.bf16.mxu1 %v9275_v42  ;;  %v7141_v55 = vcombine.high %v83_v50, %v83_v50  ;;  %v9311_v28 = vld [vmem:[%s11744_s26 + $0xdf0] sm:$0xff]   ;;  %v85_v38 = vld [vmem:[%s11745_s20 + $0xd8] sm:$0xff]  ;;  %v9323_v42 = vld [vmem:[%s11744_s26 + $0xec0] sm:$0xff]  }
 0x1a3   :  { %v84_v35 = vld [vmem:[%s11745_s20 + $0xd0] sm:$0xff]  ;;  %v7145_v40 = vcombine.high %v85_v38, %v85_v38 }
 0x1a4   :  { %v10927_v39 = vadd.f32 %v8009_v31, %v5396_v34  ;;  %8290 = vmatpush3.bf16.msra.mxu0 %v9276_v43  ;;  %5993 = vmatprep.mubr.bf16.mxu1 %v7141_v55  ;;  %v9314_v31 = vld [vmem:[%s11744_s26 + $0xd78] sm:$0xff]   ;;  %v7142_v36 = vcombine.low %v84_v35, %v84_v35  ;;  %v7143_v37 = vcombine.high %v84_v35, %v84_v35  ;;  %v9324_v43 = vld [vmem:[%s11744_s26 + $0xe00] sm:$0xff]   ;;  %v9331_v50 = vld [vmem:[%s11744_s26 + $0xed0] sm:$0xff]  }
 0x1a5   :  { %8312 = vmatpush3.bf16.msra.mxu1 %v9277_v44  ;;  %8291 = vmatprep.subr.bf16.mxu0 %v9278_v45  ;;  %v9317_v34 = vld [vmem:[%s11744_s26 + $0xdb8] sm:$0xff]   ;;  %v9325_v44 = vld [vmem:[%s11744_s26 + $0xe80] sm:$0xff]   ;;  %v9326_v45 = vld [vmem:[%s11744_s26 + $0xe48] sm:$0xff]  }
 0x1a6   :  { %8313 = vmatprep.subr.bf16.mxu1 %v9279_v46  ;;  %v9327_v46 = vld [vmem:[%s11744_s26 + $0xec8] sm:$0xff]   ;;  %v9336_v55 = vld [vmem:[%s11744_s26 + $0xe18] sm:$0xff]   ;;  %v9366_v35 = vld [vmem:[%s11744_s26 + $0xf50] sm:$0xff]  }
 0x1a8   :  { %8292 = vmatpush3.bf16.msra.mxu0 %v9280_v47  ;;  %v9328_v47 = vld [vmem:[%s11744_s26 + $0xe08] sm:$0xff]  }
 0x1a9   :  { %8314 = vmatpush3.bf16.msra.mxu1 %v9281_v48  ;;  %8321 = vmatprep.subr.bf16.mxu0 %v9286_v54  ;;  %v9329_v48 = vld [vmem:[%s11744_s26 + $0xe88] sm:$0xff]   ;;  %v9335_v54 = vld [vmem:[%s11744_s26 + $0xed8] sm:$0xff]  }
 0x1aa   :  { %8343 = vmatprep.subr.bf16.mxu1 %v9287_v56  ;;  %v9337_v56 = vld [vmem:[%s11744_s26 + $0xe98] sm:$0xff]  }
 0x1ab   :  { %5954 = vmatmul.mubr.bf16.vlgmr.msra.gmra.mrb[48].mxu0 %v7138_v51  ;;  %v9332_v51 = vld [vmem:[%s11744_s26 + $0xe10] sm:$0xff]  }
 0x1ac   :  { %5994 = vmatmul.mubr.bf16.vlgmr.msra.gmra.mrb[48].mxu1 %v7140_v53  ;;  %8322 = vmatpush3.bf16.msra.mxu0 %v9288_v57  ;;  %v9334_v53 = vld [vmem:[%s11744_s26 + $0xe58] sm:$0xff]   ;;  %v9338_v57 = vld [vmem:[%s11744_s26 + $0xe60] sm:$0xff]  }
 0x1ad   :  { %8344 = vmatpush3.bf16.msra.mxu1 %v9289_v58  ;;  %8323 = vmatprep.subr.bf16.mxu0 %v9290_v59  ;;  %v9339_v58 = vld [vmem:[%s11744_s26 + $0xee0] sm:$0xff]  }
 0x1ae   :  { %8345 = vmatprep.subr.bf16.mxu1 %v9291_v60  ;;  %6033 = vmatprep.mubr.bf16.mxu0 %v7143_v37  ;;  %v9340_v60 = vld [vmem:[%s11744_s26 + $0xe20] sm:$0xff]   ;;  %v9368_v37 = vld [vmem:[%s11744_s26 + $0xf10] sm:$0xff]  }
 0x1af   :  { %6073 = vmatprep.mubr.bf16.mxu1 %v7145_v40  ;;  %v9371_v40 = vld [vmem:[%s11744_s26 + $0xfd8] sm:$0xff]  }
 0x1b0   :  { %8324 = vmatpush3.bf16.msra.mxu0 %v9292_v61 }
 0x1b1   :  { %8346 = vmatpush3.bf16.msra.mxu1 %v9293_v62  ;;  %8325 = vmatprep.subr.bf16.mxu0 %v9294_v63  ;;  %v9341_v62 = vld [vmem:[%s11744_s26 + $0xea0] sm:$0xff]  }
 0x1b2   :  { %8347 = vmatprep.subr.bf16.mxu1 %v9295_v0 }
 0x1b4   :  { %8326 = vmatpush3.bf16.msra.mxu0 %v9296_v1  ;;  %v9342_v1 = vld [vmem:[%s11744_s26 + $0xe68] sm:$0xff]  }
 0x1b5   :  { %8348 = vmatpush3.bf16.msra.mxu1 %v9297_v2  ;;  %8327 = vmatprep.subr.bf16.mxu0 %v9298_v3 }
 0x1b6   :  { %8349 = vmatprep.subr.bf16.mxu1 %v9299_v4  ;;  %v9343_v4 = vld [vmem:[%s11744_s26 + $0xee8] sm:$0xff]  }
 0x1b8   :  { %8328 = vmatpush3.bf16.msra.mxu0 %v9300_v5 }
 0x1b9   :  { %8350 = vmatpush3.bf16.msra.mxu1 %v9301_v6  ;;  %8329 = vmatprep.subr.bf16.mxu0 %v9302_v7  ;;  %v9344_v7 = vld [vmem:[%s11744_s26 + $0xe28] sm:$0xff]  }
 0x1ba   :  { %8351 = vmatprep.subr.bf16.mxu1 %v9303_v8 }
 0x1bc   :  { %8330 = vmatpush3.bf16.msra.mxu0 %v9304_v10 }
 0x1bd   :  { %8352 = vmatpush3.bf16.msra.mxu1 %v9305_v12  ;;  %8331 = vmatprep.subr.bf16.mxu0 %v9306_v15  ;;  %v9346_v12 = vld [vmem:[%s11744_s26 + $0xe70] sm:$0xff]  }
 0x1be   :  { %v8029_v9 = vpop.f32.mrb[24].mxu0  ;;  %8353 = vmatprep.subr.bf16.mxu1 %v9307_v18  ;;  %v9348_v15 = vld [vmem:[%s11744_s26 + $0xe30] sm:$0xff]   ;;  %v9351_v18 = vld [vmem:[%s11744_s26 + $0xef8] sm:$0xff]  }
 0x1bf   :  { %v8051_v11 = vpop.f32.mrb[24].mxu1  ;;  %v8030_v13 = vpop.f32.mrb[25].mxu0 }
 0x1c0   :  { %v8052_v14 = vpop.f32.mrb[25].mxu1  ;;  %v8031_v16 = vadd.f32 %v8030_v13, %v8029_v9  ;;  %v8032_v19 = vpop.f32.mrb[26].mxu0  ;;  %8332 = vmatpush3.bf16.msra.mxu0 %v9308_v21  ;;  %v9345_v9 = vld [vmem:[%s11744_s26 + $0xea8] sm:$0xff]   ;;  %v86_v21 = vld [vmem:[%s11745_s20 + $0xe0] sm:$0xff] }
 0x1c1   :  { %v8053_v17 = vadd.f32 %v8052_v14, %v8051_v11  ;;  %v8054_v20 = vpop.f32.mrb[26].mxu1  ;;  %v8033_v24 = vpop.f32.mrb[27].mxu0  ;;  %8354 = vmatpush3.bf16.msra.mxu1 %v9309_v23  ;;  %8333 = vmatprep.subr.bf16.mxu0 %v9310_v26  ;;  %v9347_v14 = vld [vmem:[%s11744_s26 + $0xef0] sm:$0xff]   ;;  %v9352_v19 = vld [vmem:[%s11744_s26 + $0xe38] sm:$0xff]   ;;  %v7146_v23 = vcombine.low %v86_v21, %v86_v21 }
 0x1c2   :  { %v5476_v22 = vadd.f32 %v8031_v16, %v10927_v39  ;;  %v8055_v25 = vpop.f32.mrb[27].mxu1  ;;  %8355 = vmatprep.subr.bf16.mxu1 %v9311_v28  ;;  %v7144_v39 = vcombine.low %v85_v38, %v85_v38  ;;  %v9349_v16 = vld [vmem:[%s11744_s26 + $0xeb0] sm:$0xff]   ;;  %v9353_v20 = vld [vmem:[%s11744_s26 + $0xeb8] sm:$0xff]   ;;  %v7147_v24 = vcombine.high %v86_v21, %v86_v21  ;;  %v9359_v28 = vld [vmem:[%s11744_s26 + $0xfc0] sm:$0xff]  }
 0x1c3   :  { %v9369_v38 = vld [vmem:[%s11744_s26 + $0xf90] sm:$0xff]   ;;  %v9401_v21 = vld [vmem:[%s11744_s26 + $0x1088] sm:$0xff]  }
 0x1c4   :  { %v11035_v27 = vadd.f32 %v8053_v17, %v5476_v22  ;;  %8334 = vmatpush3.bf16.msra.mxu0 %v9312_v29  ;;  %v9350_v17 = vld [vmem:[%s11744_s26 + $0xe78] sm:$0xff]   ;;  %v87_v22 = vld [vmem:[%s11745_s20 + $0xe8] sm:$0xff]  ;;  %v9360_v29 = vld [vmem:[%s11744_s26 + $0xf00] sm:$0xff]  }
 0x1c5   :  { %8356 = vmatpush3.bf16.msra.mxu1 %v9313_v30  ;;  %8335 = vmatprep.subr.bf16.mxu0 %v9314_v31  ;;  %v7148_v25 = vcombine.low %v87_v22, %v87_v22  ;;  %v7149_v26 = vcombine.high %v87_v22, %v87_v22  ;;  %v9361_v30 = vld [vmem:[%s11744_s26 + $0xf80] sm:$0xff]   ;;  %v9362_v31 = vld [vmem:[%s11744_s26 + $0xf48] sm:$0xff]   ;;  %v9402_v22 = vld [vmem:[%s11744_s26 + $0x1050] sm:$0xff]  }
 0x1c6   :  { %8357 = vmatprep.subr.bf16.mxu1 %v9315_v32  ;;  %v9363_v32 = vld [vmem:[%s11744_s26 + $0xfc8] sm:$0xff]  }
 0x1c8   :  { %8336 = vmatpush3.bf16.msra.mxu0 %v9316_v33  ;;  %v9364_v33 = vld [vmem:[%s11744_s26 + $0xf08] sm:$0xff]  }
 0x1c9   :  { %8358 = vmatpush3.bf16.msra.mxu1 %v9317_v34  ;;  %8365 = vmatprep.subr.bf16.mxu0 %v9322_v41  ;;  %v9365_v34 = vld [vmem:[%s11744_s26 + $0xf88] sm:$0xff]   ;;  %v9372_v41 = vld [vmem:[%s11744_s26 + $0xf18] sm:$0xff]  }
 0x1ca   :  { %8387 = vmatprep.subr.bf16.mxu1 %v9323_v42  ;;  %v9373_v42 = vld [vmem:[%s11744_s26 + $0xf98] sm:$0xff]  }
 0x1cb   :  { %6034 = vmatmul.mubr.bf16.vlgmr.msra.gmra.mrb[52].mxu0 %v7142_v36  ;;  %v9367_v36 = vld [vmem:[%s11744_s26 + $0xfd0] sm:$0xff]  }
 0x1cc   :  { %6074 = vmatmul.mubr.bf16.vlgmr.msra.gmra.mrb[52].mxu1 %v7144_v39  ;;  %8366 = vmatpush3.bf16.msra.mxu0 %v9324_v43  ;;  %v9370_v39 = vld [vmem:[%s11744_s26 + $0xf58] sm:$0xff]   ;;  %v9374_v43 = vld [vmem:[%s11744_s26 + $0xf60] sm:$0xff]  }
 0x1cd   :  { %8388 = vmatpush3.bf16.msra.mxu1 %v9325_v44  ;;  %8367 = vmatprep.subr.bf16.mxu0 %v9326_v45  ;;  %v9375_v44 = vld [vmem:[%s11744_s26 + $0xfe0] sm:$0xff]  }
 0x1ce   :  { %8389 = vmatprep.subr.bf16.mxu1 %v9327_v46  ;;  %6113 = vmatprep.mubr.bf16.mxu0 %v7147_v24  ;;  %v9376_v45 = vld [vmem:[%s11744_s26 + $0xf20] sm:$0xff]   ;;  %v9404_v24 = vld [vmem:[%s11744_s26 + $0x1010] sm:$0xff]  }
 0x1cf   :  { %6153 = vmatprep.mubr.bf16.mxu1 %v7149_v26  ;;  %v9406_v26 = vld [vmem:[%s11744_s26 + $0x1058] sm:$0xff]  }
 0x1d0   :  { %8368 = vmatpush3.bf16.msra.mxu0 %v9328_v47  ;;  %v9377_v47 = vld [vmem:[%s11744_s26 + $0xfa0] sm:$0xff]  }
 0x1d1   :  { %8390 = vmatpush3.bf16.msra.mxu1 %v9329_v48  ;;  %8369 = vmatprep.subr.bf16.mxu0 %v9330_v49 }
 0x1d2   :  { %8391 = vmatprep.subr.bf16.mxu1 %v9331_v50 }
 0x1d4   :  { %8370 = vmatpush3.bf16.msra.mxu0 %v9332_v51 }
 0x1d5   :  { %8392 = vmatpush3.bf16.msra.mxu1 %v9333_v52  ;;  %8371 = vmatprep.subr.bf16.mxu0 %v9334_v53  ;;  %v9378_v53 = vld [vmem:[%s11744_s26 + $0xf68] sm:$0xff]  }
 0x1d6   :  { %8393 = vmatprep.subr.bf16.mxu1 %v9335_v54 }
 0x1d8   :  { %8372 = vmatpush3.bf16.msra.mxu0 %v9336_v55  ;;  %v9379_v55 = vld [vmem:[%s11744_s26 + $0xfe8] sm:$0xff]  }
 0x1d9   :  { %8394 = vmatpush3.bf16.msra.mxu1 %v9337_v56  ;;  %8373 = vmatprep.subr.bf16.mxu0 %v9338_v57 }
 0x1da   :  { %8395 = vmatprep.subr.bf16.mxu1 %v9339_v58  ;;  %v9380_v58 = vld [vmem:[%s11744_s26 + $0xf28] sm:$0xff]  }
 0x1dc   :  { %8374 = vmatpush3.bf16.msra.mxu0 %v9340_v60  ;;  %v9381_v60 = vld [vmem:[%s11744_s26 + $0xfa8] sm:$0xff]  }
 0x1dd   :  { %8396 = vmatpush3.bf16.msra.mxu1 %v9341_v62  ;;  %8375 = vmatprep.subr.bf16.mxu0 %v9342_v1  ;;  %v9384_v1 = vld [vmem:[%s11744_s26 + $0xf30] sm:$0xff]  }
 0x1de   :  { %v8073_v59 = vpop.f32.mrb[28].mxu0  ;;  %8397 = vmatprep.subr.bf16.mxu1 %v9343_v4  ;;  %v9386_v4 = vld [vmem:[%s11744_s26 + $0xf78] sm:$0xff]  }
 0x1df   :  { %v8095_v61 = vpop.f32.mrb[28].mxu1  ;;  %v8074_v63 = vpop.f32.mrb[29].mxu0 }
 0x1e0   :  { %v8096_v0 = vpop.f32.mrb[29].mxu1  ;;  %v8075_v2 = vadd.f32 %v8074_v63, %v8073_v59  ;;  %v8076_v5 = vpop.f32.mrb[30].mxu0  ;;  %8376 = vmatpush3.bf16.msra.mxu0 %v9344_v7  ;;  %v9382_v63 = vld [vmem:[%s11744_s26 + $0xf70] sm:$0xff]   ;;  %v9389_v7 = vld [vmem:[%s11744_s26 + $0xfb8] sm:$0xff]  }
 0x1e1   :  { %v8097_v3 = vadd.f32 %v8096_v0, %v8095_v61  ;;  %v8098_v6 = vpop.f32.mrb[30].mxu1  ;;  %v8077_v10 = vpop.f32.mrb[31].mxu0  ;;  %8398 = vmatpush3.bf16.msra.mxu1 %v9345_v9  ;;  %8377 = vmatprep.subr.bf16.mxu0 %v9346_v12  ;;  %v9383_v0 = vld [vmem:[%s11744_s26 + $0xff0] sm:$0xff]   ;;  %v9387_v5 = vld [vmem:[%s11744_s26 + $0xff8] sm:$0xff]  }
 0x1e2   :  { %v5556_v8 = vadd.f32 %v8075_v2, %v11035_v27  ;;  %v8099_v11 = vpop.f32.mrb[31].mxu1  ;;  %8399 = vmatprep.subr.bf16.mxu1 %v9347_v14  ;;  %v9358_v27 = vld [vmem:[%s11744_s26 + $0xf40] sm:$0xff]   ;;  %v9385_v2 = vld [vmem:[%s11744_s26 + $0xfb0] sm:$0xff]   ;;  %v9388_v6 = vld [vmem:[%s11744_s26 + $0xf38] sm:$0xff]  }
 0x1e3   :  { %v89_v9 = vld [vmem:[%s11745_s20 + $0xf8] sm:$0xff]  ;;  %v9394_v14 = vld [vmem:[%s11744_s26 + $0x1040] sm:$0xff]  }
 0x1e4   :  { %v11140_v13 = vadd.f32 %v8097_v3, %v5556_v8  ;;  %8378 = vmatpush3.bf16.msra.mxu0 %v9348_v15  ;;  %v9514_v3 = vmov 0   ;;  %v88_v8 = vld [vmem:[%s11745_s20 + $0xf0] sm:$0xff]  ;;  %v7152_v12 = vcombine.low %v89_v9, %v89_v9  ;;  %v9395_v15 = vld [vmem:[%s11744_s26 + $0x10c0] sm:$0xff]  }
 0x1e5   :  { %8400 = vmatpush3.bf16.msra.mxu1 %v9349_v16  ;;  %8379 = vmatprep.subr.bf16.mxu0 %v9350_v17  ;;  %v7150_v10 = vcombine.low %v88_v8, %v88_v8  ;;  %v7151_v11 = vcombine.high %v88_v8, %v88_v8  ;;  %v9396_v16 = vld [vmem:[%s11744_s26 + $0x1000] sm:$0xff]   ;;  %v9438_v8 = vld [vmem:[%s11744_s26 + $0x1150] sm:$0xff]  }
 0x1e6   :  { %8401 = vmatprep.subr.bf16.mxu1 %v9351_v18  ;;  %8812 = vset.pattern.permute.xlu0 %v9514_v3  ;;  %v9397_v17 = vld [vmem:[%s11744_s26 + $0x1080] sm:$0xff]   ;;  %v9398_v18 = vld [vmem:[%s11744_s26 + $0x1048] sm:$0xff]  }
 0x1e7   :  { %8814 = vset.pattern.permute.xlu1 %v9514_v3  ;;  %v9433_v3 = vld [vmem:[%s11744_s26 + $0x1180] sm:$0xff]  }
 0x1e8   :  { %8380 = vmatpush3.bf16.msra.mxu0 %v9352_v19  ;;  %v9399_v19 = vld [vmem:[%s11744_s26 + $0x10c8] sm:$0xff]  }
 0x1e9   :  { %8402 = vmatpush3.bf16.msra.mxu1 %v9353_v20  ;;  %8409 = vmatprep.subr.bf16.mxu0 %v9358_v27  ;;  %v9400_v20 = vld [vmem:[%s11744_s26 + $0x1008] sm:$0xff]   ;;  %v9407_v27 = vld [vmem:[%s11744_s26 + $0x10d8] sm:$0xff]  }
 0x1ea   :  { %8431 = vmatprep.subr.bf16.mxu1 %v9359_v28  ;;  %v9408_v28 = vld [vmem:[%s11744_s26 + $0x1018] sm:$0xff]  }
 0x1eb   :  { %6114 = vmatmul.mubr.bf16.vlgmr.msra.gmra.mrb[56].mxu0 %v7146_v23  ;;  %v9403_v23 = vld [vmem:[%s11744_s26 + $0x10d0] sm:$0xff]  }
 0x1ec   :  { %6154 = vmatmul.mubr.bf16.vlgmr.msra.gmra.mrb[56].mxu1 %v7148_v25  ;;  %8410 = vmatpush3.bf16.msra.mxu0 %v9360_v29  ;;  %v9405_v25 = vld [vmem:[%s11744_s26 + $0x1090] sm:$0xff]   ;;  %v9409_v29 = vld [vmem:[%s11744_s26 + $0x1098] sm:$0xff]  }
 0x1ed   :  { %8432 = vmatpush3.bf16.msra.mxu1 %v9361_v30  ;;  %8411 = vmatprep.subr.bf16.mxu0 %v9362_v31  ;;  %v9410_v30 = vld [vmem:[%s11744_s26 + $0x1060] sm:$0xff]  }
 0x1ee   :  { %8433 = vmatprep.subr.bf16.mxu1 %v9363_v32  ;;  %6193 = vmatprep.mubr.bf16.mxu0 %v7151_v11  ;;  %v9411_v31 = vld [vmem:[%s11744_s26 + $0x10e0] sm:$0xff]   ;;  %v9441_v11 = vld [vmem:[%s11744_s26 + $0x1190] sm:$0xff]  }
 0x1ef   :  { %v9412_v32 = vld [vmem:[%s11744_s26 + $0x1020] sm:$0xff]  }
 0x1f0   :  { %8412 = vmatpush3.bf16.msra.mxu0 %v9364_v33 }
 0x1f1   :  { %8434 = vmatpush3.bf16.msra.mxu1 %v9365_v34  ;;  %8413 = vmatprep.subr.bf16.mxu0 %v9366_v35  ;;  %v9413_v34 = vld [vmem:[%s11744_s26 + $0x10a0] sm:$0xff]  }
 0x1f2   :  { %8435 = vmatprep.subr.bf16.mxu1 %v9367_v36 }
 0x1f4   :  { %8414 = vmatpush3.bf16.msra.mxu0 %v9368_v37 }
 0x1f5   :  { %8436 = vmatpush3.bf16.msra.mxu1 %v9369_v38  ;;  %8415 = vmatprep.subr.bf16.mxu0 %v9370_v39 }
 0x1f6   :  { %8437 = vmatprep.subr.bf16.mxu1 %v9371_v40  ;;  %v9414_v40 = vld [vmem:[%s11744_s26 + $0x1068] sm:$0xff]  }
 0x1f8   :  { %8416 = vmatpush3.bf16.msra.mxu0 %v9372_v41 }
 0x1f9   :  { %8438 = vmatpush3.bf16.msra.mxu1 %v9373_v42  ;;  %8417 = vmatprep.subr.bf16.mxu0 %v9374_v43  ;;  %v9415_v42 = vld [vmem:[%s11744_s26 + $0x10e8] sm:$0xff]  }
 0x1fa   :  { %8439 = vmatprep.subr.bf16.mxu1 %v9375_v44 }
 0x1fc   :  { %8418 = vmatpush3.bf16.msra.mxu0 %v9376_v45  ;;  %v9416_v45 = vld [vmem:[%s11744_s26 + $0x1028] sm:$0xff]  }
 0x1fd   :  { %8440 = vmatpush3.bf16.msra.mxu1 %v9377_v47  ;;  %8419 = vmatprep.subr.bf16.mxu0 %v9378_v53  ;;  %v9417_v47 = vld [vmem:[%s11744_s26 + $0x10a8] sm:$0xff]   ;;  %v9421_v53 = vld [vmem:[%s11744_s26 + $0x10b0] sm:$0xff]  }
 0x1fe   :  { %v8117_v46 = vpop.f32.mrb[32].mxu0  ;;  %8441 = vmatprep.subr.bf16.mxu1 %v9379_v55  ;;  %v9423_v55 = vld [vmem:[%s11744_s26 + $0x10f8] sm:$0xff]  }
 0x1ff   :  { %v8139_v48 = vpop.f32.mrb[32].mxu1  ;;  %v8118_v49 = vpop.f32.mrb[33].mxu0 }
 0x200   :  { %v8140_v50 = vpop.f32.mrb[33].mxu1  ;;  %v8119_v51 = vadd.f32 %v8118_v49, %v8117_v46  ;;  %v8120_v54 = vpop.f32.mrb[34].mxu0  ;;  %8420 = vmatpush3.bf16.msra.mxu0 %v9380_v58  ;;  %v90_v58 = vld [vmem:[%s11745_s20 + $0x100] sm:$0xff] }
 0x201   :  { %v8141_v52 = vadd.f32 %v8140_v50, %v8139_v48  ;;  %v8142_v56 = vpop.f32.mrb[34].mxu1  ;;  %v8121_v59 = vpop.f32.mrb[35].mxu0  ;;  %8442 = vmatpush3.bf16.msra.mxu1 %v9381_v60  ;;  %8421 = vmatprep.subr.bf16.mxu0 %v9382_v63  ;;  %v9418_v50 = vld [vmem:[%s11744_s26 + $0x1070] sm:$0xff]   ;;  %v9422_v54 = vld [vmem:[%s11744_s26 + $0x1078] sm:$0xff]   ;;  %v7154_v60 = vcombine.low %v90_v58, %v90_v58 }
 0x202   :  { %v5636_v57 = vadd.f32 %v8119_v51, %v11140_v13  ;;  %v8143_v61 = vpop.f32.mrb[35].mxu1  ;;  %8443 = vmatprep.subr.bf16.mxu1 %v9383_v0  ;;  %v7153_v13 = vcombine.high %v89_v9, %v89_v9  ;;  %v9419_v51 = vld [vmem:[%s11744_s26 + $0x10f0] sm:$0xff]   ;;  %v9424_v56 = vld [vmem:[%s11744_s26 + $0x1038] sm:$0xff]   ;;  %v91_v59 = vld [vmem:[%s11745_s20 + $0x108] sm:$0xff] }
 0x203   :  { %v7155_v61 = vcombine.high %v90_v58, %v90_v58  ;;  %v7157_v63 = vcombine.high %v91_v59, %v91_v59  ;;  %v9430_v0 = vld [vmem:[%s11744_s26 + $0x1140] sm:$0xff]   ;;  %v9439_v9 = vld [vmem:[%s11744_s26 + $0x11d0] sm:$0xff]  }
 0x204   :  { %v11242_v62 = vadd.f32 %v8141_v52, %v5636_v57  ;;  %8422 = vmatpush3.bf16.msra.mxu0 %v9384_v1  ;;  %6233 = vmatprep.mubr.bf16.mxu1 %v7153_v13  ;;  %v9420_v52 = vld [vmem:[%s11744_s26 + $0x1030] sm:$0xff]   ;;  %v9425_v57 = vld [vmem:[%s11744_s26 + $0x10b8] sm:$0xff]   ;;  %v9431_v1 = vld [vmem:[%s11744_s26 + $0x11c0] sm:$0xff]  }
 0x205   :  { %8444 = vmatpush3.bf16.msra.mxu1 %v9385_v2  ;;  %8423 = vmatprep.subr.bf16.mxu0 %v9386_v4  ;;  %v9432_v2 = vld [vmem:[%s11744_s26 + $0x1100] sm:$0xff]   ;;  %v9434_v4 = vld [vmem:[%s11744_s26 + $0x1148] sm:$0xff]   ;;  %v9443_v13 = vld [vmem:[%s11744_s26 + $0x11d8] sm:$0xff]  }
 0x206   :  { %8445 = vmatprep.subr.bf16.mxu1 %v9387_v5  ;;  %v9435_v5 = vld [vmem:[%s11744_s26 + $0x11c8] sm:$0xff]  }
 0x208   :  { %8424 = vmatpush3.bf16.msra.mxu0 %v9388_v6  ;;  %v9436_v6 = vld [vmem:[%s11744_s26 + $0x1108] sm:$0xff]  }
 0x209   :  { %8446 = vmatpush3.bf16.msra.mxu1 %v9389_v7  ;;  %8453 = vmatprep.subr.bf16.mxu0 %v9394_v14  ;;  %v9437_v7 = vld [vmem:[%s11744_s26 + $0x1188] sm:$0xff]   ;;  %v9444_v14 = vld [vmem:[%s11744_s26 + $0x1118] sm:$0xff]  }
 0x20a   :  { %8475 = vmatprep.subr.bf16.mxu1 %v9395_v15  ;;  %v9445_v15 = vld [vmem:[%s11744_s26 + $0x1198] sm:$0xff]  }
 0x20b   :  { %6194 = vmatmul.mubr.bf16.vlgmr.msra.gmra.mrb[60].mxu0 %v7150_v10  ;;  %v9440_v10 = vld [vmem:[%s11744_s26 + $0x1110] sm:$0xff]  }
 0x20c   :  { %6234 = vmatmul.mubr.bf16.vlgmr.msra.gmra.mrb[60].mxu1 %v7152_v12  ;;  %8454 = vmatpush3.bf16.msra.mxu0 %v9396_v16  ;;  %v9442_v12 = vld [vmem:[%s11744_s26 + $0x1158] sm:$0xff]   ;;  %v9446_v16 = vld [vmem:[%s11744_s26 + $0x1160] sm:$0xff]  }
 0x20d   :  { %8476 = vmatpush3.bf16.msra.mxu1 %v9397_v17  ;;  %8455 = vmatprep.subr.bf16.mxu0 %v9398_v18  ;;  %v9447_v17 = vld [vmem:[%s11744_s26 + $0x11e0] sm:$0xff]  }
 0x20e   :  { %8477 = vmatprep.subr.bf16.mxu1 %v9399_v19  ;;  %6273 = vmatprep.mubr.bf16.mxu0 %v7155_v61  ;;  %v9448_v18 = vld [vmem:[%s11744_s26 + $0x1120] sm:$0xff]  }
 0x20f   :  { %6313 = vmatprep.mubr.bf16.mxu1 %v7157_v63 }
 0x210   :  { %8456 = vmatpush3.bf16.msra.mxu0 %v9400_v20  ;;  %v9449_v20 = vld [vmem:[%s11744_s26 + $0x11a0] sm:$0xff]  }
 0x211   :  { %8478 = vmatpush3.bf16.msra.mxu1 %v9401_v21  ;;  %8457 = vmatprep.subr.bf16.mxu0 %v9402_v22 }
 0x212   :  { %8479 = vmatprep.subr.bf16.mxu1 %v9403_v23 }
 0x214   :  { %8458 = vmatpush3.bf16.msra.mxu0 %v9404_v24 }
 0x215   :  { %8480 = vmatpush3.bf16.msra.mxu1 %v9405_v25  ;;  %8459 = vmatprep.subr.bf16.mxu0 %v9406_v26  ;;  %v9450_v26 = vld [vmem:[%s11744_s26 + $0x1168] sm:$0xff]  }
 0x216   :  { %8481 = vmatprep.subr.bf16.mxu1 %v9407_v27 }
 0x218   :  { %8460 = vmatpush3.bf16.msra.mxu0 %v9408_v28  ;;  %v9451_v28 = vld [vmem:[%s11744_s26 + $0x11e8] sm:$0xff]  }
 0x219   :  { %8482 = vmatpush3.bf16.msra.mxu1 %v9409_v29  ;;  %8461 = vmatprep.subr.bf16.mxu0 %v9410_v30 }
 0x21a   :  { %8483 = vmatprep.subr.bf16.mxu1 %v9411_v31  ;;  %v9452_v31 = vld [vmem:[%s11744_s26 + $0x1128] sm:$0xff]  }
 0x21c   :  { %8462 = vmatpush3.bf16.msra.mxu0 %v9412_v32 }
 0x21d   :  { %8484 = vmatpush3.bf16.msra.mxu1 %v9413_v34  ;;  %8463 = vmatprep.subr.bf16.mxu0 %v9414_v40  ;;  %v9458_v40 = vld [vmem:[%s11744_s26 + $0x1178] sm:$0xff]  }
 0x21e   :  { %v8161_v33 = vpop.f32.mrb[36].mxu0  ;;  %8485 = vmatprep.subr.bf16.mxu1 %v9415_v42  ;;  %v9460_v42 = vld [vmem:[%s11744_s26 + $0x1138] sm:$0xff]  }
 0x21f   :  { %v8183_v35 = vpop.f32.mrb[36].mxu1  ;;  %v8162_v36 = vpop.f32.mrb[37].mxu0 }
 0x220   :  { %v8184_v37 = vpop.f32.mrb[37].mxu1  ;;  %v8163_v38 = vadd.f32 %v8162_v36, %v8161_v33  ;;  %v8164_v41 = vpop.f32.mrb[38].mxu0  ;;  %8464 = vmatpush3.bf16.msra.mxu0 %v9416_v45  ;;  %v9453_v33 = vld [vmem:[%s11744_s26 + $0x11a8] sm:$0xff]   ;;  %v9454_v36 = vld [vmem:[%s11744_s26 + $0x1170] sm:$0xff]   ;;  %v93_v45 = vld [vmem:[%s11745_s20 + $0x118] sm:$0xff] }
 0x221   :  { %v8185_v39 = vadd.f32 %v8184_v37, %v8183_v35  ;;  %v8186_v43 = vpop.f32.mrb[38].mxu1  ;;  %v8165_v46 = vpop.f32.mrb[39].mxu0  ;;  %8486 = vmatpush3.bf16.msra.mxu1 %v9417_v47  ;;  %8465 = vmatprep.subr.bf16.mxu0 %v9418_v50  ;;  %v9455_v37 = vld [vmem:[%s11744_s26 + $0x11f0] sm:$0xff]   ;;  %v9459_v41 = vld [vmem:[%s11744_s26 + $0x11f8] sm:$0xff]   ;;  %v6477_v50 = vld [vmem:[%s11725_s3] sm:$0xff] }
 0x222   :  { %v5716_v44 = vadd.f32 %v8163_v38, %v11242_v62  ;;  %v8187_v48 = vpop.f32.mrb[39].mxu1  ;;  %8487 = vmatprep.subr.bf16.mxu1 %v9419_v51  ;;  %v7156_v62 = vcombine.low %v91_v59, %v91_v59  ;;  %v9456_v38 = vld [vmem:[%s11744_s26 + $0x1130] sm:$0xff]   ;;  %v9461_v43 = vld [vmem:[%s11744_s26 + $0x11b8] sm:$0xff]   ;;  %v6478_v51 = vld [vmem:[%s11725_s3 + $0x8] sm:$0x3] }
 0x223   :  { %v7160_v48 = vcombine.low %v93_v45, %v93_v45 }
 0x224   :  { %v11347_v49 = vadd.f32 %v8185_v39, %v5716_v44  ;;  %8466 = vmatpush3.bf16.msra.mxu0 %v9420_v52  ;;  %v9457_v39 = vld [vmem:[%s11744_s26 + $0x11b0] sm:$0xff]  }
 0x225   :  { %8488 = vmatpush3.bf16.msra.mxu1 %v9421_v53  ;;  %8467 = vmatprep.subr.bf16.mxu0 %v9422_v54  ;;  %v92_v44 = vld [vmem:[%s11745_s20 + $0x110] sm:$0xff] }
 0x226   :  { %8489 = vmatprep.subr.bf16.mxu1 %v9423_v55  ;;  %v7158_v46 = vcombine.low %v92_v44, %v92_v44  ;;  %v7159_v47 = vcombine.high %v92_v44, %v92_v44 }
 0x228   :  { %8468 = vmatpush3.bf16.msra.mxu0 %v9424_v56 }
 0x229   :  { %8490 = vmatpush3.bf16.msra.mxu1 %v9425_v57  ;;  %8497 = vmatprep.subr.bf16.mxu0 %v9430_v0 }
 0x22a   :  { %8519 = vmatprep.subr.bf16.mxu1 %v9431_v1 }
 0x22b   :  { %6274 = vmatmul.mubr.bf16.vlgmr.msra.gmra.mrb[64].mxu0 %v7154_v60 }
 0x22c   :  { %6314 = vmatmul.mubr.bf16.vlgmr.msra.gmra.mrb[64].mxu1 %v7156_v62  ;;  %8498 = vmatpush3.bf16.msra.mxu0 %v9432_v2 }
 0x22d   :  { %8520 = vmatpush3.bf16.msra.mxu1 %v9433_v3  ;;  %8499 = vmatprep.subr.bf16.mxu0 %v9434_v4 }
 0x22e   :  { %8521 = vmatprep.subr.bf16.mxu1 %v9435_v5 }
 0x230   :  { %8500 = vmatpush3.bf16.msra.mxu0 %v9436_v6 }
 0x231   :  { %8522 = vmatpush3.bf16.msra.mxu1 %v9437_v7  ;;  %8501 = vmatprep.subr.bf16.mxu0 %v9438_v8 }
 0x232   :  { %8523 = vmatprep.subr.bf16.mxu1 %v9439_v9 }
 0x234   :  { %8502 = vmatpush3.bf16.msra.mxu0 %v9440_v10 }
 0x235   :  { %8524 = vmatpush3.bf16.msra.mxu1 %v9441_v11  ;;  %8503 = vmatprep.subr.bf16.mxu0 %v9442_v12 }
 0x236   :  { %8525 = vmatprep.subr.bf16.mxu1 %v9443_v13 }
 0x238   :  { %8504 = vmatpush3.bf16.msra.mxu0 %v9444_v14 }
 0x239   :  { %8526 = vmatpush3.bf16.msra.mxu1 %v9445_v15  ;;  %8505 = vmatprep.subr.bf16.mxu0 %v9446_v16 }
 0x23a   :  { %8527 = vmatprep.subr.bf16.mxu1 %v9447_v17 }
 0x23c   :  { %8506 = vmatpush3.bf16.msra.mxu0 %v9448_v18 }
 0x23d   :  { %8528 = vmatpush3.bf16.msra.mxu1 %v9449_v20  ;;  %8507 = vmatprep.subr.bf16.mxu0 %v9450_v26 }
 0x23e   :  { %v8205_v19 = vpop.f32.mrb[40].mxu0  ;;  %8529 = vmatprep.subr.bf16.mxu1 %v9451_v28 }
 0x23f   :  { %v8227_v21 = vpop.f32.mrb[40].mxu1  ;;  %v8206_v22 = vpop.f32.mrb[41].mxu0 }
 0x240   :  { %v8228_v23 = vpop.f32.mrb[41].mxu1  ;;  %v8207_v24 = vadd.f32 %v8206_v22, %v8205_v19  ;;  %v8208_v27 = vpop.f32.mrb[42].mxu0  ;;  %8508 = vmatpush3.bf16.msra.mxu0 %v9452_v31 }
 0x241   :  { %v8229_v25 = vadd.f32 %v8228_v23, %v8227_v21  ;;  %v8230_v29 = vpop.f32.mrb[42].mxu1  ;;  %v8209_v32 = vpop.f32.mrb[43].mxu0  ;;  %8530 = vmatpush3.bf16.msra.mxu1 %v9453_v33  ;;  %8509 = vmatprep.subr.bf16.mxu0 %v9454_v36 }
 0x242   :  { %v5796_v30 = vadd.f32 %v8207_v24, %v11347_v49  ;;  %v8231_v34 = vpop.f32.mrb[43].mxu1  ;;  %8531 = vmatprep.subr.bf16.mxu1 %v9455_v37  ;;  %v7161_v49 = vcombine.high %v93_v45, %v93_v45 }
 0x244   :  { %v5836_v35 = vadd.f32 %v8229_v25, %v5796_v30  ;;  %8510 = vmatpush3.bf16.msra.mxu0 %v9456_v38 }
 0x245   :  { %8532 = vmatpush3.bf16.msra.mxu1 %v9457_v39  ;;  %8511 = vmatprep.subr.bf16.mxu0 %v9458_v40 }
 0x246   :  { %8533 = vmatprep.subr.bf16.mxu1 %v9459_v41 }
 0x248   :  { %8512 = vmatpush3.bf16.msra.mxu0 %v9460_v42 }
 0x249   :  { %24 = vsyncpa [#allocation5], 0  ;;  %8534 = vmatpush3.bf16.msra.mxu1 %v9461_v43  ;;  %6482 = vperm.xlu0 %8812, %v6477_v50   ;;  %v9515_v52 = vmov 1   ;;  %v9516_v53 = vmov 2   ;;  %v9517_v26 = vmov 0.0   ;;  %vm9518_vm0 = vmmov 0  }
 0x24a   :  { %6353 = vmatprep.mubr.bf16.mxu0 %v7159_v47  ;;  %6393 = vmatprep.mubr.bf16.mxu1 %v7161_v49  ;;  %v9519_v27 = vmov 0.0|0.0   ;;  %vm6403_vm1 = vcmask 64512   ;;  %vm6554_vm2 = vcmask 523264   ;;  %vm6643_vm3 = vcmask 1041408  }
 0x24b   :  { %6354 = vmatmul.mubr.bf16.vlgmr.msra.gmra.mrb[68].mxu0 %v7158_v46  ;;  %6487 = vperm.xlu1 %8814, %v6478_v51   ;;  %vm9520_vm4 = vmmov 1   ;;  %vm6639_vm6 = vcmask 80896   ;;  %vm6737_vm7 = vcmask 261120   ;;  %vm6889_vm8 = vcmask 25600  }
 0x24c   :  { %6394 = vmatmul.mubr.bf16.vlgmr.msra.gmra.mrb[68].mxu1 %v7160_v48  ;;  %8600 = vmatprep.subr.mxu1 %v9517_v26  ;;  %vm8741_vm5 = vmpackc.low %vm6643_vm3, %vm9520_vm4 }
 0x24d   :  { %8813 = vset.pattern.permute.xlu0 %v9515_v52  ;;  %8602 = vmatprep.mubr.msk.f32.mxu1 %vm9518_vm0, %v9517_v26 }
 0x24e   :  { %6497 = vperm.xlu0 %8813, %v6477_v50   ;;  %8628 = vmatprep.mubr.msk.f32.mxu0 %vm9518_vm0, %v9517_v26 }
 0x24f   :  { %8815 = vset.pattern.permute.xlu1 %v9515_v52  ;;  %8739 = vmatprep.subr.bf16.mxu0 %v9519_v27 }
 0x250   :  { %6501 = vperm.xlu1 %8815, %v6478_v51  }
 0x252   :  { %8817 = vset.pattern.permute.xlu0 %v9516_v53 }
 0x253   :  { %6517 = vperm.xlu0 %8817, %v6478_v51  }
 0x254   :  { %8816 = vset.pattern.permute.xlu1 %v9516_v53 }
 0x255   :  { %6513 = vperm.xlu1 %8816, %v6477_v50  }
 0x25e   :  { %v8249_v54 = vpop.f32.mrb[44].mxu0 }
 0x25f   :  { %v8271_v55 = vpop.f32.mrb[44].mxu1  ;;  %v8250_v56 = vpop.f32.mrb[45].mxu0 }
 0x260   :  { %v8251_v57 = vadd.f32 %v8250_v56, %v8249_v54  ;;  %v8272_v58 = vpop.f32.mrb[45].mxu1  ;;  %v8252_v59 = vpop.f32.mrb[46].mxu0 }
 0x261   :  { %v8273_v60 = vadd.f32 %v8272_v58, %v8271_v55  ;;  %v8274_v61 = vpop.f32.mrb[46].mxu1  ;;  %v8253_v62 = vpop.f32.mrb[47].mxu0 }
 0x262   :  { %v5876_v63 = vadd.f32 %v8251_v57, %v5836_v35  ;;  %v8275_v0 = vpop.f32.mrb[47].mxu1 }
 0x263   :  { %v6490_v0 = vlaneseq }
 0x264   :  { %v5916_v1 = vadd.f32 %v8273_v60, %v5876_v63 }
 0x27e   :  { %v8293_v2 = vpop.f32.mrb[48].mxu0 }
 0x27f   :  { %v8315_v3 = vpop.f32.mrb[48].mxu1  ;;  %v8294_v4 = vpop.f32.mrb[49].mxu0 }
 0x280   :  { %v8295_v5 = vadd.f32 %v8294_v4, %v8293_v2  ;;  %v8316_v6 = vpop.f32.mrb[49].mxu1  ;;  %v8296_v7 = vpop.f32.mrb[50].mxu0 }
 0x281   :  { %v8317_v8 = vadd.f32 %v8316_v6, %v8315_v3  ;;  %v8318_v9 = vpop.f32.mrb[50].mxu1  ;;  %v8297_v10 = vpop.f32.mrb[51].mxu0 }
 0x282   :  { %v5956_v11 = vadd.f32 %v8295_v5, %v5916_v1  ;;  %v8319_v12 = vpop.f32.mrb[51].mxu1  ;;  %v6491_v1 = vshrl.u32 %v6490_v0, 7  ;;  %v6479_v5 = vld [vmem:[%s11726_s4] sm:$0x7] }
 0x283   :  { %v6721_v0 = vld [vmem:[%s11732_s10 + $0x20] sm:$0xff] }
 0x284   :  { %v5996_v13 = vadd.f32 %v8317_v8, %v5956_v11  ;;  %v6492_v3 = vsub.s32 0, %v6491_v1  ;;  %v6506_v4 = vsub.s32 1, %v6491_v1  ;;  %v6522_v10 = vsub.s32 2, %v6491_v1  ;;  %v6722_v1 = vld [vmem:[%s11732_s10 + $0x28] sm:$0xff] }
 0x286   :  { %v6493_v8 = vrot.slane %v6479_v5, %v6492_v3  ;;  %v6507_v9 = vrot.slane %v6479_v5, %v6506_v4  ;;  %v6723_v3 = vld [vmem:[%s11732_s10 + $0x30] sm:$0xff]  ;;  %v6724_v4 = vld [vmem:[%s11732_s10 + $0x38] sm:$0xff] }
 0x29e   :  { %v8337_v14 = vpop.f32.mrb[52].mxu0 }
 0x29f   :  { %v8359_v15 = vpop.f32.mrb[52].mxu1  ;;  %v8338_v16 = vpop.f32.mrb[53].mxu0 }
 0x2a0   :  { %v8360_v17 = vpop.f32.mrb[53].mxu1  ;;  %v8339_v18 = vadd.f32 %v8338_v16, %v8337_v14  ;;  %v8340_v20 = vpop.f32.mrb[54].mxu0  ;;  %v6523_v14 = vrot.slane %v6479_v5, %v6522_v10  ;;  %v8759_v5 = vpack.c.bf16 %v6724_v4, %v6723_v3  ;;  %v6728_v10 = vld [vmem:[%s11732_s10 + $0x58] sm:$0xff]  ;;  %v6905_v3 = vld [vmem:[%s11735_s13 + $0x70] sm:$0xff] }
 0x2a1   :  { %v8361_v19 = vadd.f32 %v8360_v17, %v8359_v15  ;;  %v8362_v21 = vpop.f32.mrb[54].mxu1  ;;  %v8341_v22 = vpop.f32.mrb[55].mxu0  ;;  %v6906_v4 = vld [vmem:[%s11735_s13 + $0x78] sm:$0xff] }
 0x2a2   :  { %v8363_v23 = vpop.f32.mrb[55].mxu1  ;;  %v6036_v24 = vadd.f32 %v8339_v18, %v5996_v13  ;;  %v7739_v22 = vld [vmem:[%s11727_s5] ss:$0 sm:$0xff] }
 0x2a4   :  { %v6076_v25 = vadd.f32 %v8361_v19, %v6036_v24 }
 0x2be   :  { %v8381_v28 = vpop.f32.mrb[56].mxu0 }
 0x2bf   :  { %v8403_v29 = vpop.f32.mrb[56].mxu1  ;;  %v8382_v30 = vpop.f32.mrb[57].mxu0 }
 0x2c0   :  { %v8383_v31 = vadd.f32 %v8382_v30, %v8381_v28  ;;  %v8404_v32 = vpop.f32.mrb[57].mxu1  ;;  %v8384_v33 = vpop.f32.mrb[58].mxu0 }
 0x2c1   :  { %v8405_v34 = vadd.f32 %v8404_v32, %v8403_v29  ;;  %v8406_v35 = vpop.f32.mrb[58].mxu1  ;;  %v8385_v36 = vpop.f32.mrb[59].mxu0 }
 0x2c2   :  { %v6116_v37 = vadd.f32 %v8383_v31, %v6076_v25  ;;  %v8407_v38 = vpop.f32.mrb[59].mxu1  ;;  %v6540_v35 = vld [vmem:[%s11728_s6 + $0x8] sm:$0xff] }
 0x2c3   :  { %v6542_v38 = vld [vmem:[%s11728_s6 + $0x18] sm:$0xff] }
 0x2c4   :  { %v6156_v39 = vadd.f32 %v8405_v34, %v6116_v37  ;;  %v6539_v34 = vld [vmem:[%s11728_s6] sm:$0xff]  ;;  %v6541_v37 = vld [vmem:[%s11728_s6 + $0x10] sm:$0xff] }
 0x2c8   :  { %v6483_v6 = vpop.permute.xlu0 %6482 }
 0x2c9   :  { %v6494_v12 = vmul.f32 %v6493_v8, %v6483_v6  ;;  %v6725_v6 = vld [vmem:[%s11732_s10 + $0x40] sm:$0xff] }
 0x2ca   :  { %v6488_v2 = vpop.permute.xlu1 %6487 }
 0x2cd   :  { %v6498_v11 = vpop.permute.xlu0 %6497 }
 0x2ce   :  { %v6508_v13 = vmul.f32 %v6507_v9, %v6498_v11 }
 0x2cf   :  { %v6502_v7 = vpop.permute.xlu1 %6501 }
 0x2d0   :  { %v6510_v16 = vadd.f32 %v6508_v13, %v6494_v12  ;;  %v6729_v12 = vld [vmem:[%s11732_s10 + $0x60] sm:$0xff]  ;;  %v6730_v13 = vld [vmem:[%s11732_s10 + $0x68] sm:$0xff] }
 0x2d4   :  { %v6514_v15 = vpop.permute.xlu1 %6513 }
 0x2d5   :  { %v6524_v17 = vmul.f32 %v6523_v14, %v6514_v15  ;;  %v6731_v15 = vld [vmem:[%s11732_s10 + $0x70] sm:$0xff] }
 0x2d7   :  { %v6526_v19 = vadd.f32 %v6524_v17, %v6510_v16  ;;  %v6732_v16 = vld [vmem:[%s11732_s10 + $0x78] sm:$0xff] }
 0x2d8   :  { %v8771_v17 = vpack.c.bf16 %v6732_v16, %v6731_v15 }
 0x2d9   :  { %v6535_v33 = vadd.f32 %v7739_v22, %v6526_v19 }
 0x2de   :  { %v8425_v40 = vpop.f32.mrb[60].mxu0 }
 0x2df   :  { %v8447_v41 = vpop.f32.mrb[60].mxu1  ;;  %v8426_v42 = vpop.f32.mrb[61].mxu0 }
 0x2e0   :  { %v8427_v43 = vadd.f32 %v8426_v42, %v8425_v40  ;;  %v8448_v44 = vpop.f32.mrb[61].mxu1  ;;  %v8428_v45 = vpop.f32.mrb[62].mxu0  ;;  %v6402_v42 = vld [vmem:[%s11730_s8] sm:$0x3] }
 0x2e1   :  { %v8449_v46 = vadd.f32 %v8448_v44, %v8447_v41  ;;  %v8450_v47 = vpop.f32.mrb[62].mxu1  ;;  %v8429_v48 = vpop.f32.mrb[63].mxu0  ;;  %v6537_v41 = vmax.f32 %v6535_v33, 0.0  ;;  %v6509_v44 = vmul.f32 %v6507_v9, %v6502_v7  ;;  %v8727_v45 = vpack.c.bf16 %v6542_v38, %v6541_v37  ;;  %v6726_v7 = vld [vmem:[%s11732_s10 + $0x48] sm:$0xff]  ;;  %v6727_v9 = vld [vmem:[%s11732_s10 + $0x50] sm:$0xff] }
 0x2e2   :  { %v6196_v49 = vadd.f32 %v8427_v43, %v6156_v39  ;;  %v8451_v50 = vpop.f32.mrb[63].mxu1  ;;  %v8723_v39 = vpack.c.bf16 %v6540_v35, %v6539_v34  ;;  %v6495_v43 = vmul.f32 %v6493_v8, %v6488_v2  ;;  %v6543_v47 = vld [vmem:[%s11728_s6 + $0x20] sm:$0xff]  ;;  %v6544_v48 = vld [vmem:[%s11728_s6 + $0x28] sm:$0xff]  ;;  %v8756_v2 = vpack.c.bf16 %v6722_v1, %v6721_v0  ;;  %v6735_v33 = vld [vmem:[%s11733_s11 + $0x10] sm:$0xff] }
 0x2e3   :  { %v8762_v8 = vpack.c.bf16 %v6726_v7, %v6725_v6  ;;  %v8765_v11 = vpack.c.bf16 %v6728_v10, %v6727_v9  ;;  %v6736_v35 = vld [vmem:[%s11733_s11 + $0x18] sm:$0xff]  ;;  %v6903_v0 = vld [vmem:[%s11735_s13 + $0x60] sm:$0xff]  ;;  %v6904_v1 = vld [vmem:[%s11735_s13 + $0x68] sm:$0xff] }
 0x2e4   :  { %v6236_v51 = vadd.f32 %v8449_v46, %v6196_v49  ;;  %v6518_v46 = vpop.permute.xlu0 %6517  ;;  %v6511_v49 = vadd.f32 %v6509_v44, %v6495_v43  ;;  %v6910_v43 = vld [vmem:[%s11736_s14 + $0x18] sm:$0xff]  ;;  %v7746_v7 = vld [vmem:[%s11734_s12] ss:$0 sm:$0xff] }
 0x2e5   :  { %v6525_v50 = vmul.f32 %v6523_v14, %v6518_v46  ;;  %v8768_v14 = vpack.c.bf16 %v6730_v13, %v6729_v12 }
 0x2fe   :  { %v8469_v52 = vpop.f32.mrb[64].mxu0 }
 0x2ff   :  { %v8491_v53 = vpop.f32.mrb[64].mxu1  ;;  %v8470_v54 = vpop.f32.mrb[65].mxu0 }
 0x300   :  { %v8471_v55 = vadd.f32 %v8470_v54, %v8469_v52  ;;  %v8492_v56 = vpop.f32.mrb[65].mxu1  ;;  %v8472_v57 = vpop.f32.mrb[66].mxu0  ;;  %v6545_v52 = vld [vmem:[%s11728_s6 + $0x30] sm:$0xff]  ;;  %v6527_v54 = vadd.f32 %v6525_v50, %v6511_v49 }
 0x301   :  { %v8493_v58 = vadd.f32 %v8492_v56, %v8491_v53  ;;  %v8494_v59 = vpop.f32.mrb[66].mxu1  ;;  %v8473_v60 = vpop.f32.mrb[67].mxu0  ;;  %v6546_v53 = vld [vmem:[%s11728_s6 + $0x38] sm:$0xff]  ;;  %v6717_v57 = vld [vmem:[%s11732_s10] sm:$0xff]  ;;  %v6893_v50 = vld [vmem:[%s11735_s13 + $0x10] sm:$0xff] }
 0x302   :  { %v6276_v61 = vadd.f32 %v8471_v55, %v6236_v51  ;;  %v8495_v62 = vpop.f32.mrb[67].mxu1  ;;  %v8731_v51 = vpack.c.bf16 %v6544_v48, %v6543_v47  ;;  %v8735_v55 = vpack.c.bf16 %v6546_v53, %v6545_v52  ;;  %v6536_v56 = vadd.f32 %v7739_v22, %v6527_v54  ;;  %v6891_v47 = vld [vmem:[%s11735_s13] sm:$0xff]  ;;  %v6892_v48 = vld [vmem:[%s11735_s13 + $0x8] sm:$0xff] }
 0x303   :  { %v6720_v62 = vld [vmem:[%s11732_s10 + $0x18] sm:$0xff]  ;;  %v8780_v49 = vpack.c.bf16 %v6892_v48, %v6891_v47  ;;  %v6895_v53 = vld [vmem:[%s11735_s13 + $0x20] sm:$0xff]  ;;  %v6896_v54 = vld [vmem:[%s11735_s13 + $0x28] sm:$0xff] }
 0x304   :  { %v6316_v63 = vadd.f32 %v8493_v58, %v6276_v61  ;;  %v6718_v58 = vld [vmem:[%s11732_s10 + $0x8] sm:$0xff]  ;;  %v6538_v60 = vmax.f32 %v6536_v56, 0.0  ;;  %v6719_v61 = vld [vmem:[%s11732_s10 + $0x10] sm:$0xff]  ;;  %s9521_s10 = smov [#allocation2]  }
 0x305   :  { %v8750_v59 = vpack.c.bf16 %v6718_v58, %v6717_v57  ;;  %v6897_v56 = vld [vmem:[%s11735_s13 + $0x30] sm:$0xff]  ;;  %v6899_v58 = vld [vmem:[%s11735_s13 + $0x40] sm:$0xff]  ;;  %s7067_s24 = sshll.u32 %s9521_s10, 4  ;;  %s7068_s24 = int_to_ptr.vmem [resolvable:$true] %s7067_s24 }
 0x306   :  { %p9471_p1 = scmp.lt.s32.totalorder %s7068_s24, %s7068_s24 }
 0x31e   :  { %v8513_v18 = vpop.f32.mrb[68].mxu0 }
 0x31f   :  { %v8535_v20 = vpop.f32.mrb[68].mxu1  ;;  %v8514_v21 = vpop.f32.mrb[69].mxu0 }
 0x320   :  { %v8515_v23 = vadd.f32 %v8514_v21, %v8513_v18  ;;  %v8536_v24 = vpop.f32.mrb[69].mxu1  ;;  %v8516_v25 = vpop.f32.mrb[70].mxu0 }
 0x321   :  { %v8537_v28 = vadd.f32 %v8536_v24, %v8535_v20  ;;  %v8538_v29 = vpop.f32.mrb[70].mxu1  ;;  %v8517_v30 = vpop.f32.mrb[71].mxu0  ;;  %v7740_v20 = vld [vmem:[%s11729_s7] ss:$0 sm:$0xff] }
 0x322   :  { %v6356_v31 = vadd.f32 %v8515_v23, %v6316_v63  ;;  %v8539_v32 = vpop.f32.mrb[71].mxu1  ;;  %v8753_v63 = vpack.c.bf16 %v6720_v62, %v6719_v61  ;;  %v6638_v30 = vld [vmem:[%s11731_s9] sm:$0x3]  ;;  %v6901_v61 = vld [vmem:[%s11735_s13 + $0x50] sm:$0xff]  ;;  %v6902_v62 = vld [vmem:[%s11735_s13 + $0x58] sm:$0xff] }
 0x323   :  { %v6734_v32 = vld [vmem:[%s11733_s11 + $0x8] sm:$0xff] }
 0x324   :  { %v6396_v36 = vadd.f32 %v8537_v28, %v6356_v31  ;;  %v6733_v31 = vld [vmem:[%s11733_s11] sm:$0xff] }
 0x325   :  { %v8744_v34 = vpack.c.bf16 %v6734_v32, %v6733_v31 }
 0x326   :  { %v6401_v40 = vmax.f32 %v6396_v36, 0.0  ;;  %v8747_v36 = vpack.c.bf16 %v6736_v35, %v6735_v33 }
 0x328   :  { %8601 = vmatpush3.msra.mxu1 %v6401_v40  ;;  %v6908_v40 = vld [vmem:[%s11736_s14 + $0x8] sm:$0xff] }
 0x329   :  { %8724 = vmatprep.subr.bf16.mxu1 %v8723_v39  ;;  %8603 = vmatmul.mubr.msk.f32.vlgmr.msra.gmra.mrb[72].mxu1 %vm6403_vm1, %v6402_v42  ;;  %v6909_v42 = vld [vmem:[%s11736_s14 + $0x10] sm:$0xff] }
 0x32a   :  { %8726 = vmatpush3.bf16.msra.mxu1 %v8723_v39  ;;  %8621 = vmatprep.mubr.msk.f32.mxu1 %vm6554_vm2, %v6537_v41  ;;  %v6907_v39 = vld [vmem:[%s11736_s14] sm:$0xff]  ;;  %v8777_v46 = vpack.c.bf16 %v6910_v43, %v6909_v42 }
 0x32b   :  { %8728 = vmatprep.subr.bf16.mxu1 %v8727_v45  ;;  %v8774_v41 = vpack.c.bf16 %v6908_v40, %v6907_v39 }
 0x32e   :  { %8730 = vmatpush3.bf16.msra.mxu1 %v8727_v45 }
 0x32f   :  { %8732 = vmatprep.subr.bf16.mxu1 %v8731_v51 }
 0x332   :  { %8734 = vmatpush3.bf16.msra.mxu1 %v8731_v51  ;;  %v6894_v51 = vld [vmem:[%s11735_s13 + $0x18] sm:$0xff] }
 0x333   :  { %8736 = vmatprep.subr.bf16.mxu1 %v8735_v55  ;;  %v8783_v52 = vpack.c.bf16 %v6894_v51, %v6893_v50 }
 0x336   :  { %8738 = vmatpush3.bf16.msra.mxu1 %v8735_v55  ;;  %v8786_v55 = vpack.c.bf16 %v6896_v54, %v6895_v53 }
 0x337   :  { %8749 = vmatprep.subr.bf16.mxu1 %v9519_v27 }
 0x339   :  { %8622 = vmatmul.mubr.msk.f32.vlgmr.msra.gmra.mrb[74].mxu1 %vm6554_vm2, %v6538_v60 }
 0x33a   :  { %8751 = vmatpush3.bf16.msra.mxu1 %v8750_v59  ;;  %8674 = vmatprep.mubr.msk.f32.mxu1 %vm9518_vm0, %v9517_v26  ;;  %v6900_v59 = vld [vmem:[%s11735_s13 + $0x48] sm:$0xff] }
 0x33b   :  { %8752 = vmatprep.subr.bf16.mxu1 %v9519_v27  ;;  %v8792_v60 = vpack.c.bf16 %v6900_v59, %v6899_v58 }
 0x33e   :  { %8754 = vmatpush3.bf16.msra.mxu1 %v8753_v63  ;;  %v8795_v63 = vpack.c.bf16 %v6902_v62, %v6901_v61 }
 0x33f   :  { %8755 = vmatprep.subr.bf16.mxu1 %v9519_v27 }
 0x342   :  { %8757 = vmatpush3.bf16.msra.mxu1 %v8756_v2  ;;  %v8798_v2 = vpack.c.bf16 %v6904_v1, %v6903_v0 }
 0x343   :  { %8758 = vmatprep.subr.bf16.mxu1 %v9519_v27 }
 0x346   :  { %8760 = vmatpush3.bf16.msra.mxu1 %v8759_v5  ;;  %v8801_v5 = vpack.c.bf16 %v6906_v4, %v6905_v3 }
 0x347   :  { %8761 = vmatprep.subr.bf16.mxu1 %v9519_v27 }
 0x34a   :  { %8763 = vmatpush3.bf16.msra.mxu1 %v8762_v8 }
 0x34b   :  { %8764 = vmatprep.subr.bf16.mxu1 %v9519_v27 }
 0x34e   :  { %8766 = vmatpush3.bf16.msra.mxu1 %v8765_v11 }
 0x34f   :  { %8767 = vmatprep.subr.bf16.mxu1 %v9519_v27 }
 0x352   :  { %8769 = vmatpush3.bf16.msra.mxu1 %v8768_v14 }
 0x353   :  { %8770 = vmatprep.subr.bf16.mxu1 %v9519_v27 }
 0x356   :  { %8772 = vmatpush3.bf16.msra.mxu1 %v8771_v17 }
 0x3fc   :  { %v11587_v18 = vpop.f32.mrb[72].mxu1 }
 0x3fd   :  { %v8604_v19 = vpop.f32.mrb[73].mxu1  ;;  %8675 = vmatmul.mubr.f32.vlgmr.msra.gmra.mrb[76].mxu1 %v11587_v18 }
 0x40c   :  { %v8623_v21 = vpop.f32.mrb[74].mxu1 }
 0x40d   :  { %v6633_v22 = vadd.f32 %v8623_v21, %v7740_v20  ;;  %v6627_v23 = vpop.f32.mrb[75].mxu1 }
 0x40e   :  { %v6628_v24 = vadd.f32 %v7740_v20, %v6627_v23 }
 0x40f   :  { %v6637_v25 = vmax.f32 %v6633_v22, 0.0 }
 0x410   :  { %v6636_v28 = vmax.f32 %v6628_v24, 0.0 }
 0x412   :  { %v8740_v29 = vpack.c.bf16 %v6637_v25, %v6636_v28 }
 0x414   :  { %8742 = vmatpush3.bf16.msk.msra.mxu0 %vm8741_vm5, %v8740_v29 }
 0x415   :  { %8743 = vmatprep.subr.bf16.mxu0 %v9519_v27 }
 0x417   :  { %8629 = vmatmul.mubr.msk.f32.vlgmr.msra.gmra.mrb[72].mxu0 %vm6639_vm6, %v6638_v30 }
 0x418   :  { %8639 = vmatprep.mubr.msk.f32.mxu0 %vm9518_vm0, %v9517_v26  ;;  %8745 = vmatpush3.bf16.msra.mxu0 %v8744_v34 }
 0x419   :  { %8746 = vmatprep.subr.bf16.mxu0 %v9519_v27 }
 0x41c   :  { %8748 = vmatpush3.bf16.msra.mxu0 %v8747_v36 }
 0x41d   :  { %8773 = vmatprep.subr.bf16.mxu0 %v9519_v27 }
 0x4d0   :  { %v11613_v37 = vpop.f32.mrb[76].mxu1 }
 0x4d1   :  { %v8676_v38 = vpop.f32.mrb[77].mxu1 }
 0x4ea   :  { %v6713_v44 = vpop.f32.mrb[72].mxu0 }
 0x4eb   :  { %8640 = vmatmul.mubr.msk.f32.vlgmr.msra.gmra.mrb[74].mxu0 %vm6737_vm7, %v6713_v44  ;;  %v8630_v45 = vpop.f32.mrb[73].mxu0 }
 0x4ec   :  { %8775 = vmatpush3.bf16.msra.mxu0 %v8774_v41  ;;  %8685 = vmatprep.mubr.msk.f32.mxu0 %vm9518_vm0, %v9517_v26 }
 0x4ed   :  { %8776 = vmatprep.subr.bf16.mxu0 %v9519_v27 }
 0x4f0   :  { %8778 = vmatpush3.bf16.msra.mxu0 %v8777_v46 }
 0x4f1   :  { %8779 = vmatprep.subr.bf16.mxu0 %v9519_v27 }
 0x4f3   :  { %8686 = vmatmul.mubr.msk.f32.vlgmr.msra.gmra.mrb[76].mxu0 %vm6737_vm7, %v6713_v44 }
 0x4f4   :  { %8781 = vmatpush3.bf16.msra.mxu0 %v8780_v49  ;;  %8720 = vmatprep.mubr.msk.f32.mxu0 %vm9518_vm0, %v9517_v26  ;;  %v6898_v26 = vld [vmem:[%s11735_s13 + $0x38] sm:$0xff]  ;;  %s9466_s13 = scalar_lea.vmem %s7068_s24, 32 }
 0x4f5   :  { %8782 = vmatprep.subr.bf16.mxu0 %v9519_v27  ;;  %v8789_v57 = vpack.c.bf16 %v6898_v26, %v6897_v56  ;;  %p9467_p0 = scmp.ne.s32.totalorder %s7068_s24, %s9466_s13  ;;  %p9472_p2 = scmp.lt.s32.totalorder %s9466_s13, %s9466_s13 }
 0x4f7   :  { %p9473_p3 = por %p9472_p2, %p9471_p1 }
 0x4f8   :  { %8784 = vmatpush3.bf16.msra.mxu0 %v8783_v52 }
 0x4f9   :  { %8785 = vmatprep.subr.bf16.mxu0 %v9519_v27  ;;  %p9474_p4 = pnand %p9473_p3, %p9467_p0 }
 0x4fc   :  { %8787 = vmatpush3.bf16.msra.mxu0 %v8786_v55 }
 0x4fd   :  { %8788 = vmatprep.subr.bf16.mxu0 %v9519_v27 }
 0x500   :  { %8790 = vmatpush3.bf16.msra.mxu0 %v8789_v57 }
 0x501   :  { %8791 = vmatprep.subr.bf16.mxu0 %v9519_v27 }
 0x504   :  { %8793 = vmatpush3.bf16.msra.mxu0 %v8792_v60 }
 0x505   :  { %8794 = vmatprep.subr.bf16.mxu0 %v9519_v27 }
 0x508   :  { %8796 = vmatpush3.bf16.msra.mxu0 %v8795_v63 }
 0x509   :  { %8797 = vmatprep.subr.bf16.mxu0 %v9519_v27 }
 0x50c   :  { %8799 = vmatpush3.bf16.msra.mxu0 %v8798_v2 }
 0x50d   :  { %8800 = vmatprep.subr.bf16.mxu0 %v9519_v27 }
 0x510   :  { %8802 = vmatpush3.bf16.msra.mxu0 %v8801_v5 }
 0x513   :  { %8721 = vmatmul.mubr.f32.vlgmr.msra.gmra.mrb[78].mxu0 %v11587_v18 }
 0x5be   :  { %v6807_v6 = vpop.f32.mrb[74].mxu0 }
 0x5bf   :  { %v6878_v8 = vadd.f32 %v11613_v37, %v6807_v6  ;;  %v8641_v9 = vpop.f32.mrb[75].mxu0 }
 0x5c1   :  { %v6888_v10 = vadd.f32 %v7746_v7, %v6878_v8 }
 0x5c3   :  { %6890 = vst.msk [vmem:[#allocation2] sm:$0x3] %vm6889_vm8, %v6888_v10 }
 0x5c4   :  { %9477 = shalt.err (!%p9474_p4)
}
 0x5c5   :  { %s9478_s12 = scalar_lea.hbm %s11738_s16, 32 }
 0x5c6   :  { %p9479_p5 = scmp.ne.s32.totalorder %s11738_s16, %s9478_s12  ;;  %p9482_p6 = scmp.lt.u32.totalorder %s9478_s12, %s11738_s16 }
 0x5c8   :  { %p9484_p7 = pnand %p9482_p6, %p9479_p5 }
 0x5ca   :  { %9487 = shalt.err (!%p9484_p7)
}
 0x5cb   :  { %7070 = dma.vmem_to_hbm [thread:$0]  %s7068_s24, 32, %s11738_s16, [#allocation3]   ;;  %v6977_v27 = vpop.f32.mrb[76].mxu0  ;;  %v7748_v13 = vld [vmem:[%s11737_s15] ss:$0 sm:$0xff]  ;;  %vm7059_vm9 = vcmask 33792  }
 0x5cc   :  { %v8687_v11 = vpop.f32.mrb[77].mxu0  ;;  %s9522_s0 = smov [#allocation4]  }
 0x5cd   :  { %s7077_s4 = sshll.u32 %s9522_s0, 4  ;;  %s7078_s4 = int_to_ptr.vmem [resolvable:$true] %s7077_s4 }
 0x5ce   :  { %s9488_s11 = scalar_lea.vmem %s7078_s4, 32  ;;  %p9493_p9 = scmp.lt.s32.totalorder %s7078_s4, %s7078_s4 }
 0x5cf   :  { %p9489_p8 = scmp.ne.s32.totalorder %s7078_s4, %s9488_s11  ;;  %p9494_p10 = scmp.lt.s32.totalorder %s9488_s11, %s9488_s11 }
 0x5d1   :  { %p9495_p11 = por %p9494_p10, %p9493_p9 }
 0x5d3   :  { %p9496_p12 = pnand %p9495_p11, %p9489_p8 }
 0x5e6   :  { %v7047_v12 = vpop.f32.mrb[78].mxu0 }
 0x5e7   :  { %v7048_v14 = vadd.f32 %v7047_v12, %v6977_v27  ;;  %v8722_v15 = vpop.f32.mrb[79].mxu0 }
 0x5e9   :  { %v7058_v16 = vadd.f32 %v7748_v13, %v7048_v14 }
 0x5eb   :  { %7060 = vst.msk [vmem:[#allocation4] sm:$0x3] %vm7059_vm9, %v7058_v16 }
 0x5ec   :  { %9499 = shalt.err (!%p9496_p12)
}
 0x5ed   :  { %s9500_s6 = scalar_lea.hbm %s11739_s17, 32 }
 0x5ee   :  { %p9501_p13 = scmp.ne.s32.totalorder %s11739_s17, %s9500_s6  ;;  %p9504_p0 = scmp.lt.u32.totalorder %s9500_s6, %s11739_s17 }
 0x5f0   :  { %p9506_p1 = pnand %p9504_p0, %p9501_p13 }
 0x5f2   :  { %9509 = shalt.err (!%p9506_p1)
}
 0x5f3   :  { %7080 = dma.vmem_to_hbm [thread:$0]  %s7078_s4, 32, %s11739_s17, [#allocation5]  }
 0x5f4   :  { %9510 = dma.done.wait [#allocation3], 32  }
 0x5f5   :  { %9511 = vsyncadd [#allocation3], 4294967264 }
 0x5f6   :  { %9512 = dma.done.wait [#allocation5], 32  }
 0x5f7   :  { %9513 = vsyncadd [#allocation5], 4294967264 }
 0x5f8   :  { %7087 = vsyncpa [#allocation3], 1 }
 0x5f9   :  { %7088 = vsyncpa [#allocation5], 1 }

</bundles_post_ra>
